<compile_context>
chip_gen: v5e
topology: v5e:2x2
jax: 0.10.0
libtpu: 0.0.40
codegen_flags: <defaults>
</compile_context>

<pallas_src>
import functools
import math

import numpy as np
import jax
import jax.numpy as jnp
from jax.experimental import pallas as pl
from jax.experimental.pallas import tpu as pltpu


# ------------------------------------------------------------------ parameters

def _kaiming_conv(key, kh, kw, cin, cout):
    # kaiming_normal_(mode='fan_out', nonlinearity='relu'): std = sqrt(2 / fan_out)
    fan_out = cout * kh * kw
    return math.sqrt(2.0 / fan_out) * jax.random.normal(
        key, (kh, kw, cin, cout), jnp.float32)


def _bn_scale_bias(c, eps=1e-5):
    # Fresh BatchNorm2d in eval mode: gamma=1, beta=0, running stats (0, 1).
    gamma = jnp.ones((c,), jnp.float32)
    beta = jnp.zeros((c,), jnp.float32)
    mean = jnp.zeros((c,), jnp.float32)
    var = jnp.ones((c,), jnp.float32)
    scale = gamma / jnp.sqrt(var + eps)
    return scale, beta - mean * scale


def _phase_matrix(H, W):
    """0/1 matrix turning a row-major (H*W, C) activation into its four stride-2 /
    pad-1 phase planes (conv zero-padding rows built in as all-zero rows):
        phases = (P @ x).reshape(4, Hq, Wq, C)
    Plane p = 2*pi + pj holds padded coordinates (2*qi + pi, 2*qj + pj); the 3x3
    stride-2 conv tap (i, j) is then the *static* slice
        phases[(i%2)*2 + (j%2), i//2 : i//2+Ho, j//2 : j//2+Wo].
    """
    Hq, Wq = (H + 3) // 2, (W + 3) // 2
    P = np.zeros((4 * Hq * Wq, H * W), np.float32)
    for pi in range(2):
        for pj in range(2):
            for qi in range(Hq):
                for qj in range(Wq):
                    dh, dw = 2 * qi + pi - 1, 2 * qj + pj - 1
                    if 0 <= dh < H and 0 <= dw < W:
                        row = ((pi * 2 + pj) * Hq + qi) * Wq + qj
                        P[row, dh * W + dw] = 1.0
    return jnp.asarray(P), Hq, Wq


def init_params(key, layers=(1, 1, 1, 1), num_classes=110, img_hw=32):
    keys = iter(jax.random.split(key, 64))
    p = {'num_classes': num_classes}

    # stem: 7x7/s2 conv (Cin == 1) folded with BN -> a single (49, 32) matmul weight
    w = _kaiming_conv(next(keys), 7, 7, 1, 32)
    s, b = _bn_scale_bias(32)
    p['stem_w'] = (w * s[None, None, None, :]).reshape(49, 32).astype(jnp.bfloat16)
    p['stem_b'] = b.reshape(1, 32)

    stem_ho = (img_hw + 2 * 3 - 7) // 2 + 1          # 16 for a 32x32 input
    assert stem_ho % 2 == 0, "fused maxpool path assumes an even stem output"
    pool_ho = stem_ho // 2                           # MaxPool2d(3, 2, 1) output
    p['stem_ho'] = stem_ho
    p['pool_ho'] = pool_ho

    # BasicBlock stacks; layer strides (1, 2, 2, 3) as in the reference model.
    inplanes = 32
    H = W = pool_ho
    blocks = []
    for planes, nblocks, stride0 in zip((32, 64, 128, 256), layers, (1, 2, 2, 3)):
        for bi in range(nblocks):
            stride = stride0 if bi == 0 else 1
            Ho = (H - 1) // stride + 1
            Wo = (W - 1) // stride + 1
            has_down = (stride != 1) or (inplanes != planes)
            blk = dict(stride=stride, H=H, W=W, Ho=Ho, Wo=Wo,
                       cin=inplanes, planes=planes, has_down=has_down,
                       Hq=0, Wq=0)
            if stride == 1:
                blk['kind'] = 'halo'
                # TODO(synk): stride-1 projection shortcut never occurs in this model.
                assert not has_down
            elif Ho == 1 and Wo == 1:
                blk['kind'] = 'halo'      # single output position: stride is irrelevant
            elif stride == 2:
                blk['kind'] = 'phase'
                blk['P'], blk['Hq'], blk['Wq'] = _phase_matrix(H, W)
            else:
                raise NotImplementedError("unsupported stride / shape combination")

            s1, b1 = _bn_scale_bias(planes)
            w1 = _kaiming_conv(next(keys), 3, 3, inplanes, planes)
            blk['w1'] = ((w1 * s1[None, None, None, :])
                         .reshape(9 * inplanes, planes).astype(jnp.bfloat16))
            blk['b1'] = b1.reshape(1, planes)
            s2, b2 = _bn_scale_bias(planes)
            w2 = _kaiming_conv(next(keys), 3, 3, planes, planes)
            blk['w2'] = ((w2 * s2[None, None, None, :])
                         .reshape(9 * planes, planes).astype(jnp.bfloat16))
            blk['b2'] = b2.reshape(1, planes)
            if has_down:
                sd, bd = _bn_scale_bias(planes)
                wd = _kaiming_conv(next(keys), 1, 1, inplanes, planes)
                blk['wd'] = (wd * sd[None, None, None, :]).reshape(inplanes, planes)
                blk['bd'] = bd.reshape(1, planes)
            blocks.append(blk)
            inplanes = planes
            H, W = Ho, Wo
    p['blocks'] = blocks

    # FC head (nn.Linear default init); output lane-padded num_classes -> 128.
    fan_in = inplanes
    bound = 1.0 / math.sqrt(fan_in)
    kw_, kb_ = jax.random.split(next(keys))
    n_pad = ((num_classes + 127) // 128) * 128
    fc_w = jax.random.uniform(kw_, (fan_in, num_classes), jnp.float32, -bound, bound)
    fc_b = jax.random.uniform(kb_, (num_classes,), jnp.float32, -bound, bound)
    p['fc_w'] = jnp.zeros((fan_in, n_pad), jnp.float32).at[:, :num_classes].set(fc_w)
    p['fc_b'] = jnp.zeros((1, n_pad), jnp.float32).at[:, :num_classes].set(fc_b)
    return p


# ---------------------------------------------------------------- fused kernel

def _conv_taps(scr, Ho, Wo, c, kind):
    """The nine 3x3 taps as (Ho*Wo, c) tiles, concatenated along K (one dot later)."""
    cols = []
    for i in range(3):
        for j in range(3):
            if kind == 'phase':
                v = scr[(i % 2) * 2 + (j % 2),
                        i // 2:i // 2 + Ho, j // 2:j // 2 + Wo, :]
            else:
                v = scr[i:i + Ho, j:j + Wo, :]
            cols.append(v.reshape(Ho * Wo, c))
    return jnp.concatenate(cols, axis=-1)


def _resnet_kernel(*refs, meta, pool_hw, n_pad):
    it = iter(refs)
    a_ref = next(it)
    sw_ref, sb_ref = next(it), next(it)
    blk_w = []
    for m in meta:
        d = {'w1': next(it), 'b1': next(it), 'w2': next(it), 'b2': next(it)}
        if m['has_down']:
            d['wd'], d['bd'] = next(it), next(it)
        if m['kind'] == 'phase':
            d['P'] = next(it)
        blk_w.append(d)
    fcw_ref, fcb_ref = next(it), next(it)
    o_ref = next(it)
    pool_scr = next(it)
    blk_scr = [(next(it), next(it)) for _ in meta]

    Hp = Wp = pool_hw
    npp = Hp * Wp

    # ---- stem conv (+ folded bn1) + relu: one (4*Hp*Wp, 49) x (49, 32) matmul.
    # Rows arrive phase-major w.r.t. the following stride-2 maxpool.
    a = a_ref[0].astype(jnp.bfloat16)
    stem = jnp.dot(a, sw_ref[...], preferred_element_type=jnp.float32)
    stem = jnp.maximum(stem + sb_ref[...], 0.0)               # (4*npp, 32) f32

    # ---- maxpool 3x3 / stride 2 / pad 1: 9 static taps on a tiny VMEM scratch.
    # Zero padding is exact here because the input is post-ReLU (>= 0).
    pool_scr[...] = jnp.zeros_like(pool_scr)
    for k in range(4):
        ph, pw = k // 2, k % 2
        plane = stem[k * npp:(k + 1) * npp, :].reshape(Hp, Wp, stem.shape[-1])
        pool_scr[k, 1 - ph:1 - ph + Hp, 1 - pw:1 - pw + Wp, :] = plane
    x_img = None
    for i in range(3):
        for j in range(3):
            v = pool_scr[(i % 2) * 2 + (j % 2),
                         i // 2:i // 2 + Hp, j // 2:j // 2 + Wp, :]
            x_img = v if x_img is None else jnp.maximum(x_img, v)
    x = x_img.reshape(npp, x_img.shape[-1])                   # (64, 32) f32

    # ---- BasicBlocks: conv1+bn1+relu -> conv2+bn2 (+downsample) + add + relu.
    for m, wt, (scr_in, scr_h) in zip(meta, blk_w, blk_scr):
        H, W, Ho, Wo = m['H'], m['W'], m['Ho'], m['Wo']
        cin, planes = m['cin'], m['planes']
        Mo = Ho * Wo

        if m['kind'] == 'phase':
            # stride-2 conv1 input: zero-padded phase planes via one constant
            # 0/1 selection matmul (stays on the MXU, never leaves VMEM).
            scr_in[...] = jnp.dot(
                wt['P'][...], x, preferred_element_type=jnp.float32
            ).reshape(4, m['Hq'], m['Wq'], cin)
        else:
            scr_in[...] = jnp.zeros_like(scr_in)
            scr_in[1:H + 1, 1:W + 1, :] = x.reshape(H, W, cin)

        # conv1 (+ folded bn1) + relu: ONE long-K bf16 matmul over 9 taps.
        a1 = _conv_taps(scr_in, Ho, Wo, cin, m['kind']).astype(jnp.bfloat16)
        h = jnp.dot(a1, wt['w1'][...], preferred_element_type=jnp.float32)
        h = jnp.maximum(h + wt['b1'][...], 0.0)               # (Mo, planes) f32

        # identity path (kept in f32, matching the reference numerics).
        if m['has_down']:
            if m['kind'] == 'phase':
                ident_in = scr_in[3, 0:Ho, 0:Wo, :].reshape(Mo, cin)   # (1,1) tap
            else:
                ident_in = scr_in[1:2, 1:2, :].reshape(1, cin)         # 1x1 output
            identity = jnp.dot(ident_in, wt['wd'][...],
                               preferred_element_type=jnp.float32) + wt['bd'][...]
        else:
            identity = x

        # conv2 (+ folded bn2): ONE long-K bf16 matmul over 9 taps of h.
        scr_h[...] = jnp.zeros_like(scr_h)
        scr_h[1:Ho + 1, 1:Wo + 1, :] = h.reshape(Ho, Wo, planes)
        a2 = _conv_taps(scr_h, Ho, Wo, planes, 'halo').astype(jnp.bfloat16)
        out = jnp.dot(a2, wt['w2'][...], preferred_element_type=jnp.float32)
        x = jnp.maximum(out + wt['b2'][...] + identity, 0.0)  # (Mo, planes) f32

    # ---- global average pool + FC (lane-dense padded logits).
    pooled = jnp.mean(x, axis=0, keepdims=True)               # (1, 256)
    logits = jnp.dot(pooled, fcw_ref[...],
                     preferred_element_type=jnp.float32) + fcb_ref[...]
    o_ref[...] = logits.reshape(1, 1, n_pad)


# -------------------------------------------------------------------- forward

def resnet_forward(params, x_nchw):
    x = jnp.transpose(x_nchw, (0, 2, 3, 1)).astype(jnp.float32)   # NCHW -> NHWC
    B = x.shape[0]
    blocks = params['blocks']
    stem_ho = params['stem_ho']
    pool_ho = params['pool_ho']
    n_pad = params['fc_w'].shape[1]
    num_classes = params['num_classes']

    # Stem im2col (Cin == 1, K = 49, ~100 KB), rows ordered phase-major so the
    # in-kernel maxpool sees its stride-2 phases as static slices.
    xp = jnp.pad(x, ((0, 0), (3, 3), (3, 3), (0, 0)))
    cols = jnp.concatenate(
        [xp[:, i:i + 2 * stem_ho:2, j:j + 2 * stem_ho:2, :]
         for i in range(7) for j in range(7)], axis=-1)           # (B, 16, 16, 49)
    a_list = [cols[:, (1 - ph)::2, (1 - pw)::2, :]
              for ph in range(2) for pw in range(2)]
    A = jnp.stack(a_list, axis=1).reshape(B, 4 * pool_ho * pool_ho, 49)

    # Assemble the single fused pallas_call.
    flat_inputs, in_specs = [], []

    def add_batched(arr):
        nd = arr.ndim
        flat_inputs.append(arr)
        in_specs.append(pl.BlockSpec((1,) + arr.shape[1:],
                                     lambda b, nd=nd: (b,) + (0,) * (nd - 1)))

    def add_const(arr):
        nd = arr.ndim
        flat_inputs.append(arr)
        in_specs.append(pl.BlockSpec(arr.shape, lambda b, nd=nd: (0,) * nd))

    add_batched(A)
    add_const(params['stem_w'])
    add_const(params['stem_b'])
    for blk in blocks:
        add_const(blk['w1']); add_const(blk['b1'])
        add_const(blk['w2']); add_const(blk['b2'])
        if blk['has_down']:
            add_const(blk['wd']); add_const(blk['bd'])
        if blk['kind'] == 'phase':
            add_const(blk['P'])
    add_const(params['fc_w'])
    add_const(params['fc_b'])

    scratch_shapes = [pltpu.VMEM((4, pool_ho + 1, pool_ho + 1, 32), jnp.float32)]
    for blk in blocks:
        if blk['kind'] == 'phase':
            scratch_shapes.append(
                pltpu.VMEM((4, blk['Hq'], blk['Wq'], blk['cin']), jnp.float32))
        else:
            scratch_shapes.append(
                pltpu.VMEM((blk['H'] + 2, blk['W'] + 2, blk['cin']), jnp.float32))
        scratch_shapes.append(
            pltpu.VMEM((blk['Ho'] + 2, blk['Wo'] + 2, blk['planes']), jnp.float32))

    meta = [dict(kind=b['kind'], H=b['H'], W=b['W'], Ho=b['Ho'], Wo=b['Wo'],
                 cin=b['cin'], planes=b['planes'], has_down=b['has_down'],
                 Hq=b['Hq'], Wq=b['Wq']) for b in blocks]

    kern = functools.partial(_resnet_kernel, meta=meta, pool_hw=pool_ho,
                             n_pad=n_pad)
    out = pl.pallas_call(
        kern,
        out_shape=jax.ShapeDtypeStruct((B, 1, n_pad), jnp.float32),
        grid=(B,),
        in_specs=in_specs,
        out_specs=pl.BlockSpec((1, 1, n_pad), lambda b: (b, 0, 0)),
        scratch_shapes=scratch_shapes,
        compiler_params=pltpu.CompilerParams(
            dimension_semantics=("parallel",),     # batch split across v7x TCs
            vmem_limit_bytes=32 * 1024 * 1024),
    )(*flat_inputs)
    return out.reshape(B, n_pad)[:, :num_classes]


# ------------------------------------------------------------------------ main

if __name__ == "__main__":
    key = jax.random.PRNGKey(0)
    k_x, k_p = jax.random.split(key)
    # PyTorch-style NCHW input: batch=2, 1 channel, 32x32 spatial.
    x = jax.random.normal(k_x, (2, 1, 32, 32), jnp.float32)
    params = init_params(k_p, layers=(1, 1, 1, 1), num_classes=110)

    fwd = jax.jit(functools.partial(resnet_forward, params))
    out = jax.block_until_ready(fwd(x))
    assert out.shape == (2, 110), out.shape
    assert bool(jnp.all(jnp.isfinite(out)))
    print("KERNEL_OK")
</pallas_src>

<mosaic_0001>
module attributes {stable_mosaic.version = 11 : i64} {
  func.func @_resnet_kernel(%arg0: i32, %arg1: memref<1x256x49xf32, #tpu.memory_space<vmem>>, %arg2: memref<49x32xbf16, #tpu.memory_space<vmem>>, %arg3: memref<1x32xf32, #tpu.memory_space<vmem>>, %arg4: memref<288x32xbf16, #tpu.memory_space<vmem>>, %arg5: memref<1x32xf32, #tpu.memory_space<vmem>>, %arg6: memref<288x32xbf16, #tpu.memory_space<vmem>>, %arg7: memref<1x32xf32, #tpu.memory_space<vmem>>, %arg8: memref<288x64xbf16, #tpu.memory_space<vmem>>, %arg9: memref<1x64xf32, #tpu.memory_space<vmem>>, %arg10: memref<576x64xbf16, #tpu.memory_space<vmem>>, %arg11: memref<1x64xf32, #tpu.memory_space<vmem>>, %arg12: memref<32x64xf32, #tpu.memory_space<vmem>>, %arg13: memref<1x64xf32, #tpu.memory_space<vmem>>, %arg14: memref<100x64xf32, #tpu.memory_space<vmem>>, %arg15: memref<576x128xbf16, #tpu.memory_space<vmem>>, %arg16: memref<1x128xf32, #tpu.memory_space<vmem>>, %arg17: memref<1152x128xbf16, #tpu.memory_space<vmem>>, %arg18: memref<1x128xf32, #tpu.memory_space<vmem>>, %arg19: memref<64x128xf32, #tpu.memory_space<vmem>>, %arg20: memref<1x128xf32, #tpu.memory_space<vmem>>, %arg21: memref<36x16xf32, #tpu.memory_space<vmem>>, %arg22: memref<1152x256xbf16, #tpu.memory_space<vmem>>, %arg23: memref<1x256xf32, #tpu.memory_space<vmem>>, %arg24: memref<2304x256xbf16, #tpu.memory_space<vmem>>, %arg25: memref<1x256xf32, #tpu.memory_space<vmem>>, %arg26: memref<128x256xf32, #tpu.memory_space<vmem>>, %arg27: memref<1x256xf32, #tpu.memory_space<vmem>>, %arg28: memref<256x128xf32, #tpu.memory_space<vmem>>, %arg29: memref<1x128xf32, #tpu.memory_space<vmem>>, %arg30: memref<1x1x128xf32, #tpu.memory_space<vmem>>, %arg31: memref<4x9x9x32xf32, #tpu.memory_space<vmem>>, %arg32: memref<10x10x32xf32, #tpu.memory_space<vmem>>, %arg33: memref<10x10x32xf32, #tpu.memory_space<vmem>>, %arg34: memref<4x5x5x32xf32, #tpu.memory_space<vmem>>, %arg35: memref<6x6x64xf32, #tpu.memory_space<vmem>>, %arg36: memref<4x3x3x64xf32, #tpu.memory_space<vmem>>, %arg37: memref<4x4x128xf32, #tpu.memory_space<vmem>>, %arg38: memref<4x4x128xf32, #tpu.memory_space<vmem>>, %arg39: memref<3x3x256xf32, #tpu.memory_space<vmem>>) attributes {dimension_semantics = [#tpu.dimension_semantics<parallel>], iteration_bounds = array<i64: 2>, scalar_prefetch = 0 : i64, scratch_operands = 9 : i64, tpu.core_type = #tpu.core_type<tc>, window_params = [{transform_indices = @transform_0, window_bounds = array<i64: 1, 256, 49>}, {pipeline_mode = #tpu.pipeline_mode<synchronous>, transform_indices = @transform_1, window_bounds = array<i64: 49, 32>}, {pipeline_mode = #tpu.pipeline_mode<synchronous>, transform_indices = @transform_2, window_bounds = array<i64: 1, 32>}, {pipeline_mode = #tpu.pipeline_mode<synchronous>, transform_indices = @transform_3, window_bounds = array<i64: 288, 32>}, {pipeline_mode = #tpu.pipeline_mode<synchronous>, transform_indices = @transform_4, window_bounds = array<i64: 1, 32>}, {pipeline_mode = #tpu.pipeline_mode<synchronous>, transform_indices = @transform_5, window_bounds = array<i64: 288, 32>}, {pipeline_mode = #tpu.pipeline_mode<synchronous>, transform_indices = @transform_6, window_bounds = array<i64: 1, 32>}, {pipeline_mode = #tpu.pipeline_mode<synchronous>, transform_indices = @transform_7, window_bounds = array<i64: 288, 64>}, {pipeline_mode = #tpu.pipeline_mode<synchronous>, transform_indices = @transform_8, window_bounds = array<i64: 1, 64>}, {pipeline_mode = #tpu.pipeline_mode<synchronous>, transform_indices = @transform_9, window_bounds = array<i64: 576, 64>}, {pipeline_mode = #tpu.pipeline_mode<synchronous>, transform_indices = @transform_10, window_bounds = array<i64: 1, 64>}, {pipeline_mode = #tpu.pipeline_mode<synchronous>, transform_indices = @transform_11, window_bounds = array<i64: 32, 64>}, {pipeline_mode = #tpu.pipeline_mode<synchronous>, transform_indices = @transform_12, window_bounds = array<i64: 1, 64>}, {pipeline_mode = #tpu.pipeline_mode<synchronous>, transform_indices = @transform_13, window_bounds = array<i64: 100, 64>}, {pipeline_mode = #tpu.pipeline_mode<synchronous>, transform_indices = @transform_14, window_bounds = array<i64: 576, 128>}, {pipeline_mode = #tpu.pipeline_mode<synchronous>, transform_indices = @transform_15, window_bounds = array<i64: 1, 128>}, {pipeline_mode = #tpu.pipeline_mode<synchronous>, transform_indices = @transform_16, window_bounds = array<i64: 1152, 128>}, {pipeline_mode = #tpu.pipeline_mode<synchronous>, transform_indices = @transform_17, window_bounds = array<i64: 1, 128>}, {pipeline_mode = #tpu.pipeline_mode<synchronous>, transform_indices = @transform_18, window_bounds = array<i64: 64, 128>}, {pipeline_mode = #tpu.pipeline_mode<synchronous>, transform_indices = @transform_19, window_bounds = array<i64: 1, 128>}, {pipeline_mode = #tpu.pipeline_mode<synchronous>, transform_indices = @transform_20, window_bounds = array<i64: 36, 16>}, {pipeline_mode = #tpu.pipeline_mode<synchronous>, transform_indices = @transform_21, window_bounds = array<i64: 1152, 256>}, {pipeline_mode = #tpu.pipeline_mode<synchronous>, transform_indices = @transform_22, window_bounds = array<i64: 1, 256>}, {pipeline_mode = #tpu.pipeline_mode<synchronous>, transform_indices = @transform_23, window_bounds = array<i64: 2304, 256>}, {pipeline_mode = #tpu.pipeline_mode<synchronous>, transform_indices = @transform_24, window_bounds = array<i64: 1, 256>}, {pipeline_mode = #tpu.pipeline_mode<synchronous>, transform_indices = @transform_25, window_bounds = array<i64: 128, 256>}, {pipeline_mode = #tpu.pipeline_mode<synchronous>, transform_indices = @transform_26, window_bounds = array<i64: 1, 256>}, {pipeline_mode = #tpu.pipeline_mode<synchronous>, transform_indices = @transform_27, window_bounds = array<i64: 256, 128>}, {pipeline_mode = #tpu.pipeline_mode<synchronous>, transform_indices = @transform_28, window_bounds = array<i64: 1, 128>}, {transform_indices = @transform_29, window_bounds = array<i64: 1, 1, 128>}]} {
    %c0 = arith.constant 0 : index
    %c0_0 = arith.constant 0 : index
    %c0_1 = arith.constant 0 : index
    %0 = vector.load %arg1[%c0, %c0_0, %c0_1] : memref<1x256x49xf32, #tpu.memory_space<vmem>>, vector<1x256x49xf32>
    %1 = vector.shape_cast %0 : vector<1x256x49xf32> to vector<256x49xf32>
    %2 = arith.truncf %1 : vector<256x49xf32> to vector<256x49xbf16>
    %c0_2 = arith.constant 0 : index
    %c0_3 = arith.constant 0 : index
    %3 = vector.load %arg2[%c0_2, %c0_3] : memref<49x32xbf16, #tpu.memory_space<vmem>>, vector<49x32xbf16>
    %cst = arith.constant dense<0.000000e+00> : vector<256x32xf32>
    %4 = tpu.matmul %2, %3, %cst {dimension_numbers = #tpu.dot_dimension_numbers<[1], [0], [0], [1], [0, 0, 1, 1], [], []>} : vector<256x49xbf16>, vector<49x32xbf16>, vector<256x32xf32> -> vector<256x32xf32>
    %c0_4 = arith.constant 0 : index
    %c0_5 = arith.constant 0 : index
    %5 = vector.load %arg3[%c0_4, %c0_5] : memref<1x32xf32, #tpu.memory_space<vmem>>, vector<1x32xf32>
    %6 = vector.broadcast %5 : vector<1x32xf32> to vector<256x32xf32>
    %7 = arith.addf %4, %6 : vector<256x32xf32>
    %cst_6 = arith.constant 0.000000e+00 : f32
    %8 = vector.broadcast %cst_6 : f32 to vector<256x32xf32>
    %9 = arith.maximumf %7, %8 : vector<256x32xf32>
    %cst_7 = arith.constant 0.000000e+00 : f32
    %10 = vector.broadcast %cst_7 : f32 to vector<4x9x9x32xf32>
    %c0_8 = arith.constant 0 : index
    %c0_9 = arith.constant 0 : index
    %c0_10 = arith.constant 0 : index
    %c0_11 = arith.constant 0 : index
    %11 = vector.load %arg31[%c0_8, %c0_9, %c0_10, %c0_11] : memref<4x9x9x32xf32, #tpu.memory_space<vmem>>, vector<4x9x9x32xf32>
    tpu.vector_store %arg31[%c0_8, %c0_9, %c0_10, %c0_11], %10 {strides = array<i32>} : memref<4x9x9x32xf32, #tpu.memory_space<vmem>>, vector<4x9x9x32xf32>,
    %12 = vector.extract_strided_slice %9 {offsets = [0, 0], sizes = [64, 32], strides = [1, 1]} : vector<256x32xf32> to vector<64x32xf32>
    %13 = vector.shape_cast %12 : vector<64x32xf32> to vector<8x8x32xf32>
    %c0_12 = arith.constant 0 : index
    %c1 = arith.constant 1 : index
    %c1_13 = arith.constant 1 : index
    %c0_14 = arith.constant 0 : index
    %14 = vector.load %arg31[%c0_12, %c1, %c1_13, %c0_14] : memref<4x9x9x32xf32, #tpu.memory_space<vmem>>, vector<1x8x8x32xf32>
    %15 = vector.shape_cast %14 : vector<1x8x8x32xf32> to vector<8x8x32xf32>
    %16 = vector.shape_cast %13 : vector<8x8x32xf32> to vector<1x8x8x32xf32>
    tpu.vector_store %arg31[%c0_12, %c1, %c1_13, %c0_14], %16 {strides = array<i32>} : memref<4x9x9x32xf32, #tpu.memory_space<vmem>>, vector<1x8x8x32xf32>,
    %17 = vector.extract_strided_slice %9 {offsets = [64, 0], sizes = [64, 32], strides = [1, 1]} : vector<256x32xf32> to vector<64x32xf32>
    %18 = vector.shape_cast %17 : vector<64x32xf32> to vector<8x8x32xf32>
    %c1_15 = arith.constant 1 : index
    %c1_16 = arith.constant 1 : index
    %c0_17 = arith.constant 0 : index
    %c0_18 = arith.constant 0 : index
    %19 = vector.load %arg31[%c1_15, %c1_16, %c0_17, %c0_18] : memref<4x9x9x32xf32, #tpu.memory_space<vmem>>, vector<1x8x8x32xf32>
    %20 = vector.shape_cast %19 : vector<1x8x8x32xf32> to vector<8x8x32xf32>
    %21 = vector.shape_cast %18 : vector<8x8x32xf32> to vector<1x8x8x32xf32>
    tpu.vector_store %arg31[%c1_15, %c1_16, %c0_17, %c0_18], %21 {strides = array<i32>} : memref<4x9x9x32xf32, #tpu.memory_space<vmem>>, vector<1x8x8x32xf32>,
    %22 = vector.extract_strided_slice %9 {offsets = [128, 0], sizes = [64, 32], strides = [1, 1]} : vector<256x32xf32> to vector<64x32xf32>
    %23 = vector.shape_cast %22 : vector<64x32xf32> to vector<8x8x32xf32>
    %c2 = arith.constant 2 : index
    %c0_19 = arith.constant 0 : index
    %c1_20 = arith.constant 1 : index
    %c0_21 = arith.constant 0 : index
    %24 = vector.load %arg31[%c2, %c0_19, %c1_20, %c0_21] : memref<4x9x9x32xf32, #tpu.memory_space<vmem>>, vector<1x8x8x32xf32>
    %25 = vector.shape_cast %24 : vector<1x8x8x32xf32> to vector<8x8x32xf32>
    %26 = vector.shape_cast %23 : vector<8x8x32xf32> to vector<1x8x8x32xf32>
    tpu.vector_store %arg31[%c2, %c0_19, %c1_20, %c0_21], %26 {strides = array<i32>} : memref<4x9x9x32xf32, #tpu.memory_space<vmem>>, vector<1x8x8x32xf32>,
    %27 = vector.extract_strided_slice %9 {offsets = [192, 0], sizes = [64, 32], strides = [1, 1]} : vector<256x32xf32> to vector<64x32xf32>
    %28 = vector.shape_cast %27 : vector<64x32xf32> to vector<8x8x32xf32>
    %c3 = arith.constant 3 : index
    %c0_22 = arith.constant 0 : index
    %c0_23 = arith.constant 0 : index
    %c0_24 = arith.constant 0 : index
    %29 = vector.load %arg31[%c3, %c0_22, %c0_23, %c0_24] : memref<4x9x9x32xf32, #tpu.memory_space<vmem>>, vector<1x8x8x32xf32>
    %30 = vector.shape_cast %29 : vector<1x8x8x32xf32> to vector<8x8x32xf32>
    %31 = vector.shape_cast %28 : vector<8x8x32xf32> to vector<1x8x8x32xf32>
    tpu.vector_store %arg31[%c3, %c0_22, %c0_23, %c0_24], %31 {strides = array<i32>} : memref<4x9x9x32xf32, #tpu.memory_space<vmem>>, vector<1x8x8x32xf32>,
    %c0_25 = arith.constant 0 : index
    %c0_26 = arith.constant 0 : index
    %c0_27 = arith.constant 0 : index
    %c0_28 = arith.constant 0 : index
    %32 = vector.load %arg31[%c0_25, %c0_26, %c0_27, %c0_28] : memref<4x9x9x32xf32, #tpu.memory_space<vmem>>, vector<1x8x8x32xf32>
    %33 = vector.shape_cast %32 : vector<1x8x8x32xf32> to vector<8x8x32xf32>
    %c1_29 = arith.constant 1 : index
    %c0_30 = arith.constant 0 : index
    %c0_31 = arith.constant 0 : index
    %c0_32 = arith.constant 0 : index
    %34 = vector.load %arg31[%c1_29, %c0_30, %c0_31, %c0_32] : memref<4x9x9x32xf32, #tpu.memory_space<vmem>>, vector<1x8x8x32xf32>
    %35 = vector.shape_cast %34 : vector<1x8x8x32xf32> to vector<8x8x32xf32>
    %36 = arith.maximumf %33, %35 : vector<8x8x32xf32>
    %c0_33 = arith.constant 0 : index
    %c0_34 = arith.constant 0 : index
    %c1_35 = arith.constant 1 : index
    %c0_36 = arith.constant 0 : index
    %37 = vector.load %arg31[%c0_33, %c0_34, %c1_35, %c0_36] : memref<4x9x9x32xf32, #tpu.memory_space<vmem>>, vector<1x8x8x32xf32>
    %38 = vector.shape_cast %37 : vector<1x8x8x32xf32> to vector<8x8x32xf32>
    %39 = arith.maximumf %36, %38 : vector<8x8x32xf32>
    %c2_37 = arith.constant 2 : index
    %c0_38 = arith.constant 0 : index
    %c0_39 = arith.constant 0 : index
    %c0_40 = arith.constant 0 : index
    %40 = vector.load %arg31[%c2_37, %c0_38, %c0_39, %c0_40] : memref<4x9x9x32xf32, #tpu.memory_space<vmem>>, vector<1x8x8x32xf32>
    %41 = vector.shape_cast %40 : vector<1x8x8x32xf32> to vector<8x8x32xf32>
    %42 = arith.maximumf %39, %41 : vector<8x8x32xf32>
    %c3_41 = arith.constant 3 : index
    %c0_42 = arith.constant 0 : index
    %c0_43 = arith.constant 0 : index
    %c0_44 = arith.constant 0 : index
    %43 = vector.load %arg31[%c3_41, %c0_42, %c0_43, %c0_44] : memref<4x9x9x32xf32, #tpu.memory_space<vmem>>, vector<1x8x8x32xf32>
    %44 = vector.shape_cast %43 : vector<1x8x8x32xf32> to vector<8x8x32xf32>
    %45 = arith.maximumf %42, %44 : vector<8x8x32xf32>
    %c2_45 = arith.constant 2 : index
    %c0_46 = arith.constant 0 : index
    %c1_47 = arith.constant 1 : index
    %c0_48 = arith.constant 0 : index
    %46 = vector.load %arg31[%c2_45, %c0_46, %c1_47, %c0_48] : memref<4x9x9x32xf32, #tpu.memory_space<vmem>>, vector<1x8x8x32xf32>
    %47 = vector.shape_cast %46 : vector<1x8x8x32xf32> to vector<8x8x32xf32>
    %48 = arith.maximumf %45, %47 : vector<8x8x32xf32>
    %c0_49 = arith.constant 0 : index
    %c1_50 = arith.constant 1 : index
    %c0_51 = arith.constant 0 : index
    %c0_52 = arith.constant 0 : index
    %49 = vector.load %arg31[%c0_49, %c1_50, %c0_51, %c0_52] : memref<4x9x9x32xf32, #tpu.memory_space<vmem>>, vector<1x8x8x32xf32>
    %50 = vector.shape_cast %49 : vector<1x8x8x32xf32> to vector<8x8x32xf32>
    %51 = arith.maximumf %48, %50 : vector<8x8x32xf32>
    %c1_53 = arith.constant 1 : index
    %c1_54 = arith.constant 1 : index
    %c0_55 = arith.constant 0 : index
    %c0_56 = arith.constant 0 : index
    %52 = vector.load %arg31[%c1_53, %c1_54, %c0_55, %c0_56] : memref<4x9x9x32xf32, #tpu.memory_space<vmem>>, vector<1x8x8x32xf32>
    %53 = vector.shape_cast %52 : vector<1x8x8x32xf32> to vector<8x8x32xf32>
    %54 = arith.maximumf %51, %53 : vector<8x8x32xf32>
    %c0_57 = arith.constant 0 : index
    %c1_58 = arith.constant 1 : index
    %c1_59 = arith.constant 1 : index
    %c0_60 = arith.constant 0 : index
    %55 = vector.load %arg31[%c0_57, %c1_58, %c1_59, %c0_60] : memref<4x9x9x32xf32, #tpu.memory_space<vmem>>, vector<1x8x8x32xf32>
    %56 = vector.shape_cast %55 : vector<1x8x8x32xf32> to vector<8x8x32xf32>
    %57 = arith.maximumf %54, %56 : vector<8x8x32xf32>
    %58 = vector.shape_cast %57 : vector<8x8x32xf32> to vector<64x32xf32>
    %cst_61 = arith.constant 0.000000e+00 : f32
    %59 = vector.broadcast %cst_61 : f32 to vector<10x10x32xf32>
    %c0_62 = arith.constant 0 : index
    %c0_63 = arith.constant 0 : index
    %c0_64 = arith.constant 0 : index
    %60 = vector.load %arg32[%c0_62, %c0_63, %c0_64] : memref<10x10x32xf32, #tpu.memory_space<vmem>>, vector<10x10x32xf32>
    tpu.vector_store %arg32[%c0_62, %c0_63, %c0_64], %59 {strides = array<i32>} : memref<10x10x32xf32, #tpu.memory_space<vmem>>, vector<10x10x32xf32>,
    %61 = vector.shape_cast %58 : vector<64x32xf32> to vector<8x8x32xf32>
    %c1_65 = arith.constant 1 : index
    %c1_66 = arith.constant 1 : index
    %c0_67 = arith.constant 0 : index
    %62 = vector.load %arg32[%c1_65, %c1_66, %c0_67] : memref<10x10x32xf32, #tpu.memory_space<vmem>>, vector<8x8x32xf32>
    tpu.vector_store %arg32[%c1_65, %c1_66, %c0_67], %61 {strides = array<i32>} : memref<10x10x32xf32, #tpu.memory_space<vmem>>, vector<8x8x32xf32>,
    %c0_68 = arith.constant 0 : index
    %c0_69 = arith.constant 0 : index
    %c0_70 = arith.constant 0 : index
    %63 = vector.load %arg32[%c0_68, %c0_69, %c0_70] : memref<10x10x32xf32, #tpu.memory_space<vmem>>, vector<8x8x32xf32>
    %64 = vector.shape_cast %63 : vector<8x8x32xf32> to vector<64x32xf32>
    %c0_71 = arith.constant 0 : index
    %c1_72 = arith.constant 1 : index
    %c0_73 = arith.constant 0 : index
    %65 = vector.load %arg32[%c0_71, %c1_72, %c0_73] : memref<10x10x32xf32, #tpu.memory_space<vmem>>, vector<8x8x32xf32>
    %66 = vector.shape_cast %65 : vector<8x8x32xf32> to vector<64x32xf32>
    %c0_74 = arith.constant 0 : index
    %c2_75 = arith.constant 2 : index
    %c0_76 = arith.constant 0 : index
    %67 = vector.load %arg32[%c0_74, %c2_75, %c0_76] : memref<10x10x32xf32, #tpu.memory_space<vmem>>, vector<8x8x32xf32>
    %68 = vector.shape_cast %67 : vector<8x8x32xf32> to vector<64x32xf32>
    %c1_77 = arith.constant 1 : index
    %c0_78 = arith.constant 0 : index
    %c0_79 = arith.constant 0 : index
    %69 = vector.load %arg32[%c1_77, %c0_78, %c0_79] : memref<10x10x32xf32, #tpu.memory_space<vmem>>, vector<8x8x32xf32>
    %70 = vector.shape_cast %69 : vector<8x8x32xf32> to vector<64x32xf32>
    %c1_80 = arith.constant 1 : index
    %c1_81 = arith.constant 1 : index
    %c0_82 = arith.constant 0 : index
    %71 = vector.load %arg32[%c1_80, %c1_81, %c0_82] : memref<10x10x32xf32, #tpu.memory_space<vmem>>, vector<8x8x32xf32>
    %72 = vector.shape_cast %71 : vector<8x8x32xf32> to vector<64x32xf32>
    %c1_83 = arith.constant 1 : index
    %c2_84 = arith.constant 2 : index
    %c0_85 = arith.constant 0 : index
    %73 = vector.load %arg32[%c1_83, %c2_84, %c0_85] : memref<10x10x32xf32, #tpu.memory_space<vmem>>, vector<8x8x32xf32>
    %74 = vector.shape_cast %73 : vector<8x8x32xf32> to vector<64x32xf32>
    %c2_86 = arith.constant 2 : index
    %c0_87 = arith.constant 0 : index
    %c0_88 = arith.constant 0 : index
    %75 = vector.load %arg32[%c2_86, %c0_87, %c0_88] : memref<10x10x32xf32, #tpu.memory_space<vmem>>, vector<8x8x32xf32>
    %76 = vector.shape_cast %75 : vector<8x8x32xf32> to vector<64x32xf32>
    %c2_89 = arith.constant 2 : index
    %c1_90 = arith.constant 1 : index
    %c0_91 = arith.constant 0 : index
    %77 = vector.load %arg32[%c2_89, %c1_90, %c0_91] : memref<10x10x32xf32, #tpu.memory_space<vmem>>, vector<8x8x32xf32>
    %78 = vector.shape_cast %77 : vector<8x8x32xf32> to vector<64x32xf32>
    %c2_92 = arith.constant 2 : index
    %c2_93 = arith.constant 2 : index
    %c0_94 = arith.constant 0 : index
    %79 = vector.load %arg32[%c2_92, %c2_93, %c0_94] : memref<10x10x32xf32, #tpu.memory_space<vmem>>, vector<8x8x32xf32>
    %80 = vector.shape_cast %79 : vector<8x8x32xf32> to vector<64x32xf32>
    %81 = tpu.concatenate %64, %66, %68, %70, %72, %74, %76, %78, %80 in 1 : vector<64x32xf32>, vector<64x32xf32>, vector<64x32xf32>, vector<64x32xf32>, vector<64x32xf32>, vector<64x32xf32>, vector<64x32xf32>, vector<64x32xf32>, vector<64x32xf32> -> vector<64x288xf32>
    %82 = arith.truncf %81 : vector<64x288xf32> to vector<64x288xbf16>
    %c0_95 = arith.constant 0 : index
    %c0_96 = arith.constant 0 : index
    %83 = vector.load %arg4[%c0_95, %c0_96] : memref<288x32xbf16, #tpu.memory_space<vmem>>, vector<288x32xbf16>
    %cst_97 = arith.constant dense<0.000000e+00> : vector<64x32xf32>
    %84 = tpu.matmul %82, %83, %cst_97 {dimension_numbers = #tpu.dot_dimension_numbers<[1], [0], [0], [1], [0, 0, 1, 1], [], []>} : vector<64x288xbf16>, vector<288x32xbf16>, vector<64x32xf32> -> vector<64x32xf32>
    %c0_98 = arith.constant 0 : index
    %c0_99 = arith.constant 0 : index
    %85 = vector.load %arg5[%c0_98, %c0_99] : memref<1x32xf32, #tpu.memory_space<vmem>>, vector<1x32xf32>
    %86 = vector.broadcast %85 : vector<1x32xf32> to vector<64x32xf32>
    %87 = arith.addf %84, %86 : vector<64x32xf32>
    %cst_100 = arith.constant 0.000000e+00 : f32
    %88 = vector.broadcast %cst_100 : f32 to vector<64x32xf32>
    %89 = arith.maximumf %87, %88 : vector<64x32xf32>
    %cst_101 = arith.constant 0.000000e+00 : f32
    %90 = vector.broadcast %cst_101 : f32 to vector<10x10x32xf32>
    %c0_102 = arith.constant 0 : index
    %c0_103 = arith.constant 0 : index
    %c0_104 = arith.constant 0 : index
    %91 = vector.load %arg33[%c0_102, %c0_103, %c0_104] : memref<10x10x32xf32, #tpu.memory_space<vmem>>, vector<10x10x32xf32>
    tpu.vector_store %arg33[%c0_102, %c0_103, %c0_104], %90 {strides = array<i32>} : memref<10x10x32xf32, #tpu.memory_space<vmem>>, vector<10x10x32xf32>,
    %92 = vector.shape_cast %89 : vector<64x32xf32> to vector<8x8x32xf32>
    %c1_105 = arith.constant 1 : index
    %c1_106 = arith.constant 1 : index
    %c0_107 = arith.constant 0 : index
    %93 = vector.load %arg33[%c1_105, %c1_106, %c0_107] : memref<10x10x32xf32, #tpu.memory_space<vmem>>, vector<8x8x32xf32>
    tpu.vector_store %arg33[%c1_105, %c1_106, %c0_107], %92 {strides = array<i32>} : memref<10x10x32xf32, #tpu.memory_space<vmem>>, vector<8x8x32xf32>,
    %c0_108 = arith.constant 0 : index
    %c0_109 = arith.constant 0 : index
    %c0_110 = arith.constant 0 : index
    %94 = vector.load %arg33[%c0_108, %c0_109, %c0_110] : memref<10x10x32xf32, #tpu.memory_space<vmem>>, vector<8x8x32xf32>
    %95 = vector.shape_cast %94 : vector<8x8x32xf32> to vector<64x32xf32>
    %c0_111 = arith.constant 0 : index
    %c1_112 = arith.constant 1 : index
    %c0_113 = arith.constant 0 : index
    %96 = vector.load %arg33[%c0_111, %c1_112, %c0_113] : memref<10x10x32xf32, #tpu.memory_space<vmem>>, vector<8x8x32xf32>
    %97 = vector.shape_cast %96 : vector<8x8x32xf32> to vector<64x32xf32>
    %c0_114 = arith.constant 0 : index
    %c2_115 = arith.constant 2 : index
    %c0_116 = arith.constant 0 : index
    %98 = vector.load %arg33[%c0_114, %c2_115, %c0_116] : memref<10x10x32xf32, #tpu.memory_space<vmem>>, vector<8x8x32xf32>
    %99 = vector.shape_cast %98 : vector<8x8x32xf32> to vector<64x32xf32>
    %c1_117 = arith.constant 1 : index
    %c0_118 = arith.constant 0 : index
    %c0_119 = arith.constant 0 : index
    %100 = vector.load %arg33[%c1_117, %c0_118, %c0_119] : memref<10x10x32xf32, #tpu.memory_space<vmem>>, vector<8x8x32xf32>
    %101 = vector.shape_cast %100 : vector<8x8x32xf32> to vector<64x32xf32>
    %c1_120 = arith.constant 1 : index
    %c1_121 = arith.constant 1 : index
    %c0_122 = arith.constant 0 : index
    %102 = vector.load %arg33[%c1_120, %c1_121, %c0_122] : memref<10x10x32xf32, #tpu.memory_space<vmem>>, vector<8x8x32xf32>
    %103 = vector.shape_cast %102 : vector<8x8x32xf32> to vector<64x32xf32>
    %c1_123 = arith.constant 1 : index
    %c2_124 = arith.constant 2 : index
    %c0_125 = arith.constant 0 : index
    %104 = vector.load %arg33[%c1_123, %c2_124, %c0_125] : memref<10x10x32xf32, #tpu.memory_space<vmem>>, vector<8x8x32xf32>
    %105 = vector.shape_cast %104 : vector<8x8x32xf32> to vector<64x32xf32>
    %c2_126 = arith.constant 2 : index
    %c0_127 = arith.constant 0 : index
    %c0_128 = arith.constant 0 : index
    %106 = vector.load %arg33[%c2_126, %c0_127, %c0_128] : memref<10x10x32xf32, #tpu.memory_space<vmem>>, vector<8x8x32xf32>
    %107 = vector.shape_cast %106 : vector<8x8x32xf32> to vector<64x32xf32>
    %c2_129 = arith.constant 2 : index
    %c1_130 = arith.constant 1 : index
    %c0_131 = arith.constant 0 : index
    %108 = vector.load %arg33[%c2_129, %c1_130, %c0_131] : memref<10x10x32xf32, #tpu.memory_space<vmem>>, vector<8x8x32xf32>
    %109 = vector.shape_cast %108 : vector<8x8x32xf32> to vector<64x32xf32>
    %c2_132 = arith.constant 2 : index
    %c2_133 = arith.constant 2 : index
    %c0_134 = arith.constant 0 : index
    %110 = vector.load %arg33[%c2_132, %c2_133, %c0_134] : memref<10x10x32xf32, #tpu.memory_space<vmem>>, vector<8x8x32xf32>
    %111 = vector.shape_cast %110 : vector<8x8x32xf32> to vector<64x32xf32>
    %112 = tpu.concatenate %95, %97, %99, %101, %103, %105, %107, %109, %111 in 1 : vector<64x32xf32>, vector<64x32xf32>, vector<64x32xf32>, vector<64x32xf32>, vector<64x32xf32>, vector<64x32xf32>, vector<64x32xf32>, vector<64x32xf32>, vector<64x32xf32> -> vector<64x288xf32>
    %113 = arith.truncf %112 : vector<64x288xf32> to vector<64x288xbf16>
    %c0_135 = arith.constant 0 : index
    %c0_136 = arith.constant 0 : index
    %114 = vector.load %arg6[%c0_135, %c0_136] : memref<288x32xbf16, #tpu.memory_space<vmem>>, vector<288x32xbf16>
    %cst_137 = arith.constant dense<0.000000e+00> : vector<64x32xf32>
    %115 = tpu.matmul %113, %114, %cst_137 {dimension_numbers = #tpu.dot_dimension_numbers<[1], [0], [0], [1], [0, 0, 1, 1], [], []>} : vector<64x288xbf16>, vector<288x32xbf16>, vector<64x32xf32> -> vector<64x32xf32>
    %c0_138 = arith.constant 0 : index
    %c0_139 = arith.constant 0 : index
    %116 = vector.load %arg7[%c0_138, %c0_139] : memref<1x32xf32, #tpu.memory_space<vmem>>, vector<1x32xf32>
    %117 = vector.broadcast %116 : vector<1x32xf32> to vector<64x32xf32>
    %118 = arith.addf %115, %117 : vector<64x32xf32>
    %119 = arith.addf %118, %58 : vector<64x32xf32>
    %cst_140 = arith.constant 0.000000e+00 : f32
    %120 = vector.broadcast %cst_140 : f32 to vector<64x32xf32>
    %121 = arith.maximumf %119, %120 : vector<64x32xf32>
    %c0_141 = arith.constant 0 : index
    %c0_142 = arith.constant 0 : index
    %122 = vector.load %arg14[%c0_141, %c0_142] : memref<100x64xf32, #tpu.memory_space<vmem>>, vector<100x64xf32>
    %cst_143 = arith.constant dense<0.000000e+00> : vector<100x32xf32>
    %123 = tpu.matmul %122, %121, %cst_143 {dimension_numbers = #tpu.dot_dimension_numbers<[1], [0], [0], [1], [0, 0, 1, 1], [], []>} : vector<100x64xf32>, vector<64x32xf32>, vector<100x32xf32> -> vector<100x32xf32>
    %124 = vector.shape_cast %123 : vector<100x32xf32> to vector<4x5x5x32xf32>
    %c0_144 = arith.constant 0 : index
    %c0_145 = arith.constant 0 : index
    %c0_146 = arith.constant 0 : index
    %c0_147 = arith.constant 0 : index
    %125 = vector.load %arg34[%c0_144, %c0_145, %c0_146, %c0_147] : memref<4x5x5x32xf32, #tpu.memory_space<vmem>>, vector<4x5x5x32xf32>
    tpu.vector_store %arg34[%c0_144, %c0_145, %c0_146, %c0_147], %124 {strides = array<i32>} : memref<4x5x5x32xf32, #tpu.memory_space<vmem>>, vector<4x5x5x32xf32>,
    %c0_148 = arith.constant 0 : index
    %c0_149 = arith.constant 0 : index
    %c0_150 = arith.constant 0 : index
    %c0_151 = arith.constant 0 : index
    %126 = vector.load %arg34[%c0_148, %c0_149, %c0_150, %c0_151] : memref<4x5x5x32xf32, #tpu.memory_space<vmem>>, vector<1x4x4x32xf32>
    %127 = vector.shape_cast %126 : vector<1x4x4x32xf32> to vector<4x4x32xf32>
    %128 = vector.shape_cast %127 : vector<4x4x32xf32> to vector<16x32xf32>
    %c1_152 = arith.constant 1 : index
    %c0_153 = arith.constant 0 : index
    %c0_154 = arith.constant 0 : index
    %c0_155 = arith.constant 0 : index
    %129 = vector.load %arg34[%c1_152, %c0_153, %c0_154, %c0_155] : memref<4x5x5x32xf32, #tpu.memory_space<vmem>>, vector<1x4x4x32xf32>
    %130 = vector.shape_cast %129 : vector<1x4x4x32xf32> to vector<4x4x32xf32>
    %131 = vector.shape_cast %130 : vector<4x4x32xf32> to vector<16x32xf32>
    %c0_156 = arith.constant 0 : index
    %c0_157 = arith.constant 0 : index
    %c1_158 = arith.constant 1 : index
    %c0_159 = arith.constant 0 : index
    %132 = vector.load %arg34[%c0_156, %c0_157, %c1_158, %c0_159] : memref<4x5x5x32xf32, #tpu.memory_space<vmem>>, vector<1x4x4x32xf32>
    %133 = vector.shape_cast %132 : vector<1x4x4x32xf32> to vector<4x4x32xf32>
    %134 = vector.shape_cast %133 : vector<4x4x32xf32> to vector<16x32xf32>
    %c2_160 = arith.constant 2 : index
    %c0_161 = arith.constant 0 : index
    %c0_162 = arith.constant 0 : index
    %c0_163 = arith.constant 0 : index
    %135 = vector.load %arg34[%c2_160, %c0_161, %c0_162, %c0_163] : memref<4x5x5x32xf32, #tpu.memory_space<vmem>>, vector<1x4x4x32xf32>
    %136 = vector.shape_cast %135 : vector<1x4x4x32xf32> to vector<4x4x32xf32>
    %137 = vector.shape_cast %136 : vector<4x4x32xf32> to vector<16x32xf32>
    %c3_164 = arith.constant 3 : index
    %c0_165 = arith.constant 0 : index
    %c0_166 = arith.constant 0 : index
    %c0_167 = arith.constant 0 : index
    %138 = vector.load %arg34[%c3_164, %c0_165, %c0_166, %c0_167] : memref<4x5x5x32xf32, #tpu.memory_space<vmem>>, vector<1x4x4x32xf32>
    %139 = vector.shape_cast %138 : vector<1x4x4x32xf32> to vector<4x4x32xf32>
    %140 = vector.shape_cast %139 : vector<4x4x32xf32> to vector<16x32xf32>
    %c2_168 = arith.constant 2 : index
    %c0_169 = arith.constant 0 : index
    %c1_170 = arith.constant 1 : index
    %c0_171 = arith.constant 0 : index
    %141 = vector.load %arg34[%c2_168, %c0_169, %c1_170, %c0_171] : memref<4x5x5x32xf32, #tpu.memory_space<vmem>>, vector<1x4x4x32xf32>
    %142 = vector.shape_cast %141 : vector<1x4x4x32xf32> to vector<4x4x32xf32>
    %143 = vector.shape_cast %142 : vector<4x4x32xf32> to vector<16x32xf32>
    %c0_172 = arith.constant 0 : index
    %c1_173 = arith.constant 1 : index
    %c0_174 = arith.constant 0 : index
    %c0_175 = arith.constant 0 : index
    %144 = vector.load %arg34[%c0_172, %c1_173, %c0_174, %c0_175] : memref<4x5x5x32xf32, #tpu.memory_space<vmem>>, vector<1x4x4x32xf32>
    %145 = vector.shape_cast %144 : vector<1x4x4x32xf32> to vector<4x4x32xf32>
    %146 = vector.shape_cast %145 : vector<4x4x32xf32> to vector<16x32xf32>
    %c1_176 = arith.constant 1 : index
    %c1_177 = arith.constant 1 : index
    %c0_178 = arith.constant 0 : index
    %c0_179 = arith.constant 0 : index
    %147 = vector.load %arg34[%c1_176, %c1_177, %c0_178, %c0_179] : memref<4x5x5x32xf32, #tpu.memory_space<vmem>>, vector<1x4x4x32xf32>
    %148 = vector.shape_cast %147 : vector<1x4x4x32xf32> to vector<4x4x32xf32>
    %149 = vector.shape_cast %148 : vector<4x4x32xf32> to vector<16x32xf32>
    %c0_180 = arith.constant 0 : index
    %c1_181 = arith.constant 1 : index
    %c1_182 = arith.constant 1 : index
    %c0_183 = arith.constant 0 : index
    %150 = vector.load %arg34[%c0_180, %c1_181, %c1_182, %c0_183] : memref<4x5x5x32xf32, #tpu.memory_space<vmem>>, vector<1x4x4x32xf32>
    %151 = vector.shape_cast %150 : vector<1x4x4x32xf32> to vector<4x4x32xf32>
    %152 = vector.shape_cast %151 : vector<4x4x32xf32> to vector<16x32xf32>
    %153 = tpu.concatenate %128, %131, %134, %137, %140, %143, %146, %149, %152 in 1 : vector<16x32xf32>, vector<16x32xf32>, vector<16x32xf32>, vector<16x32xf32>, vector<16x32xf32>, vector<16x32xf32>, vector<16x32xf32>, vector<16x32xf32>, vector<16x32xf32> -> vector<16x288xf32>
    %154 = arith.truncf %153 : vector<16x288xf32> to vector<16x288xbf16>
    %c0_184 = arith.constant 0 : index
    %c0_185 = arith.constant 0 : index
    %155 = vector.load %arg8[%c0_184, %c0_185] : memref<288x64xbf16, #tpu.memory_space<vmem>>, vector<288x64xbf16>
    %cst_186 = arith.constant dense<0.000000e+00> : vector<16x64xf32>
    %156 = tpu.matmul %154, %155, %cst_186 {dimension_numbers = #tpu.dot_dimension_numbers<[1], [0], [0], [1], [0, 0, 1, 1], [], []>} : vector<16x288xbf16>, vector<288x64xbf16>, vector<16x64xf32> -> vector<16x64xf32>
    %c0_187 = arith.constant 0 : index
    %c0_188 = arith.constant 0 : index
    %157 = vector.load %arg9[%c0_187, %c0_188] : memref<1x64xf32, #tpu.memory_space<vmem>>, vector<1x64xf32>
    %158 = vector.broadcast %157 : vector<1x64xf32> to vector<16x64xf32>
    %159 = arith.addf %156, %158 : vector<16x64xf32>
    %cst_189 = arith.constant 0.000000e+00 : f32
    %160 = vector.broadcast %cst_189 : f32 to vector<16x64xf32>
    %161 = arith.maximumf %159, %160 : vector<16x64xf32>
    %c3_190 = arith.constant 3 : index
    %c0_191 = arith.constant 0 : index
    %c0_192 = arith.constant 0 : index
    %c0_193 = arith.constant 0 : index
    %162 = vector.load %arg34[%c3_190, %c0_191, %c0_192, %c0_193] : memref<4x5x5x32xf32, #tpu.memory_space<vmem>>, vector<1x4x4x32xf32>
    %163 = vector.shape_cast %162 : vector<1x4x4x32xf32> to vector<4x4x32xf32>
    %164 = vector.shape_cast %163 : vector<4x4x32xf32> to vector<16x32xf32>
    %c0_194 = arith.constant 0 : index
    %c0_195 = arith.constant 0 : index
    %165 = vector.load %arg12[%c0_194, %c0_195] : memref<32x64xf32, #tpu.memory_space<vmem>>, vector<32x64xf32>
    %cst_196 = arith.constant dense<0.000000e+00> : vector<16x64xf32>
    %166 = tpu.matmul %164, %165, %cst_196 {dimension_numbers = #tpu.dot_dimension_numbers<[1], [0], [0], [1], [0, 0, 1, 1], [], []>} : vector<16x32xf32>, vector<32x64xf32>, vector<16x64xf32> -> vector<16x64xf32>
    %c0_197 = arith.constant 0 : index
    %c0_198 = arith.constant 0 : index
    %167 = vector.load %arg13[%c0_197, %c0_198] : memref<1x64xf32, #tpu.memory_space<vmem>>, vector<1x64xf32>
    %168 = vector.broadcast %167 : vector<1x64xf32> to vector<16x64xf32>
    %169 = arith.addf %166, %168 : vector<16x64xf32>
    %cst_199 = arith.constant 0.000000e+00 : f32
    %170 = vector.broadcast %cst_199 : f32 to vector<6x6x64xf32>
    %c0_200 = arith.constant 0 : index
    %c0_201 = arith.constant 0 : index
    %c0_202 = arith.constant 0 : index
    %171 = vector.load %arg35[%c0_200, %c0_201, %c0_202] : memref<6x6x64xf32, #tpu.memory_space<vmem>>, vector<6x6x64xf32>
    tpu.vector_store %arg35[%c0_200, %c0_201, %c0_202], %170 {strides = array<i32>} : memref<6x6x64xf32, #tpu.memory_space<vmem>>, vector<6x6x64xf32>,
    %172 = vector.shape_cast %161 : vector<16x64xf32> to vector<4x4x64xf32>
    %c1_203 = arith.constant 1 : index
    %c1_204 = arith.constant 1 : index
    %c0_205 = arith.constant 0 : index
    %173 = vector.load %arg35[%c1_203, %c1_204, %c0_205] : memref<6x6x64xf32, #tpu.memory_space<vmem>>, vector<4x4x64xf32>
    tpu.vector_store %arg35[%c1_203, %c1_204, %c0_205], %172 {strides = array<i32>} : memref<6x6x64xf32, #tpu.memory_space<vmem>>, vector<4x4x64xf32>,
    %c0_206 = arith.constant 0 : index
    %c0_207 = arith.constant 0 : index
    %c0_208 = arith.constant 0 : index
    %174 = vector.load %arg35[%c0_206, %c0_207, %c0_208] : memref<6x6x64xf32, #tpu.memory_space<vmem>>, vector<4x4x64xf32>
    %175 = vector.shape_cast %174 : vector<4x4x64xf32> to vector<16x64xf32>
    %c0_209 = arith.constant 0 : index
    %c1_210 = arith.constant 1 : index
    %c0_211 = arith.constant 0 : index
    %176 = vector.load %arg35[%c0_209, %c1_210, %c0_211] : memref<6x6x64xf32, #tpu.memory_space<vmem>>, vector<4x4x64xf32>
    %177 = vector.shape_cast %176 : vector<4x4x64xf32> to vector<16x64xf32>
    %c0_212 = arith.constant 0 : index
    %c2_213 = arith.constant 2 : index
    %c0_214 = arith.constant 0 : index
    %178 = vector.load %arg35[%c0_212, %c2_213, %c0_214] : memref<6x6x64xf32, #tpu.memory_space<vmem>>, vector<4x4x64xf32>
    %179 = vector.shape_cast %178 : vector<4x4x64xf32> to vector<16x64xf32>
    %c1_215 = arith.constant 1 : index
    %c0_216 = arith.constant 0 : index
    %c0_217 = arith.constant 0 : index
    %180 = vector.load %arg35[%c1_215, %c0_216, %c0_217] : memref<6x6x64xf32, #tpu.memory_space<vmem>>, vector<4x4x64xf32>
    %181 = vector.shape_cast %180 : vector<4x4x64xf32> to vector<16x64xf32>
    %c1_218 = arith.constant 1 : index
    %c1_219 = arith.constant 1 : index
    %c0_220 = arith.constant 0 : index
    %182 = vector.load %arg35[%c1_218, %c1_219, %c0_220] : memref<6x6x64xf32, #tpu.memory_space<vmem>>, vector<4x4x64xf32>
    %183 = vector.shape_cast %182 : vector<4x4x64xf32> to vector<16x64xf32>
    %c1_221 = arith.constant 1 : index
    %c2_222 = arith.constant 2 : index
    %c0_223 = arith.constant 0 : index
    %184 = vector.load %arg35[%c1_221, %c2_222, %c0_223] : memref<6x6x64xf32, #tpu.memory_space<vmem>>, vector<4x4x64xf32>
    %185 = vector.shape_cast %184 : vector<4x4x64xf32> to vector<16x64xf32>
    %c2_224 = arith.constant 2 : index
    %c0_225 = arith.constant 0 : index
    %c0_226 = arith.constant 0 : index
    %186 = vector.load %arg35[%c2_224, %c0_225, %c0_226] : memref<6x6x64xf32, #tpu.memory_space<vmem>>, vector<4x4x64xf32>
    %187 = vector.shape_cast %186 : vector<4x4x64xf32> to vector<16x64xf32>
    %c2_227 = arith.constant 2 : index
    %c1_228 = arith.constant 1 : index
    %c0_229 = arith.constant 0 : index
    %188 = vector.load %arg35[%c2_227, %c1_228, %c0_229] : memref<6x6x64xf32, #tpu.memory_space<vmem>>, vector<4x4x64xf32>
    %189 = vector.shape_cast %188 : vector<4x4x64xf32> to vector<16x64xf32>
    %c2_230 = arith.constant 2 : index
    %c2_231 = arith.constant 2 : index
    %c0_232 = arith.constant 0 : index
    %190 = vector.load %arg35[%c2_230, %c2_231, %c0_232] : memref<6x6x64xf32, #tpu.memory_space<vmem>>, vector<4x4x64xf32>
    %191 = vector.shape_cast %190 : vector<4x4x64xf32> to vector<16x64xf32>
    %192 = tpu.concatenate %175, %177, %179, %181, %183, %185, %187, %189, %191 in 1 : vector<16x64xf32>, vector<16x64xf32>, vector<16x64xf32>, vector<16x64xf32>, vector<16x64xf32>, vector<16x64xf32>, vector<16x64xf32>, vector<16x64xf32>, vector<16x64xf32> -> vector<16x576xf32>
    %193 = arith.truncf %192 : vector<16x576xf32> to vector<16x576xbf16>
    %c0_233 = arith.constant 0 : index
    %c0_234 = arith.constant 0 : index
    %194 = vector.load %arg10[%c0_233, %c0_234] : memref<576x64xbf16, #tpu.memory_space<vmem>>, vector<576x64xbf16>
    %cst_235 = arith.constant dense<0.000000e+00> : vector<16x64xf32>
    %195 = tpu.matmul %193, %194, %cst_235 {dimension_numbers = #tpu.dot_dimension_numbers<[1], [0], [0], [1], [0, 0, 1, 1], [], []>} : vector<16x576xbf16>, vector<576x64xbf16>, vector<16x64xf32> -> vector<16x64xf32>
    %c0_236 = arith.constant 0 : index
    %c0_237 = arith.constant 0 : index
    %196 = vector.load %arg11[%c0_236, %c0_237] : memref<1x64xf32, #tpu.memory_space<vmem>>, vector<1x64xf32>
    %197 = vector.broadcast %196 : vector<1x64xf32> to vector<16x64xf32>
    %198 = arith.addf %195, %197 : vector<16x64xf32>
    %199 = arith.addf %198, %169 : vector<16x64xf32>
    %cst_238 = arith.constant 0.000000e+00 : f32
    %200 = vector.broadcast %cst_238 : f32 to vector<16x64xf32>
    %201 = arith.maximumf %199, %200 : vector<16x64xf32>
    %c0_239 = arith.constant 0 : index
    %c0_240 = arith.constant 0 : index
    %202 = vector.load %arg21[%c0_239, %c0_240] : memref<36x16xf32, #tpu.memory_space<vmem>>, vector<36x16xf32>
    %cst_241 = arith.constant dense<0.000000e+00> : vector<36x64xf32>
    %203 = tpu.matmul %202, %201, %cst_241 {dimension_numbers = #tpu.dot_dimension_numbers<[1], [0], [0], [1], [0, 0, 1, 1], [], []>} : vector<36x16xf32>, vector<16x64xf32>, vector<36x64xf32> -> vector<36x64xf32>
    %204 = vector.shape_cast %203 : vector<36x64xf32> to vector<4x3x3x64xf32>
    %c0_242 = arith.constant 0 : index
    %c0_243 = arith.constant 0 : index
    %c0_244 = arith.constant 0 : index
    %c0_245 = arith.constant 0 : index
    %205 = vector.load %arg36[%c0_242, %c0_243, %c0_244, %c0_245] : memref<4x3x3x64xf32, #tpu.memory_space<vmem>>, vector<4x3x3x64xf32>
    tpu.vector_store %arg36[%c0_242, %c0_243, %c0_244, %c0_245], %204 {strides = array<i32>} : memref<4x3x3x64xf32, #tpu.memory_space<vmem>>, vector<4x3x3x64xf32>,
    %c0_246 = arith.constant 0 : index
    %c0_247 = arith.constant 0 : index
    %c0_248 = arith.constant 0 : index
    %c0_249 = arith.constant 0 : index
    %206 = vector.load %arg36[%c0_246, %c0_247, %c0_248, %c0_249] : memref<4x3x3x64xf32, #tpu.memory_space<vmem>>, vector<1x2x2x64xf32>
    %207 = vector.shape_cast %206 : vector<1x2x2x64xf32> to vector<2x2x64xf32>
    %208 = vector.shape_cast %207 : vector<2x2x64xf32> to vector<4x64xf32>
    %c1_250 = arith.constant 1 : index
    %c0_251 = arith.constant 0 : index
    %c0_252 = arith.constant 0 : index
    %c0_253 = arith.constant 0 : index
    %209 = vector.load %arg36[%c1_250, %c0_251, %c0_252, %c0_253] : memref<4x3x3x64xf32, #tpu.memory_space<vmem>>, vector<1x2x2x64xf32>
    %210 = vector.shape_cast %209 : vector<1x2x2x64xf32> to vector<2x2x64xf32>
    %211 = vector.shape_cast %210 : vector<2x2x64xf32> to vector<4x64xf32>
    %c0_254 = arith.constant 0 : index
    %c0_255 = arith.constant 0 : index
    %c1_256 = arith.constant 1 : index
    %c0_257 = arith.constant 0 : index
    %212 = vector.load %arg36[%c0_254, %c0_255, %c1_256, %c0_257] : memref<4x3x3x64xf32, #tpu.memory_space<vmem>>, vector<1x2x2x64xf32>
    %213 = vector.shape_cast %212 : vector<1x2x2x64xf32> to vector<2x2x64xf32>
    %214 = vector.shape_cast %213 : vector<2x2x64xf32> to vector<4x64xf32>
    %c2_258 = arith.constant 2 : index
    %c0_259 = arith.constant 0 : index
    %c0_260 = arith.constant 0 : index
    %c0_261 = arith.constant 0 : index
    %215 = vector.load %arg36[%c2_258, %c0_259, %c0_260, %c0_261] : memref<4x3x3x64xf32, #tpu.memory_space<vmem>>, vector<1x2x2x64xf32>
    %216 = vector.shape_cast %215 : vector<1x2x2x64xf32> to vector<2x2x64xf32>
    %217 = vector.shape_cast %216 : vector<2x2x64xf32> to vector<4x64xf32>
    %c3_262 = arith.constant 3 : index
    %c0_263 = arith.constant 0 : index
    %c0_264 = arith.constant 0 : index
    %c0_265 = arith.constant 0 : index
    %218 = vector.load %arg36[%c3_262, %c0_263, %c0_264, %c0_265] : memref<4x3x3x64xf32, #tpu.memory_space<vmem>>, vector<1x2x2x64xf32>
    %219 = vector.shape_cast %218 : vector<1x2x2x64xf32> to vector<2x2x64xf32>
    %220 = vector.shape_cast %219 : vector<2x2x64xf32> to vector<4x64xf32>
    %c2_266 = arith.constant 2 : index
    %c0_267 = arith.constant 0 : index
    %c1_268 = arith.constant 1 : index
    %c0_269 = arith.constant 0 : index
    %221 = vector.load %arg36[%c2_266, %c0_267, %c1_268, %c0_269] : memref<4x3x3x64xf32, #tpu.memory_space<vmem>>, vector<1x2x2x64xf32>
    %222 = vector.shape_cast %221 : vector<1x2x2x64xf32> to vector<2x2x64xf32>
    %223 = vector.shape_cast %222 : vector<2x2x64xf32> to vector<4x64xf32>
    %c0_270 = arith.constant 0 : index
    %c1_271 = arith.constant 1 : index
    %c0_272 = arith.constant 0 : index
    %c0_273 = arith.constant 0 : index
    %224 = vector.load %arg36[%c0_270, %c1_271, %c0_272, %c0_273] : memref<4x3x3x64xf32, #tpu.memory_space<vmem>>, vector<1x2x2x64xf32>
    %225 = vector.shape_cast %224 : vector<1x2x2x64xf32> to vector<2x2x64xf32>
    %226 = vector.shape_cast %225 : vector<2x2x64xf32> to vector<4x64xf32>
    %c1_274 = arith.constant 1 : index
    %c1_275 = arith.constant 1 : index
    %c0_276 = arith.constant 0 : index
    %c0_277 = arith.constant 0 : index
    %227 = vector.load %arg36[%c1_274, %c1_275, %c0_276, %c0_277] : memref<4x3x3x64xf32, #tpu.memory_space<vmem>>, vector<1x2x2x64xf32>
    %228 = vector.shape_cast %227 : vector<1x2x2x64xf32> to vector<2x2x64xf32>
    %229 = vector.shape_cast %228 : vector<2x2x64xf32> to vector<4x64xf32>
    %c0_278 = arith.constant 0 : index
    %c1_279 = arith.constant 1 : index
    %c1_280 = arith.constant 1 : index
    %c0_281 = arith.constant 0 : index
    %230 = vector.load %arg36[%c0_278, %c1_279, %c1_280, %c0_281] : memref<4x3x3x64xf32, #tpu.memory_space<vmem>>, vector<1x2x2x64xf32>
    %231 = vector.shape_cast %230 : vector<1x2x2x64xf32> to vector<2x2x64xf32>
    %232 = vector.shape_cast %231 : vector<2x2x64xf32> to vector<4x64xf32>
    %233 = tpu.concatenate %208, %211, %214, %217, %220, %223, %226, %229, %232 in 1 : vector<4x64xf32>, vector<4x64xf32>, vector<4x64xf32>, vector<4x64xf32>, vector<4x64xf32>, vector<4x64xf32>, vector<4x64xf32>, vector<4x64xf32>, vector<4x64xf32> -> vector<4x576xf32>
    %234 = arith.truncf %233 : vector<4x576xf32> to vector<4x576xbf16>
    %c0_282 = arith.constant 0 : index
    %c0_283 = arith.constant 0 : index
    %235 = vector.load %arg15[%c0_282, %c0_283] : memref<576x128xbf16, #tpu.memory_space<vmem>>, vector<576x128xbf16>
    %cst_284 = arith.constant dense<0.000000e+00> : vector<4x128xf32>
    %236 = tpu.matmul %234, %235, %cst_284 {dimension_numbers = #tpu.dot_dimension_numbers<[1], [0], [0], [1], [0, 0, 1, 1], [], []>} : vector<4x576xbf16>, vector<576x128xbf16>, vector<4x128xf32> -> vector<4x128xf32>
    %c0_285 = arith.constant 0 : index
    %c0_286 = arith.constant 0 : index
    %237 = vector.load %arg16[%c0_285, %c0_286] : memref<1x128xf32, #tpu.memory_space<vmem>>, vector<1x128xf32>
    %238 = vector.broadcast %237 : vector<1x128xf32> to vector<4x128xf32>
    %239 = arith.addf %236, %238 : vector<4x128xf32>
    %cst_287 = arith.constant 0.000000e+00 : f32
    %240 = vector.broadcast %cst_287 : f32 to vector<4x128xf32>
    %241 = arith.maximumf %239, %240 : vector<4x128xf32>
    %c3_288 = arith.constant 3 : index
    %c0_289 = arith.constant 0 : index
    %c0_290 = arith.constant 0 : index
    %c0_291 = arith.constant 0 : index
    %242 = vector.load %arg36[%c3_288, %c0_289, %c0_290, %c0_291] : memref<4x3x3x64xf32, #tpu.memory_space<vmem>>, vector<1x2x2x64xf32>
    %243 = vector.shape_cast %242 : vector<1x2x2x64xf32> to vector<2x2x64xf32>
    %244 = vector.shape_cast %243 : vector<2x2x64xf32> to vector<4x64xf32>
    %c0_292 = arith.constant 0 : index
    %c0_293 = arith.constant 0 : index
    %245 = vector.load %arg19[%c0_292, %c0_293] : memref<64x128xf32, #tpu.memory_space<vmem>>, vector<64x128xf32>
    %cst_294 = arith.constant dense<0.000000e+00> : vector<4x128xf32>
    %246 = tpu.matmul %244, %245, %cst_294 {dimension_numbers = #tpu.dot_dimension_numbers<[1], [0], [0], [1], [0, 0, 1, 1], [], []>} : vector<4x64xf32>, vector<64x128xf32>, vector<4x128xf32> -> vector<4x128xf32>
    %c0_295 = arith.constant 0 : index
    %c0_296 = arith.constant 0 : index
    %247 = vector.load %arg20[%c0_295, %c0_296] : memref<1x128xf32, #tpu.memory_space<vmem>>, vector<1x128xf32>
    %248 = vector.broadcast %247 : vector<1x128xf32> to vector<4x128xf32>
    %249 = arith.addf %246, %248 : vector<4x128xf32>
    %cst_297 = arith.constant 0.000000e+00 : f32
    %250 = vector.broadcast %cst_297 : f32 to vector<4x4x128xf32>
    %c0_298 = arith.constant 0 : index
    %c0_299 = arith.constant 0 : index
    %c0_300 = arith.constant 0 : index
    %251 = vector.load %arg37[%c0_298, %c0_299, %c0_300] : memref<4x4x128xf32, #tpu.memory_space<vmem>>, vector<4x4x128xf32>
    tpu.vector_store %arg37[%c0_298, %c0_299, %c0_300], %250 {strides = array<i32>} : memref<4x4x128xf32, #tpu.memory_space<vmem>>, vector<4x4x128xf32>,
    %252 = vector.shape_cast %241 : vector<4x128xf32> to vector<2x2x128xf32>
    %c1_301 = arith.constant 1 : index
    %c1_302 = arith.constant 1 : index
    %c0_303 = arith.constant 0 : index
    %253 = vector.load %arg37[%c1_301, %c1_302, %c0_303] : memref<4x4x128xf32, #tpu.memory_space<vmem>>, vector<2x2x128xf32>
    tpu.vector_store %arg37[%c1_301, %c1_302, %c0_303], %252 {strides = array<i32>} : memref<4x4x128xf32, #tpu.memory_space<vmem>>, vector<2x2x128xf32>,
    %c0_304 = arith.constant 0 : index
    %c0_305 = arith.constant 0 : index
    %c0_306 = arith.constant 0 : index
    %254 = vector.load %arg37[%c0_304, %c0_305, %c0_306] : memref<4x4x128xf32, #tpu.memory_space<vmem>>, vector<2x2x128xf32>
    %255 = vector.shape_cast %254 : vector<2x2x128xf32> to vector<4x128xf32>
    %c0_307 = arith.constant 0 : index
    %c1_308 = arith.constant 1 : index
    %c0_309 = arith.constant 0 : index
    %256 = vector.load %arg37[%c0_307, %c1_308, %c0_309] : memref<4x4x128xf32, #tpu.memory_space<vmem>>, vector<2x2x128xf32>
    %257 = vector.shape_cast %256 : vector<2x2x128xf32> to vector<4x128xf32>
    %c0_310 = arith.constant 0 : index
    %c2_311 = arith.constant 2 : index
    %c0_312 = arith.constant 0 : index
    %258 = vector.load %arg37[%c0_310, %c2_311, %c0_312] : memref<4x4x128xf32, #tpu.memory_space<vmem>>, vector<2x2x128xf32>
    %259 = vector.shape_cast %258 : vector<2x2x128xf32> to vector<4x128xf32>
    %c1_313 = arith.constant 1 : index
    %c0_314 = arith.constant 0 : index
    %c0_315 = arith.constant 0 : index
    %260 = vector.load %arg37[%c1_313, %c0_314, %c0_315] : memref<4x4x128xf32, #tpu.memory_space<vmem>>, vector<2x2x128xf32>
    %261 = vector.shape_cast %260 : vector<2x2x128xf32> to vector<4x128xf32>
    %c1_316 = arith.constant 1 : index
    %c1_317 = arith.constant 1 : index
    %c0_318 = arith.constant 0 : index
    %262 = vector.load %arg37[%c1_316, %c1_317, %c0_318] : memref<4x4x128xf32, #tpu.memory_space<vmem>>, vector<2x2x128xf32>
    %263 = vector.shape_cast %262 : vector<2x2x128xf32> to vector<4x128xf32>
    %c1_319 = arith.constant 1 : index
    %c2_320 = arith.constant 2 : index
    %c0_321 = arith.constant 0 : index
    %264 = vector.load %arg37[%c1_319, %c2_320, %c0_321] : memref<4x4x128xf32, #tpu.memory_space<vmem>>, vector<2x2x128xf32>
    %265 = vector.shape_cast %264 : vector<2x2x128xf32> to vector<4x128xf32>
    %c2_322 = arith.constant 2 : index
    %c0_323 = arith.constant 0 : index
    %c0_324 = arith.constant 0 : index
    %266 = vector.load %arg37[%c2_322, %c0_323, %c0_324] : memref<4x4x128xf32, #tpu.memory_space<vmem>>, vector<2x2x128xf32>
    %267 = vector.shape_cast %266 : vector<2x2x128xf32> to vector<4x128xf32>
    %c2_325 = arith.constant 2 : index
    %c1_326 = arith.constant 1 : index
    %c0_327 = arith.constant 0 : index
    %268 = vector.load %arg37[%c2_325, %c1_326, %c0_327] : memref<4x4x128xf32, #tpu.memory_space<vmem>>, vector<2x2x128xf32>
    %269 = vector.shape_cast %268 : vector<2x2x128xf32> to vector<4x128xf32>
    %c2_328 = arith.constant 2 : index
    %c2_329 = arith.constant 2 : index
    %c0_330 = arith.constant 0 : index
    %270 = vector.load %arg37[%c2_328, %c2_329, %c0_330] : memref<4x4x128xf32, #tpu.memory_space<vmem>>, vector<2x2x128xf32>
    %271 = vector.shape_cast %270 : vector<2x2x128xf32> to vector<4x128xf32>
    %272 = tpu.concatenate %255, %257, %259, %261, %263, %265, %267, %269, %271 in 1 : vector<4x128xf32>, vector<4x128xf32>, vector<4x128xf32>, vector<4x128xf32>, vector<4x128xf32>, vector<4x128xf32>, vector<4x128xf32>, vector<4x128xf32>, vector<4x128xf32> -> vector<4x1152xf32>
    %273 = arith.truncf %272 : vector<4x1152xf32> to vector<4x1152xbf16>
    %c0_331 = arith.constant 0 : index
    %c0_332 = arith.constant 0 : index
    %274 = vector.load %arg17[%c0_331, %c0_332] : memref<1152x128xbf16, #tpu.memory_space<vmem>>, vector<1152x128xbf16>
    %cst_333 = arith.constant dense<0.000000e+00> : vector<4x128xf32>
    %275 = tpu.matmul %273, %274, %cst_333 {dimension_numbers = #tpu.dot_dimension_numbers<[1], [0], [0], [1], [0, 0, 1, 1], [], []>} : vector<4x1152xbf16>, vector<1152x128xbf16>, vector<4x128xf32> -> vector<4x128xf32>
    %c0_334 = arith.constant 0 : index
    %c0_335 = arith.constant 0 : index
    %276 = vector.load %arg18[%c0_334, %c0_335] : memref<1x128xf32, #tpu.memory_space<vmem>>, vector<1x128xf32>
    %277 = vector.broadcast %276 : vector<1x128xf32> to vector<4x128xf32>
    %278 = arith.addf %275, %277 : vector<4x128xf32>
    %279 = arith.addf %278, %249 : vector<4x128xf32>
    %cst_336 = arith.constant 0.000000e+00 : f32
    %280 = vector.broadcast %cst_336 : f32 to vector<4x128xf32>
    %281 = arith.maximumf %279, %280 : vector<4x128xf32>
    %cst_337 = arith.constant 0.000000e+00 : f32
    %282 = vector.broadcast %cst_337 : f32 to vector<4x4x128xf32>
    %c0_338 = arith.constant 0 : index
    %c0_339 = arith.constant 0 : index
    %c0_340 = arith.constant 0 : index
    %283 = vector.load %arg38[%c0_338, %c0_339, %c0_340] : memref<4x4x128xf32, #tpu.memory_space<vmem>>, vector<4x4x128xf32>
    tpu.vector_store %arg38[%c0_338, %c0_339, %c0_340], %282 {strides = array<i32>} : memref<4x4x128xf32, #tpu.memory_space<vmem>>, vector<4x4x128xf32>,
    %284 = vector.shape_cast %281 : vector<4x128xf32> to vector<2x2x128xf32>
    %c1_341 = arith.constant 1 : index
    %c1_342 = arith.constant 1 : index
    %c0_343 = arith.constant 0 : index
    %285 = vector.load %arg38[%c1_341, %c1_342, %c0_343] : memref<4x4x128xf32, #tpu.memory_space<vmem>>, vector<2x2x128xf32>
    tpu.vector_store %arg38[%c1_341, %c1_342, %c0_343], %284 {strides = array<i32>} : memref<4x4x128xf32, #tpu.memory_space<vmem>>, vector<2x2x128xf32>,
    %c0_344 = arith.constant 0 : index
    %c0_345 = arith.constant 0 : index
    %c0_346 = arith.constant 0 : index
    %286 = vector.load %arg38[%c0_344, %c0_345, %c0_346] : memref<4x4x128xf32, #tpu.memory_space<vmem>>, vector<1x1x128xf32>
    %287 = vector.shape_cast %286 : vector<1x1x128xf32> to vector<1x128xf32>
    %c0_347 = arith.constant 0 : index
    %c1_348 = arith.constant 1 : index
    %c0_349 = arith.constant 0 : index
    %288 = vector.load %arg38[%c0_347, %c1_348, %c0_349] : memref<4x4x128xf32, #tpu.memory_space<vmem>>, vector<1x1x128xf32>
    %289 = vector.shape_cast %288 : vector<1x1x128xf32> to vector<1x128xf32>
    %c0_350 = arith.constant 0 : index
    %c2_351 = arith.constant 2 : index
    %c0_352 = arith.constant 0 : index
    %290 = vector.load %arg38[%c0_350, %c2_351, %c0_352] : memref<4x4x128xf32, #tpu.memory_space<vmem>>, vector<1x1x128xf32>
    %291 = vector.shape_cast %290 : vector<1x1x128xf32> to vector<1x128xf32>
    %c1_353 = arith.constant 1 : index
    %c0_354 = arith.constant 0 : index
    %c0_355 = arith.constant 0 : index
    %292 = vector.load %arg38[%c1_353, %c0_354, %c0_355] : memref<4x4x128xf32, #tpu.memory_space<vmem>>, vector<1x1x128xf32>
    %293 = vector.shape_cast %292 : vector<1x1x128xf32> to vector<1x128xf32>
    %c1_356 = arith.constant 1 : index
    %c1_357 = arith.constant 1 : index
    %c0_358 = arith.constant 0 : index
    %294 = vector.load %arg38[%c1_356, %c1_357, %c0_358] : memref<4x4x128xf32, #tpu.memory_space<vmem>>, vector<1x1x128xf32>
    %295 = vector.shape_cast %294 : vector<1x1x128xf32> to vector<1x128xf32>
    %c1_359 = arith.constant 1 : index
    %c2_360 = arith.constant 2 : index
    %c0_361 = arith.constant 0 : index
    %296 = vector.load %arg38[%c1_359, %c2_360, %c0_361] : memref<4x4x128xf32, #tpu.memory_space<vmem>>, vector<1x1x128xf32>
    %297 = vector.shape_cast %296 : vector<1x1x128xf32> to vector<1x128xf32>
    %c2_362 = arith.constant 2 : index
    %c0_363 = arith.constant 0 : index
    %c0_364 = arith.constant 0 : index
    %298 = vector.load %arg38[%c2_362, %c0_363, %c0_364] : memref<4x4x128xf32, #tpu.memory_space<vmem>>, vector<1x1x128xf32>
    %299 = vector.shape_cast %298 : vector<1x1x128xf32> to vector<1x128xf32>
    %c2_365 = arith.constant 2 : index
    %c1_366 = arith.constant 1 : index
    %c0_367 = arith.constant 0 : index
    %300 = vector.load %arg38[%c2_365, %c1_366, %c0_367] : memref<4x4x128xf32, #tpu.memory_space<vmem>>, vector<1x1x128xf32>
    %301 = vector.shape_cast %300 : vector<1x1x128xf32> to vector<1x128xf32>
    %c2_368 = arith.constant 2 : index
    %c2_369 = arith.constant 2 : index
    %c0_370 = arith.constant 0 : index
    %302 = vector.load %arg38[%c2_368, %c2_369, %c0_370] : memref<4x4x128xf32, #tpu.memory_space<vmem>>, vector<1x1x128xf32>
    %303 = vector.shape_cast %302 : vector<1x1x128xf32> to vector<1x128xf32>
    %304 = tpu.concatenate %287, %289, %291, %293, %295, %297, %299, %301, %303 in 1 : vector<1x128xf32>, vector<1x128xf32>, vector<1x128xf32>, vector<1x128xf32>, vector<1x128xf32>, vector<1x128xf32>, vector<1x128xf32>, vector<1x128xf32>, vector<1x128xf32> -> vector<1x1152xf32>
    %305 = arith.truncf %304 : vector<1x1152xf32> to vector<1x1152xbf16>
    %c0_371 = arith.constant 0 : index
    %c0_372 = arith.constant 0 : index
    %306 = vector.load %arg22[%c0_371, %c0_372] : memref<1152x256xbf16, #tpu.memory_space<vmem>>, vector<1152x256xbf16>
    %cst_373 = arith.constant dense<0.000000e+00> : vector<1x256xf32>
    %307 = tpu.matmul %305, %306, %cst_373 {dimension_numbers = #tpu.dot_dimension_numbers<[1], [0], [0], [1], [0, 0, 1, 1], [], []>} : vector<1x1152xbf16>, vector<1152x256xbf16>, vector<1x256xf32> -> vector<1x256xf32>
    %c0_374 = arith.constant 0 : index
    %c0_375 = arith.constant 0 : index
    %308 = vector.load %arg23[%c0_374, %c0_375] : memref<1x256xf32, #tpu.memory_space<vmem>>, vector<1x256xf32>
    %309 = arith.addf %307, %308 : vector<1x256xf32>
    %cst_376 = arith.constant 0.000000e+00 : f32
    %310 = vector.broadcast %cst_376 : f32 to vector<1x256xf32>
    %311 = arith.maximumf %309, %310 : vector<1x256xf32>
    %c1_377 = arith.constant 1 : index
    %c1_378 = arith.constant 1 : index
    %c0_379 = arith.constant 0 : index
    %312 = vector.load %arg38[%c1_377, %c1_378, %c0_379] : memref<4x4x128xf32, #tpu.memory_space<vmem>>, vector<1x1x128xf32>
    %313 = vector.shape_cast %312 : vector<1x1x128xf32> to vector<1x128xf32>
    %c0_380 = arith.constant 0 : index
    %c0_381 = arith.constant 0 : index
    %314 = vector.load %arg26[%c0_380, %c0_381] : memref<128x256xf32, #tpu.memory_space<vmem>>, vector<128x256xf32>
    %cst_382 = arith.constant dense<0.000000e+00> : vector<1x256xf32>
    %315 = tpu.matmul %313, %314, %cst_382 {dimension_numbers = #tpu.dot_dimension_numbers<[1], [0], [0], [1], [0, 0, 1, 1], [], []>} : vector<1x128xf32>, vector<128x256xf32>, vector<1x256xf32> -> vector<1x256xf32>
    %c0_383 = arith.constant 0 : index
    %c0_384 = arith.constant 0 : index
    %316 = vector.load %arg27[%c0_383, %c0_384] : memref<1x256xf32, #tpu.memory_space<vmem>>, vector<1x256xf32>
    %317 = arith.addf %315, %316 : vector<1x256xf32>
    %cst_385 = arith.constant 0.000000e+00 : f32
    %318 = vector.broadcast %cst_385 : f32 to vector<3x3x256xf32>
    %c0_386 = arith.constant 0 : index
    %c0_387 = arith.constant 0 : index
    %c0_388 = arith.constant 0 : index
    %319 = vector.load %arg39[%c0_386, %c0_387, %c0_388] : memref<3x3x256xf32, #tpu.memory_space<vmem>>, vector<3x3x256xf32>
    tpu.vector_store %arg39[%c0_386, %c0_387, %c0_388], %318 {strides = array<i32>} : memref<3x3x256xf32, #tpu.memory_space<vmem>>, vector<3x3x256xf32>,
    %320 = vector.shape_cast %311 : vector<1x256xf32> to vector<1x1x256xf32>
    %c1_389 = arith.constant 1 : index
    %c1_390 = arith.constant 1 : index
    %c0_391 = arith.constant 0 : index
    %321 = vector.load %arg39[%c1_389, %c1_390, %c0_391] : memref<3x3x256xf32, #tpu.memory_space<vmem>>, vector<1x1x256xf32>
    tpu.vector_store %arg39[%c1_389, %c1_390, %c0_391], %320 {strides = array<i32>} : memref<3x3x256xf32, #tpu.memory_space<vmem>>, vector<1x1x256xf32>,
    %c0_392 = arith.constant 0 : index
    %c0_393 = arith.constant 0 : index
    %c0_394 = arith.constant 0 : index
    %322 = vector.load %arg39[%c0_392, %c0_393, %c0_394] : memref<3x3x256xf32, #tpu.memory_space<vmem>>, vector<1x1x256xf32>
    %323 = vector.shape_cast %322 : vector<1x1x256xf32> to vector<1x256xf32>
    %c0_395 = arith.constant 0 : index
    %c1_396 = arith.constant 1 : index
    %c0_397 = arith.constant 0 : index
    %324 = vector.load %arg39[%c0_395, %c1_396, %c0_397] : memref<3x3x256xf32, #tpu.memory_space<vmem>>, vector<1x1x256xf32>
    %325 = vector.shape_cast %324 : vector<1x1x256xf32> to vector<1x256xf32>
    %c0_398 = arith.constant 0 : index
    %c2_399 = arith.constant 2 : index
    %c0_400 = arith.constant 0 : index
    %326 = vector.load %arg39[%c0_398, %c2_399, %c0_400] : memref<3x3x256xf32, #tpu.memory_space<vmem>>, vector<1x1x256xf32>
    %327 = vector.shape_cast %326 : vector<1x1x256xf32> to vector<1x256xf32>
    %c1_401 = arith.constant 1 : index
    %c0_402 = arith.constant 0 : index
    %c0_403 = arith.constant 0 : index
    %328 = vector.load %arg39[%c1_401, %c0_402, %c0_403] : memref<3x3x256xf32, #tpu.memory_space<vmem>>, vector<1x1x256xf32>
    %329 = vector.shape_cast %328 : vector<1x1x256xf32> to vector<1x256xf32>
    %c1_404 = arith.constant 1 : index
    %c1_405 = arith.constant 1 : index
    %c0_406 = arith.constant 0 : index
    %330 = vector.load %arg39[%c1_404, %c1_405, %c0_406] : memref<3x3x256xf32, #tpu.memory_space<vmem>>, vector<1x1x256xf32>
    %331 = vector.shape_cast %330 : vector<1x1x256xf32> to vector<1x256xf32>
    %c1_407 = arith.constant 1 : index
    %c2_408 = arith.constant 2 : index
    %c0_409 = arith.constant 0 : index
    %332 = vector.load %arg39[%c1_407, %c2_408, %c0_409] : memref<3x3x256xf32, #tpu.memory_space<vmem>>, vector<1x1x256xf32>
    %333 = vector.shape_cast %332 : vector<1x1x256xf32> to vector<1x256xf32>
    %c2_410 = arith.constant 2 : index
    %c0_411 = arith.constant 0 : index
    %c0_412 = arith.constant 0 : index
    %334 = vector.load %arg39[%c2_410, %c0_411, %c0_412] : memref<3x3x256xf32, #tpu.memory_space<vmem>>, vector<1x1x256xf32>
    %335 = vector.shape_cast %334 : vector<1x1x256xf32> to vector<1x256xf32>
    %c2_413 = arith.constant 2 : index
    %c1_414 = arith.constant 1 : index
    %c0_415 = arith.constant 0 : index
    %336 = vector.load %arg39[%c2_413, %c1_414, %c0_415] : memref<3x3x256xf32, #tpu.memory_space<vmem>>, vector<1x1x256xf32>
    %337 = vector.shape_cast %336 : vector<1x1x256xf32> to vector<1x256xf32>
    %c2_416 = arith.constant 2 : index
    %c2_417 = arith.constant 2 : index
    %c0_418 = arith.constant 0 : index
    %338 = vector.load %arg39[%c2_416, %c2_417, %c0_418] : memref<3x3x256xf32, #tpu.memory_space<vmem>>, vector<1x1x256xf32>
    %339 = vector.shape_cast %338 : vector<1x1x256xf32> to vector<1x256xf32>
    %340 = tpu.concatenate %323, %325, %327, %329, %331, %333, %335, %337, %339 in 1 : vector<1x256xf32>, vector<1x256xf32>, vector<1x256xf32>, vector<1x256xf32>, vector<1x256xf32>, vector<1x256xf32>, vector<1x256xf32>, vector<1x256xf32>, vector<1x256xf32> -> vector<1x2304xf32>
    %341 = arith.truncf %340 : vector<1x2304xf32> to vector<1x2304xbf16>
    %c0_419 = arith.constant 0 : index
    %c0_420 = arith.constant 0 : index
    %342 = vector.load %arg24[%c0_419, %c0_420] : memref<2304x256xbf16, #tpu.memory_space<vmem>>, vector<2304x256xbf16>
    %cst_421 = arith.constant dense<0.000000e+00> : vector<1x256xf32>
    %343 = tpu.matmul %341, %342, %cst_421 {dimension_numbers = #tpu.dot_dimension_numbers<[1], [0], [0], [1], [0, 0, 1, 1], [], []>} : vector<1x2304xbf16>, vector<2304x256xbf16>, vector<1x256xf32> -> vector<1x256xf32>
    %c0_422 = arith.constant 0 : index
    %c0_423 = arith.constant 0 : index
    %344 = vector.load %arg25[%c0_422, %c0_423] : memref<1x256xf32, #tpu.memory_space<vmem>>, vector<1x256xf32>
    %345 = arith.addf %343, %344 : vector<1x256xf32>
    %346 = arith.addf %345, %317 : vector<1x256xf32>
    %cst_424 = arith.constant 0.000000e+00 : f32
    %347 = vector.broadcast %cst_424 : f32 to vector<1x256xf32>
    %348 = arith.maximumf %346, %347 : vector<1x256xf32>
    %cst_425 = arith.constant dense<0.000000e+00> : vector<256xf32>
    %349 = vector.multi_reduction <add>, %348, %cst_425 [0] : vector<1x256xf32> to vector<256xf32>
    %350 = vector.shape_cast %349 : vector<256xf32> to vector<1x256xf32>
    %cst_426 = arith.constant 1.000000e+00 : f32
    %351 = vector.broadcast %cst_426 : f32 to vector<1x256xf32>
    %352 = arith.divf %350, %351 : vector<1x256xf32>
    %c0_427 = arith.constant 0 : index
    %c0_428 = arith.constant 0 : index
    %353 = vector.load %arg28[%c0_427, %c0_428] : memref<256x128xf32, #tpu.memory_space<vmem>>, vector<256x128xf32>
    %cst_429 = arith.constant dense<0.000000e+00> : vector<1x128xf32>
    %354 = tpu.matmul %352, %353, %cst_429 {dimension_numbers = #tpu.dot_dimension_numbers<[1], [0], [0], [1], [0, 0, 1, 1], [], []>} : vector<1x256xf32>, vector<256x128xf32>, vector<1x128xf32> -> vector<1x128xf32>
    %c0_430 = arith.constant 0 : index
    %c0_431 = arith.constant 0 : index
    %355 = vector.load %arg29[%c0_430, %c0_431] : memref<1x128xf32, #tpu.memory_space<vmem>>, vector<1x128xf32>
    %356 = arith.addf %354, %355 : vector<1x128xf32>
    %357 = vector.shape_cast %356 : vector<1x128xf32> to vector<1x1x128xf32>
    %c0_432 = arith.constant 0 : index
    %c0_433 = arith.constant 0 : index
    %c0_434 = arith.constant 0 : index
    %358 = vector.load %arg30[%c0_432, %c0_433, %c0_434] : memref<1x1x128xf32, #tpu.memory_space<vmem>>, vector<1x1x128xf32>
    tpu.vector_store %arg30[%c0_432, %c0_433, %c0_434], %357 {strides = array<i32>} : memref<1x1x128xf32, #tpu.memory_space<vmem>>, vector<1x1x128xf32>,
    return
  }
  func.func @transform_0(%arg0: i32) -> (i32, i32, i32) {
    %c0_i32 = arith.constant 0 : i32
    %c0_i32_0 = arith.constant 0 : i32
    %c0_i32_1 = arith.constant 0 : i32
    return %arg0, %c0_i32, %c0_i32_0 : i32, i32, i32
  }
  func.func @transform_1(%arg0: i32) -> (i32, i32) {
    %c0_i32 = arith.constant 0 : i32
    %c0_i32_0 = arith.constant 0 : i32
    %c0_i32_1 = arith.constant 0 : i32
    return %c0_i32, %c0_i32_0 : i32, i32
  }
  func.func @transform_2(%arg0: i32) -> (i32, i32) {
    %c0_i32 = arith.constant 0 : i32
    %c0_i32_0 = arith.constant 0 : i32
    %c0_i32_1 = arith.constant 0 : i32
    return %c0_i32, %c0_i32_0 : i32, i32
  }
  func.func @transform_3(%arg0: i32) -> (i32, i32) {
    %c0_i32 = arith.constant 0 : i32
    %c0_i32_0 = arith.constant 0 : i32
    %c0_i32_1 = arith.constant 0 : i32
    return %c0_i32, %c0_i32_0 : i32, i32
  }
  func.func @transform_4(%arg0: i32) -> (i32, i32) {
    %c0_i32 = arith.constant 0 : i32
    %c0_i32_0 = arith.constant 0 : i32
    %c0_i32_1 = arith.constant 0 : i32
    return %c0_i32, %c0_i32_0 : i32, i32
  }
  func.func @transform_5(%arg0: i32) -> (i32, i32) {
    %c0_i32 = arith.constant 0 : i32
    %c0_i32_0 = arith.constant 0 : i32
    %c0_i32_1 = arith.constant 0 : i32
    return %c0_i32, %c0_i32_0 : i32, i32
  }
  func.func @transform_6(%arg0: i32) -> (i32, i32) {
    %c0_i32 = arith.constant 0 : i32
    %c0_i32_0 = arith.constant 0 : i32
    %c0_i32_1 = arith.constant 0 : i32
    return %c0_i32, %c0_i32_0 : i32, i32
  }
  func.func @transform_7(%arg0: i32) -> (i32, i32) {
    %c0_i32 = arith.constant 0 : i32
    %c0_i32_0 = arith.constant 0 : i32
    %c0_i32_1 = arith.constant 0 : i32
    return %c0_i32, %c0_i32_0 : i32, i32
  }
  func.func @transform_8(%arg0: i32) -> (i32, i32) {
    %c0_i32 = arith.constant 0 : i32
    %c0_i32_0 = arith.constant 0 : i32
    %c0_i32_1 = arith.constant 0 : i32
    return %c0_i32, %c0_i32_0 : i32, i32
  }
  func.func @transform_9(%arg0: i32) -> (i32, i32) {
    %c0_i32 = arith.constant 0 : i32
    %c0_i32_0 = arith.constant 0 : i32
    %c0_i32_1 = arith.constant 0 : i32
    return %c0_i32, %c0_i32_0 : i32, i32
  }
  func.func @transform_10(%arg0: i32) -> (i32, i32) {
    %c0_i32 = arith.constant 0 : i32
    %c0_i32_0 = arith.constant 0 : i32
    %c0_i32_1 = arith.constant 0 : i32
    return %c0_i32, %c0_i32_0 : i32, i32
  }
  func.func @transform_11(%arg0: i32) -> (i32, i32) {
    %c0_i32 = arith.constant 0 : i32
    %c0_i32_0 = arith.constant 0 : i32
    %c0_i32_1 = arith.constant 0 : i32
    return %c0_i32, %c0_i32_0 : i32, i32
  }
  func.func @transform_12(%arg0: i32) -> (i32, i32) {
    %c0_i32 = arith.constant 0 : i32
    %c0_i32_0 = arith.constant 0 : i32
    %c0_i32_1 = arith.constant 0 : i32
    return %c0_i32, %c0_i32_0 : i32, i32
  }
  func.func @transform_13(%arg0: i32) -> (i32, i32) {
    %c0_i32 = arith.constant 0 : i32
    %c0_i32_0 = arith.constant 0 : i32
    %c0_i32_1 = arith.constant 0 : i32
    return %c0_i32, %c0_i32_0 : i32, i32
  }
  func.func @transform_14(%arg0: i32) -> (i32, i32) {
    %c0_i32 = arith.constant 0 : i32
    %c0_i32_0 = arith.constant 0 : i32
    %c0_i32_1 = arith.constant 0 : i32
    return %c0_i32, %c0_i32_0 : i32, i32
  }
  func.func @transform_15(%arg0: i32) -> (i32, i32) {
    %c0_i32 = arith.constant 0 : i32
    %c0_i32_0 = arith.constant 0 : i32
    %c0_i32_1 = arith.constant 0 : i32
    return %c0_i32, %c0_i32_0 : i32, i32
  }
  func.func @transform_16(%arg0: i32) -> (i32, i32) {
    %c0_i32 = arith.constant 0 : i32
    %c0_i32_0 = arith.constant 0 : i32
    %c0_i32_1 = arith.constant 0 : i32
    return %c0_i32, %c0_i32_0 : i32, i32
  }
  func.func @transform_17(%arg0: i32) -> (i32, i32) {
    %c0_i32 = arith.constant 0 : i32
    %c0_i32_0 = arith.constant 0 : i32
    %c0_i32_1 = arith.constant 0 : i32
    return %c0_i32, %c0_i32_0 : i32, i32
  }
  func.func @transform_18(%arg0: i32) -> (i32, i32) {
    %c0_i32 = arith.constant 0 : i32
    %c0_i32_0 = arith.constant 0 : i32
    %c0_i32_1 = arith.constant 0 : i32
    return %c0_i32, %c0_i32_0 : i32, i32
  }
  func.func @transform_19(%arg0: i32) -> (i32, i32) {
    %c0_i32 = arith.constant 0 : i32
    %c0_i32_0 = arith.constant 0 : i32
    %c0_i32_1 = arith.constant 0 : i32
    return %c0_i32, %c0_i32_0 : i32, i32
  }
  func.func @transform_20(%arg0: i32) -> (i32, i32) {
    %c0_i32 = arith.constant 0 : i32
    %c0_i32_0 = arith.constant 0 : i32
    %c0_i32_1 = arith.constant 0 : i32
    return %c0_i32, %c0_i32_0 : i32, i32
  }
  func.func @transform_21(%arg0: i32) -> (i32, i32) {
    %c0_i32 = arith.constant 0 : i32
    %c0_i32_0 = arith.constant 0 : i32
    %c0_i32_1 = arith.constant 0 : i32
    return %c0_i32, %c0_i32_0 : i32, i32
  }
  func.func @transform_22(%arg0: i32) -> (i32, i32) {
    %c0_i32 = arith.constant 0 : i32
    %c0_i32_0 = arith.constant 0 : i32
    %c0_i32_1 = arith.constant 0 : i32
    return %c0_i32, %c0_i32_0 : i32, i32
  }
  func.func @transform_23(%arg0: i32) -> (i32, i32) {
    %c0_i32 = arith.constant 0 : i32
    %c0_i32_0 = arith.constant 0 : i32
    %c0_i32_1 = arith.constant 0 : i32
    return %c0_i32, %c0_i32_0 : i32, i32
  }
  func.func @transform_24(%arg0: i32) -> (i32, i32) {
    %c0_i32 = arith.constant 0 : i32
    %c0_i32_0 = arith.constant 0 : i32
    %c0_i32_1 = arith.constant 0 : i32
    return %c0_i32, %c0_i32_0 : i32, i32
  }
  func.func @transform_25(%arg0: i32) -> (i32, i32) {
    %c0_i32 = arith.constant 0 : i32
    %c0_i32_0 = arith.constant 0 : i32
    %c0_i32_1 = arith.constant 0 : i32
    return %c0_i32, %c0_i32_0 : i32, i32
  }
  func.func @transform_26(%arg0: i32) -> (i32, i32) {
    %c0_i32 = arith.constant 0 : i32
    %c0_i32_0 = arith.constant 0 : i32
    %c0_i32_1 = arith.constant 0 : i32
    return %c0_i32, %c0_i32_0 : i32, i32
  }
  func.func @transform_27(%arg0: i32) -> (i32, i32) {
    %c0_i32 = arith.constant 0 : i32
    %c0_i32_0 = arith.constant 0 : i32
    %c0_i32_1 = arith.constant 0 : i32
    return %c0_i32, %c0_i32_0 : i32, i32
  }
  func.func @transform_28(%arg0: i32) -> (i32, i32) {
    %c0_i32 = arith.constant 0 : i32
    %c0_i32_0 = arith.constant 0 : i32
    %c0_i32_1 = arith.constant 0 : i32
    return %c0_i32, %c0_i32_0 : i32, i32
  }
  func.func @transform_29(%arg0: i32) -> (i32, i32, i32) {
    %c0_i32 = arith.constant 0 : i32
    %c0_i32_0 = arith.constant 0 : i32
    %c0_i32_1 = arith.constant 0 : i32
    return %arg0, %c0_i32, %c0_i32_0 : i32, i32, i32
  }
}

</mosaic_0001>

<bundles_post_ra>
// kernel: resnet_forward.1
= control target key start
LH: loop header
LB: loop body
LE: loop exit
PB: predicated region body
PF: predicated region fallthrough
CT: control target
= control target key end

     0   :  { %s12868_s6 = smov 1   ;;  %s12869_s10 = smov 2   ;;  %s15381_s0 = inlined_call_operand.smem [shape: u32[30], index: -1, kind: input, shape index: {}] }
   0x1   :  { %s12910_s5 = sld [smem:[%s15381_s0]]   ;;  %s12870_s14 = smov 3  }
   0x2   :  { %s12915_s9 = sld [smem:[%s15381_s0 + %s12868_s6]]   ;;  %s12871_s18 = smov 4  }
   0x3   :  { %s12920_s13 = sld [smem:[%s15381_s0 + %s12869_s10]]   ;;  %s12872_s22 = smov 5  }
   0x4   :  { %s12925_s17 = sld [smem:[%s15381_s0 + %s12870_s14]]   ;;  %s12873_s26 = smov 6  }
   0x5   :  { %s12930_s21 = sld [smem:[%s15381_s0 + %s12871_s18]]   ;;  %s12874_s30 = smov 7  }
   0x6   :  { %s12935_s25 = sld [smem:[%s15381_s0 + %s12872_s22]]   ;;  %s12875_s4 = smov 8  }
   0x7   :  { %15397 = sst [smem:[#allocation14_spill]] %s12910_s5  ;;  %s12876_s10 = smov 9  }
   0x8   :  { %15398 = sst [smem:[#allocation15_spill]] %s12915_s9  ;;  %s12877_s15 = smov 10  }
   0x9   :  { %15399 = sst [smem:[#allocation16_spill]] %s12920_s13  ;;  %s12878_s20 = smov 11  }
   0xa   :  { %s12940_s29 = sld [smem:[%s15381_s0 + %s12873_s26]]   ;;  %s12879_s26 = smov 12  }
   0xb   :  { %s12945_s3 = sld [smem:[%s15381_s0 + %s12874_s30]]   ;;  %s12880_s1 = smov 13  }
   0xc   :  { %s12950_s8 = sld [smem:[%s15381_s0 + %s12875_s4]]   ;;  %s12881_s7 = smov 14  }
   0xd   :  { %s12955_s14 = sld [smem:[%s15381_s0 + %s12876_s10]]   ;;  %s12883_s22 = smov 16  }
   0xe   :  { %s12960_s19 = sld [smem:[%s15381_s0 + %s12877_s15]]   ;;  %s12882_s15 = smov 15  }
   0xf   :  { %s12965_s24 = sld [smem:[%s15381_s0 + %s12878_s20]]   ;;  %s12884_s28 = smov 17  }
  0x10   :  { %s12970_s30 = sld [smem:[%s15381_s0 + %s12879_s26]]  }
  0x11   :  { %15400 = sst [smem:[#allocation17_spill]] %s12945_s3 }
  0x12   :  { %15401 = sst [smem:[#allocation18_spill]] %s12950_s8 }
  0x13   :  { %s12975_s6 = sld [smem:[%s15381_s0 + %s12880_s1]]  }
  0x14   :  { %s12980_s12 = sld [smem:[%s15381_s0 + %s12881_s7]]   ;;  %s12885_s7 = smov 18  }
  0x15   :  { %s12985_s20 = sld [smem:[%s15381_s0 + %s12882_s15]]   ;;  %s12886_s15 = smov 19  }
  0x16   :  { %s12990_s27 = sld [smem:[%s15381_s0 + %s12883_s22]]   ;;  %s12887_s22 = smov 20  }
  0x17   :  { %s12995_s4 = sld [smem:[%s15381_s0 + %s12884_s28]]   ;;  %s12888_s28 = smov 21  }
  0x19   :  { %15402 = sst [smem:[#allocation19_spill]] %s12975_s6 }
  0x1a   :  { %15403 = sst [smem:[#allocation20_spill]] %s12980_s12 }
  0x1b   :  { %15404 = sst [smem:[#allocation21_spill]] %s12985_s20 }
  0x1c   :  { %15405 = sst [smem:[#allocation22_spill]] %s12990_s27 }
  0x1d   :  { %15406 = sst [smem:[#allocation23_spill]] %s12995_s4 }
  0x1e   :  { %s13000_s12 = sld [smem:[%s15381_s0 + %s12885_s7]]   ;;  %s12889_s7 = smov 22  }
  0x1f   :  { %s13005_s20 = sld [smem:[%s15381_s0 + %s12886_s15]]   ;;  %s12890_s15 = smov 23  }
  0x20   :  { %s13010_s27 = sld [smem:[%s15381_s0 + %s12887_s22]]   ;;  %s12891_s22 = smov 24  }
  0x21   :  { %s13015_s4 = sld [smem:[%s15381_s0 + %s12888_s28]]   ;;  %s12892_s28 = smov 25  }
  0x24   :  { %15407 = sst [smem:[#allocation24_spill]] %s13000_s12 }
  0x25   :  { %15408 = sst [smem:[#allocation25_spill]] %s13005_s20 }
  0x26   :  { %15409 = sst [smem:[#allocation26_spill]] %s13010_s27 }
  0x27   :  { %15410 = sst [smem:[#allocation27_spill]] %s13015_s4 }
  0x28   :  { %s13020_s12 = sld [smem:[%s15381_s0 + %s12889_s7]]   ;;  %s12893_s7 = smov 26  }
  0x29   :  { %s13025_s20 = sld [smem:[%s15381_s0 + %s12890_s15]]   ;;  %s12894_s15 = smov 27  }
  0x2a   :  { %s13030_s27 = sld [smem:[%s15381_s0 + %s12891_s22]]   ;;  %s12895_s22 = smov 28  }
  0x2b   :  { %s13035_s4 = sld [smem:[%s15381_s0 + %s12892_s28]]   ;;  %s12896_s28 = smov 29  }
  0x2e   :  { %15411 = sst [smem:[#allocation28_spill]] %s13020_s12 }
  0x2f   :  { %15412 = sst [smem:[#allocation29_spill]] %s13025_s20 }
  0x30   :  { %15413 = sst [smem:[#allocation30_spill]] %s13030_s27 }
  0x31   :  { %15414 = sst [smem:[#allocation31_spill]] %s13035_s4 }
  0x32   :  { %s13040_s12 = sld [smem:[%s15381_s0 + %s12893_s7]]  }
  0x33   :  { %s13045_s20 = sld [smem:[%s15381_s0 + %s12894_s15]]  }
  0x34   :  { %s13050_s27 = sld [smem:[%s15381_s0 + %s12895_s22]]  }
  0x35   :  { %s13055_s4 = sld [smem:[%s15381_s0 + %s12896_s28]]  }
  0x38   :  { %15415 = sst [smem:[#allocation32_spill]] %s13040_s12 }
  0x39   :  { %64 = vsyncpa [#allocation12], 0 }
  0x3a   :  { %66 = vsyncpa [#allocation12 + $0x1], 0  ;;  %s13057_s7 = smov 0   ;;  %s13059_s10 = smov 0  }
  0x3b   :  { %s13061_s11 = smov 0   ;;  %s13063_s15 = smov 0  }
  0x3c LB: > { %s15416_s12 = sld [smem:[#allocation32_spill]]  ;;  %s13078_s0 = sadd.s32 4294967295, %s12866_s15   ;;  %s12866_s15 = sphi %s13063_s15, %s15440_s15   ;;  %s12862_s11 = sphi %s13061_s11, %s15439_s11   ;;  %s12858_s10 = sphi %s13059_s10, %s15438_s10   ;;  %s12854_s7 = sphi %s13057_s7, %s15437_s7  }
  0x3d   : > { %s15417_s9 = sld [smem:[#allocation15_spill]]  ;;  %s9204_s16 = sadd.s32 4294967294, %s12866_s15  }
  0x3e   : > { %s15418_s6 = sld [smem:[#allocation19_spill]]  ;;  %s13082_s18 = sadd.s32 1, %s12866_s15  }
  0x3f   : > { %s15419_s3 = sld [smem:[#allocation17_spill]]  ;;  %s693_s22 = sadd.s32 1, %s12862_s11 }
  0x40   : > { %s690_s23 = ssub.s32 %s12866_s15, %s13082_s18  ;;  %p703_p0 = scmp.ne.s32.totalorder %s12862_s11, %s12858_s10 }
  0x41   : > { %p691_p1 = scmp.eq.s32.totalorder %s690_s23, 0  ;;  %p704_p2 = scmp.eq.s32.totalorder %s13078_s0, 1 }
  0x42   : > { %p709_p3 = scmp.ne.s32.totalorder %s12858_s10, %s12854_s7  ;;  %p710_p4 = scmp.eq.s32.totalorder %s9204_s16, 1 }
  0x43   : > { %s13093_s26 = scalar_select %p691_p1, %s12862_s11, %s693_s22  }
  0x44   : > { %p13095_p5 = por %p704_p2, %p703_p0  ;;  %p13099_p6 = por %p710_p4, %p709_p3 }
  0x45   : > { %p9207_p7 = scmp.ge.s32.totalorder %s12866_s15, 1  ;;  %p820_p8 = scmp.lt.s32.totalorder %s12866_s15, 3 }
  0x47   : > { %p821_p9 = pnand %p9207_p7, %p820_p8 }
  0x48   : > { %s15422_s5 = sld [smem:[#allocation14_spill]] (!%p821_p9)  ;;  %p895_p10 = scmp.lt.s32.totalorder (!%p821_p9), %s13078_s0, 1 }
  0x49   : > { %824 = sbr.rel (%p821_p9) target bundleno = 3567 (0xdef), region = 136  ;;  %s15423_s13 = sld [smem:[#allocation16_spill]] (!%p821_p9) }
  0x4a   : > { %s12899_s23 = smov (!%p821_p9), 64   ;;  %s15424_s8 = sld [smem:[#allocation18_spill]] (!%p821_p9) }
  0x4e   : > { %v955_v0 = vld [vmem:[%s15417_s9 + $0x18] sm:$0x1]  ;;  %vm1030_vm0 = vcmask 1040384   ;;  %v12897_v2 = vmov 0   ;;  %s896_s2 = scalar_select %p895_p10, %s13078_s0, 1  ;;  %v11795_v6 = vld [vmem:[%s15417_s9 + $0x10] sm:$0xff] }
  0x4f   : > { %v973_v1 = vunpack.c.l.b16 %v955_v0  ;;  %v1032_v3 = vsel %vm1030_vm0, 65535, %v12897_v2  ;;  %v11794_v7 = vld [vmem:[%s15417_s9 + $0x8] sm:$0xff]  ;;  %v11793_v8 = vld [vmem:[%s15417_s9] sm:$0xff]  ;;  %vm981_vm1 = vcmask 400384   ;;  %vm1157_vm2 = vcmask 261120  }
  0x50   : > { %s11792_s16 = sshll.u32 %s896_s2, 8  ;;  %vm1159_vm3 = vcmask 253952   ;;  %v12898_v30 = vmov 0.0   ;;  %v13186_v36 = vld [vmem:[%s15423_s13] ss:$0 sm:$0xff]  ;;  %vm1405_vm4 = vcmask 254976  }
  0x51   : > { %v977_v4 = vpack.c.b16 %v973_v1, %v973_v1  ;;  %s13112_s22 = scalar_lea.vmem %s15422_s5, %s11792_s16  ;;  %1161 = vst.msk [vmem:[#allocation2 + $0x10] sm:$0xff] %vm1157_vm2, %v12898_v30  ;;  %s12900_s2 = smov 32   ;;  %vm1707_vm5 = vcmask 523264   ;;  %vm1716_vm6 = vcmask 785408   ;;  %vm2985_vm7 = vcmask 258048  }
  0x52   : > { %v901_v9 = vld [vmem:[%s13112_s22] sm:$0xff]  ;;  %v902_v10 = vld [vmem:[%s13112_s22 + $0x8] sm:$0xff]  ;;  %v903_v12 = vld [vmem:[%s13112_s22 + $0x10] sm:$0xff]  ;;  %1162 = vst.msk [vmem:[#allocation2 + $0x18] sm:$0x1] %vm1159_vm3, %v12898_v30  ;;  %s12901_s16 = smov 96  }
  0x53   : > { %v1034_v5 = vand.u32 %v1032_v3, %v977_v4  ;;  %v933_v11 = vpack.c.bf16 %v902_v10, %v901_v9  ;;  %v904_v13 = vld [vmem:[%s13112_s22 + $0x18] sm:$0xff]  ;;  %v905_v15 = vld [vmem:[%s13112_s22 + $0x20] sm:$0xff]  ;;  %v906_v16 = vld [vmem:[%s13112_s22 + $0x28] sm:$0xff]  ;;  %1158 = vst.msk [vmem:[#allocation2] sm:$0xff] %vm1157_vm2, %v12898_v30  ;;  %vm3460_vm8 = vcmask 521216   ;;  %vm3474_vm9 = vcmask 519168  }
  0x54   : > { %v934_v14 = vpack.c.bf16 %v904_v13, %v903_v12  ;;  %v935_v17 = vpack.c.bf16 %v906_v16, %v905_v15  ;;  %v907_v18 = vld [vmem:[%s13112_s22 + $0x30] sm:$0xff]  ;;  %v908_v19 = vld [vmem:[%s13112_s22 + $0x38] sm:$0xff]  ;;  %v909_v21 = vld [vmem:[%s13112_s22 + $0x40] sm:$0xff]  ;;  %1160 = vst.msk [vmem:[#allocation2 + $0x8] sm:$0x1] %vm1159_vm3, %v12898_v30  ;;  %vm4054_vm10 = vcmask 130048  }
  0x55   : > { %1040 = vmatpush.bf16.msra.mxu0 %v1034_v5  ;;  %v936_v20 = vpack.c.bf16 %v908_v19, %v907_v18  ;;  %v910_v22 = vld [vmem:[%s13112_s22 + $0x48] sm:$0xff]  ;;  %v911_v24 = vld [vmem:[%s13112_s22 + $0x50] sm:$0xff]  ;;  %v912_v25 = vld [vmem:[%s13112_s22 + $0x58] sm:$0xff]  ;;  %1163 = vst.msk [vmem:[#allocation2 + $0x20] sm:$0xff] %vm1157_vm2, %v12898_v30  ;;  %vm4200_vm11 = vcmask 518144   ;;  %s15432_s5 = sld [smem:[#allocation23_spill]] }
  0x56   : > { %v937_v23 = vpack.c.bf16 %v910_v22, %v909_v21  ;;  %v938_v26 = vpack.c.bf16 %v912_v25, %v911_v24  ;;  %v913_v27 = vld [vmem:[%s13112_s22 + $0x60] sm:$0xff]  ;;  %v914_v28 = vld [vmem:[%s13112_s22 + $0x68] sm:$0xff]  ;;  %1164 = vst.msk [vmem:[#allocation2 + $0x28] sm:$0x1] %vm1159_vm3, %v12898_v30  ;;  %v915_v31 = vld [vmem:[%s13112_s22 + $0x70] sm:$0xff] }
  0x57   : > { %v939_v29 = vpack.c.bf16 %v914_v28, %v913_v27  ;;  %1165 = vst.msk [vmem:[#allocation2 + $0x30] sm:$0xff] %vm1157_vm2, %v12898_v30  ;;  %v916_v32 = vld [vmem:[%s13112_s22 + $0x78] sm:$0xff]  ;;  %v917_v34 = vld [vmem:[%s13112_s22 + $0x80] sm:$0xff]  ;;  %v918_v35 = vld [vmem:[%s13112_s22 + $0x88] sm:$0xff] }
  0x58   : > { %1166 = vst.msk [vmem:[#allocation2 + $0x38] sm:$0x1] %vm1159_vm3, %v12898_v30  ;;  %v940_v33 = vpack.c.bf16 %v916_v32, %v915_v31  ;;  %v941_v37 = vpack.c.bf16 %v918_v35, %v917_v34  ;;  %v919_v43 = vld [vmem:[%s13112_s22 + $0x90] sm:$0xff]  ;;  %v920_v44 = vld [vmem:[%s13112_s22 + $0x98] sm:$0xff]  ;;  %v921_v47 = vld [vmem:[%s13112_s22 + $0xa0] sm:$0xff] }
  0x59   : > { %1041 = vmatpush.bf16.msra.mxu0 %v11795_v6  ;;  %1167 = vst.msk [vmem:[#allocation2 + $0x40] sm:$0xff] %vm1157_vm2, %v12898_v30  ;;  %v942_v45 = vpack.c.bf16 %v920_v44, %v919_v43  ;;  %v922_v48 = vld [vmem:[%s13112_s22 + $0xa8] sm:$0xff]  ;;  %v923_v61 = vld [vmem:[%s13112_s22 + $0xb0] sm:$0xff]  ;;  %v924_v62 = vld [vmem:[%s13112_s22 + $0xb8] sm:$0xff] }
  0x5a   : > { %1168 = vst.msk [vmem:[#allocation2 + $0x48] sm:$0x1] %vm1159_vm3, %v12898_v30  ;;  %v943_v49 = vpack.c.bf16 %v922_v48, %v921_v47  ;;  %v944_v0 = vpack.c.bf16 %v924_v62, %v923_v61  ;;  %v927_v16 = vld [vmem:[%s13112_s22 + $0xd0] sm:$0xff]  ;;  %v929_v25 = vld [vmem:[%s13112_s22 + $0xe0] sm:$0xff] }
  0x5b   : > { %1169 = vst.msk [vmem:[#allocation2 + $0x50] sm:$0xff] %vm1157_vm2, %v12898_v30  ;;  %v931_v35 = vld [vmem:[%s13112_s22 + $0xf0] sm:$0xff] }
  0x5c   : > { %1170 = vst.msk [vmem:[#allocation2 + $0x58] sm:$0x1] %vm1159_vm3, %v12898_v30 }
  0x5d   : > { %1042 = vmatpush.bf16.msra.mxu0 %v11794_v7  ;;  %1171 = vst.msk [vmem:[#allocation2 + $0x60] sm:$0xff] %vm1157_vm2, %v12898_v30  ;;  %v925_v7 = vld [vmem:[%s13112_s22 + $0xc0] sm:$0xff] }
  0x5e   : > { %1172 = vst.msk [vmem:[#allocation2 + $0x68] sm:$0x1] %vm1159_vm3, %v12898_v30 }
  0x5f   : > { %1173 = vst.msk [vmem:[#allocation2 + $0x70] sm:$0xff] %vm1157_vm2, %v12898_v30 }
  0x60   : > { %1174 = vst.msk [vmem:[#allocation2 + $0x78] sm:$0x1] %vm1159_vm3, %v12898_v30 }
  0x61   : > { %1043 = vmatpush.bf16.msra.mxu0 %v11793_v8  ;;  %1175 = vst.msk [vmem:[#allocation2 + $0x80] sm:$0xff] %vm1157_vm2, %v12898_v30  ;;  %v926_v8 = vld [vmem:[%s13112_s22 + $0xc8] sm:$0xff] }
  0x62   : > { %1176 = vst.msk [vmem:[#allocation2 + $0x88] sm:$0x1] %vm1159_vm3, %v12898_v30  ;;  %v945_v9 = vpack.c.bf16 %v926_v8, %v925_v7 }
  0x63   : > { %1177 = vst.msk [vmem:[#allocation2 + $0x90] sm:$0xff] %vm1157_vm2, %v12898_v30 }
  0x64   : > { %9222 = vmatmul.msk.bf16.vlgmr.msra.gmra.mxu0 %vm981_vm1, %v933_v11  ;;  %1179 = vst.msk [vmem:[#allocation2 + $0xa0] sm:$0xff] %vm1157_vm2, %v12898_v30 }
  0x65   : > { %1181 = vst.msk [vmem:[#allocation2 + $0xb0] sm:$0xff] %vm1157_vm2, %v12898_v30 }
  0x66   : > { %1183 = vst.msk [vmem:[#allocation2 + $0xc0] sm:$0xff] %vm1157_vm2, %v12898_v30 }
  0x67   : > { %1185 = vst.msk [vmem:[#allocation2 + $0xd0] sm:$0xff] %vm1157_vm2, %v12898_v30 }
  0x68   : > { %1187 = vst.msk [vmem:[#allocation2 + $0xe0] sm:$0xff] %vm1157_vm2, %v12898_v30 }
  0x69   : > { %1189 = vst.msk [vmem:[#allocation2 + $0xf0] sm:$0xff] %vm1157_vm2, %v12898_v30 }
  0x6a   : > { %1191 = vst.msk [vmem:[#allocation2 + $0x100] sm:$0xff] %vm1157_vm2, %v12898_v30  ;;  %v1276_v7 = vld [vmem:[#allocation2 + $0x90] sm:$0xff] }
  0x6b   : > { %1193 = vst.msk [vmem:[#allocation2 + $0x110] sm:$0xff] %vm1157_vm2, %v12898_v30 }
  0x6c   : > { %1195 = vst.msk [vmem:[#allocation2 + $0x120] sm:$0xff] %vm1157_vm2, %v12898_v30 }
  0x6d   : > { %1196 = vst.msk [vmem:[#allocation2 + $0x128] sm:$0x1] %vm1159_vm3, %v12898_v30 }
  0x6e   : > { %1197 = vst.msk [vmem:[#allocation2 + $0x130] sm:$0xff] %vm1157_vm2, %v12898_v30 }
  0x6f   : > { %1198 = vst.msk [vmem:[#allocation2 + $0x138] sm:$0x1] %vm1159_vm3, %v12898_v30 }
  0x70   : > { %1199 = vst.msk [vmem:[#allocation2 + $0x140] sm:$0xff] %vm1157_vm2, %v12898_v30 }
  0x71   : > { %1200 = vst.msk [vmem:[#allocation2 + $0x148] sm:$0x1] %vm1159_vm3, %v12898_v30 }
  0x72   : > { %1201 = vst.msk [vmem:[#allocation2 + $0x150] sm:$0xff] %vm1157_vm2, %v12898_v30 }
  0x73   : > { %1202 = vst.msk [vmem:[#allocation2 + $0x158] sm:$0x1] %vm1159_vm3, %v12898_v30 }
  0x74   : > { %9223 = vmatmul.msk.bf16.gmra.mxu0 %vm981_vm1, %v934_v14  ;;  %1203 = vst.msk [vmem:[#allocation2 + $0x160] sm:$0xff] %vm1157_vm2, %v12898_v30 }
  0x75   : > { %1204 = vst.msk [vmem:[#allocation2 + $0x168] sm:$0x1] %vm1159_vm3, %v12898_v30 }
  0x76   : > { %1205 = vst.msk [vmem:[#allocation2 + $0x170] sm:$0xff] %vm1157_vm2, %v12898_v30 }
  0x77   : > { %1206 = vst.msk [vmem:[#allocation2 + $0x178] sm:$0x1] %vm1159_vm3, %v12898_v30 }
  0x78   : > { %1207 = vst.msk [vmem:[#allocation2 + $0x180] sm:$0xff] %vm1157_vm2, %v12898_v30 }
  0x79   : > { %1208 = vst.msk [vmem:[#allocation2 + $0x188] sm:$0x1] %vm1159_vm3, %v12898_v30 }
  0x7a   : > { %1209 = vst.msk [vmem:[#allocation2 + $0x190] sm:$0xff] %vm1157_vm2, %v12898_v30 }
  0x7b   : > { %1210 = vst.msk [vmem:[#allocation2 + $0x198] sm:$0x1] %vm1159_vm3, %v12898_v30 }
  0x7c   : > { %1213 = vst.msk [vmem:[#allocation2 + $0x1b0] sm:$0xff] %vm1157_vm2, %v12898_v30 }
  0x7d   : > { %1215 = vst.msk [vmem:[#allocation2 + $0x1c0] sm:$0xff] %vm1157_vm2, %v12898_v30 }
  0x7e   : > { %1217 = vst.msk [vmem:[#allocation2 + $0x1d0] sm:$0xff] %vm1157_vm2, %v12898_v30 }
  0x7f   : > { %1219 = vst.msk [vmem:[#allocation2 + $0x1e0] sm:$0xff] %vm1157_vm2, %v12898_v30 }
  0x80   : > { %1221 = vst.msk [vmem:[#allocation2 + $0x1f0] sm:$0xff] %vm1157_vm2, %v12898_v30 }
  0x81   : > { %1223 = vst.msk [vmem:[#allocation2 + $0x200] sm:$0xff] %vm1157_vm2, %v12898_v30 }
  0x82   : > { %1225 = vst.msk [vmem:[#allocation2 + $0x210] sm:$0xff] %vm1157_vm2, %v12898_v30 }
  0x83   : > { %1227 = vst.msk [vmem:[#allocation2 + $0x220] sm:$0xff] %vm1157_vm2, %v12898_v30 }
  0x84   : > { %9224 = vmatmul.msk.bf16.gmra.mxu0 %vm981_vm1, %v935_v17  ;;  %1404 = vst.msk [vmem:[#allocation3] sm:$0xff] %vm1157_vm2, %v12898_v30  ;;  %v928_v17 = vld [vmem:[%s13112_s22 + $0xd8] sm:$0xff] }
  0x85   : > { %1407 = vst.msk [vmem:[#allocation3 + $0x10] sm:$0xff] %vm1157_vm2, %v12898_v30  ;;  %v946_v18 = vpack.c.bf16 %v928_v17, %v927_v16 }
  0x86   : > { %1409 = vst.msk [vmem:[#allocation3 + $0x20] sm:$0xff] %vm1157_vm2, %v12898_v30 }
  0x87   : > { %1411 = vst.msk [vmem:[#allocation3 + $0x30] sm:$0xff] %vm1157_vm2, %v12898_v30 }
  0x88   : > { %1413 = vst.msk [vmem:[#allocation3 + $0x40] sm:$0xff] %vm1157_vm2, %v12898_v30 }
  0x89   : > { %1415 = vst.msk [vmem:[#allocation3 + $0x50] sm:$0xff] %vm1157_vm2, %v12898_v30 }
  0x8a   : > { %1417 = vst.msk [vmem:[#allocation3 + $0x60] sm:$0xff] %vm1157_vm2, %v12898_v30 }
  0x8b   : > { %1419 = vst.msk [vmem:[#allocation3 + $0x70] sm:$0xff] %vm1157_vm2, %v12898_v30 }
  0x8c   : > { %1421 = vst.msk [vmem:[#allocation3 + $0x80] sm:$0xff] %vm1157_vm2, %v12898_v30 }
  0x8d   : > { %1423 = vst.msk [vmem:[#allocation3 + $0x90] sm:$0xff] %vm1157_vm2, %v12898_v30 }
  0x8e   : > { %2016 = vst.msk [vmem:[#allocation4] sm:$0xff] %vm1157_vm2, %v12898_v30 }
  0x8f   : > { %2018 = vst.msk [vmem:[#allocation4 + $0x10] sm:$0xff] %vm1157_vm2, %v12898_v30 }
  0x90   : > { %2020 = vst.msk [vmem:[#allocation4 + $0x20] sm:$0xff] %vm1157_vm2, %v12898_v30 }
  0x91   : > { %2022 = vst.msk [vmem:[#allocation4 + $0x30] sm:$0xff] %vm1157_vm2, %v12898_v30 }
  0x92   : > { %2024 = vst.msk [vmem:[#allocation4 + $0x40] sm:$0xff] %vm1157_vm2, %v12898_v30 }
  0x93   : > { %2026 = vst.msk [vmem:[#allocation4 + $0x50] sm:$0xff] %vm1157_vm2, %v12898_v30 }
  0x94   : > { %9225 = vmatmul.msk.bf16.gmra.mxu0 %vm981_vm1, %v936_v20  ;;  %2028 = vst.msk [vmem:[#allocation4 + $0x60] sm:$0xff] %vm1157_vm2, %v12898_v30 }
  0x95   : > { %2030 = vst.msk [vmem:[#allocation4 + $0x70] sm:$0xff] %vm1157_vm2, %v12898_v30 }
  0x96   : > { %2032 = vst.msk [vmem:[#allocation4 + $0x80] sm:$0xff] %vm1157_vm2, %v12898_v30 }
  0x97   : > { %2034 = vst.msk [vmem:[#allocation4 + $0x90] sm:$0xff] %vm1157_vm2, %v12898_v30 }
  0x98   : > { %4715 = vst [vmem:[#allocation8] sm:$0xf] %v12898_v30 }
  0x99   : > { %4716 = vst [vmem:[#allocation8 + $0x4] sm:$0xf] %v12898_v30 }
  0x9a   : > { %4717 = vst [vmem:[#allocation8 + $0x8] sm:$0xf] %v12898_v30 }
  0x9b   : > { %4718 = vst [vmem:[#allocation8 + $0xc] sm:$0xf] %v12898_v30 }
  0x9c   : > { %5515 = vst [vmem:[#allocation9] sm:$0xf] %v12898_v30 }
  0x9d   : > { %5516 = vst [vmem:[#allocation9 + $0x4] sm:$0xf] %v12898_v30 }
  0x9e   : > { %5517 = vst [vmem:[#allocation9 + $0x8] sm:$0xf] %v12898_v30 }
  0x9f   : > { %6728 = vst [vmem:[#allocation10] sm:$0x77] %v12898_v30 }
  0xa0   : > { %6729 = vst [vmem:[#allocation10 + $0x8] sm:$0x77] %v12898_v30 }
  0xa1   : > { %6730 = vst [vmem:[#allocation10 + $0x10] sm:$0x77] %v12898_v30 }
  0xa2   : > { %1406 = vst.msk [vmem:[#allocation3 + $0x8] sm:$0x3] %vm1405_vm4, %v12898_v30 }
  0xa3   : > { %1408 = vst.msk [vmem:[#allocation3 + $0x18] sm:$0x3] %vm1405_vm4, %v12898_v30 }
  0xa4   : > { %9226 = vmatmul.msk.bf16.gmra.mxu0 %vm981_vm1, %v937_v23  ;;  %1410 = vst.msk [vmem:[#allocation3 + $0x28] sm:$0x3] %vm1405_vm4, %v12898_v30 }
  0xa5   : > { %1412 = vst.msk [vmem:[#allocation3 + $0x38] sm:$0x3] %vm1405_vm4, %v12898_v30 }
  0xa6   : > { %1414 = vst.msk [vmem:[#allocation3 + $0x48] sm:$0x3] %vm1405_vm4, %v12898_v30 }
  0xa7   : > { %1416 = vst.msk [vmem:[#allocation3 + $0x58] sm:$0x3] %vm1405_vm4, %v12898_v30 }
  0xa8   : > { %1418 = vst.msk [vmem:[#allocation3 + $0x68] sm:$0x3] %vm1405_vm4, %v12898_v30 }
  0xa9   : > { %1420 = vst.msk [vmem:[#allocation3 + $0x78] sm:$0x3] %vm1405_vm4, %v12898_v30 }
  0xaa   : > { %1422 = vst.msk [vmem:[#allocation3 + $0x88] sm:$0x3] %vm1405_vm4, %v12898_v30 }
  0xab   : > { %1424 = vst.msk [vmem:[#allocation3 + $0x98] sm:$0x3] %vm1405_vm4, %v12898_v30 }
  0xac   : > { %2017 = vst.msk [vmem:[#allocation4 + $0x8] sm:$0x3] %vm1405_vm4, %v12898_v30 }
  0xad   : > { %2019 = vst.msk [vmem:[#allocation4 + $0x18] sm:$0x3] %vm1405_vm4, %v12898_v30 }
  0xae   : > { %2021 = vst.msk [vmem:[#allocation4 + $0x28] sm:$0x3] %vm1405_vm4, %v12898_v30 }
  0xaf   : > { %2023 = vst.msk [vmem:[#allocation4 + $0x38] sm:$0x3] %vm1405_vm4, %v12898_v30 }
  0xb0   : > { %2025 = vst.msk [vmem:[#allocation4 + $0x48] sm:$0x3] %vm1405_vm4, %v12898_v30 }
  0xb1   : > { %2027 = vst.msk [vmem:[#allocation4 + $0x58] sm:$0x3] %vm1405_vm4, %v12898_v30 }
  0xb2   : > { %2029 = vst.msk [vmem:[#allocation4 + $0x68] sm:$0x3] %vm1405_vm4, %v12898_v30 }
  0xb3   : > { %2031 = vst.msk [vmem:[#allocation4 + $0x78] sm:$0x3] %vm1405_vm4, %v12898_v30 }
  0xb4   : > { %9227 = vmatmul.msk.bf16.gmra.mxu0 %vm981_vm1, %v938_v26  ;;  %v930_v26 = vld [vmem:[%s13112_s22 + $0xe8] sm:$0xff]  ;;  %2033 = vst.msk [vmem:[#allocation4 + $0x88] sm:$0x3] %vm1405_vm4, %v12898_v30 }
  0xb5   : > { %v947_v27 = vpack.c.bf16 %v930_v26, %v929_v25  ;;  %2035 = vst.msk [vmem:[#allocation4 + $0x98] sm:$0x3] %vm1405_vm4, %v12898_v30 }
  0xb6   : > { %3461 = vst.msk [vmem:[#allocation6] sm:$0x3f] %vm3460_vm8, %v12898_v30 }
  0xb7   : > { %3462 = vst.msk [vmem:[#allocation6 + $0x8] sm:$0x3f] %vm3460_vm8, %v12898_v30 }
  0xb8   : > { %3463 = vst.msk [vmem:[#allocation6 + $0x10] sm:$0x3f] %vm3460_vm8, %v12898_v30 }
  0xb9   : > { %3466 = vst.msk [vmem:[#allocation6 + $0x28] sm:$0x3f] %vm3460_vm8, %v12898_v30 }
  0xba   : > { %3464 = vst.msk [vmem:[#allocation6 + $0x18] sm:$0x3f] %vm3460_vm8, %v12898_v30 }
  0xbb   : > { %3465 = vst.msk [vmem:[#allocation6 + $0x20] sm:$0x3f] %vm3460_vm8, %v12898_v30 }
  0xc4   : > { %9228 = vmatmul.msk.bf16.gmra.mxu0 %vm981_vm1, %v939_v29 }
  0xd4   : > { %9229 = vmatmul.msk.bf16.gmra.mxu0 %vm981_vm1, %v940_v33 }
  0xe1   : > { %v1045_v38 = vpop.f32.mrf.mxu0 }
  0xe2   : > { %v1046_v39 = vadd.f32 %v13186_v36, %v1045_v38 }
  0xe4   : > { %v1125_v40 = vmax.f32 %v1046_v39, 0.0  ;;  %9230 = vmatmul.msk.bf16.gmra.mxu0 %vm981_vm1, %v941_v37  ;;  %v932_v37 = vld [vmem:[%s13112_s22 + $0xf8] sm:$0xff]  ;;  %s15425_s22 = sld [smem:[#allocation26_spill]] }
  0xe5   : > { %v948_v38 = vpack.c.bf16 %v932_v37, %v931_v35 }
  0xe6   : > { %1232 = vst.msk [vmem:[#allocation2 + $0x11] sm:$0xff] %vm1157_vm2, %v1125_v40 }
  0xe9   : > { %v1047_v41 = vpop.f32.mrf.mxu0 }
  0xea   : > { %v1048_v51 = vadd.f32 %v13186_v36, %v1047_v41 }
  0xec   : > { %v1126_v56 = vmax.f32 %v1048_v51, 0.0 }
  0xee   : > { %1233 = vst.msk [vmem:[#allocation2 + $0x21] sm:$0xff] %vm1157_vm2, %v1126_v56 }
  0xf1   : > { %v1050_v42 = vpop.f32.mrf.mxu0 }
  0xf2   : > { %v1051_v52 = vadd.f32 %v13186_v36, %v1050_v42 }
  0xf4   : > { %9231 = vmatmul.msk.bf16.gmra.mxu0 %vm981_vm1, %v942_v45  ;;  %v1127_v58 = vmax.f32 %v1051_v52, 0.0 }
  0xf6   : > { %1234 = vst.msk [vmem:[#allocation2 + $0x31] sm:$0xff] %vm1157_vm2, %v1127_v58 }
  0xf9   : > { %v1052_v46 = vpop.f32.mrf.mxu0 }
  0xfa   : > { %v1053_v53 = vadd.f32 %v13186_v36, %v1052_v46 }
  0xfc   : > { %v1128_v59 = vmax.f32 %v1053_v53, 0.0 }
  0xfe   : > { %1235 = vst.msk [vmem:[#allocation2 + $0x41] sm:$0xff] %vm1157_vm2, %v1128_v59 }
 0x101   : > { %v1055_v50 = vpop.f32.mrf.mxu0 }
 0x102   : > { %v1056_v54 = vadd.f32 %v13186_v36, %v1055_v50 }
 0x104   : > { %9232 = vmatmul.msk.bf16.gmra.mxu0 %vm981_vm1, %v943_v49  ;;  %v1129_v60 = vmax.f32 %v1056_v54, 0.0 }
 0x106   : > { %1236 = vst.msk [vmem:[#allocation2 + $0x51] sm:$0xff] %vm1157_vm2, %v1129_v60 }
 0x109   : > { %v1057_v55 = vpop.f32.mrf.mxu0 }
 0x10a   : > { %v1058_v57 = vadd.f32 %v13186_v36, %v1057_v55 }
 0x10c   : > { %v1130_v63 = vmax.f32 %v1058_v57, 0.0 }
 0x10e   : > { %1237 = vst.msk [vmem:[#allocation2 + $0x61] sm:$0xff] %vm1157_vm2, %v1130_v63 }
 0x111   : > { %v1060_v1 = vpop.f32.mrf.mxu0 }
 0x112   : > { %v1061_v2 = vadd.f32 %v13186_v36, %v1060_v1 }
 0x114   : > { %v1131_v3 = vmax.f32 %v1061_v2, 0.0  ;;  %9233 = vmatmul.msk.bf16.gmra.mxu0 %vm981_vm1, %v944_v0 }
 0x116   : > { %1238 = vst.msk [vmem:[#allocation2 + $0x71] sm:$0xff] %vm1157_vm2, %v1131_v3 }
 0x119   : > { %v1062_v4 = vpop.f32.mrf.mxu0 }
 0x11a   : > { %v1063_v5 = vadd.f32 %v13186_v36, %v1062_v4 }
 0x11c   : > { %v1132_v6 = vmax.f32 %v1063_v5, 0.0 }
 0x11e   : > { %1239 = vst.msk [vmem:[#allocation2 + $0x81] sm:$0xff] %vm1157_vm2, %v1132_v6  ;;  %v1267_v6 = vld [vmem:[#allocation2] sm:$0xff] }
 0x121   : > { %v1065_v10 = vpop.f32.mrf.mxu0 }
 0x122   : > { %v1066_v11 = vadd.f32 %v13186_v36, %v1065_v10  ;;  %v1284_v10 = vmax.f32 %v1267_v6, %v1276_v7 }
 0x124   : > { %v1133_v12 = vmax.f32 %v1066_v11, 0.0  ;;  %9234 = vmatmul.msk.bf16.gmra.mxu0 %vm981_vm1, %v945_v9  ;;  %v1292_v11 = vld [vmem:[#allocation2 + $0x1] sm:$0xff] }
 0x126   : > { %1241 = vst.msk [vmem:[#allocation2 + $0xa0] sm:$0xff] %vm1157_vm2, %v1133_v12  ;;  %v1300_v12 = vmax.f32 %v1284_v10, %v1292_v11 }
 0x129   : > { %v1067_v13 = vpop.f32.mrf.mxu0 }
 0x12a   : > { %v1068_v14 = vadd.f32 %v13186_v36, %v1067_v13 }
 0x12c   : > { %v1134_v15 = vmax.f32 %v1068_v14, 0.0 }
 0x12e   : > { %1242 = vst.msk [vmem:[#allocation2 + $0xb0] sm:$0xff] %vm1157_vm2, %v1134_v15 }
 0x131   : > { %v1070_v19 = vpop.f32.mrf.mxu0 }
 0x132   : > { %v1071_v20 = vadd.f32 %v13186_v36, %v1070_v19  ;;  %v1277_v19 = vld [vmem:[#allocation2 + $0xa0] sm:$0xff] }
 0x134   : > { %v1135_v21 = vmax.f32 %v1071_v20, 0.0  ;;  %9235 = vmatmul.msk.bf16.gmra.mxu0 %vm981_vm1, %v946_v18 }
 0x136   : > { %1243 = vst.msk [vmem:[#allocation2 + $0xc0] sm:$0xff] %vm1157_vm2, %v1135_v21 }
 0x139   : > { %v1072_v22 = vpop.f32.mrf.mxu0 }
 0x13a   : > { %v1073_v23 = vadd.f32 %v13186_v36, %v1072_v22  ;;  %v1356_v22 = vld [vmem:[#allocation2 + $0x10] sm:$0xff] }
 0x13c   : > { %v1136_v24 = vmax.f32 %v1073_v23, 0.0 }
 0x13e   : > { %1244 = vst.msk [vmem:[#allocation2 + $0xd0] sm:$0xff] %vm1157_vm2, %v1136_v24  ;;  %v1285_v24 = vmax.f32 %v1356_v22, %v1277_v19 }
 0x141   : > { %v1075_v28 = vpop.f32.mrf.mxu0 }
 0x142   : > { %v1076_v29 = vadd.f32 %v13186_v36, %v1075_v28  ;;  %v13371_v28 = vld [vmem:[#allocation2 + $0xb0] sm:$0xff] }
 0x144   : > { %v1137_v31 = vmax.f32 %v1076_v29, 0.0  ;;  %9236 = vmatmul.msk.bf16.gmra.mxu0 %vm981_vm1, %v947_v27  ;;  %v1293_v29 = vld [vmem:[#allocation2 + $0x11] sm:$0xff] }
 0x145   : > { %v1301_v35 = vmax.f32 %v1285_v24, %v1293_v29 }
 0x146   : > { %1245 = vst.msk [vmem:[#allocation2 + $0xe0] sm:$0xff] %vm1157_vm2, %v1137_v31 }
 0x149   : > { %v1077_v32 = vpop.f32.mrf.mxu0 }
 0x14a   : > { %v1078_v33 = vadd.f32 %v13186_v36, %v1077_v32 }
 0x14c   : > { %v1138_v34 = vmax.f32 %v1078_v33, 0.0 }
 0x14d   : > { %v1281_v24 = vld [vmem:[#allocation2 + $0xe0] sm:$0xff] }
 0x14e   : > { %1246 = vst.msk [vmem:[#allocation2 + $0xf0] sm:$0xff] %vm1157_vm2, %v1138_v34  ;;  %v1357_v34 = vld [vmem:[#allocation2 + $0x20] sm:$0xff] }
 0x14f   : > { %v1286_v37 = vmax.f32 %v1357_v34, %v13371_v28 }
 0x151   : > { %v1080_v39 = vpop.f32.mrf.mxu0 }
 0x152   : > { %v1081_v40 = vadd.f32 %v13186_v36, %v1080_v39 }
 0x154   : > { %v1139_v41 = vmax.f32 %v1081_v40, 0.0  ;;  %9237 = vmatmul.msk.bf16.gmra.mxu0 %vm981_vm1, %v948_v38 }
 0x156   : > { %1247 = vst.msk [vmem:[#allocation2 + $0x100] sm:$0xff] %vm1157_vm2, %v1139_v41  ;;  %v13383_v41 = vld [vmem:[#allocation2 + $0x21] sm:$0xff] }
 0x159   : > { %v1082_v42 = vpop.f32.mrf.mxu0 }
 0x15a   : > { %v1083_v43 = vadd.f32 %v13186_v36, %v1082_v42 }
 0x15c   : > { %v1140_v44 = vmax.f32 %v1083_v43, 0.0 }
 0x15e   : > { %1248 = vst.msk [vmem:[#allocation2 + $0x110] sm:$0xff] %vm1157_vm2, %v1140_v44 }
 0x161   : > { %v1085_v45 = vpop.f32.mrf.mxu0 }
 0x162   : > { %v1086_v46 = vadd.f32 %v13186_v36, %v1085_v45  ;;  %v1302_v45 = vmax.f32 %v1286_v37, %v13383_v41 }
 0x164   : > { %v1141_v47 = vmax.f32 %v1086_v46, 0.0 }
 0x166   : > { %1250 = vst.msk [vmem:[#allocation2 + $0x121] sm:$0xff] %vm1157_vm2, %v1141_v47  ;;  %v13391_v47 = vld [vmem:[#allocation2 + $0xc0] sm:$0xff] }
 0x169   : > { %v1087_v48 = vpop.f32.mrf.mxu0 }
 0x16a   : > { %v1088_v49 = vadd.f32 %v13186_v36, %v1087_v48 }
 0x16c   : > { %v1142_v50 = vmax.f32 %v1088_v49, 0.0 }
 0x16d   : > { %v1308_v13 = vld [vmem:[#allocation2 + $0x120] sm:$0xff] }
 0x16e   : > { %1251 = vst.msk [vmem:[#allocation2 + $0x131] sm:$0xff] %vm1157_vm2, %v1142_v50  ;;  %v1316_v16 = vmax.f32 %v1300_v12, %v1308_v13  ;;  %v1340_v21 = vld [vmem:[#allocation2 + $0x121] sm:$0xff] }
 0x171   : > { %v1090_v51 = vpop.f32.mrf.mxu0 }
 0x172   : > { %v1091_v52 = vadd.f32 %v13186_v36, %v1090_v51  ;;  %v11813_v51 = vld [vmem:[%s12925_s17 + $0x88] sm:$0xff] }
 0x173   : > { %1985 = vmatpush.bf16.msra.mxu3 %v11813_v51 }
 0x174   : > { %v1143_v53 = vmax.f32 %v1091_v52, 0.0  ;;  %v1358_v52 = vld [vmem:[#allocation2 + $0x30] sm:$0xff] }
 0x175   : > { %v1309_v31 = vld [vmem:[#allocation2 + $0x130] sm:$0xff] }
 0x176   : > { %1252 = vst.msk [vmem:[#allocation2 + $0x141] sm:$0xff] %vm1157_vm2, %v1143_v53  ;;  %v1317_v40 = vmax.f32 %v1301_v35, %v1309_v31  ;;  %v1341_v48 = vld [vmem:[#allocation2 + $0x131] sm:$0xff] }
 0x179   : > { %v1092_v54 = vpop.f32.mrf.mxu0 }
 0x17a   : > { %v1093_v55 = vadd.f32 %v13186_v36, %v1092_v54 }
 0x17c   : > { %v1144_v56 = vmax.f32 %v1093_v55, 0.0  ;;  %v1450_v55 = vld [vmem:[#allocation3 + $0x2] sm:$0xff] }
 0x17d   : > { %v1310_v42 = vld [vmem:[#allocation2 + $0x140] sm:$0xff] }
 0x17e   : > { %1253 = vst.msk [vmem:[#allocation2 + $0x151] sm:$0xff] %vm1157_vm2, %v1144_v56  ;;  %v1318_v49 = vmax.f32 %v1302_v45, %v1310_v42  ;;  %v1287_v56 = vmax.f32 %v1358_v52, %v13391_v47  ;;  %v1282_v45 = vld [vmem:[#allocation2 + $0xf0] sm:$0xff] }
 0x181   : > { %v1095_v57 = vpop.f32.mrf.mxu0 }
 0x182   : > { %v1096_v58 = vadd.f32 %v13186_v36, %v1095_v57 }
 0x184   : > { %v1145_v59 = vmax.f32 %v1096_v58, 0.0  ;;  %v11812_v58 = vld [vmem:[%s12925_s17 + $0x80] sm:$0xff] }
 0x185   : > { %1986 = vmatpush.bf16.msra.mxu3 %v11812_v58 }
 0x186   : > { %1254 = vst.msk [vmem:[#allocation2 + $0x161] sm:$0xff] %vm1157_vm2, %v1145_v59  ;;  %v1342_v59 = vld [vmem:[#allocation2 + $0x141] sm:$0xff] }
 0x189   : > { %v1097_v60 = vpop.f32.mrf.mxu0 }
 0x18a   : > { %v1098_v61 = vadd.f32 %v13186_v36, %v1097_v60 }
 0x18c   : > { %v1146_v62 = vmax.f32 %v1098_v61, 0.0 }
 0x18d   : > { %v1344_v35 = vld [vmem:[#allocation2 + $0x161] sm:$0xff] }
 0x18e   : > { %1255 = vst.msk [vmem:[#allocation2 + $0x171] sm:$0xff] %vm1157_vm2, %v1146_v62 }
 0x191   : > { %v1100_v63 = vpop.f32.mrf.mxu0 }
 0x192   : > { %v1101_v0 = vadd.f32 %v13186_v36, %v1100_v63  ;;  %v1295_v63 = vld [vmem:[#allocation2 + $0x31] sm:$0xff] }
 0x194   : > { %v1147_v1 = vmax.f32 %v1101_v0, 0.0  ;;  %v1311_v0 = vld [vmem:[#allocation2 + $0x150] sm:$0xff] }
 0x196   : > { %1256 = vst.msk [vmem:[#allocation2 + $0x181] sm:$0xff] %vm1157_vm2, %v1147_v1 }
 0x199   : > { %v1102_v2 = vpop.f32.mrf.mxu0 }
 0x19a   : > { %v1103_v3 = vadd.f32 %v13186_v36, %v1102_v2 }
 0x19c   : > { %v1148_v4 = vmax.f32 %v1103_v3, 0.0  ;;  %v1303_v3 = vmax.f32 %v1287_v56, %v1295_v63 }
 0x19e   : > { %1257 = vst.msk [vmem:[#allocation2 + $0x191] sm:$0xff] %vm1157_vm2, %v1148_v4  ;;  %v1319_v7 = vmax.f32 %v1303_v3, %v1311_v0  ;;  %v1298_v3 = vld [vmem:[#allocation2 + $0x61] sm:$0xff] }
 0x1a1   : > { %v1105_v5 = vpop.f32.mrf.mxu0 }
 0x1a2   : > { %v1106_v8 = vadd.f32 %v13186_v36, %v1105_v5  ;;  %v1280_v5 = vld [vmem:[#allocation2 + $0xd0] sm:$0xff] }
 0x1a4   : > { %v1149_v9 = vmax.f32 %v1106_v8, 0.0 }
 0x1a6   : > { %1259 = vst.msk [vmem:[#allocation2 + $0x1b0] sm:$0xff] %vm1157_vm2, %v1149_v9  ;;  %v1359_v9 = vld [vmem:[#allocation2 + $0x40] sm:$0xff] }
 0x1a7   : > { %v1288_v12 = vmax.f32 %v1359_v9, %v1280_v5 }
 0x1a9   : > { %v1107_v14 = vpop.f32.mrf.mxu0 }
 0x1aa   : > { %v1108_v15 = vadd.f32 %v13186_v36, %v1107_v14  ;;  %v1343_v14 = vld [vmem:[#allocation2 + $0x151] sm:$0xff] }
 0x1ac   : > { %v1150_v17 = vmax.f32 %v1108_v15, 0.0 }
 0x1ad   : > { %v1324_v18 = vld [vmem:[#allocation2 + $0x1b0] sm:$0xff] }
 0x1ae   : > { %v1332_v20 = vmax.f32 %v1316_v16, %v1324_v18  ;;  %1260 = vst.msk [vmem:[#allocation2 + $0x1c0] sm:$0xff] %vm1157_vm2, %v1150_v17  ;;  %v1296_v17 = vld [vmem:[#allocation2 + $0x41] sm:$0xff] }
 0x1af   : > { %v1312_v18 = vld [vmem:[#allocation2 + $0x160] sm:$0xff] }
 0x1b0   : > { %v1348_v23 = vmax.f32 %v1332_v20, %v1340_v21  ;;  %v1304_v21 = vmax.f32 %v1288_v12, %v1296_v17 }
 0x1b1   : > { %v1110_v25 = vpop.f32.mrf.mxu0 }
 0x1b2   : > { %v1364_v26 = vmax.f32 %v1348_v23, %v1356_v22  ;;  %v1111_v27 = vadd.f32 %v13186_v36, %v1110_v25 }
 0x1b4   : > { %v1151_v32 = vmax.f32 %v1111_v27, 0.0  ;;  %v1380_v33 = vmax.f32 %v1364_v26, %v1277_v19  ;;  %v1320_v27 = vmax.f32 %v1304_v21, %v1312_v18 }
 0x1b5   : > { %v1325_v38 = vld [vmem:[#allocation2 + $0x1c0] sm:$0xff] }
 0x1b6   : > { %1261 = vst.msk [vmem:[#allocation2 + $0x1d0] sm:$0xff] %vm1157_vm2, %v1151_v32  ;;  %v13377_v39 = vmax.f32 %v1380_v33, %v1293_v29  ;;  %v1333_v43 = vmax.f32 %v1317_v40, %v1325_v38  ;;  %v1360_v29 = vld [vmem:[#allocation2 + $0x50] sm:$0xff] }
 0x1b7   : > { %v1289_v32 = vmax.f32 %v1360_v29, %v1281_v24  ;;  %v1297_v38 = vld [vmem:[#allocation2 + $0x51] sm:$0xff] }
 0x1b8   : > { %1426 = vst.msk [vmem:[#allocation3 + $0x11] sm:$0xff] %vm1157_vm2, %v13377_v39  ;;  %v1349_v53 = vmax.f32 %v1333_v43, %v1341_v48  ;;  %v1313_v40 = vld [vmem:[#allocation2 + $0x170] sm:$0xff] }
 0x1b9   : > { %v1112_v44 = vpop.f32.mrf.mxu0  ;;  %v1305_v42 = vmax.f32 %v1289_v32, %v1297_v38 }
 0x1ba   : > { %v1113_v46 = vadd.f32 %v13186_v36, %v1112_v44  ;;  %v1365_v1 = vmax.f32 %v1349_v53, %v1357_v34 }
 0x1bc   : > { %v1152_v50 = vmax.f32 %v1113_v46, 0.0  ;;  %v1381_v11 = vmax.f32 %v1365_v1, %v13371_v28 }
 0x1bd   : > { %v1326_v54 = vld [vmem:[#allocation2 + $0x1d0] sm:$0xff] }
 0x1be   : > { %v1334_v57 = vmax.f32 %v1318_v49, %v1326_v54  ;;  %1262 = vst.msk [vmem:[#allocation2 + $0x1e0] sm:$0xff] %vm1157_vm2, %v1152_v50  ;;  %v13432_v20 = vmax.f32 %v1381_v11, %v13383_v41 }
 0x1bf   : > { %v13403_v60 = vld [vmem:[#allocation3 + $0x12] sm:$0xff] }
 0x1c0   : > { %v1350_v61 = vmax.f32 %v1334_v57, %v1342_v59  ;;  %v12519_v62 = vpack.i.bf16 %v13403_v60, %v1450_v55  ;;  %1427 = vst.msk [vmem:[#allocation3 + $0x21] sm:$0xff] %vm1157_vm2, %v13432_v20  ;;  %v13455_v49 = vld [vmem:[#allocation3 + $0x10] sm:$0xff] }
 0x1c1   : > { %v1115_v2 = vpop.f32.mrf.mxu0 }
 0x1c2   : > { %v1116_v4 = vadd.f32 %v13186_v36, %v1115_v2  ;;  %12520 = vrot.lane.b32.xlu2 %v12519_v62, %s12899_s23  ;;  %v1366_v6 = vmax.f32 %v1350_v61, %v1358_v52  ;;  %v1361_v52 = vld [vmem:[#allocation2 + $0x60] sm:$0xff] }
 0x1c3   : > { %v1290_v56 = vmax.f32 %v1361_v52, %v1282_v45 }
 0x1c4   : > { %v1153_v8 = vmax.f32 %v1116_v4, 0.0  ;;  %v1382_v15 = vmax.f32 %v1366_v6, %v13391_v47  ;;  %v1321_v47 = vmax.f32 %v1305_v42, %v1313_v40  ;;  %v1314_v4 = vld [vmem:[#allocation2 + $0x180] sm:$0xff] }
 0x1c5   : > { %v1327_v10 = vld [vmem:[#allocation2 + $0x1e0] sm:$0xff]  ;;  %v1306_v6 = vmax.f32 %v1290_v56, %v1298_v3  ;;  %v1379_v56 = vld [vmem:[#allocation2 + $0x110] sm:$0xff] }
 0x1c6   : > { %v1335_v13 = vmax.f32 %v1319_v7, %v1327_v10  ;;  %1263 = vst.msk [vmem:[#allocation2 + $0x1f0] sm:$0xff] %vm1157_vm2, %v1153_v8  ;;  %v13439_v25 = vmax.f32 %v1382_v15, %v1295_v63  ;;  %v1345_v63 = vld [vmem:[#allocation2 + $0x171] sm:$0xff] }
 0x1c7   : > { %v13453_v48 = vld [vmem:[#allocation3 + $0x22] sm:$0xff]  ;;  %v1322_v12 = vmax.f32 %v1306_v6, %v1314_v4  ;;  %v13490_v15 = vld [vmem:[#allocation3 + $0x11] sm:$0xff] }
 0x1c8   : > { %v1351_v16 = vmax.f32 %v1335_v13, %v1343_v14  ;;  %1428 = vst.msk [vmem:[#allocation3 + $0x31] sm:$0xff] %vm1157_vm2, %v13439_v25  ;;  %v13457_v50 = vld [vmem:[#allocation3 + $0x20] sm:$0xff]  ;;  %v12499_v54 = vpack.i.bf16 %v13453_v48, %v13403_v60 }
 0x1c9   : > { %v1117_v19 = vpop.f32.mrf.mxu0  ;;  %v12524_v55 = vpack.i.bf16 %v13457_v50, %v13455_v49  ;;  %v13466_v59 = vld [vmem:[#allocation3 + $0x21] sm:$0xff] }
 0x1ca   : > { %v1367_v22 = vmax.f32 %v1351_v16, %v1359_v9  ;;  %v1118_v23 = vadd.f32 %v13186_v36, %v1117_v19  ;;  %12500 = vrot.lane.b32.xlu0 %v12499_v54, %s12900_s2  ;;  %v1283_v9 = vld [vmem:[#allocation2 + $0x100] sm:$0xff]  ;;  %v1362_v16 = vld [vmem:[#allocation2 + $0x70] sm:$0xff] }
 0x1cb   : > { %12525 = vrot.lane.b32.xlu2 %v12524_v55, %s12901_s16  ;;  %v1442_v14 = vld [vmem:[#allocation3 + $0x1] sm:$0xff]  ;;  %v1291_v18 = vmax.f32 %v1362_v16, %v1283_v9 }
 0x1cc   : > { %v1383_v26 = vmax.f32 %v1367_v22, %v1280_v5  ;;  %v1154_v28 = vmax.f32 %v1118_v23, 0.0  ;;  %v1346_v22 = vld [vmem:[#allocation2 + $0x181] sm:$0xff] }
 0x1cd   : > { %v1328_v31 = vld [vmem:[#allocation2 + $0x1f0] sm:$0xff]  ;;  %v1363_v54 = vld [vmem:[#allocation2 + $0x80] sm:$0xff] }
 0x1ce   : > { %v1336_v33 = vmax.f32 %v1320_v27, %v1328_v31  ;;  %1264 = vst.msk [vmem:[#allocation2 + $0x200] sm:$0xff] %vm1157_vm2, %v1154_v28  ;;  %v13446_v34 = vmax.f32 %v1383_v26, %v1296_v17  ;;  %v1315_v31 = vld [vmem:[#allocation2 + $0x190] sm:$0xff] }
 0x1cf   : > { %v13464_v58 = vld [vmem:[#allocation3 + $0x32] sm:$0xff] }
 0x1d0   : > { %v1352_v37 = vmax.f32 %v1336_v33, %v1344_v35  ;;  %1429 = vst.msk [vmem:[#allocation3 + $0x41] sm:$0xff] %vm1157_vm2, %v13446_v34  ;;  %v13468_v61 = vld [vmem:[#allocation3 + $0x31] sm:$0xff]  ;;  %v1751_v60 = vpack.c.bf16 %v13464_v58, %v13453_v48 }
 0x1d1   : > { %v1120_v41 = vpop.f32.mrf.mxu0  ;;  %v13478_v0 = vpack.i.bf16 %v13468_v61, %v13466_v59  ;;  %v13480_v2 = vld [vmem:[#allocation3 + $0x30] sm:$0xff] }
 0x1d2   : > { %v1368_v43 = vmax.f32 %v1352_v37, %v1360_v29  ;;  %v1121_v44 = vadd.f32 %v13186_v36, %v1120_v41  ;;  %9310 = vmatmul.msk.bf16.vlgmr.msra.gmra.mxu3 %vm1157_vm2, %v1751_v60  ;;  %v12504_v10 = vpack.i.bf16 %v13480_v2, %v13457_v50  ;;  %v1299_v29 = vld [vmem:[#allocation2 + $0x71] sm:$0xff] }
 0x1d3   : > { %12510 = vrot.lane.b32.xlu1 %v13478_v0, %s12901_s16  ;;  %v1307_v32 = vmax.f32 %v1291_v18, %v1299_v29  ;;  %v1506_v18 = vld [vmem:[#allocation3 + $0x92] sm:$0xff] }
 0x1d4   : > { %v1384_v46 = vmax.f32 %v1368_v43, %v1281_v24  ;;  %v1155_v51 = vmax.f32 %v1121_v44, 0.0  ;;  %12505 = vrot.lane.b32.xlu0 %v12504_v10, %s12899_s23 }
 0x1d5   : > { %v1329_v53 = vld [vmem:[#allocation2 + $0x200] sm:$0xff]  ;;  %v1323_v41 = vmax.f32 %v1307_v32, %v1315_v31  ;;  %v11803_v31 = vld [vmem:[%s12925_s17 + $0x38] sm:$0xff]  ;;  %v11810_v32 = vld [vmem:[%s12925_s17 + $0x70] sm:$0xff] }
 0x1d6   : > { %v1337_v57 = vmax.f32 %v1321_v47, %v1329_v53  ;;  %1265 = vst.msk [vmem:[#allocation2 + $0x210] sm:$0xff] %vm1157_vm2, %v1155_v51  ;;  %v13470_v62 = vmax.f32 %v1384_v46, %v1297_v38  ;;  %v1347_v51 = vld [vmem:[#allocation2 + $0x191] sm:$0xff]  ;;  %1921 = vmatpush.bf16.msra.mxu1 %v11803_v31 }
 0x1d7   : > { %v13497_v23 = vld [vmem:[#allocation3 + $0x41] sm:$0xff] }
 0x1d8   : > { %v1353_v1 = vmax.f32 %v1337_v57, %v1345_v63  ;;  %1430 = vst.msk [vmem:[#allocation3 + $0x51] sm:$0xff] %vm1157_vm2, %v13470_v62  ;;  %v1477_v27 = vld [vmem:[#allocation3 + $0x42] sm:$0xff] }
 0x1d9   : > { %v1122_v5 = vpop.f32.mrf.mxu0  ;;  %v12529_v38 = vpack.i.bf16 %v1477_v27, %v13464_v58  ;;  %v13510_v42 = vld [vmem:[#allocation3 + $0x40] sm:$0xff] }
 0x1da   : > { %v1369_v7 = vmax.f32 %v1353_v1, %v1361_v52  ;;  %v1123_v8 = vadd.f32 %v13186_v36, %v1122_v5  ;;  %v12514_v36 = vpack.i.bf16 %v13490_v15, %v1442_v14  ;;  %v12554_v53 = vpack.i.bf16 %v13510_v42, %v13480_v2  ;;  %v1395_v63 = vld [vmem:[#allocation2 + $0x81] sm:$0xff] }
 0x1db   : > { %v12544_v1 = vpack.i.bf16 %v13464_v58, %v13453_v48 }
 0x1dc   : > { %v1385_v11 = vmax.f32 %v1369_v7, %v1282_v45  ;;  %v1156_v13 = vmax.f32 %v1123_v8, 0.0  ;;  %12515 = vrot.lane.b32.xlu1 %v12514_v36, %s12900_s2  ;;  %12530 = vrot.lane.b32.xlu0 %v12529_v38, %s12900_s2  ;;  %v11808_v38 = vld [vmem:[%s12925_s17 + $0x60] sm:$0xff] }
 0x1dd   : > { %v1330_v17 = vld [vmem:[#allocation2 + $0x210] sm:$0xff] }
 0x1de   : > { %v1338_v19 = vmax.f32 %v1322_v12, %v1330_v17  ;;  %1266 = vst.msk [vmem:[#allocation2 + $0x220] sm:$0xff] %vm1157_vm2, %v1156_v13  ;;  %v13493_v21 = vmax.f32 %v1385_v11, %v1298_v3  ;;  %v1498_v12 = vld [vmem:[#allocation3 + $0x91] sm:$0xff] }
 0x1df   : > { %v13499_v24 = vld [vmem:[#allocation3 + $0x51] sm:$0xff] }
 0x1e0   : > { %v1354_v26 = vmax.f32 %v1338_v19, %v1346_v22  ;;  %v12549_v28 = vpack.i.bf16 %v13499_v24, %v13497_v23  ;;  %1431 = vst.msk [vmem:[#allocation3 + $0x61] sm:$0xff] %vm1157_vm2, %v13493_v21  ;;  %v1502_v35 = vld [vmem:[#allocation3 + $0x52] sm:$0xff] }
 0x1e1   : > { %v13506_v37 = vld [vmem:[#allocation3 + $0x50] sm:$0xff]  ;;  %v1754_v44 = vpack.c.bf16 %v1502_v35, %v1477_v27  ;;  %v12574_v13 = vpack.i.bf16 %v1502_v35, %v1477_v27 }
 0x1e2   : > { %v1370_v33 = vmax.f32 %v1354_v26, %v1362_v16  ;;  %12550 = vrot.lane.b32.xlu2 %v12549_v28, %s12901_s16  ;;  %v12539_v45 = vpack.i.bf16 %v13506_v37, %v13510_v42  ;;  %v1490_v22 = vld [vmem:[#allocation3 + $0x90] sm:$0xff] }
 0x1e3   : > { %9311 = vmatmul.msk.bf16.gmra.mxu3 %vm1157_vm2, %v1754_v44  ;;  %v11800_v44 = vld [vmem:[%s12925_s17 + $0x20] sm:$0xff] }
 0x1e4   : > { %v1386_v40 = vmax.f32 %v1370_v33, %v1283_v9  ;;  %12540 = vrot.lane.b32.xlu1 %v12539_v45, %s12899_s23  ;;  %12535 = vrot.lane.b32.xlu0 %v13478_v0, %s12900_s2  ;;  %v11802_v33 = vld [vmem:[%s12925_s17 + $0x30] sm:$0xff]  ;;  %v11805_v45 = vld [vmem:[%s12925_s17 + $0x48] sm:$0xff] }
 0x1e5   : > { %v1331_v43 = vld [vmem:[#allocation2 + $0x220] sm:$0xff]  ;;  %1922 = vmatpush.bf16.msra.mxu1 %v11802_v33 }
 0x1e6   : > { %v1339_v46 = vmax.f32 %v1323_v41, %v1331_v43  ;;  %v13514_v47 = vmax.f32 %v1386_v40, %v1299_v29  ;;  %v11811_v29 = vld [vmem:[%s12925_s17 + $0x78] sm:$0xff]  ;;  %v11801_v41 = vld [vmem:[%s12925_s17 + $0x28] sm:$0xff]  ;;  %v11806_v43 = vld [vmem:[%s12925_s17 + $0x50] sm:$0xff] }
 0x1e7   : > { %v13530_v3 = vld [vmem:[#allocation3 + $0x61] sm:$0xff]  ;;  %1950 = vmatpush.bf16.msra.mxu2 %v11811_v29  ;;  %v11807_v40 = vld [vmem:[%s12925_s17 + $0x58] sm:$0xff] }
 0x1e8   : > { %v1355_v52 = vmax.f32 %v1339_v46, %v1347_v51  ;;  %1432 = vst.msk [vmem:[#allocation3 + $0x71] sm:$0xff] %vm1157_vm2, %v13514_v47  ;;  %v1479_v5 = vld [vmem:[#allocation3 + $0x62] sm:$0xff]  ;;  %v11799_v46 = vld [vmem:[%s12925_s17 + $0x18] sm:$0xff]  ;;  %v11804_v51 = vld [vmem:[%s12925_s17 + $0x40] sm:$0xff] }
 0x1e9   : > { %v12559_v8 = vpack.i.bf16 %v1479_v5, %v1502_v35  ;;  %v13542_v48 = vld [vmem:[#allocation3 + $0x60] sm:$0xff]  ;;  %1923 = vmatpush.bf16.msra.mxu1 %v11801_v41 }
 0x1ea   : > { %v1371_v55 = vmax.f32 %v1355_v52, %v1363_v54  ;;  %12555 = vrot.lane.b32.xlu2 %v12554_v53, %s12901_s16  ;;  %v12584_v10 = vpack.i.bf16 %v13542_v48, %v13506_v37  ;;  %v11809_v35 = vld [vmem:[%s12925_s17 + $0x68] sm:$0xff]  ;;  %v11798_v52 = vld [vmem:[%s12925_s17 + $0x10] sm:$0xff] }
 0x1eb   : > { %1951 = vmatpush.bf16.msra.mxu2 %v11810_v32  ;;  %v11797_v53 = vld [vmem:[%s12925_s17 + $0x8] sm:$0xff] }
 0x1ec   : > { %v1387_v57 = vmax.f32 %v1371_v55, %v1379_v56  ;;  %12545 = vrot.lane.b32.xlu1 %v12544_v1, %s12899_s23  ;;  %12560 = vrot.lane.b32.xlu0 %v12559_v8, %s12900_s2  ;;  %v11796_v55 = vld [vmem:[%s12925_s17] sm:$0xff] }
 0x1ed   : > { %1924 = vmatpush.bf16.msra.mxu1 %v11800_v44 }
 0x1ee   : > { %v13524_v60 = vmax.f32 %v1387_v57, %v1395_v63 }
 0x1ef   : > { %v13532_v4 = vld [vmem:[#allocation3 + $0x71] sm:$0xff]  ;;  %1952 = vmatpush.bf16.msra.mxu2 %v11809_v35 }
 0x1f0   : > { %v12579_v6 = vpack.i.bf16 %v13532_v4, %v13530_v3  ;;  %1433 = vst.msk [vmem:[#allocation3 + $0x81] sm:$0xff] %vm1157_vm2, %v13524_v60  ;;  %v1504_v7 = vld [vmem:[#allocation3 + $0x72] sm:$0xff] }
 0x1f1   : > { %v13540_v0 = vld [vmem:[#allocation3 + $0x70] sm:$0xff]  ;;  %v1757_v58 = vpack.c.bf16 %v1504_v7, %v1479_v5  ;;  %1925 = vmatpush.bf16.msra.mxu1 %v11799_v46 }
 0x1f2   : > { %12580 = vrot.lane.b32.xlu2 %v12579_v6, %s12901_s16  ;;  %v12569_v9 = vpack.i.bf16 %v13540_v0, %v13542_v48 }
 0x1f3   : > { %9312 = vmatmul.msk.bf16.gmra.mxu3 %vm1157_vm2, %v1757_v58  ;;  %1953 = vmatpush.bf16.msra.mxu2 %v11808_v38 }
 0x1f4   : > { %12570 = vrot.lane.b32.xlu1 %v12569_v9, %s12899_s23  ;;  %12565 = vrot.lane.b32.xlu0 %v12549_v28, %s12900_s2  ;;  %v12604_v28 = vpack.i.bf16 %v1504_v7, %v1479_v5 }
 0x1f5   : > { %1926 = vmatpush.bf16.msra.mxu1 %v11798_v52 }
 0x1f7   : > { %v13552_v11 = vld [vmem:[#allocation3 + $0x81] sm:$0xff]  ;;  %1954 = vmatpush.bf16.msra.mxu2 %v11807_v40 }
 0x1f8   : > { %v1481_v14 = vld [vmem:[#allocation3 + $0x82] sm:$0xff]  ;;  %v12609_v16 = vpack.i.bf16 %v1498_v12, %v13552_v11 }
 0x1f9   : > { %v12589_v17 = vpack.i.bf16 %v1481_v14, %v1504_v7  ;;  %v1489_v19 = vld [vmem:[#allocation3 + $0x80] sm:$0xff]  ;;  %v1760_v36 = vpack.c.bf16 %v1506_v18, %v1481_v14  ;;  %1927 = vmatpush.bf16.msra.mxu1 %v11797_v53 }
 0x1fa   : > { %12585 = vrot.lane.b32.xlu2 %v12584_v10, %s12901_s16  ;;  %v12599_v26 = vpack.i.bf16 %v1490_v22, %v1489_v19  ;;  %v12614_v27 = vpack.i.bf16 %v1489_v19, %v13540_v0 }
 0x1fb   : > { %1955 = vmatpush.bf16.msra.mxu2 %v11806_v43 }
 0x1fc   : > { %12575 = vrot.lane.b32.xlu1 %v12574_v13, %s12899_s23  ;;  %12590 = vrot.lane.b32.xlu0 %v12589_v17, %s12900_s2 }
 0x1fd   : > { %1928 = vmatpush.bf16.msra.mxu1 %v11796_v55 }
 0x1ff   : > { %1956 = vmatpush.bf16.msra.mxu2 %v11805_v45 }
 0x202   : > { %12610 = vrot.lane.b32.xlu2 %v12609_v16, %s12901_s16  ;;  %v1434_v16 = vld [vmem:[#allocation3] sm:$0xff] }
 0x203   : > { %9313 = vmatmul.msk.bf16.gmra.mxu3 %vm1157_vm2, %v1760_v36  ;;  %1957 = vmatpush.bf16.msra.mxu2 %v11804_v51 }
 0x204   : > { %12600 = vrot.lane.b32.xlu1 %v12599_v26, %s12899_s23  ;;  %12595 = vrot.lane.b32.xlu0 %v12579_v6, %s12900_s2 }
 0x20a   : > { %12615 = vrot.lane.b32.xlu2 %v12614_v27, %s12901_s16 }
 0x20c   : > { %12605 = vrot.lane.b32.xlu1 %v12604_v28, %s12899_s23 }
 0x21c   : > { %v12521_v54 = vpop.permute.xlu2 %12520 }
 0x21d   : > { %v12523_v12 = vunpack.i.h.bf16 %v12521_v54  ;;  %v12522_v26 = vunpack.i.l.bf16 %v12521_v54 }
 0x225   : > { %v12526_v56 = vpop.permute.xlu2 %12525 }
 0x226   : > { %v12528_v27 = vunpack.i.h.bf16 %v12526_v56  ;;  %v12527_v31 = vunpack.i.l.bf16 %v12526_v56 }
 0x23c   : > { %v12501_v57 = vpop.permute.xlu0 %12500  ;;  %v12551_v6 = vpop.permute.xlu2 %12550 }
 0x23d   : > { %v12503_v1 = vunpack.i.h.bf16 %v12501_v57  ;;  %v12502_v5 = vunpack.i.l.bf16 %v12501_v57  ;;  %v12553_v57 = vunpack.i.h.bf16 %v12551_v6 }
 0x23f   : > { %v1725_v13 = vsel %vm1157_vm2, %v13490_v15, %v12502_v5  ;;  %v1726_v14 = vsel %vm1157_vm2, %v13466_v59, %v12503_v1 }
 0x244   : > { %v12556_v44 = vpop.permute.xlu2 %12555 }
 0x245   : > { %v12511_v63 = vpop.permute.xlu1 %12510 }
 0x246   : > { %v12513_v7 = vunpack.i.h.bf16 %v12511_v63  ;;  %v12512_v8 = vunpack.i.l.bf16 %v12511_v63  ;;  %v12506_v58 = vpop.permute.xlu0 %12505  ;;  %v12552_v63 = vunpack.i.l.bf16 %v12551_v6 }
 0x247   : > { %v12508_v9 = vunpack.i.h.bf16 %v12506_v58  ;;  %v12507_v10 = vunpack.i.l.bf16 %v12506_v58 }
 0x249   : > { %v1733_v18 = vsel %vm1707_vm5, %v1725_v13, %v12507_v10  ;;  %v1734_v19 = vsel %vm1707_vm5, %v1726_v14, %v12508_v9  ;;  %v12558_v14 = vunpack.i.h.bf16 %v12556_v44 }
 0x24a   : > { %v1741_v28 = vsel %vm1716_vm6, %v1733_v18, %v12512_v8  ;;  %v1742_v29 = vsel %vm1716_vm6, %v1734_v19, %v12513_v7 }
 0x24b   : > { %v1750_v32 = vpack.c.bf16 %v1742_v29, %v1741_v28 }
 0x24c   : > { %v12581_v10 = vpop.permute.xlu2 %12580 }
 0x24d   : > { %1958 = vmatmul.bf16.vlgmr.msra.gmra.mxu2 %v1750_v32 }
 0x24e   : > { %v12516_v17 = vpop.permute.xlu1 %12515  ;;  %v12531_v41 = vpop.permute.xlu0 %12530 }
 0x24f   : > { %v12518_v22 = vunpack.i.h.bf16 %v12516_v17  ;;  %v12517_v36 = vunpack.i.l.bf16 %v12516_v17  ;;  %v12533_v45 = vunpack.i.h.bf16 %v12531_v41  ;;  %v12532_v46 = vunpack.i.l.bf16 %v12531_v41 }
 0x251   : > { %v1700_v15 = vsel %vm1157_vm2, %v13455_v49, %v12518_v22  ;;  %v1699_v59 = vsel %vm1157_vm2, %v1434_v16, %v12517_v36  ;;  %v1728_v53 = vsel %vm1157_vm2, %v13497_v23, %v12533_v45  ;;  %v1727_v54 = vsel %vm1157_vm2, %v13468_v61, %v12532_v46 }
 0x252   : > { %v1708_v33 = vsel %vm1707_vm5, %v1699_v59, %v12522_v26  ;;  %v1709_v35 = vsel %vm1707_vm5, %v1700_v15, %v12523_v12  ;;  %v12557_v61 = vunpack.i.l.bf16 %v12556_v44 }
 0x253   : > { %v1717_v38 = vsel %vm1716_vm6, %v1708_v33, %v12527_v31  ;;  %v1718_v40 = vsel %vm1716_vm6, %v1709_v35, %v12528_v27  ;;  %v12583_v35 = vunpack.i.h.bf16 %v12581_v10 }
 0x254   : > { %v1749_v43 = vpack.c.bf16 %v1718_v40, %v1717_v38  ;;  %v12586_v15 = vpop.permute.xlu2 %12585  ;;  %v12582_v38 = vunpack.i.l.bf16 %v12581_v10 }
 0x256   : > { %v12541_v51 = vpop.permute.xlu1 %12540  ;;  %1929 = vmatmul.bf16.vlgmr.msra.gmra.mxu1 %v1749_v43  ;;  %v12536_v1 = vpop.permute.xlu0 %12535 }
 0x257   : > { %v12543_v52 = vunpack.i.h.bf16 %v12541_v51  ;;  %v12542_v49 = vunpack.i.l.bf16 %v12541_v51  ;;  %v12538_v8 = vunpack.i.h.bf16 %v12536_v1  ;;  %v12537_v58 = vunpack.i.l.bf16 %v12536_v1 }
 0x259   : > { %v1735_v55 = vsel %vm1707_vm5, %v1727_v54, %v12542_v49  ;;  %v1736_v56 = vsel %vm1707_vm5, %v1728_v53, %v12543_v52  ;;  %v1702_v16 = vsel %vm1157_vm2, %v13480_v2, %v12538_v8  ;;  %v1701_v6 = vsel %vm1157_vm2, %v13457_v50, %v12537_v58 }
 0x25a   : > { %v1743_v5 = vsel %vm1716_vm6, %v1735_v55, %v12552_v63  ;;  %v1744_v7 = vsel %vm1716_vm6, %v1736_v56, %v12553_v57  ;;  %v12588_v49 = vunpack.i.h.bf16 %v12586_v15 }
 0x25b   : > { %v1753_v12 = vpack.c.bf16 %v1744_v7, %v1743_v5 }
 0x25c   : > { %v12611_v1 = vpop.permute.xlu2 %12610 }
 0x25d   : > { %1963 = vmatmul.bf16.gmra.mxu2 %v1753_v12 }
 0x25e   : > { %v12546_v9 = vpop.permute.xlu1 %12545  ;;  %v12561_v26 = vpop.permute.xlu0 %12560 }
 0x25f   : > { %v12548_v23 = vunpack.i.h.bf16 %v12546_v9  ;;  %v12547_v13 = vunpack.i.l.bf16 %v12546_v9  ;;  %v12563_v27 = vunpack.i.h.bf16 %v12561_v26  ;;  %v12562_v28 = vunpack.i.l.bf16 %v12561_v26 }
 0x261   : > { %v1710_v17 = vsel %vm1707_vm5, %v1701_v6, %v12547_v13  ;;  %v1711_v18 = vsel %vm1707_vm5, %v1702_v16, %v12548_v23  ;;  %v1730_v50 = vsel %vm1157_vm2, %v13530_v3, %v12563_v27  ;;  %v1729_v32 = vsel %vm1157_vm2, %v13499_v24, %v12562_v28 }
 0x262   : > { %v1719_v19 = vsel %vm1716_vm6, %v1710_v17, %v12557_v61  ;;  %v1720_v22 = vsel %vm1716_vm6, %v1711_v18, %v12558_v14  ;;  %v12587_v24 = vunpack.i.l.bf16 %v12586_v15  ;;  %v12613_v14 = vunpack.i.h.bf16 %v12611_v1 }
 0x263   : > { %v1752_v36 = vpack.c.bf16 %v1720_v22, %v1719_v19  ;;  %v12612_v61 = vunpack.i.l.bf16 %v12611_v1 }
 0x264   : > { %v12616_v18 = vpop.permute.xlu2 %12615 }
 0x265   : > { %v12617_v28 = vunpack.i.l.bf16 %v12616_v18 }
 0x266   : > { %v12571_v29 = vpop.permute.xlu1 %12570  ;;  %1934 = vmatmul.bf16.gmra.mxu1 %v1752_v36  ;;  %v12566_v40 = vpop.permute.xlu0 %12565 }
 0x267   : > { %v12573_v31 = vunpack.i.h.bf16 %v12571_v29  ;;  %v12572_v2 = vunpack.i.l.bf16 %v12571_v29  ;;  %v12568_v44 = vunpack.i.h.bf16 %v12566_v40  ;;  %v12567_v45 = vunpack.i.l.bf16 %v12566_v40 }
 0x269   : > { %v1737_v59 = vsel %vm1707_vm5, %v1729_v32, %v12572_v2  ;;  %v1738_v33 = vsel %vm1707_vm5, %v1730_v50, %v12573_v31  ;;  %v1704_v53 = vsel %vm1157_vm2, %v13506_v37, %v12568_v44  ;;  %v1703_v54 = vsel %vm1157_vm2, %v13510_v42, %v12567_v45 }
 0x26a   : > { %v1745_v41 = vsel %vm1716_vm6, %v1737_v59, %v12582_v38  ;;  %v1746_v43 = vsel %vm1716_vm6, %v1738_v33, %v12583_v35  ;;  %v1988_v33 = vpop.f32.mrf.mxu3  ;;  %v13645_v35 = vld [vmem:[%s12930_s21] ss:$0 sm:$0xff] }
 0x26b   : > { %v1756_v51 = vpack.c.bf16 %v1746_v43, %v1745_v41 }
 0x26d   : > { %1968 = vmatmul.bf16.gmra.mxu2 %v1756_v51 }
 0x26e   : > { %v12576_v46 = vpop.permute.xlu1 %12575  ;;  %v12591_v7 = vpop.permute.xlu0 %12590 }
 0x26f   : > { %v12578_v3 = vunpack.i.h.bf16 %v12576_v46  ;;  %v12577_v52 = vunpack.i.l.bf16 %v12576_v46  ;;  %v12593_v8 = vunpack.i.h.bf16 %v12591_v7  ;;  %v12592_v58 = vunpack.i.l.bf16 %v12591_v7 }
 0x271   : > { %v1712_v55 = vsel %vm1707_vm5, %v1703_v54, %v12577_v52  ;;  %v1713_v56 = vsel %vm1707_vm5, %v1704_v53, %v12578_v3  ;;  %v1732_v42 = vsel %vm1157_vm2, %v13552_v11, %v12593_v8  ;;  %v1731_v12 = vsel %vm1157_vm2, %v13532_v4, %v12592_v58  ;;  %v11830_v3 = vld [vmem:[%s12935_s25 + $0x80] sm:$0xff]  ;;  %v2061_v54 = vld [vmem:[#allocation4 + $0x2] sm:$0xff] }
 0x272   : > { %v1721_v57 = vsel %vm1716_vm6, %v1712_v55, %v12587_v24  ;;  %v1722_v63 = vsel %vm1716_vm6, %v1713_v56, %v12588_v49  ;;  %v12618_v4 = vunpack.i.h.bf16 %v12616_v18  ;;  %v2053_v55 = vld [vmem:[#allocation4 + $0x1] sm:$0xff] }
 0x273   : > { %v1755_v5 = vpack.c.bf16 %v1722_v63, %v1721_v57 }
 0x276   : > { %v12601_v9 = vpop.permute.xlu1 %12600  ;;  %1939 = vmatmul.bf16.gmra.mxu1 %v1755_v5  ;;  %v12596_v16 = vpop.permute.xlu0 %12595 }
 0x277   : > { %v12603_v37 = vunpack.i.h.bf16 %v12601_v9  ;;  %v12602_v10 = vunpack.i.l.bf16 %v12601_v9  ;;  %v12598_v19 = vunpack.i.h.bf16 %v12596_v16  ;;  %v12597_v22 = vunpack.i.l.bf16 %v12596_v16 }
 0x279   : > { %v1739_v23 = vsel %vm1707_vm5, %v1731_v12, %v12602_v10  ;;  %v1740_v13 = vsel %vm1707_vm5, %v1732_v42, %v12603_v37  ;;  %v1706_v29 = vsel %vm1157_vm2, %v13540_v0, %v12598_v19  ;;  %v1705_v31 = vsel %vm1157_vm2, %v13542_v48, %v12597_v22  ;;  %v1990_v0 = vpop.f32.mrf.mxu3  ;;  %v11831_v48 = vld [vmem:[%s12935_s25 + $0x88] sm:$0xff] }
 0x27a   : > { %v1747_v6 = vsel %vm1716_vm6, %v1739_v23, %v12612_v61  ;;  %v1748_v17 = vsel %vm1716_vm6, %v1740_v13, %v12613_v14  ;;  %2594 = vmatpush.bf16.msrb.mxu2 %v11831_v48 }
 0x27b   : > { %v1759_v11 = vpack.c.bf16 %v1748_v17, %v1747_v6 }
 0x27d   : > { %1973 = vmatmul.bf16.gmra.mxu2 %v1759_v11 }
 0x27e   : > { %v12606_v36 = vpop.permute.xlu1 %12605  ;;  %2595 = vmatpush.bf16.msrb.mxu2 %v11830_v3 }
 0x27f   : > { %v12608_v26 = vunpack.i.h.bf16 %v12606_v36  ;;  %v12607_v27 = vunpack.i.l.bf16 %v12606_v36 }
 0x281   : > { %v1714_v2 = vsel %vm1707_vm5, %v1705_v31, %v12607_v27  ;;  %v1715_v50 = vsel %vm1707_vm5, %v1706_v29, %v12608_v26  ;;  %v1993_v52 = vpop.f32.mrf.mxu3 }
 0x282   : > { %v1723_v32 = vsel %vm1716_vm6, %v1714_v2, %v12617_v28  ;;  %v1724_v15 = vsel %vm1716_vm6, %v1715_v50, %v12618_v4 }
 0x283   : > { %v1758_v59 = vpack.c.bf16 %v1724_v15, %v1723_v32 }
 0x286   : > { %1944 = vmatmul.bf16.gmra.mxu1 %v1758_v59 }
 0x289   : > { %v1995_v37 = vpop.f32.mrf.mxu3 }
 0x291   : > { %v1998_v22 = vpop.f32.mrf.mxu3 }
 0x2d0   : > { %v1959_v41 = vpop.f32.mrf.mxu2 }
 0x2d3   : > { %v1930_v38 = vpop.f32.mrf.mxu1 }
 0x2d4   : > { %v1931_v40 = vadd.f32 %v13645_v35, %v1930_v38 }
 0x2d6   : > { %v1960_v43 = vadd.f32 %v1959_v41, %v1931_v40 }
 0x2d8   : > { %v1989_v44 = vadd.f32 %v1988_v33, %v1960_v43  ;;  %v1961_v49 = vpop.f32.mrf.mxu2 }
 0x2da   : > { %v2008_v45 = vmax.f32 %v1989_v44, 0.0 }
 0x2db   : > { %v1932_v46 = vpop.f32.mrf.mxu1 }
 0x2dc   : > { %v1933_v51 = vadd.f32 %v13645_v35, %v1932_v46  ;;  %2037 = vst.msk [vmem:[#allocation4 + $0x11] sm:$0xff] %vm1157_vm2, %v2008_v45 }
 0x2de   : > { %v1962_v24 = vadd.f32 %v1961_v49, %v1933_v51 }
 0x2e0   : > { %v1991_v53 = vadd.f32 %v1990_v0, %v1962_v24  ;;  %v1964_v58 = vpop.f32.mrf.mxu2  ;;  %v2000_v0 = vpop.f32.mrf.mxu3 }
 0x2e2   : > { %v2009_v56 = vmax.f32 %v1991_v53, 0.0 }
 0x2e3   : > { %v1935_v57 = vpop.f32.mrf.mxu1  ;;  %v2062_v1 = vld [vmem:[#allocation4 + $0x12] sm:$0xff] }
 0x2e4   : > { %v1936_v63 = vadd.f32 %v13645_v35, %v1935_v57  ;;  %v13653_v5 = vld [vmem:[#allocation4 + $0x11] sm:$0xff]  ;;  %2038 = vst.msk [vmem:[#allocation4 + $0x21] sm:$0xff] %vm1157_vm2, %v2009_v56  ;;  %v12624_v7 = vpack.i.bf16 %v2062_v1, %v2061_v54 }
 0x2e5   : > { %v12619_v8 = vpack.i.bf16 %v13653_v5, %v2053_v55  ;;  %v13660_v13 = vld [vmem:[#allocation4 + $0x10] sm:$0xff] }
 0x2e6   : > { %v1965_v9 = vadd.f32 %v1964_v58, %v1936_v63  ;;  %12625 = vrot.lane.b32.xlu1 %v12624_v7, %s12899_s23 }
 0x2e7   : > { %12620 = vrot.lane.b32.xlu0 %v12619_v8, %s12900_s2 }
 0x2e8   : > { %v1994_v10 = vadd.f32 %v1993_v52, %v1965_v9  ;;  %v1966_v17 = vpop.f32.mrf.mxu2  ;;  %v2003_v7 = vpop.f32.mrf.mxu3  ;;  %v11821_v9 = vld [vmem:[%s12935_s25 + $0x38] sm:$0xff] }
 0x2e9   : > { %2530 = vmatpush.bf16.msrb.mxu3 %v11821_v9  ;;  %v11825_v9 = vld [vmem:[%s12935_s25 + $0x58] sm:$0xff] }
 0x2ea   : > { %v2010_v42 = vmax.f32 %v1994_v10, 0.0  ;;  %v11820_v10 = vld [vmem:[%s12935_s25 + $0x30] sm:$0xff] }
 0x2eb   : > { %v1937_v12 = vpop.f32.mrf.mxu1  ;;  %v13662_v14 = vld [vmem:[#allocation4 + $0x20] sm:$0xff] }
 0x2ec   : > { %v1938_v23 = vadd.f32 %v13645_v35, %v1937_v12  ;;  %v2086_v61 = vld [vmem:[#allocation4 + $0x22] sm:$0xff]  ;;  %2039 = vst.msk [vmem:[#allocation4 + $0x31] sm:$0xff] %vm1157_vm2, %v2010_v42  ;;  %v12629_v16 = vpack.i.bf16 %v13662_v14, %v13660_v13 }
 0x2ed   : > { %v12634_v6 = vpack.i.bf16 %v2086_v61, %v2062_v1  ;;  %v13669_v26 = vld [vmem:[#allocation4 + $0x21] sm:$0xff]  ;;  %2531 = vmatpush.bf16.msrb.mxu3 %v11820_v10 }
 0x2ee   : > { %v1967_v18 = vadd.f32 %v1966_v17, %v1938_v23  ;;  %12630 = vrot.lane.b32.xlu2 %v12629_v16, %s12901_s16  ;;  %v11823_v10 = vld [vmem:[%s12935_s25 + $0x48] sm:$0xff] }
 0x2ef   : > { %12635 = vrot.lane.b32.xlu0 %v12634_v6, %s12900_s2 }
 0x2f0   : > { %v1996_v19 = vadd.f32 %v1995_v37, %v1967_v18  ;;  %v1969_v32 = vpop.f32.mrf.mxu2 }
 0x2f2   : > { %v2011_v36 = vmax.f32 %v1996_v19, 0.0 }
 0x2f3   : > { %v1940_v11 = vpop.f32.mrf.mxu1  ;;  %v2111_v4 = vld [vmem:[#allocation4 + $0x32] sm:$0xff] }
 0x2f4   : > { %v1941_v27 = vadd.f32 %v13645_v35, %v1940_v11  ;;  %v13672_v28 = vld [vmem:[#allocation4 + $0x31] sm:$0xff]  ;;  %2040 = vst.msk [vmem:[#allocation4 + $0x41] sm:$0xff] %vm1157_vm2, %v2011_v36  ;;  %v2360_v31 = vpack.c.bf16 %v2111_v4, %v2086_v61  ;;  %v12654_v46 = vpack.i.bf16 %v2111_v4, %v2086_v61  ;;  %v2005_v36 = vpop.f32.mrf.mxu3 }
 0x2f5   : > { %v13674_v29 = vld [vmem:[#allocation4 + $0x30] sm:$0xff]  ;;  %v12644_v2 = vpack.i.bf16 %v13672_v28, %v13669_v26 }
 0x2f6   : > { %v12639_v50 = vpack.i.bf16 %v13674_v29, %v13662_v14  ;;  %v1970_v15 = vadd.f32 %v1969_v32, %v1941_v27  ;;  %9386 = vmatmul.msk.bf16.vlgmr.msrb.gmra.mxu2 %vm1157_vm2, %v2360_v31 }
 0x2f7   : > { %12645 = vrot.lane.b32.xlu2 %v12644_v2, %s12901_s16  ;;  %12650 = vrot.lane.b32.xlu0 %v12644_v2, %s12900_s2 }
 0x2f8   : > { %12640 = vrot.lane.b32.xlu1 %v12639_v50, %s12899_s23  ;;  %v1999_v59 = vadd.f32 %v1998_v22, %v1970_v15  ;;  %v1971_v45 = vpop.f32.mrf.mxu2 }
 0x2fa   : > { %v2012_v33 = vmax.f32 %v1999_v59, 0.0 }
 0x2fb   : > { %v1942_v38 = vpop.f32.mrf.mxu1  ;;  %v13686_v48 = vld [vmem:[#allocation4 + $0x40] sm:$0xff] }
 0x2fc   : > { %v1943_v40 = vadd.f32 %v13645_v35, %v1942_v38  ;;  %v2088_v41 = vld [vmem:[#allocation4 + $0x42] sm:$0xff]  ;;  %2041 = vst.msk [vmem:[#allocation4 + $0x51] sm:$0xff] %vm1157_vm2, %v2012_v33  ;;  %v12659_v43 = vpack.i.bf16 %v13686_v48, %v13674_v29 }
 0x2fd   : > { %v12664_v44 = vpack.i.bf16 %v2088_v41, %v2111_v4  ;;  %v13694_v24 = vld [vmem:[#allocation4 + $0x41] sm:$0xff] }
 0x2fe   : > { %v1972_v51 = vadd.f32 %v1971_v45, %v1943_v40  ;;  %v2101_v45 = vld [vmem:[#allocation4 + $0x90] sm:$0xff] }
 0x2ff   : > { %12660 = vrot.lane.b32.xlu2 %v12659_v43, %s12901_s16  ;;  %12665 = vrot.lane.b32.xlu0 %v12664_v44, %s12900_s2  ;;  %v2109_v44 = vld [vmem:[#allocation4 + $0x91] sm:$0xff] }
 0x300   : > { %12655 = vrot.lane.b32.xlu1 %v12654_v46, %s12899_s23  ;;  %v2001_v3 = vadd.f32 %v2000_v0, %v1972_v51  ;;  %v1974_v8 = vpop.f32.mrf.mxu2 }
 0x302   : > { %v2013_v52 = vmax.f32 %v2001_v3, 0.0 }
 0x303   : > { %v1945_v49 = vpop.f32.mrf.mxu1  ;;  %v2113_v54 = vld [vmem:[#allocation4 + $0x52] sm:$0xff] }
 0x304   : > { %v1946_v53 = vadd.f32 %v13645_v35, %v1945_v49  ;;  %v13697_v55 = vld [vmem:[#allocation4 + $0x51] sm:$0xff]  ;;  %2042 = vst.msk [vmem:[#allocation4 + $0x61] sm:$0xff] %vm1157_vm2, %v2013_v52  ;;  %v2363_v57 = vpack.c.bf16 %v2113_v54, %v2088_v41  ;;  %v12684_v19 = vpack.i.bf16 %v2113_v54, %v2088_v41  ;;  %v11819_v52 = vld [vmem:[%s12935_s25 + $0x28] sm:$0xff] }
 0x305   : > { %v13699_v56 = vld [vmem:[#allocation4 + $0x50] sm:$0xff]  ;;  %v12674_v63 = vpack.i.bf16 %v13697_v55, %v13694_v24  ;;  %2532 = vmatpush.bf16.msrb.mxu3 %v11819_v52 }
 0x306   : > { %v12669_v1 = vpack.i.bf16 %v13699_v56, %v13686_v48  ;;  %v1975_v58 = vadd.f32 %v1974_v8, %v1946_v53  ;;  %9387 = vmatmul.msk.bf16.gmra.mxu2 %vm1157_vm2, %v2363_v57  ;;  %v2117_v41 = vld [vmem:[#allocation4 + $0x92] sm:$0xff]  ;;  %v11828_v57 = vld [vmem:[%s12935_s25 + $0x70] sm:$0xff] }
 0x307   : > { %12675 = vrot.lane.b32.xlu2 %v12674_v63, %s12901_s16  ;;  %12680 = vrot.lane.b32.xlu0 %v12674_v63, %s12900_s2  ;;  %v11829_v49 = vld [vmem:[%s12935_s25 + $0x78] sm:$0xff]  ;;  %v11818_v53 = vld [vmem:[%s12935_s25 + $0x20] sm:$0xff] }
 0x308   : > { %12670 = vrot.lane.b32.xlu1 %v12669_v1, %s12899_s23  ;;  %v2004_v37 = vadd.f32 %v2003_v7, %v1975_v58  ;;  %v1976_v18 = vpop.f32.mrf.mxu2  ;;  %2559 = vmatpush.bf16.msrb.mxu1 %v11829_v49  ;;  %v11816_v63 = vld [vmem:[%s12935_s25 + $0x10] sm:$0xff]  ;;  %v11827_v1 = vld [vmem:[%s12935_s25 + $0x68] sm:$0xff]  ;;  %v11826_v8 = vld [vmem:[%s12935_s25 + $0x60] sm:$0xff] }
 0x309   : > { %2533 = vmatpush.bf16.msrb.mxu3 %v11818_v53  ;;  %v11815_v7 = vld [vmem:[%s12935_s25 + $0x8] sm:$0xff]  ;;  %v11814_v58 = vld [vmem:[%s12935_s25] sm:$0xff] }
 0x30a   : > { %v2014_v42 = vmax.f32 %v2004_v37, 0.0  ;;  %v11824_v37 = vld [vmem:[%s12935_s25 + $0x50] sm:$0xff] }
 0x30b   : > { %v1947_v12 = vpop.f32.mrf.mxu1  ;;  %v13713_v61 = vld [vmem:[#allocation4 + $0x60] sm:$0xff] }
 0x30c   : > { %v1948_v23 = vadd.f32 %v13645_v35, %v1947_v12  ;;  %v2090_v16 = vld [vmem:[#allocation4 + $0x62] sm:$0xff]  ;;  %2043 = vst.msk [vmem:[#allocation4 + $0x71] sm:$0xff] %vm1157_vm2, %v2014_v42  ;;  %v12689_v6 = vpack.i.bf16 %v13713_v61, %v13699_v56  ;;  %2560 = vmatpush.bf16.msrb.mxu1 %v11828_v57  ;;  %v11822_v42 = vld [vmem:[%s12935_s25 + $0x40] sm:$0xff] }
 0x30d   : > { %v12694_v17 = vpack.i.bf16 %v2090_v16, %v2113_v54  ;;  %v13721_v27 = vld [vmem:[#allocation4 + $0x61] sm:$0xff]  ;;  %v11817_v54 = vld [vmem:[%s12935_s25 + $0x18] sm:$0xff] }
 0x30e   : > { %v1977_v22 = vadd.f32 %v1976_v18, %v1948_v23  ;;  %2534 = vmatpush.bf16.msrb.mxu3 %v11817_v54 }
 0x30f   : > { %12690 = vrot.lane.b32.xlu2 %v12689_v6, %s12901_s16  ;;  %12695 = vrot.lane.b32.xlu0 %v12694_v17, %s12900_s2 }
 0x310   : > { %12685 = vrot.lane.b32.xlu1 %v12684_v19, %s12899_s23  ;;  %v2006_v35 = vadd.f32 %v2005_v36, %v1977_v22  ;;  %2561 = vmatpush.bf16.msrb.mxu1 %v11827_v1 }
 0x312   : > { %v2015_v11 = vmax.f32 %v2006_v35, 0.0  ;;  %2535 = vmatpush.bf16.msrb.mxu3 %v11816_v63 }
 0x313   : > { %v2115_v4 = vld [vmem:[#allocation4 + $0x72] sm:$0xff] }
 0x314   : > { %v13723_v31 = vld [vmem:[#allocation4 + $0x71] sm:$0xff]  ;;  %2044 = vst.msk [vmem:[#allocation4 + $0x81] sm:$0xff] %vm1157_vm2, %v2015_v11  ;;  %v2366_v50 = vpack.c.bf16 %v2115_v4, %v2090_v16  ;;  %v12714_v40 = vpack.i.bf16 %v2115_v4, %v2090_v16  ;;  %2562 = vmatpush.bf16.msrb.mxu1 %v11826_v8  ;;  %v2045_v16 = vld [vmem:[#allocation4] sm:$0xff] }
 0x315   : > { %v13725_v2 = vld [vmem:[#allocation4 + $0x70] sm:$0xff]  ;;  %v12704_v32 = vpack.i.bf16 %v13723_v31, %v13721_v27 }
 0x316   : > { %v12699_v15 = vpack.i.bf16 %v13725_v2, %v13713_v61  ;;  %9388 = vmatmul.msk.bf16.gmra.mxu2 %vm1157_vm2, %v2366_v50  ;;  %2536 = vmatpush.bf16.msrb.mxu3 %v11815_v7 }
 0x317   : > { %12705 = vrot.lane.b32.xlu2 %v12704_v32, %s12901_s16  ;;  %12710 = vrot.lane.b32.xlu0 %v12704_v32, %s12900_s2 }
 0x318   : > { %12700 = vrot.lane.b32.xlu1 %v12699_v15, %s12899_s23  ;;  %2563 = vmatpush.bf16.msrb.mxu1 %v11825_v9 }
 0x31a   : > { %2537 = vmatpush.bf16.msrb.mxu3 %v11814_v58 }
 0x31b   : > { %v2076_v59 = vld [vmem:[#allocation4 + $0x80] sm:$0xff] }
 0x31c   : > { %v2092_v33 = vld [vmem:[#allocation4 + $0x82] sm:$0xff]  ;;  %v12719_v38 = vpack.i.bf16 %v2076_v59, %v13725_v2  ;;  %v12729_v3 = vpack.i.bf16 %v2101_v45, %v2076_v59  ;;  %2564 = vmatpush.bf16.msrb.mxu1 %v11824_v37 }
 0x31d   : > { %v12724_v0 = vpack.i.bf16 %v2092_v33, %v2115_v4  ;;  %v13740_v43 = vld [vmem:[#allocation4 + $0x81] sm:$0xff]  ;;  %v2369_v46 = vpack.c.bf16 %v2117_v41, %v2092_v33 }
 0x31e   : > { %v12734_v51 = vpack.i.bf16 %v2109_v44, %v13740_v43 }
 0x31f   : > { %12720 = vrot.lane.b32.xlu2 %v12719_v38, %s12901_s16  ;;  %12725 = vrot.lane.b32.xlu0 %v12724_v0, %s12900_s2 }
 0x320   : > { %12715 = vrot.lane.b32.xlu1 %v12714_v40, %s12899_s23  ;;  %2565 = vmatpush.bf16.msrb.mxu1 %v11823_v10 }
 0x324   : > { %2566 = vmatpush.bf16.msrb.mxu1 %v11822_v42 }
 0x326   : > { %9389 = vmatmul.msk.bf16.gmra.mxu2 %vm1157_vm2, %v2369_v46 }
 0x327   : > { %12735 = vrot.lane.b32.xlu2 %v12734_v51, %s12901_s16 }
 0x328   : > { %12730 = vrot.lane.b32.xlu1 %v12729_v3, %s12899_s23 }
 0x348   : > { %v12631_v12 = vpop.permute.xlu2 %12630 }
 0x349   : > { %v12633_v36 = vunpack.i.h.bf16 %v12631_v12  ;;  %v12632_v35 = vunpack.i.l.bf16 %v12631_v12 }
 0x351   : > { %v12646_v50 = vpop.permute.xlu2 %12645 }
 0x352   : > { %v12648_v3 = vunpack.i.h.bf16 %v12646_v50  ;;  %v12647_v52 = vunpack.i.l.bf16 %v12646_v50 }
 0x358   : > { %v12626_v23 = vpop.permute.xlu1 %12625 }
 0x359   : > { %v12621_v6 = vpop.permute.xlu0 %12620  ;;  %v12628_v17 = vunpack.i.h.bf16 %v12626_v23  ;;  %v12627_v18 = vunpack.i.l.bf16 %v12626_v23  ;;  %v12661_v40 = vpop.permute.xlu2 %12660 }
 0x35a   : > { %v12623_v19 = vunpack.i.h.bf16 %v12621_v6  ;;  %v12622_v22 = vunpack.i.l.bf16 %v12621_v6  ;;  %v12663_v12 = vunpack.i.h.bf16 %v12661_v40  ;;  %v12662_v23 = vunpack.i.l.bf16 %v12661_v40 }
 0x35c   : > { %v2311_v11 = vsel %vm1157_vm2, %v13660_v13, %v12623_v19  ;;  %v2310_v4 = vsel %vm1157_vm2, %v2045_v16, %v12622_v22 }
 0x35d   : > { %v2318_v32 = vsel %vm1707_vm5, %v2310_v4, %v12627_v18  ;;  %v2319_v15 = vsel %vm1707_vm5, %v2311_v11, %v12628_v17 }
 0x35e   : > { %v2326_v59 = vsel %vm1716_vm6, %v2318_v32, %v12632_v35  ;;  %v2327_v33 = vsel %vm1716_vm6, %v2319_v15, %v12633_v36 }
 0x35f   : > { %v2358_v38 = vpack.c.bf16 %v2327_v33, %v2326_v59 }
 0x361   : > { %v12636_v0 = vpop.permute.xlu0 %12635  ;;  %2538 = vmatmul.bf16.vlgmr.msrb.gmra.mxu3 %v2358_v38  ;;  %v12676_v9 = vpop.permute.xlu2 %12675 }
 0x362   : > { %v12638_v41 = vunpack.i.h.bf16 %v12636_v0  ;;  %v12637_v44 = vunpack.i.l.bf16 %v12636_v0  ;;  %v12678_v15 = vunpack.i.h.bf16 %v12676_v9  ;;  %v12677_v59 = vunpack.i.l.bf16 %v12676_v9 }
 0x364   : > { %v2335_v49 = vsel %vm1157_vm2, %v13669_v26, %v12638_v41  ;;  %v2334_v53 = vsel %vm1157_vm2, %v13653_v5, %v12637_v44 }
 0x369   : > { %v12651_v51 = vpop.permute.xlu0 %12650  ;;  %v12691_v4 = vpop.permute.xlu2 %12690 }
 0x36a   : > { %v12641_v45 = vpop.permute.xlu1 %12640  ;;  %v12653_v8 = vunpack.i.h.bf16 %v12651_v51  ;;  %v12652_v58 = vunpack.i.l.bf16 %v12651_v51 }
 0x36b   : > { %v12643_v46 = vunpack.i.h.bf16 %v12641_v45  ;;  %v12642_v13 = vunpack.i.l.bf16 %v12641_v45 }
 0x36c   : > { %v2312_v5 = vsel %vm1157_vm2, %v13662_v14, %v12652_v58  ;;  %v2313_v16 = vsel %vm1157_vm2, %v13674_v29, %v12653_v8 }
 0x36d   : > { %v2343_v54 = vsel %vm1707_vm5, %v2335_v49, %v12643_v46  ;;  %v2342_v57 = vsel %vm1707_vm5, %v2334_v53, %v12642_v13  ;;  %v12692_v49 = vunpack.i.l.bf16 %v12691_v4 }
 0x36e   : > { %v2350_v63 = vsel %vm1716_vm6, %v2342_v57, %v12647_v52  ;;  %v2351_v1 = vsel %vm1716_vm6, %v2343_v54, %v12648_v3 }
 0x36f   : > { %v2359_v7 = vpack.c.bf16 %v2351_v1, %v2350_v63 }
 0x371   : > { %2567 = vmatmul.bf16.vlgmr.msrb.gmra.mxu1 %v2359_v7  ;;  %v12666_v26 = vpop.permute.xlu0 %12665  ;;  %v12706_v54 = vpop.permute.xlu2 %12705 }
 0x372   : > { %v12656_v37 = vpop.permute.xlu1 %12655  ;;  %v12668_v36 = vunpack.i.h.bf16 %v12666_v26  ;;  %v12667_v35 = vunpack.i.l.bf16 %v12666_v26  ;;  %v12708_v26 = vunpack.i.h.bf16 %v12706_v54 }
 0x373   : > { %v12658_v10 = vunpack.i.h.bf16 %v12656_v37  ;;  %v12657_v42 = vunpack.i.l.bf16 %v12656_v37 }
 0x374   : > { %v2337_v29 = vsel %vm1157_vm2, %v13694_v24, %v12668_v36  ;;  %v2336_v33 = vsel %vm1157_vm2, %v13672_v28, %v12667_v35  ;;  %v12693_v24 = vunpack.i.h.bf16 %v12691_v4 }
 0x375   : > { %v2320_v6 = vsel %vm1707_vm5, %v2312_v5, %v12657_v42  ;;  %v2321_v17 = vsel %vm1707_vm5, %v2313_v16, %v12658_v10 }
 0x376   : > { %v2328_v18 = vsel %vm1716_vm6, %v2320_v6, %v12662_v23  ;;  %v2329_v19 = vsel %vm1716_vm6, %v2321_v17, %v12663_v12  ;;  %v12707_v12 = vunpack.i.l.bf16 %v12706_v54 }
 0x377   : > { %v2361_v22 = vpack.c.bf16 %v2329_v19, %v2328_v18 }
 0x379   : > { %2543 = vmatmul.bf16.gmra.mxu3 %v2361_v22  ;;  %v12681_v14 = vpop.permute.xlu0 %12680  ;;  %v12721_v18 = vpop.permute.xlu2 %12720 }
 0x37a   : > { %v12671_v11 = vpop.permute.xlu1 %12670  ;;  %v12683_v45 = vunpack.i.h.bf16 %v12681_v14  ;;  %v12682_v46 = vunpack.i.l.bf16 %v12681_v14 }
 0x37b   : > { %v12673_v50 = vunpack.i.h.bf16 %v12671_v11  ;;  %v12672_v32 = vunpack.i.l.bf16 %v12671_v11 }
 0x37c   : > { %v2315_v28 = vsel %vm1157_vm2, %v13699_v56, %v12683_v45  ;;  %v2314_v53 = vsel %vm1157_vm2, %v13686_v48, %v12682_v46 }
 0x37d   : > { %v2344_v38 = vsel %vm1707_vm5, %v2336_v33, %v12672_v32  ;;  %v2345_v0 = vsel %vm1707_vm5, %v2337_v29, %v12673_v50  ;;  %v12722_v50 = vunpack.i.l.bf16 %v12721_v18 }
 0x37e   : > { %v2352_v40 = vsel %vm1716_vm6, %v2344_v38, %v12677_v59  ;;  %v2353_v41 = vsel %vm1716_vm6, %v2345_v0, %v12678_v15 }
 0x37f   : > { %v2362_v44 = vpack.c.bf16 %v2353_v41, %v2352_v40 }
 0x381   : > { %2572 = vmatmul.bf16.gmra.mxu1 %v2362_v44  ;;  %v12696_v52 = vpop.permute.xlu0 %12695  ;;  %v12736_v41 = vpop.permute.xlu2 %12735 }
 0x382   : > { %v12686_v13 = vpop.permute.xlu1 %12685  ;;  %v12698_v58 = vunpack.i.h.bf16 %v12696_v52  ;;  %v12697_v9 = vunpack.i.l.bf16 %v12696_v52  ;;  %v12738_v46 = vunpack.i.h.bf16 %v12736_v41 }
 0x383   : > { %v12688_v51 = vunpack.i.h.bf16 %v12686_v13  ;;  %v12687_v3 = vunpack.i.l.bf16 %v12686_v13  ;;  %v12737_v13 = vunpack.i.l.bf16 %v12736_v41 }
 0x384   : > { %v2339_v48 = vsel %vm1157_vm2, %v13721_v27, %v12698_v58  ;;  %v2338_v23 = vsel %vm1157_vm2, %v13697_v55, %v12697_v9  ;;  %v12723_v27 = vunpack.i.h.bf16 %v12721_v18 }
 0x385   : > { %v2322_v57 = vsel %vm1707_vm5, %v2314_v53, %v12687_v3  ;;  %v2323_v63 = vsel %vm1707_vm5, %v2315_v28, %v12688_v51  ;;  %v2597_v53 = vpop.f32.mrf.mxu2 }
 0x386   : > { %v2330_v1 = vsel %vm1716_vm6, %v2322_v57, %v12692_v49  ;;  %v2331_v7 = vsel %vm1716_vm6, %v2323_v63, %v12693_v24 }
 0x387   : > { %v2364_v8 = vpack.c.bf16 %v2331_v7, %v2330_v1 }
 0x389   : > { %2548 = vmatmul.bf16.gmra.mxu3 %v2364_v8  ;;  %v12711_v56 = vpop.permute.xlu0 %12710 }
 0x38a   : > { %v12701_v37 = vpop.permute.xlu1 %12700  ;;  %v12713_v22 = vunpack.i.h.bf16 %v12711_v56  ;;  %v12712_v36 = vunpack.i.l.bf16 %v12711_v56 }
 0x38b   : > { %v12703_v10 = vunpack.i.h.bf16 %v12701_v37  ;;  %v12702_v42 = vunpack.i.l.bf16 %v12701_v37 }
 0x38c   : > { %v2317_v55 = vsel %vm1157_vm2, %v13725_v2, %v12713_v22  ;;  %v2316_v32 = vsel %vm1157_vm2, %v13713_v61, %v12712_v36 }
 0x38d   : > { %v2346_v5 = vsel %vm1707_vm5, %v2338_v23, %v12702_v42  ;;  %v2347_v16 = vsel %vm1707_vm5, %v2339_v48, %v12703_v10  ;;  %v2599_v57 = vpop.f32.mrf.mxu2 }
 0x38e   : > { %v2354_v6 = vsel %vm1716_vm6, %v2346_v5, %v12707_v12  ;;  %v2355_v17 = vsel %vm1716_vm6, %v2347_v16, %v12708_v26  ;;  %v12796_v5 = vld [vmem:[%s12940_s29] ss:$0 sm:$0xff] }
 0x38f   : > { %v2365_v19 = vpack.c.bf16 %v2355_v17, %v2354_v6 }
 0x391   : > { %2577 = vmatmul.bf16.gmra.mxu1 %v2365_v19  ;;  %v12726_v14 = vpop.permute.xlu0 %12725 }
 0x392   : > { %v12716_v35 = vpop.permute.xlu1 %12715  ;;  %v12728_v0 = vunpack.i.h.bf16 %v12726_v14  ;;  %v12727_v40 = vunpack.i.l.bf16 %v12726_v14 }
 0x393   : > { %v12718_v11 = vunpack.i.h.bf16 %v12716_v35  ;;  %v12717_v4 = vunpack.i.l.bf16 %v12716_v35 }
 0x394   : > { %v2341_v61 = vsel %vm1157_vm2, %v13740_v43, %v12728_v0  ;;  %v2340_v51 = vsel %vm1157_vm2, %v13723_v31, %v12727_v40 }
 0x395   : > { %v2324_v15 = vsel %vm1707_vm5, %v2316_v32, %v12717_v4  ;;  %v2325_v59 = vsel %vm1707_vm5, %v2317_v55, %v12718_v11  ;;  %v2602_v43 = vpop.f32.mrf.mxu2 }
 0x396   : > { %v2332_v29 = vsel %vm1716_vm6, %v2324_v15, %v12722_v50  ;;  %v2333_v33 = vsel %vm1716_vm6, %v2325_v59, %v12723_v27 }
 0x397   : > { %v2367_v38 = vpack.c.bf16 %v2333_v33, %v2332_v29 }
 0x399   : > { %2553 = vmatmul.bf16.gmra.mxu3 %v2367_v38 }
 0x39a   : > { %v12731_v44 = vpop.permute.xlu1 %12730 }
 0x39b   : > { %v12733_v45 = vunpack.i.h.bf16 %v12731_v44  ;;  %v12732_v2 = vunpack.i.l.bf16 %v12731_v44 }
 0x39d   : > { %v2348_v3 = vsel %vm1707_vm5, %v2340_v51, %v12732_v2  ;;  %v2349_v52 = vsel %vm1707_vm5, %v2341_v61, %v12733_v45  ;;  %v2604_v58 = vpop.f32.mrf.mxu2 }
 0x39e   : > { %v2356_v24 = vsel %vm1716_vm6, %v2348_v3, %v12737_v13  ;;  %v2357_v49 = vsel %vm1716_vm6, %v2349_v52, %v12738_v46 }
 0x39f   : > { %v2368_v28 = vpack.c.bf16 %v2357_v49, %v2356_v24 }
 0x3a1   : > { %2582 = vmatmul.bf16.gmra.mxu1 %v2368_v28 }
 0x3a5   : > { %v2607_v10 = vpop.f32.mrf.mxu2 }
 0x3ad   : > { %v2609_v26 = vpop.f32.mrf.mxu2 }
 0x3b5   : > { %v2612_v16 = vpop.f32.mrf.mxu2 }
 0x3bd   : > { %v2614_v15 = vpop.f32.mrf.mxu2 }
 0x3e4   : > { %v2539_v54 = vpop.f32.mrf.mxu3 }
 0x3e5   : > { %v2540_v45 = vadd.f32 %v12796_v5, %v2539_v54 }
 0x3ec   : > { %v2541_v1 = vpop.f32.mrf.mxu3 }
 0x3ed   : > { %v2542_v38 = vadd.f32 %v12796_v5, %v2541_v1 }
 0x3ee   : > { %v2568_v63 = vpop.f32.mrf.mxu1 }
 0x3ef   : > { %v2569_v51 = vadd.f32 %v2568_v63, %v2540_v45 }
 0x3f1   : > { %v2598_v1 = vadd.f32 %v2597_v53, %v2569_v51 }
 0x3f6   : > { %v2570_v7 = vpop.f32.mrf.mxu1 }
 0x3f7   : > { %v2571_v2 = vadd.f32 %v2570_v7, %v2542_v38  ;;  %v2637_v7 = vld [vmem:[%s15418_s6 + $0x20] sm:$0xff] }
 0x3f9   : > { %v2600_v49 = vadd.f32 %v2599_v57, %v2571_v2  ;;  %v2617_v57 = vadd.f32 %v2598_v1, %v13377_v39  ;;  %v2636_v39 = vld [vmem:[%s15418_s6 + $0x18] sm:$0xff] }
 0x3fb   : > { %v2618_v63 = vadd.f32 %v2600_v49, %v13432_v20  ;;  %v2625_v53 = vmax.f32 %v2617_v57, 0.0  ;;  %v2635_v20 = vld [vmem:[%s15418_s6 + $0x10] sm:$0xff] }
 0x3fc   : > { %v2544_v8 = vpop.f32.mrf.mxu3 }
 0x3fd   : > { %v2545_v50 = vadd.f32 %v12796_v5, %v2544_v8  ;;  %v2638_v8 = vld [vmem:[%s15418_s6 + $0x28] sm:$0xff] }
 0x3fe   : > { %v2573_v31 = vpop.f32.mrf.mxu1 }
 0x3ff   : > { %v2574_v0 = vadd.f32 %v2573_v31, %v2545_v50  ;;  %v2639_v31 = vld [vmem:[%s15418_s6 + $0x30] sm:$0xff] }
 0x401   : > { %v2603_v3 = vadd.f32 %v2602_v43, %v2574_v0  ;;  %v2633_v43 = vld [vmem:[%s15418_s6] sm:$0xff] }
 0x403   : > { %v2619_v54 = vadd.f32 %v2603_v3, %v13439_v25  ;;  %v2634_v25 = vld [vmem:[%s15418_s6 + $0x8] sm:$0xff] }
 0x404   : > { %v2546_v9 = vpop.f32.mrf.mxu3 }
 0x405   : > { %v2547_v35 = vadd.f32 %v12796_v5, %v2546_v9  ;;  %v2641_v9 = vld [vmem:[%s15418_s6 + $0x40] sm:$0xff] }
 0x406   : > { %v2575_v37 = vpop.f32.mrf.mxu1 }
 0x407   : > { %v2576_v59 = vadd.f32 %v2575_v37, %v2547_v35  ;;  %v2642_v37 = vld [vmem:[%s15418_s6 + $0x48] sm:$0xff] }
 0x409   : > { %v2605_v46 = vadd.f32 %v2604_v58, %v2576_v59  ;;  %v2640_v58 = vld [vmem:[%s15418_s6 + $0x38] sm:$0xff] }
 0x40c   : > { %v2549_v42 = vpop.f32.mrf.mxu3 }
 0x40d   : > { %v2550_v19 = vadd.f32 %v12796_v5, %v2549_v42  ;;  %v2644_v42 = vld [vmem:[%s15418_s6 + $0x58] sm:$0xff] }
 0x40e   : > { %v2578_v56 = vpop.f32.mrf.mxu1 }
 0x40f   : > { %v2579_v55 = vadd.f32 %v2578_v56, %v2550_v19 }
 0x411   : > { %v2608_v40 = vadd.f32 %v2607_v10, %v2579_v55  ;;  %v2643_v10 = vld [vmem:[%s15418_s6 + $0x50] sm:$0xff] }
 0x413   : > { %v2621_v24 = vadd.f32 %v2608_v40, %v13470_v62  ;;  %v2627_v62 = vmax.f32 %v2619_v54, 0.0 }
 0x414   : > { %v2551_v12 = vpop.f32.mrf.mxu3 }
 0x415   : > { %v2552_v18 = vadd.f32 %v12796_v5, %v2551_v12 }
 0x416   : > { %v2580_v48 = vpop.f32.mrf.mxu1 }
 0x417   : > { %v2581_v11 = vadd.f32 %v2580_v48, %v2552_v18 }
 0x419   : > { %v2610_v29 = vadd.f32 %v2609_v26, %v2581_v11 }
 0x41b   : > { %v2622_v61 = vadd.f32 %v2610_v29, %v13493_v21 }
 0x41c   : > { %v2554_v23 = vpop.f32.mrf.mxu3 }
 0x41d   : > { %v2555_v17 = vadd.f32 %v12796_v5, %v2554_v23  ;;  %v2630_v28 = vmax.f32 %v2622_v61, 0.0 }
 0x41e   : > { %v2583_v6 = vpop.f32.mrf.mxu1 }
 0x41f   : > { %v2584_v22 = vadd.f32 %v2583_v6, %v2555_v17 }
 0x421   : > { %v2613_v32 = vadd.f32 %v2612_v16, %v2584_v22 }
 0x423   : > { %v2623_v44 = vadd.f32 %v2613_v32, %v13514_v47  ;;  %v2629_v47 = vmax.f32 %v2621_v24, 0.0 }
 0x424   : > { %v2556_v36 = vpop.f32.mrf.mxu3 }
 0x425   : > { %v2557_v4 = vadd.f32 %v12796_v5, %v2556_v36  ;;  %v2631_v52 = vmax.f32 %v2623_v44, 0.0  ;;  %v2645_v5 = vld [vmem:[%s15418_s6 + $0x60] sm:$0xf]  ;;  %s15434_s6 = sld [smem:[#allocation29_spill]] }
 0x426   : > { %v2585_v27 = vpop.f32.mrf.mxu1 }
 0x427   : > { %v2586_v14 = vadd.f32 %v2585_v27, %v2557_v4 }
 0x429   : > { %v2615_v33 = vadd.f32 %v2614_v15, %v2586_v14 }
 0x42b   : > { %v2624_v41 = vadd.f32 %v2615_v33, %v13524_v60  ;;  %v2620_v60 = vadd.f32 %v2605_v46, %v13446_v34  ;;  %v2626_v34 = vmax.f32 %v2618_v63, 0.0 }
 0x42d   : > { %v2632_v13 = vmax.f32 %v2624_v41, 0.0  ;;  %v2628_v21 = vmax.f32 %v2620_v60, 0.0 }
 0x42f   : > { %2693 = vmatpush.msra.mxu3 %v2632_v13 }
 0x431   : > { %2694 = vmatpush.msra.mxu3 %v2631_v52 }
 0x433   : > { %2695 = vmatpush.msra.mxu3 %v2630_v28 }
 0x435   : > { %2696 = vmatpush.msra.mxu3 %v2629_v47 }
 0x437   : > { %2697 = vmatpush.msra.mxu3 %v2628_v21 }
 0x439   : > { %2698 = vmatpush.msra.mxu3 %v2627_v62 }
 0x43b   : > { %2699 = vmatpush.msra.mxu3 %v2626_v34 }
 0x43d   : > { %2700 = vmatpush.msra.mxu3 %v2625_v53 }
 0x43e   : > { %9390 = vmatmul.msk.f32.vlgmr.msra.gmra.mxu3 %vm1707_vm5, %v2633_v43 }
 0x446   : > { %9391 = vmatmul.msk.f32.gmra.mxu3 %vm1707_vm5, %v2634_v25 }
 0x44e   : > { %9392 = vmatmul.msk.f32.gmra.mxu3 %vm1707_vm5, %v2635_v20 }
 0x456   : > { %9393 = vmatmul.msk.f32.gmra.mxu3 %vm1707_vm5, %v2636_v39 }
 0x45e   : > { %9394 = vmatmul.msk.f32.gmra.mxu3 %vm1707_vm5, %v2637_v7 }
 0x466   : > { %9395 = vmatmul.msk.f32.gmra.mxu3 %vm1707_vm5, %v2638_v8 }
 0x46e   : > { %9396 = vmatmul.msk.f32.gmra.mxu3 %vm1707_vm5, %v2639_v31 }
 0x476   : > { %9397 = vmatmul.msk.f32.gmra.mxu3 %vm1707_vm5, %v2640_v58 }
 0x47e   : > { %9398 = vmatmul.msk.f32.gmra.mxu3 %vm1707_vm5, %v2641_v9 }
 0x486   : > { %9399 = vmatmul.msk.f32.gmra.mxu3 %vm1707_vm5, %v2642_v37 }
 0x48e   : > { %9400 = vmatmul.msk.f32.gmra.mxu3 %vm1707_vm5, %v2643_v10 }
 0x496   : > { %9401 = vmatmul.msk.f32.gmra.mxu3 %vm1707_vm5, %v2644_v42 }
 0x49e   : > { %9402 = vmatmul.msk.f32.gmra.mxu3 %vm1707_vm5, %v2645_v5 }
 0x4c1   : > { %v2702_v56 = vpop.f32.mrf.mxu3 }
 0x4c2   : > { %v2754_v26 = vrot.slane %v2702_v56, 1  ;;  %v2755_v12 = vrot.slane %v2702_v56, 2  ;;  %v2756_v48 = vrot.slane %v2702_v56, 3  ;;  %2841 = vst [vmem:[#allocation1] ss:$9 sm:$0xff] %v2702_v56  ;;  %v2757_v23 = vrot.slane %v2702_v56, 4 }
 0x4c3   : > { %v2758_v6 = vrot.slane %v2702_v56, 5  ;;  %v2759_v17 = vrot.slane %v2702_v56, 6  ;;  %v2760_v19 = vrot.slane %v2702_v56, 7 }
 0x4c4   : > { %2843 = vst [vmem:[#allocation1 + $0x1] ss:$9 sm:$0xff] %v2754_v26 }
 0x4c5   : > { %2845 = vst [vmem:[#allocation1 + $0x2] ss:$9 sm:$0xff] %v2755_v12 }
 0x4c6   : > { %2847 = vst [vmem:[#allocation1 + $0x3] ss:$9 sm:$0xff] %v2756_v48 }
 0x4c7   : > { %2849 = vst [vmem:[#allocation1 + $0x4] ss:$9 sm:$0xff] %v2757_v23 }
 0x4c9   : > { %v2705_v16 = vpop.f32.mrf.mxu3 }
 0x4ca   : > { %v2761_v22 = vrot.slane %v2705_v16, 1  ;;  %v2762_v36 = vrot.slane %v2705_v16, 2  ;;  %v2763_v35 = vrot.slane %v2705_v16, 3  ;;  %v2764_v4 = vrot.slane %v2705_v16, 4 }
 0x4cb   : > { %v2765_v27 = vrot.slane %v2705_v16, 5  ;;  %v2766_v50 = vrot.slane %v2705_v16, 6  ;;  %v2767_v32 = vrot.slane %v2705_v16, 7 }
 0x4ce   : > { %v2850_v18 = vld [vmem:[#allocation1] sm:$0xff] }
 0x4cf   : > { %2851 = vst [vmem:[#allocation1] ss:$9 sm:$0xff] %v2758_v6 }
 0x4d0   : > { %2852 = vst [vmem:[#allocation1 + $0x1] ss:$9 sm:$0xff] %v2759_v17 }
 0x4d1   : > { %2853 = vst [vmem:[#allocation1 + $0x2] ss:$9 sm:$0xff] %v2760_v19  ;;  %v2708_v55 = vpop.f32.mrf.mxu3 }
 0x4d2   : > { %2854 = vst [vmem:[#allocation1 + $0x3] ss:$9 sm:$0xff] %v2705_v16  ;;  %v2768_v14 = vrot.slane %v2708_v55, 1  ;;  %v2769_v59 = vrot.slane %v2708_v55, 2  ;;  %v2770_v29 = vrot.slane %v2708_v55, 3  ;;  %v2771_v33 = vrot.slane %v2708_v55, 4 }
 0x4d3   : > { %2855 = vst [vmem:[#allocation1 + $0x4] ss:$9 sm:$0xff] %v2761_v22  ;;  %v2772_v38 = vrot.slane %v2708_v55, 5  ;;  %v2773_v40 = vrot.slane %v2708_v55, 6  ;;  %v2774_v41 = vrot.slane %v2708_v55, 7 }
 0x4d4   : > { %2986 = vst.msk [vmem:[#allocation5] sm:$0x1f] %vm2985_vm7, %v2850_v18 }
 0x4d9   : > { %v2711_v44 = vpop.f32.mrf.mxu3 }
 0x4da   : > { %v2856_v11 = vld [vmem:[#allocation1] sm:$0xff]  ;;  %v2775_v45 = vrot.slane %v2711_v44, 1  ;;  %v2776_v2 = vrot.slane %v2711_v44, 2  ;;  %v2777_v13 = vrot.slane %v2711_v44, 3  ;;  %v2778_v61 = vrot.slane %v2711_v44, 4 }
 0x4db   : > { %2857 = vst [vmem:[#allocation1] ss:$9 sm:$0xff] %v2762_v36  ;;  %v2779_v51 = vrot.slane %v2711_v44, 5  ;;  %v2780_v52 = vrot.slane %v2711_v44, 6  ;;  %v2781_v24 = vrot.slane %v2711_v44, 7 }
 0x4dc   : > { %2858 = vst [vmem:[#allocation1 + $0x1] ss:$9 sm:$0xff] %v2763_v35 }
 0x4dd   : > { %2859 = vst [vmem:[#allocation1 + $0x2] ss:$9 sm:$0xff] %v2764_v4 }
 0x4de   : > { %2860 = vst [vmem:[#allocation1 + $0x3] ss:$9 sm:$0xff] %v2765_v27 }
 0x4df   : > { %2861 = vst [vmem:[#allocation1 + $0x4] ss:$9 sm:$0xff] %v2766_v50 }
 0x4e0   : > { %2987 = vst.msk [vmem:[#allocation5 + $0x8] sm:$0x1f] %vm2985_vm7, %v2856_v11 }
 0x4e1   : > { %v2714_v3 = vpop.f32.mrf.mxu3 }
 0x4e2   : > { %v2782_v28 = vrot.slane %v2714_v3, 1  ;;  %v2783_v60 = vrot.slane %v2714_v3, 2  ;;  %v2785_v1 = vrot.slane %v2714_v3, 4  ;;  %v2786_v47 = vrot.slane %v2714_v3, 5 }
 0x4e3   : > { %v2787_v21 = vrot.slane %v2714_v3, 6  ;;  %v2788_v63 = vrot.slane %v2714_v3, 7  ;;  %v2784_v62 = vrot.slane %v2714_v3, 3 }
 0x4e6   : > { %v2862_v15 = vld [vmem:[#allocation1] sm:$0xff] }
 0x4e7   : > { %2863 = vst [vmem:[#allocation1] ss:$9 sm:$0xff] %v2767_v32 }
 0x4e8   : > { %2864 = vst [vmem:[#allocation1 + $0x1] ss:$9 sm:$0xff] %v2708_v55 }
 0x4e9   : > { %2865 = vst [vmem:[#allocation1 + $0x2] ss:$9 sm:$0xff] %v2768_v14  ;;  %v2717_v57 = vpop.f32.mrf.mxu3 }
 0x4ea   : > { %2866 = vst [vmem:[#allocation1 + $0x3] ss:$9 sm:$0xff] %v2769_v59  ;;  %v2789_v34 = vrot.slane %v2717_v57, 1  ;;  %v2790_v53 = vrot.slane %v2717_v57, 2  ;;  %v2791_v43 = vrot.slane %v2717_v57, 3  ;;  %v2792_v20 = vrot.slane %v2717_v57, 4 }
 0x4eb   : > { %2867 = vst [vmem:[#allocation1 + $0x4] ss:$9 sm:$0xff] %v2770_v29  ;;  %v2793_v7 = vrot.slane %v2717_v57, 5  ;;  %v2794_v8 = vrot.slane %v2717_v57, 6  ;;  %v2795_v58 = vrot.slane %v2717_v57, 7 }
 0x4ec   : > { %2988 = vst.msk [vmem:[#allocation5 + $0x10] sm:$0x1f] %vm2985_vm7, %v2862_v15 }
 0x4f1   : > { %v2720_v39 = vpop.f32.mrf.mxu3 }
 0x4f2   : > { %v2868_v0 = vld [vmem:[#allocation1] sm:$0xff]  ;;  %v2796_v9 = vrot.slane %v2720_v39, 1  ;;  %v2797_v37 = vrot.slane %v2720_v39, 2  ;;  %v2798_v10 = vrot.slane %v2720_v39, 3  ;;  %v2799_v56 = vrot.slane %v2720_v39, 4 }
 0x4f3   : > { %2869 = vst [vmem:[#allocation1] ss:$9 sm:$0xff] %v2771_v33  ;;  %v2800_v26 = vrot.slane %v2720_v39, 5  ;;  %v2801_v12 = vrot.slane %v2720_v39, 6  ;;  %v2802_v23 = vrot.slane %v2720_v39, 7 }
 0x4f4   : > { %2870 = vst [vmem:[#allocation1 + $0x1] ss:$9 sm:$0xff] %v2772_v38 }
 0x4f5   : > { %2871 = vst [vmem:[#allocation1 + $0x2] ss:$9 sm:$0xff] %v2773_v40 }
 0x4f6   : > { %2872 = vst [vmem:[#allocation1 + $0x3] ss:$9 sm:$0xff] %v2774_v41 }
 0x4f7   : > { %2873 = vst [vmem:[#allocation1 + $0x4] ss:$9 sm:$0xff] %v2711_v44 }
 0x4f8   : > { %2989 = vst.msk [vmem:[#allocation5 + $0x18] sm:$0x1f] %vm2985_vm7, %v2868_v0 }
 0x4f9   : > { %v2723_v48 = vpop.f32.mrf.mxu3 }
 0x4fa   : > { %v2803_v5 = vrot.slane %v2723_v48, 1  ;;  %v2804_v6 = vrot.slane %v2723_v48, 2  ;;  %v2805_v17 = vrot.slane %v2723_v48, 3  ;;  %v2806_v18 = vrot.slane %v2723_v48, 4 }
 0x4fb   : > { %v2807_v19 = vrot.slane %v2723_v48, 5  ;;  %v2808_v36 = vrot.slane %v2723_v48, 6  ;;  %v2809_v35 = vrot.slane %v2723_v48, 7 }
 0x4fe   : > { %v2874_v46 = vld [vmem:[#allocation1] sm:$0xff] }
 0x4ff   : > { %2875 = vst [vmem:[#allocation1] ss:$9 sm:$0xff] %v2775_v45 }
 0x500   : > { %2876 = vst [vmem:[#allocation1 + $0x1] ss:$9 sm:$0xff] %v2776_v2 }
 0x501   : > { %2877 = vst [vmem:[#allocation1 + $0x2] ss:$9 sm:$0xff] %v2777_v13  ;;  %v2726_v11 = vpop.f32.mrf.mxu3 }
 0x502   : > { %2878 = vst [vmem:[#allocation1 + $0x3] ss:$9 sm:$0xff] %v2778_v61  ;;  %v2810_v4 = vrot.slane %v2726_v11, 1  ;;  %v2811_v27 = vrot.slane %v2726_v11, 2  ;;  %v2812_v55 = vrot.slane %v2726_v11, 3  ;;  %v2813_v32 = vrot.slane %v2726_v11, 4 }
 0x503   : > { %2879 = vst [vmem:[#allocation1 + $0x4] ss:$9 sm:$0xff] %v2779_v51  ;;  %v2814_v14 = vrot.slane %v2726_v11, 5  ;;  %v2815_v59 = vrot.slane %v2726_v11, 6  ;;  %v2816_v29 = vrot.slane %v2726_v11, 7 }
 0x504   : > { %2990 = vst.msk [vmem:[#allocation5 + $0x20] sm:$0x1f] %vm2985_vm7, %v2874_v46 }
 0x509   : > { %v2729_v15 = vpop.f32.mrf.mxu3 }
 0x50a   : > { %v2880_v49 = vld [vmem:[#allocation1] sm:$0xff]  ;;  %v2817_v38 = vrot.slane %v2729_v15, 1  ;;  %v2818_v0 = vrot.slane %v2729_v15, 2  ;;  %v2820_v40 = vrot.slane %v2729_v15, 4  ;;  %v2821_v41 = vrot.slane %v2729_v15, 5 }
 0x50b   : > { %2881 = vst [vmem:[#allocation1] ss:$9 sm:$0xff] %v2780_v52  ;;  %v2822_v44 = vrot.slane %v2729_v15, 6  ;;  %v2823_v45 = vrot.slane %v2729_v15, 7  ;;  %v2819_v2 = vrot.slane %v2729_v15, 3 }
 0x50c   : > { %2882 = vst [vmem:[#allocation1 + $0x1] ss:$9 sm:$0xff] %v2781_v24 }
 0x50d   : > { %2883 = vst [vmem:[#allocation1 + $0x2] ss:$9 sm:$0xff] %v2714_v3 }
 0x50e   : > { %2884 = vst [vmem:[#allocation1 + $0x3] ss:$9 sm:$0xff] %v2782_v28 }
 0x50f   : > { %2885 = vst [vmem:[#allocation1 + $0x4] ss:$9 sm:$0xff] %v2783_v60 }
 0x510   : > { %2991 = vst.msk [vmem:[#allocation5 + $0x28] sm:$0x1f] %vm2985_vm7, %v2880_v49 }
 0x511   : > { %v2732_v46 = vpop.f32.mrf.mxu3 }
 0x512   : > { %v2824_v13 = vrot.slane %v2732_v46, 1  ;;  %v2825_v61 = vrot.slane %v2732_v46, 2  ;;  %v2826_v51 = vrot.slane %v2732_v46, 3  ;;  %v2827_v52 = vrot.slane %v2732_v46, 4 }
 0x513   : > { %v2828_v49 = vrot.slane %v2732_v46, 5  ;;  %v2829_v28 = vrot.slane %v2732_v46, 6 }
 0x516   : > { %v2886_v54 = vld [vmem:[#allocation1] sm:$0xff] }
 0x517   : > { %2888 = vst [vmem:[#allocation1 + $0x1] ss:$9 sm:$0xff] %v2785_v1  ;;  %v2830_v1 = vrot.slane %v2732_v46, 7 }
 0x518   : > { %2889 = vst [vmem:[#allocation1 + $0x2] ss:$9 sm:$0xff] %v2786_v47 }
 0x519   : > { %2890 = vst [vmem:[#allocation1 + $0x3] ss:$9 sm:$0xff] %v2787_v21  ;;  %v2735_v24 = vpop.f32.mrf.mxu3 }
 0x51a   : > { %2891 = vst [vmem:[#allocation1 + $0x4] ss:$9 sm:$0xff] %v2788_v63  ;;  %v2831_v47 = vrot.slane %v2735_v24, 1  ;;  %v2834_v21 = vrot.slane %v2735_v24, 4 }
 0x51b   : > { %2887 = vst [vmem:[#allocation1] ss:$9 sm:$0xff] %v2784_v62  ;;  %v2835_v62 = vrot.slane %v2735_v24, 5 }
 0x51c   : > { %2992 = vst.msk [vmem:[#allocation5 + $0x30] sm:$0x1f] %vm2985_vm7, %v2886_v54  ;;  %v2832_v54 = vrot.slane %v2735_v24, 2 }
 0x522   : > { %v2892_v25 = vld [vmem:[#allocation1] sm:$0xff] }
 0x523   : > { %2893 = vst [vmem:[#allocation1] ss:$9 sm:$0xff] %v2717_v57  ;;  %v2836_v57 = vrot.slane %v2735_v24, 6 }
 0x524   : > { %2894 = vst [vmem:[#allocation1 + $0x1] ss:$9 sm:$0xff] %v2789_v34  ;;  %v2833_v34 = vrot.slane %v2735_v24, 3 }
 0x525   : > { %2895 = vst [vmem:[#allocation1 + $0x2] ss:$9 sm:$0xff] %v2790_v53  ;;  %v2738_v53 = vpop.f32.mrf.mxu3 }
 0x526   : > { %2896 = vst [vmem:[#allocation1 + $0x3] ss:$9 sm:$0xff] %v2791_v43  ;;  %v2837_v43 = vrot.slane %v2735_v24, 7 }
 0x527   : > { %2897 = vst [vmem:[#allocation1 + $0x4] ss:$9 sm:$0xff] %v2792_v20  ;;  %v2839_v20 = vrot.slane %v2738_v53, 2 }
 0x528   : > { %2993 = vst.msk [vmem:[#allocation5 + $0x38] sm:$0x1f] %vm2985_vm7, %v2892_v25  ;;  %v2838_v25 = vrot.slane %v2738_v53, 1 }
 0x52e   : > { %v2898_v31 = vld [vmem:[#allocation1] sm:$0xff] }
 0x52f   : > { %2899 = vst [vmem:[#allocation1] ss:$9 sm:$0xff] %v2793_v7  ;;  %v2840_v7 = vrot.slane %v2738_v53, 3 }
 0x530   : > { %2900 = vst [vmem:[#allocation1 + $0x1] ss:$9 sm:$0xff] %v2794_v8  ;;  %v3008_v8 = vld [vmem:[#allocation5 + $0x10] sm:$0xf] }
 0x531   : > { %2901 = vst [vmem:[#allocation1 + $0x2] ss:$9 sm:$0xff] %v2795_v58  ;;  %v3006_v58 = vld [vmem:[#allocation5] sm:$0xf] }
 0x532   : > { %2902 = vst [vmem:[#allocation1 + $0x3] ss:$9 sm:$0xff] %v2720_v39 }
 0x533   : > { %2903 = vst [vmem:[#allocation1 + $0x4] ss:$9 sm:$0xff] %v2796_v9  ;;  %v3007_v9 = vld [vmem:[#allocation5 + $0x8] sm:$0xf] }
 0x534   : > { %2994 = vst.msk [vmem:[#allocation5 + $0x40] sm:$0x1f] %vm2985_vm7, %v2898_v31  ;;  %v3009_v31 = vld [vmem:[#allocation5 + $0x18] sm:$0xf] }
 0x53a   : > { %v2904_v42 = vld [vmem:[#allocation1] sm:$0xff] }
 0x53b   : > { %2905 = vst [vmem:[#allocation1] ss:$9 sm:$0xff] %v2797_v37  ;;  %v3013_v37 = vld [vmem:[#allocation5 + $0x38] sm:$0xf] }
 0x53c   : > { %2906 = vst [vmem:[#allocation1 + $0x1] ss:$9 sm:$0xff] %v2798_v10 }
 0x53d   : > { %2907 = vst [vmem:[#allocation1 + $0x2] ss:$9 sm:$0xff] %v2799_v56  ;;  %v3011_v56 = vld [vmem:[#allocation5 + $0x28] sm:$0xf] }
 0x53e   : > { %2908 = vst [vmem:[#allocation1 + $0x3] ss:$9 sm:$0xff] %v2800_v26 }
 0x53f   : > { %2909 = vst [vmem:[#allocation1 + $0x4] ss:$9 sm:$0xff] %v2801_v12  ;;  %v3012_v12 = vld [vmem:[#allocation5 + $0x30] sm:$0xf] }
 0x540   : > { %2995 = vst.msk [vmem:[#allocation5 + $0x48] sm:$0x1f] %vm2985_vm7, %v2904_v42  ;;  %v3014_v42 = vld [vmem:[#allocation5 + $0x40] sm:$0xf] }
 0x546   : > { %v2910_v16 = vld [vmem:[#allocation1] sm:$0xff] }
 0x547   : > { %2911 = vst [vmem:[#allocation1] ss:$9 sm:$0xff] %v2802_v23 }
 0x548   : > { %2912 = vst [vmem:[#allocation1 + $0x1] ss:$9 sm:$0xff] %v2723_v48  ;;  %v3017_v48 = vld [vmem:[#allocation5 + $0x11] sm:$0xf] }
 0x549   : > { %2913 = vst [vmem:[#allocation1 + $0x2] ss:$9 sm:$0xff] %v2803_v5  ;;  %v3018_v5 = vld [vmem:[#allocation5 + $0x19] sm:$0xf] }
 0x54a   : > { %2914 = vst [vmem:[#allocation1 + $0x3] ss:$9 sm:$0xff] %v2804_v6 }
 0x54b   : > { %2915 = vst [vmem:[#allocation1 + $0x4] ss:$9 sm:$0xff] %v2805_v17  ;;  %v3016_v17 = vld [vmem:[#allocation5 + $0x9] sm:$0xf] }
 0x54c   : > { %2996 = vst.msk [vmem:[#allocation5 + $0x50] sm:$0x1f] %vm2985_vm7, %v2910_v16  ;;  %v3015_v16 = vld [vmem:[#allocation5 + $0x1] sm:$0xf] }
 0x552   : > { %v2916_v22 = vld [vmem:[#allocation1] sm:$0xff] }
 0x553   : > { %2917 = vst [vmem:[#allocation1] ss:$9 sm:$0xff] %v2806_v18 }
 0x554   : > { %2918 = vst [vmem:[#allocation1 + $0x1] ss:$9 sm:$0xff] %v2807_v19 }
 0x555   : > { %2919 = vst [vmem:[#allocation1 + $0x2] ss:$9 sm:$0xff] %v2808_v36 }
 0x556   : > { %2920 = vst [vmem:[#allocation1 + $0x3] ss:$9 sm:$0xff] %v2809_v35  ;;  %v3020_v35 = vld [vmem:[#allocation5 + $0x50] sm:$0xf] }
 0x557   : > { %2921 = vst [vmem:[#allocation1 + $0x4] ss:$9 sm:$0xff] %v2726_v11 }
 0x558   : > { %2997 = vst.msk [vmem:[#allocation5 + $0x58] sm:$0x1f] %vm2985_vm7, %v2916_v22 }
 0x55e   : > { %v2922_v50 = vld [vmem:[#allocation1] sm:$0xff] }
 0x55f   : > { %2923 = vst [vmem:[#allocation1] ss:$9 sm:$0xff] %v2810_v4  ;;  %v3021_v4 = vld [vmem:[#allocation5 + $0x58] sm:$0xf] }
 0x560   : > { %2924 = vst [vmem:[#allocation1 + $0x1] ss:$9 sm:$0xff] %v2811_v27 }
 0x561   : > { %2925 = vst [vmem:[#allocation1 + $0x2] ss:$9 sm:$0xff] %v2812_v55 }
 0x562   : > { %2926 = vst [vmem:[#allocation1 + $0x3] ss:$9 sm:$0xff] %v2813_v32 }
 0x563   : > { %2927 = vst [vmem:[#allocation1 + $0x4] ss:$9 sm:$0xff] %v2814_v14 }
 0x564   : > { %2998 = vst.msk [vmem:[#allocation5 + $0x60] sm:$0x1f] %vm2985_vm7, %v2922_v50 }
 0x56a   : > { %v2928_v33 = vld [vmem:[#allocation1] sm:$0xff] }
 0x56b   : > { %2929 = vst [vmem:[#allocation1] ss:$9 sm:$0xff] %v2815_v59  ;;  %v3022_v18 = vld [vmem:[#allocation5 + $0x60] sm:$0xf] }
 0x56c   : > { %2930 = vst [vmem:[#allocation1 + $0x1] ss:$9 sm:$0xff] %v2816_v29  ;;  %v3031_v29 = vld [vmem:[#allocation5 + $0x61] sm:$0xf] }
 0x56d   : > { %2931 = vst [vmem:[#allocation1 + $0x2] ss:$9 sm:$0xff] %v2729_v15 }
 0x56e   : > { %2932 = vst [vmem:[#allocation1 + $0x3] ss:$9 sm:$0xff] %v2817_v38 }
 0x56f   : > { %2933 = vst [vmem:[#allocation1 + $0x4] ss:$9 sm:$0xff] %v2818_v0 }
 0x570   : > { %2999 = vst.msk [vmem:[#allocation5 + $0x68] sm:$0x1f] %vm2985_vm7, %v2928_v33 }
 0x571   : > { %2936 = vst [vmem:[#allocation1 + $0x1] ss:$9 sm:$0xff] %v2820_v40  ;;  %v3029_v40 = vld [vmem:[#allocation5 + $0x51] sm:$0xf] }
 0x572   : > { %2937 = vst [vmem:[#allocation1 + $0x2] ss:$9 sm:$0xff] %v2821_v41 }
 0x573   : > { %2938 = vst [vmem:[#allocation1 + $0x3] ss:$9 sm:$0xff] %v2822_v44  ;;  %v3030_v44 = vld [vmem:[#allocation5 + $0x59] sm:$0xf] }
 0x574   : > { %2939 = vst [vmem:[#allocation1 + $0x4] ss:$9 sm:$0xff] %v2823_v45  ;;  %v3036_v45 = vld [vmem:[#allocation5 + $0x18] sm:$0xf] }
 0x575   : > { %2935 = vst [vmem:[#allocation1] ss:$9 sm:$0xff] %v2819_v2 }
 0x577   : > { %v3023_v36 = vld [vmem:[#allocation5 + $0x68] sm:$0xf] }
 0x578   : > { %v3032_v0 = vld [vmem:[#allocation5 + $0x69] sm:$0xf] }
 0x57c   : > { %v2940_v3 = vld [vmem:[#allocation1] sm:$0xff] }
 0x57d   : > { %2941 = vst [vmem:[#allocation1] ss:$9 sm:$0xff] %v2732_v46  ;;  %v3037_v46 = vld [vmem:[#allocation5 + $0x20] sm:$0xf] }
 0x57e   : > { %2942 = vst [vmem:[#allocation1 + $0x1] ss:$9 sm:$0xff] %v2824_v13  ;;  %v3034_v13 = vld [vmem:[#allocation5 + $0x8] sm:$0xf] }
 0x57f   : > { %2943 = vst [vmem:[#allocation1 + $0x2] ss:$9 sm:$0xff] %v2825_v61 }
 0x580   : > { %2944 = vst [vmem:[#allocation1 + $0x3] ss:$9 sm:$0xff] %v2826_v51  ;;  %v3035_v51 = vld [vmem:[#allocation5 + $0x10] sm:$0xf] }
 0x581   : > { %2945 = vst [vmem:[#allocation1 + $0x4] ss:$9 sm:$0xff] %v2827_v52 }
 0x582   : > { %3001 = vst.msk [vmem:[#allocation5 + $0x78] sm:$0x1f] %vm2985_vm7, %v2940_v3  ;;  %v3041_v3 = vld [vmem:[#allocation5 + $0x40] sm:$0xf] }
 0x588   : > { %v2946_v60 = vld [vmem:[#allocation1] sm:$0xff] }
 0x589   : > { %2947 = vst [vmem:[#allocation1] ss:$9 sm:$0xff] %v2828_v49  ;;  %v3025_v14 = vld [vmem:[#allocation5 + $0x78] sm:$0xf]  ;;  %v3042_v49 = vld [vmem:[#allocation5 + $0x48] sm:$0xf] }
 0x58a   : > { %2948 = vst [vmem:[#allocation1 + $0x1] ss:$9 sm:$0xff] %v2829_v28  ;;  %v11839_v28 = vld [vmem:[%s15419_s3 + $0x38] sm:$0xff] }
 0x58b   : > { %2949 = vst [vmem:[#allocation1 + $0x2] ss:$9 sm:$0xff] %v2830_v1  ;;  %3372 = vmatpush.bf16.msra.mxu1 %v11839_v28  ;;  %v3039_v1 = vld [vmem:[#allocation5 + $0x30] sm:$0xf] }
 0x58c   : > { %2950 = vst [vmem:[#allocation1 + $0x3] ss:$9 sm:$0xff] %v2735_v24 }
 0x58d   : > { %2951 = vst [vmem:[#allocation1 + $0x4] ss:$9 sm:$0xff] %v2831_v47  ;;  %v3045_v47 = vld [vmem:[#allocation5 + $0x19] sm:$0xf] }
 0x58e   : > { %3002 = vst.msk [vmem:[#allocation5 + $0x80] sm:$0x1f] %vm2985_vm7, %v2946_v60  ;;  %v11838_v60 = vld [vmem:[%s15419_s3 + $0x30] sm:$0xff] }
 0x58f   : > { %3373 = vmatpush.bf16.msra.mxu1 %v11838_v60 }
 0x594   : > { %v2952_v63 = vld [vmem:[#allocation1] sm:$0xff] }
 0x595   : > { %2953 = vst [vmem:[#allocation1] ss:$9 sm:$0xff] %v2832_v54  ;;  %v3026_v59 = vld [vmem:[#allocation5 + $0x80] sm:$0xf] }
 0x596   : > { %2955 = vst [vmem:[#allocation1 + $0x2] ss:$9 sm:$0xff] %v2834_v21  ;;  %v3040_v21 = vld [vmem:[#allocation5 + $0x38] sm:$0xf] }
 0x597   : > { %2956 = vst [vmem:[#allocation1 + $0x3] ss:$9 sm:$0xff] %v2835_v62  ;;  %v11837_v62 = vld [vmem:[%s15419_s3 + $0x28] sm:$0xff] }
 0x598   : > { %2957 = vst [vmem:[#allocation1 + $0x4] ss:$9 sm:$0xff] %v2836_v57  ;;  %3374 = vmatpush.bf16.msra.mxu1 %v11837_v62 }
 0x599   : > { %2954 = vst [vmem:[#allocation1 + $0x1] ss:$9 sm:$0xff] %v2833_v34  ;;  %v3046_v34 = vld [vmem:[#allocation5 + $0x21] sm:$0xf] }
 0x59a   : > { %3003 = vst.msk [vmem:[#allocation5 + $0x88] sm:$0x1f] %vm2985_vm7, %v2952_v63 }
 0x5a0   : > { %v2958_v39 = vld [vmem:[#allocation1] sm:$0xff] }
 0x5a1   : > { %2959 = vst [vmem:[#allocation1] ss:$9 sm:$0xff] %v2837_v43  ;;  %v13881_v27 = vld [vmem:[#allocation5 + $0x88] sm:$0xf] }
 0x5a2   : > { %2960 = vst [vmem:[#allocation1 + $0x1] ss:$9 sm:$0xff] %v2738_v53  ;;  %v3043_v53 = vld [vmem:[#allocation5 + $0x9] sm:$0xf] }
 0x5a3   : > { %2961 = vst [vmem:[#allocation1 + $0x2] ss:$9 sm:$0xff] %v2838_v25  ;;  %v3044_v25 = vld [vmem:[#allocation5 + $0x11] sm:$0xf] }
 0x5a4   : > { %2962 = vst [vmem:[#allocation1 + $0x3] ss:$9 sm:$0xff] %v2839_v20 }
 0x5a5   : > { %2963 = vst [vmem:[#allocation1 + $0x4] ss:$9 sm:$0xff] %v2840_v7 }
 0x5a6   : > { %3004 = vst.msk [vmem:[#allocation5 + $0x90] sm:$0x1f] %vm2985_vm7, %v2958_v39 }
 0x5a7   : > { %3055 = vst [vmem:[#allocation1 + $0x10] ss:$2 sm:$0xff] %v3008_v8  ;;  %v11836_v8 = vld [vmem:[%s15419_s3 + $0x20] sm:$0xff] }
 0x5a8   : > { %3057 = vst [vmem:[#allocation1 + $0x11] ss:$2 sm:$0xff] %v3009_v31  ;;  %3375 = vmatpush.bf16.msra.mxu1 %v11836_v8  ;;  %v11835_v31 = vld [vmem:[%s15419_s3 + $0x18] sm:$0xff] }
 0x5a9   : > { %3051 = vst [vmem:[#allocation1] ss:$2 sm:$0xff] %v3006_v58  ;;  %v11834_v58 = vld [vmem:[%s15419_s3 + $0x10] sm:$0xff] }
 0x5aa   : > { %3053 = vst [vmem:[#allocation1 + $0x1] ss:$2 sm:$0xff] %v3007_v9  ;;  %v11833_v9 = vld [vmem:[%s15419_s3 + $0x8] sm:$0xff] }
 0x5ac   : > { %3376 = vmatpush.bf16.msra.mxu1 %v11835_v31 }
 0x5ad   : > { %v13883_v32 = vld [vmem:[#allocation5 + $0x90] sm:$0xf] }
 0x5af   : > { %v13876_v10 = vld.sshfl [vmem:[#allocation1 + $0x10] sm:$0xff pattern:$0x75316420] }
 0x5b0   : > { %3070 = vst [vmem:[#allocation1 + $0x10] ss:$2 sm:$0xff] %v3013_v37  ;;  %3377 = vmatpush.bf16.msra.mxu1 %v11834_v58  ;;  %v11832_v37 = vld [vmem:[%s15419_s3] sm:$0xff] }
 0x5b1   : > { %3072 = vst [vmem:[#allocation1 + $0x11] ss:$2 sm:$0xff] %v3014_v42  ;;  %v13878_v26 = vld.sshfl [vmem:[#allocation1] sm:$0xff pattern:$0x75316420]  ;;  %v11847_v42 = vld [vmem:[%s15419_s3 + $0x78] sm:$0xff] }
 0x5b2   : > { %3066 = vst [vmem:[#allocation1] ss:$2 sm:$0xff] %v3011_v56  ;;  %v11849_v56 = vld [vmem:[%s15419_s3 + $0x88] sm:$0xff]  ;;  %3386 = vmatpush.bf16.msra.mxu2 %v11847_v42 }
 0x5b3   : > { %3068 = vst [vmem:[#allocation1 + $0x1] ss:$2 sm:$0xff] %v3012_v12  ;;  %v11846_v12 = vld [vmem:[%s15419_s3 + $0x70] sm:$0xff] }
 0x5b4   : > { %3378 = vmatpush.bf16.msra.mxu1 %v11833_v9 }
 0x5b6   : > { %3387 = vmatpush.bf16.msra.mxu2 %v11846_v12 }
 0x5b8   : > { %v3074_v23 = vld.sshfl [vmem:[#allocation1 + $0x10] sm:$0xff pattern:$0x75316420]  ;;  %3379 = vmatpush.bf16.msra.mxu1 %v11832_v37 }
 0x5b9   : > { %3089 = vst [vmem:[#allocation1 + $0x10] ss:$2 sm:$0xff] %v3017_v48  ;;  %v11845_v48 = vld [vmem:[%s15419_s3 + $0x68] sm:$0xff] }
 0x5ba   : > { %3091 = vst [vmem:[#allocation1 + $0x11] ss:$2 sm:$0xff] %v3018_v5  ;;  %v3073_v6 = vld.sshfl [vmem:[#allocation1] sm:$0xff pattern:$0x75316420]  ;;  %3388 = vmatpush.bf16.msra.mxu2 %v11845_v48 }
 0x5bb   : > { %3085 = vst [vmem:[#allocation1] ss:$2 sm:$0xff] %v3015_v16  ;;  %v12739_v19 = vpack.i.bf16 %v3074_v23, %v3073_v6  ;;  %v11844_v23 = vld [vmem:[%s15419_s3 + $0x60] sm:$0xff]  ;;  %v11843_v16 = vld [vmem:[%s15419_s3 + $0x58] sm:$0xff] }
 0x5bc   : > { %3087 = vst [vmem:[#allocation1 + $0x1] ss:$2 sm:$0xff] %v3016_v17  ;;  %3406 = vmatpush.bf16.msrb.mxu1 %v11849_v56  ;;  %v11848_v5 = vld [vmem:[%s15419_s3 + $0x80] sm:$0xff] }
 0x5bd   : > { %12740 = vrot.lane.b32.xlu0 %v12739_v19, %s12900_s2  ;;  %v11842_v19 = vld [vmem:[%s15419_s3 + $0x50] sm:$0xff] }
 0x5be   : > { %3389 = vmatpush.bf16.msra.mxu2 %v11844_v23 }
 0x5c0   : > { %3407 = vmatpush.bf16.msrb.mxu1 %v11848_v5  ;;  %v3483_v5 = vld [vmem:[#allocation6 + $0x1] sm:$0xf] }
 0x5c1   : > { %v3093_v22 = vld.sshfl [vmem:[#allocation1 + $0x10] sm:$0xff pattern:$0x75316420] }
 0x5c2   : > { %3108 = vst [vmem:[#allocation1 + $0x10] ss:$2 sm:$0xff] %v3022_v18  ;;  %3390 = vmatpush.bf16.msra.mxu2 %v11843_v16 }
 0x5c3   : > { %3110 = vst [vmem:[#allocation1 + $0x11] ss:$2 sm:$0xff] %v3023_v36  ;;  %v3092_v11 = vld.sshfl [vmem:[#allocation1] sm:$0xff pattern:$0x75316420] }
 0x5c4   : > { %3104 = vst [vmem:[#allocation1] ss:$2 sm:$0xff] %v3020_v35  ;;  %v12744_v50 = vpack.i.bf16 %v3093_v22, %v3092_v11  ;;  %v11841_v35 = vld [vmem:[%s15419_s3 + $0x48] sm:$0xff] }
 0x5c5   : > { %3106 = vst [vmem:[#allocation1 + $0x1] ss:$2 sm:$0xff] %v3021_v4 }
 0x5c6   : > { %12745 = vrot.lane.b32.xlu1 %v12744_v50, %s12899_s23  ;;  %3391 = vmatpush.bf16.msra.mxu2 %v11842_v19 }
 0x5ca   : > { %v3112_v55 = vld.sshfl [vmem:[#allocation1 + $0x10] sm:$0xff pattern:$0x75316420]  ;;  %3392 = vmatpush.bf16.msra.mxu2 %v11841_v35 }
 0x5cb   : > { %3127 = vst [vmem:[#allocation1 + $0x10] ss:$2 sm:$0xff] %v13881_v27 }
 0x5cc   : > { %3129 = vst [vmem:[#allocation1 + $0x11] ss:$2 sm:$0xff] %v13883_v32  ;;  %v3111_v15 = vld.sshfl [vmem:[#allocation1] sm:$0xff pattern:$0x75316420] }
 0x5cd   : > { %3123 = vst [vmem:[#allocation1] ss:$2 sm:$0xff] %v3025_v14  ;;  %v12749_v33 = vpack.i.bf16 %v3112_v55, %v3111_v15 }
 0x5ce   : > { %3125 = vst [vmem:[#allocation1 + $0x1] ss:$2 sm:$0xff] %v3026_v59 }
 0x5cf   : > { %12750 = vrot.lane.b32.xlu2 %v12749_v33, %s12901_s16 }
 0x5d3   : > { %v13888_v38 = vld.sshfl [vmem:[#allocation1 + $0x10] sm:$0xff pattern:$0x75316420] }
 0x5d4   : > { %3142 = vst [vmem:[#allocation1 + $0x10] ss:$2 sm:$0xff] %v3031_v29 }
 0x5d5   : > { %3144 = vst [vmem:[#allocation1 + $0x11] ss:$2 sm:$0xff] %v3032_v0  ;;  %v13891_v41 = vld.sshfl [vmem:[#allocation1] sm:$0xff pattern:$0x75316420] }
 0x5d6   : > { %3138 = vst [vmem:[#allocation1] ss:$2 sm:$0xff] %v3029_v40  ;;  %v11840_v0 = vld [vmem:[%s15419_s3 + $0x40] sm:$0xff]  ;;  %v3419_v40 = vld [vmem:[%s12965_s24 + $0x18] sm:$0xff]  ;;  %s15431_s3 = sld [smem:[#allocation31_spill]] }
 0x5d7   : > { %3140 = vst [vmem:[#allocation1 + $0x1] ss:$2 sm:$0xff] %v3030_v44  ;;  %3393 = vmatpush.bf16.msra.mxu2 %v11840_v0  ;;  %v3418_v44 = vld [vmem:[%s12965_s24 + $0x10] sm:$0xff] }
 0x5db   : > { %3449 = vmatpush.msrb.mxu2 %v3419_v40 }
 0x5dc   : > { %v3146_v2 = vld.sshfl [vmem:[#allocation1 + $0x10] sm:$0xff pattern:$0x75316420] }
 0x5dd   : > { %3161 = vst [vmem:[#allocation1 + $0x10] ss:$2 sm:$0xff] %v3036_v45  ;;  %3450 = vmatpush.msrb.mxu2 %v3418_v44  ;;  %v3416_v45 = vld [vmem:[%s12965_s24] sm:$0xff] }
 0x5de   : > { %3163 = vst [vmem:[#allocation1 + $0x11] ss:$2 sm:$0xff] %v3037_v46  ;;  %v3145_v61 = vld.sshfl [vmem:[#allocation1] sm:$0xff pattern:$0x75316420] }
 0x5df   : > { %3157 = vst [vmem:[#allocation1] ss:$2 sm:$0xff] %v3034_v13  ;;  %v12754_v52 = vpack.i.bf16 %v3146_v2, %v3145_v61 }
 0x5e0   : > { %3159 = vst [vmem:[#allocation1 + $0x1] ss:$2 sm:$0xff] %v3035_v51 }
 0x5e1   : > { %12755 = vrot.lane.b32.xlu0 %v12754_v52, %s12900_s2  ;;  %s15426_s2 = sld [smem:[#allocation20_spill]] }
 0x5e5   : > { %v3165_v24 = vld.sshfl [vmem:[#allocation1 + $0x10] sm:$0xff pattern:$0x75316420] }
 0x5e6   : > { %3180 = vst [vmem:[#allocation1 + $0x10] ss:$2 sm:$0xff] %v3041_v3 }
 0x5e7   : > { %3182 = vst [vmem:[#allocation1 + $0x11] ss:$2 sm:$0xff] %v3042_v49  ;;  %v3164_v54 = vld.sshfl [vmem:[#allocation1] sm:$0xff pattern:$0x75316420] }
 0x5e8   : > { %3176 = vst [vmem:[#allocation1] ss:$2 sm:$0xff] %v3039_v1  ;;  %v12759_v63 = vpack.i.bf16 %v3165_v24, %v3164_v54 }
 0x5e9   : > { %3178 = vst [vmem:[#allocation1 + $0x1] ss:$2 sm:$0xff] %v3040_v21 }
 0x5ea   : > { %12760 = vrot.lane.b32.xlu1 %v12759_v63, %s12899_s23 }
 0x5ee   : > { %v3184_v57 = vld.sshfl [vmem:[#allocation1 + $0x10] sm:$0xff pattern:$0x75316420] }
 0x5ef   : > { %3199 = vst [vmem:[#allocation1 + $0x10] ss:$2 sm:$0xff] %v3045_v47 }
 0x5f0   : > { %3201 = vst [vmem:[#allocation1 + $0x11] ss:$2 sm:$0xff] %v3046_v34  ;;  %v3183_v43 = vld.sshfl [vmem:[#allocation1] sm:$0xff pattern:$0x75316420] }
 0x5f1   : > { %3195 = vst [vmem:[#allocation1] ss:$2 sm:$0xff] %v3043_v53  ;;  %v12764_v20 = vpack.i.bf16 %v3184_v57, %v3183_v43  ;;  %v12797_v53 = vld [vmem:[%s15424_s8] ss:$0 sm:$0xff] }
 0x5f2   : > { %3197 = vst [vmem:[#allocation1 + $0x1] ss:$2 sm:$0xff] %v3044_v25 }
 0x5f3   : > { %12765 = vrot.lane.b32.xlu2 %v12764_v20, %s12901_s16  ;;  %s15428_s16 = sld [smem:[#allocation22_spill]] }
 0x5f7   : > { %v13898_v39 = vld.sshfl [vmem:[#allocation1 + $0x10] sm:$0xff pattern:$0x75316420] }
 0x5f8   : > { %3428 = vst [vmem:[#allocation1 + $0x10] ss:$2 sm:$0xff] %v13881_v27 }
 0x5f9   : > { %3430 = vst [vmem:[#allocation1 + $0x11] ss:$2 sm:$0xff] %v13883_v32  ;;  %v3202_v7 = vld.sshfl [vmem:[#allocation1] sm:$0xff pattern:$0x75316420] }
 0x5fa   : > { %3424 = vst [vmem:[#allocation1] ss:$2 sm:$0xff] %v3025_v14 }
 0x5fb   : > { %3426 = vst [vmem:[#allocation1 + $0x1] ss:$2 sm:$0xff] %v3026_v59 }
 0x600   : > { %v3432_v57 = vld.sshfl [vmem:[#allocation1 + $0x10] sm:$0xff pattern:$0x75316420] }
 0x602   : > { %v3431_v62 = vld.sshfl [vmem:[#allocation1] sm:$0xff pattern:$0x75316420] }
 0x629   : > { %v12751_v22 = vpop.permute.xlu2 %12750 }
 0x62a   : > { %v12753_v27 = vunpack.i.h.bf16 %v12751_v22  ;;  %v12752_v50 = vunpack.i.l.bf16 %v12751_v22 }
 0x62f   : > { %v12741_v6 = vpop.permute.xlu0 %12740 }
 0x630   : > { %v12743_v17 = vunpack.i.h.bf16 %v12741_v6  ;;  %v12742_v18 = vunpack.i.l.bf16 %v12741_v6 }
 0x632   : > { %v3207_v55 = vsel %vm1157_vm2, %v13876_v10, %v12743_v17  ;;  %v3206_v32 = vsel %vm1157_vm2, %v13878_v26, %v12742_v18  ;;  %v3417_v10 = vld [vmem:[%s12965_s24 + $0x8] sm:$0xff]  ;;  %v3220_v26 = vpack.c.bf16 %v13898_v39, %v3202_v7 }
 0x633   : > { %3451 = vmatpush.msrb.mxu2 %v3417_v10  ;;  %v3487_v18 = vld [vmem:[#allocation6 + $0x2] sm:$0xf] }
 0x635   : > { %3452 = vmatpush.msrb.mxu2 %v3416_v45 }
 0x638   : > { %v12746_v36 = vpop.permute.xlu1 %12745 }
 0x639   : > { %v12748_v11 = vunpack.i.h.bf16 %v12746_v36  ;;  %v12747_v4 = vunpack.i.l.bf16 %v12746_v36 }
 0x63b   : > { %v3209_v14 = vsel %vm1707_vm5, %v3207_v55, %v12748_v11  ;;  %v3208_v15 = vsel %vm1707_vm5, %v3206_v32, %v12747_v4 }
 0x63c   : > { %v3210_v59 = vsel %vm1716_vm6, %v3208_v15, %v12752_v50  ;;  %v3211_v29 = vsel %vm1716_vm6, %v3209_v14, %v12753_v27 }
 0x63d   : > { %v3218_v33 = vpack.c.bf16 %v3211_v29, %v3210_v59 }
 0x63f   : > { %3380 = vmatmul.bf16.vlgmr.msra.gmra.mxu1 %v3218_v33 }
 0x64d   : > { %v12766_v61 = vpop.permute.xlu2 %12765 }
 0x64e   : > { %v12768_v24 = vunpack.i.h.bf16 %v12766_v61  ;;  %v12767_v49 = vunpack.i.l.bf16 %v12766_v61 }
 0x64f   : > { %9475 = vmatmul.msk.bf16.vlgmr.msrb.gmra.mxu1 %vm1157_vm2, %v3220_v26 }
 0x653   : > { %v12756_v2 = vpop.permute.xlu0 %12755 }
 0x654   : > { %v12758_v46 = vunpack.i.h.bf16 %v12756_v2  ;;  %v12757_v13 = vunpack.i.l.bf16 %v12756_v2  ;;  %v11885_v2 = vld [vmem:[%s12955_s14 + $0x118] sm:$0xff] }
 0x655   : > { %4035 = vmatpush.bf16.msrb.mxu3 %v11885_v2  ;;  %v11877_v2 = vld [vmem:[%s12955_s14 + $0xd8] sm:$0xff] }
 0x656   : > { %v3213_v28 = vsel %vm1157_vm2, %v13888_v38, %v12758_v46  ;;  %v3212_v60 = vsel %vm1157_vm2, %v13891_v41, %v12757_v13  ;;  %v3479_v41 = vld [vmem:[#allocation6] sm:$0xf] }
 0x657   : > { %3520 = vst [vmem:[#allocation1] ss:$2 sm:$0xff] %v3479_v41  ;;  %v3507_v41 = vld [vmem:[#allocation6 + $0x28] sm:$0xf] }
 0x65c   : > { %v12761_v51 = vpop.permute.xlu1 %12760 }
 0x65d   : > { %v12763_v3 = vunpack.i.h.bf16 %v12761_v51  ;;  %v12762_v52 = vunpack.i.l.bf16 %v12761_v51 }
 0x65f   : > { %v3215_v1 = vsel %vm1707_vm5, %v3213_v28, %v12763_v3  ;;  %v3214_v47 = vsel %vm1707_vm5, %v3212_v60, %v12762_v52  ;;  %v11884_v3 = vld [vmem:[%s12955_s14 + $0x110] sm:$0xff]  ;;  %v11883_v28 = vld [vmem:[%s12955_s14 + $0x108] sm:$0xff] }
 0x660   : > { %v3216_v54 = vsel %vm1716_vm6, %v3214_v47, %v12767_v49  ;;  %v3217_v21 = vsel %vm1716_vm6, %v3215_v1, %v12768_v24  ;;  %4036 = vmatpush.bf16.msrb.mxu3 %v11884_v3 }
 0x661   : > { %v3219_v63 = vpack.c.bf16 %v3217_v21, %v3216_v54  ;;  %v11882_v54 = vld [vmem:[%s12955_s14 + $0x100] sm:$0xff] }
 0x663   : > { %3394 = vmatmul.bf16.vlgmr.msra.gmra.mxu2 %v3219_v63 }
 0x664   : > { %4037 = vmatpush.bf16.msrb.mxu3 %v11883_v28  ;;  %v11867_v28 = vld [vmem:[%s12955_s14 + $0x88] sm:$0xff] }
 0x668   : > { %4038 = vmatpush.bf16.msrb.mxu3 %v11882_v54  ;;  %v11874_v54 = vld [vmem:[%s12955_s14 + $0xc0] sm:$0xff] }
 0x673   : > { %9476 = vmatmul.msk.f32.vlgmr.msrb.gmra.mxu2 %vm1157_vm2, %v3431_v62 }
 0x67b   : > { %9477 = vmatmul.msk.f32.gmra.mxu2 %vm1157_vm2, %v3432_v57  ;;  %v11857_v57 = vld [vmem:[%s12955_s14 + $0x38] sm:$0xff] }
 0x67c   : > { %3975 = vmatpush.bf16.msra.mxu1 %v11857_v57 }
 0x6bc   : > { %v3381_v38 = vpop.f32.mrf.mxu1 }
 0x6bd   : > { %v3382_v43 = vadd.f32 %v12797_v53, %v3381_v38  ;;  %v11865_v38 = vld [vmem:[%s12955_s14 + $0x78] sm:$0xff] }
 0x6be   : > { %3989 = vmatpush.bf16.msra.mxu2 %v11865_v38 }
 0x6c4   : > { %v3383_v34 = vpop.f32.mrf.mxu1 }
 0x6c5   : > { %v3384_v31 = vadd.f32 %v12797_v53, %v3383_v34 }
 0x6cc   : > { %v3409_v25 = vpop.f32.mrf.mxu1 }
 0x6d4   : > { %v3411_v37 = vpop.f32.mrf.mxu1 }
 0x6e6   : > { %v3395_v20 = vpop.f32.mrf.mxu2 }
 0x6e7   : > { %v3396_v39 = vadd.f32 %v3395_v20, %v3382_v43  ;;  %v11856_v43 = vld [vmem:[%s12955_s14 + $0x30] sm:$0xff] }
 0x6e8   : > { %3976 = vmatpush.bf16.msra.mxu1 %v11856_v43 }
 0x6e9   : > { %v3410_v7 = vadd.f32 %v3409_v25, %v3396_v39  ;;  %v11864_v25 = vld [vmem:[%s12955_s14 + $0x70] sm:$0xff] }
 0x6ea   : > { %3990 = vmatpush.bf16.msra.mxu2 %v11864_v25 }
 0x6eb   : > { %v3414_v8 = vmax.f32 %v3410_v7, 0.0 }
 0x6ed   : > { %v3469_v58 = vrot.slane %v3414_v8, 4  ;;  %3475 = vst.msk [vmem:[#allocation6 + $0x9] sm:$0xf] %vm3474_vm9, %v3414_v8  ;;  %v11855_v8 = vld [vmem:[%s12955_s14 + $0x28] sm:$0xff] }
 0x6ee   : > { %v3397_v9 = vpop.f32.mrf.mxu2  ;;  %3977 = vmatpush.bf16.msra.mxu1 %v11855_v8 }
 0x6ef   : > { %3476 = vst.msk [vmem:[#allocation6 + $0x11] sm:$0xf] %vm3474_vm9, %v3469_v58  ;;  %v3398_v30 = vadd.f32 %v3397_v9, %v3384_v31  ;;  %v11863_v31 = vld [vmem:[%s12955_s14 + $0x68] sm:$0xff]  ;;  %v3511_v9 = vld [vmem:[#allocation6 + $0x29] sm:$0xf] }
 0x6f0   : > { %3991 = vmatpush.bf16.msra.mxu2 %v11863_v31 }
 0x6f1   : > { %v3412_v42 = vadd.f32 %v3411_v37, %v3398_v30  ;;  %v11854_v30 = vld [vmem:[%s12955_s14 + $0x20] sm:$0xff] }
 0x6f2   : > { %v11862_v37 = vld [vmem:[%s12955_s14 + $0x60] sm:$0xff]  ;;  %3978 = vmatpush.bf16.msra.mxu1 %v11854_v30 }
 0x6f3   : > { %v3415_v56 = vmax.f32 %v3412_v42, 0.0 }
 0x6f4   : > { %v3480_v12 = vld [vmem:[#allocation6 + $0x8] sm:$0xf]  ;;  %3992 = vmatpush.bf16.msra.mxu2 %v11862_v37 }
 0x6f5   : > { %3522 = vst [vmem:[#allocation1 + $0x1] ss:$2 sm:$0xff] %v3480_v12  ;;  %v3470_v23 = vrot.slane %v3415_v56, 4  ;;  %v3484_v6 = vld [vmem:[#allocation6 + $0x9] sm:$0xf]  ;;  %v11853_v12 = vld [vmem:[%s12955_s14 + $0x18] sm:$0xff] }
 0x6f6   : > { %v3481_v48 = vld [vmem:[#allocation6 + $0x10] sm:$0xf]  ;;  %3477 = vst.msk [vmem:[#allocation6 + $0x19] sm:$0xf] %vm3474_vm9, %v3415_v56  ;;  %v3488_v22 = vld [vmem:[#allocation6 + $0xa] sm:$0xf]  ;;  %3979 = vmatpush.bf16.msra.mxu1 %v11853_v12 }
 0x6f7   : > { %3524 = vst [vmem:[#allocation1 + $0x10] ss:$2 sm:$0xff] %v3481_v48  ;;  %v3485_v36 = vld [vmem:[#allocation6 + $0x11] sm:$0xf]  ;;  %v3491_v4 = vld [vmem:[#allocation6 + $0x8] sm:$0xf] }
 0x6f8   : > { %3478 = vst.msk [vmem:[#allocation6 + $0x21] sm:$0xf] %vm3474_vm9, %v3470_v23  ;;  %v3492_v50 = vld [vmem:[#allocation6 + $0x10] sm:$0xf]  ;;  %v3495_v59 = vld [vmem:[#allocation6 + $0x9] sm:$0xf] }
 0x6f9   : > { %v3489_v55 = vld [vmem:[#allocation6 + $0x12] sm:$0xf]  ;;  %v3499_v10 = vld [vmem:[#allocation6 + $0xa] sm:$0xf] }
 0x6fa   : > { %v3496_v33 = vld [vmem:[#allocation6 + $0x11] sm:$0xf]  ;;  %v11852_v23 = vld [vmem:[%s12955_s14 + $0x10] sm:$0xff] }
 0x6fb   : > { %v3500_v26 = vld [vmem:[#allocation6 + $0x12] sm:$0xf]  ;;  %3980 = vmatpush.bf16.msra.mxu1 %v11852_v23 }
 0x6fc   : > { %v13953_v16 = vld.sshfl [vmem:[#allocation1] sm:$0xff pattern:$0x75316420]  ;;  %v3504_v52 = vld [vmem:[#allocation6 + $0x10] sm:$0xf] }
 0x6fd   : > { %3535 = vst [vmem:[#allocation1] ss:$2 sm:$0xff] %v3483_v5  ;;  %v3482_v17 = vld [vmem:[#allocation6 + $0x18] sm:$0xf]  ;;  %v3508_v21 = vld [vmem:[#allocation6 + $0x11] sm:$0xf] }
 0x6fe   : > { %3537 = vst [vmem:[#allocation1 + $0x1] ss:$2 sm:$0xff] %v3484_v6  ;;  %v3486_v11 = vld [vmem:[#allocation6 + $0x19] sm:$0xf]  ;;  %v3512_v58 = vld [vmem:[#allocation6 + $0x12] sm:$0xf] }
 0x6ff   : > { %3526 = vst [vmem:[#allocation1 + $0x11] ss:$2 sm:$0xff] %v3482_v17  ;;  %v3490_v14 = vld [vmem:[#allocation6 + $0x1a] sm:$0xf]  ;;  %v3494_v44 = vld [vmem:[#allocation6 + $0x20] sm:$0xf] }
 0x700   : > { %v3493_v0 = vld [vmem:[#allocation6 + $0x18] sm:$0xf]  ;;  %v3498_v61 = vld [vmem:[#allocation6 + $0x21] sm:$0xf]  ;;  %v11861_v48 = vld [vmem:[%s12955_s14 + $0x58] sm:$0xff] }
 0x701   : > { %v3497_v46 = vld [vmem:[#allocation6 + $0x19] sm:$0xf]  ;;  %v3502_v47 = vld [vmem:[#allocation6 + $0x22] sm:$0xf]  ;;  %3993 = vmatpush.bf16.msra.mxu2 %v11861_v48  ;;  %v11860_v5 = vld [vmem:[%s12955_s14 + $0x50] sm:$0xff] }
 0x702   : > { %v3505_v49 = vld [vmem:[#allocation6 + $0x18] sm:$0xf]  ;;  %v3506_v34 = vld [vmem:[#allocation6 + $0x20] sm:$0xf]  ;;  %v3515_v6 = vld [vmem:[#allocation6 + $0x2a] sm:$0xf] }
 0x703   : > { %v3501_v60 = vld [vmem:[#allocation6 + $0x1a] sm:$0xf]  ;;  %v3510_v42 = vld [vmem:[#allocation6 + $0x21] sm:$0xf] }
 0x704   : > { %v3509_v62 = vld [vmem:[#allocation6 + $0x19] sm:$0xf]  ;;  %v3514_v17 = vld [vmem:[#allocation6 + $0x22] sm:$0xf] }
 0x705   : > { %v3542_v19 = vld.sshfl [vmem:[#allocation1] sm:$0xff pattern:$0x75316420]  ;;  %3994 = vmatpush.bf16.msra.mxu2 %v11860_v5 }
 0x706   : > { %3554 = vst [vmem:[#allocation1] ss:$2 sm:$0xff] %v3487_v18  ;;  %v13955_v35 = vld.sshfl [vmem:[#allocation1 + $0x10] sm:$0xff pattern:$0x75316420] }
 0x707   : > { %3556 = vst [vmem:[#allocation1 + $0x1] ss:$2 sm:$0xff] %v3488_v22  ;;  %v3513_v39 = vld [vmem:[#allocation6 + $0x1a] sm:$0xf]  ;;  %v11851_v22 = vld [vmem:[%s12955_s14 + $0x8] sm:$0xff] }
 0x708   : > { %3539 = vst [vmem:[#allocation1 + $0x10] ss:$2 sm:$0xff] %v3485_v36  ;;  %3981 = vmatpush.bf16.msra.mxu1 %v11851_v22  ;;  %v12798_v22 = vld [vmem:[%s12970_s30] ss:$0 sm:$0xff] }
 0x709   : > { %3541 = vst [vmem:[#allocation1 + $0x11] ss:$2 sm:$0xff] %v3486_v11 }
 0x70e   : > { %v13957_v27 = vld.sshfl [vmem:[#allocation1] sm:$0xff pattern:$0x75316420] }
 0x70f   : > { %3569 = vst [vmem:[#allocation1] ss:$2 sm:$0xff] %v3491_v4 }
 0x710   : > { %3571 = vst [vmem:[#allocation1 + $0x1] ss:$2 sm:$0xff] %v3492_v50  ;;  %v3543_v32 = vld.sshfl [vmem:[#allocation1 + $0x10] sm:$0xff pattern:$0x75316420]  ;;  %v11859_v50 = vld [vmem:[%s12955_s14 + $0x48] sm:$0xff] }
 0x711   : > { %3558 = vst [vmem:[#allocation1 + $0x10] ss:$2 sm:$0xff] %v3489_v55  ;;  %v12774_v15 = vpack.i.bf16 %v3543_v32, %v3542_v19  ;;  %v11850_v55 = vld [vmem:[%s12955_s14] sm:$0xff]  ;;  %3995 = vmatpush.bf16.msra.mxu2 %v11859_v50 }
 0x712   : > { %3560 = vst [vmem:[#allocation1 + $0x11] ss:$2 sm:$0xff] %v3490_v14  ;;  %3982 = vmatpush.bf16.msra.mxu1 %v11850_v55  ;;  %v11858_v32 = vld [vmem:[%s12955_s14 + $0x40] sm:$0xff]  ;;  %v11873_v14 = vld [vmem:[%s12955_s14 + $0xb8] sm:$0xff] }
 0x713   : > { %12775 = vrot.lane.b32.xlu1 %v12774_v15, %s12899_s23  ;;  %v11881_v15 = vld [vmem:[%s12955_s14 + $0xf8] sm:$0xff] }
 0x715   : > { %3996 = vmatpush.bf16.msra.mxu2 %v11858_v32 }
 0x716   : > { %4003 = vmatpush.bf16.msrb.mxu1 %v11873_v14 }
 0x717   : > { %v3576_v29 = vld.sshfl [vmem:[#allocation1] sm:$0xff pattern:$0x75316420] }
 0x718   : > { %3588 = vst [vmem:[#allocation1] ss:$2 sm:$0xff] %v3495_v59  ;;  %v11872_v59 = vld [vmem:[%s12955_s14 + $0xb0] sm:$0xff] }
 0x719   : > { %3590 = vst [vmem:[#allocation1 + $0x1] ss:$2 sm:$0xff] %v3496_v33  ;;  %v13960_v40 = vld.sshfl [vmem:[#allocation1 + $0x10] sm:$0xff pattern:$0x75316420]  ;;  %4017 = vmatpush.bf16.msrb.mxu2 %v11881_v15  ;;  %v11871_v33 = vld [vmem:[%s12955_s14 + $0xa8] sm:$0xff] }
 0x71a   : > { %3573 = vst [vmem:[#allocation1 + $0x10] ss:$2 sm:$0xff] %v3493_v0  ;;  %4004 = vmatpush.bf16.msrb.mxu1 %v11872_v59  ;;  %v11879_v0 = vld [vmem:[%s12955_s14 + $0xe8] sm:$0xff] }
 0x71b   : > { %3575 = vst [vmem:[#allocation1 + $0x11] ss:$2 sm:$0xff] %v3494_v44  ;;  %v11870_v44 = vld [vmem:[%s12955_s14 + $0xa0] sm:$0xff] }
 0x71e   : > { %4005 = vmatpush.bf16.msrb.mxu1 %v11871_v33 }
 0x720   : > { %v13962_v45 = vld.sshfl [vmem:[#allocation1] sm:$0xff pattern:$0x75316420] }
 0x721   : > { %3603 = vst [vmem:[#allocation1] ss:$2 sm:$0xff] %v3499_v10  ;;  %v11878_v10 = vld [vmem:[%s12955_s14 + $0xe0] sm:$0xff] }
 0x722   : > { %3605 = vst [vmem:[#allocation1 + $0x1] ss:$2 sm:$0xff] %v3500_v26  ;;  %v3577_v13 = vld.sshfl [vmem:[#allocation1 + $0x10] sm:$0xff pattern:$0x75316420]  ;;  %4006 = vmatpush.bf16.msrb.mxu1 %v11870_v44  ;;  %v11869_v26 = vld [vmem:[%s12955_s14 + $0x98] sm:$0xff] }
 0x723   : > { %3592 = vst [vmem:[#allocation1 + $0x10] ss:$2 sm:$0xff] %v3497_v46  ;;  %v12769_v51 = vpack.i.bf16 %v3577_v13, %v3576_v29  ;;  %v11880_v29 = vld [vmem:[%s12955_s14 + $0xf0] sm:$0xff]  ;;  %v4049_v44 = vld [vmem:[%s15425_s22] sm:$0xff] }
 0x724   : > { %3594 = vst [vmem:[#allocation1 + $0x11] ss:$2 sm:$0xff] %v3498_v61  ;;  %4018 = vmatpush.bf16.msrb.mxu2 %v11880_v29  ;;  %v11868_v13 = vld [vmem:[%s12955_s14 + $0x90] sm:$0xff] }
 0x725   : > { %12770 = vrot.lane.b32.xlu0 %v12769_v51, %s12899_s23  ;;  %v11876_v61 = vld [vmem:[%s12955_s14 + $0xd0] sm:$0xff] }
 0x726   : > { %4007 = vmatpush.bf16.msrb.mxu1 %v11869_v26  ;;  %v4051_v26 = vld [vmem:[%s15425_s22 + $0x10] sm:$0xff] }
 0x728   : > { %4019 = vmatpush.bf16.msrb.mxu2 %v11879_v0 }
 0x729   : > { %v3610_v24 = vld.sshfl [vmem:[#allocation1] sm:$0xff pattern:$0x75316420] }
 0x72a   : > { %3622 = vst [vmem:[#allocation1] ss:$2 sm:$0xff] %v3504_v52  ;;  %4008 = vmatpush.bf16.msrb.mxu1 %v11868_v13  ;;  %v11875_v52 = vld [vmem:[%s12955_s14 + $0xc8] sm:$0xff] }
 0x72b   : > { %3624 = vst [vmem:[#allocation1 + $0x1] ss:$2 sm:$0xff] %v3505_v49  ;;  %v13968_v1 = vld.sshfl [vmem:[#allocation1 + $0x10] sm:$0xff pattern:$0x75316420] }
 0x72c   : > { %3607 = vst [vmem:[#allocation1 + $0x10] ss:$2 sm:$0xff] %v3501_v60  ;;  %4020 = vmatpush.bf16.msrb.mxu2 %v11878_v10  ;;  %v4050_v10 = vld [vmem:[%s15425_s22 + $0x8] sm:$0xff] }
 0x72d   : > { %3609 = vst [vmem:[#allocation1 + $0x11] ss:$2 sm:$0xff] %v3502_v47  ;;  %v11866_v47 = vld [vmem:[%s12955_s14 + $0x80] sm:$0xff] }
 0x72e   : > { %4009 = vmatpush.bf16.msrb.mxu1 %v11867_v28 }
 0x730   : > { %4021 = vmatpush.bf16.msrb.mxu2 %v11877_v2  ;;  %v4052_v2 = vld [vmem:[%s15425_s22 + $0x18] sm:$0xff] }
 0x732   : > { %v13971_v63 = vld.sshfl [vmem:[#allocation1] sm:$0xff pattern:$0x75316420]  ;;  %4010 = vmatpush.bf16.msrb.mxu1 %v11866_v47 }
 0x733   : > { %3637 = vst [vmem:[#allocation1] ss:$2 sm:$0xff] %v3508_v21 }
 0x734   : > { %3639 = vst [vmem:[#allocation1 + $0x1] ss:$2 sm:$0xff] %v3509_v62  ;;  %v3611_v53 = vld.sshfl [vmem:[#allocation1 + $0x10] sm:$0xff pattern:$0x75316420]  ;;  %4022 = vmatpush.bf16.msrb.mxu2 %v11876_v61 }
 0x735   : > { %3626 = vst [vmem:[#allocation1 + $0x10] ss:$2 sm:$0xff] %v3506_v34  ;;  %v12784_v20 = vpack.i.bf16 %v3611_v53, %v3610_v24 }
 0x736   : > { %3628 = vst [vmem:[#allocation1 + $0x11] ss:$2 sm:$0xff] %v3507_v41 }
 0x737   : > { %12785 = vrot.lane.b32.xlu0 %v12784_v20, %s12899_s23 }
 0x738   : > { %4023 = vmatpush.bf16.msrb.mxu2 %v11875_v52 }
 0x73b   : > { %v3644_v7 = vld.sshfl [vmem:[#allocation1] sm:$0xff pattern:$0x75316420] }
 0x73c   : > { %3658 = vst [vmem:[#allocation1 + $0x1] ss:$2 sm:$0xff] %v3513_v39  ;;  %4024 = vmatpush.bf16.msrb.mxu2 %v11874_v54 }
 0x73d   : > { %3656 = vst [vmem:[#allocation1] ss:$2 sm:$0xff] %v3512_v58  ;;  %v13982_v56 = vld.sshfl [vmem:[#allocation1 + $0x10] sm:$0xff pattern:$0x75316420]  ;;  %v3454_v58 = vpop.f32.mrf.mxu2 }
 0x73e   : > { %3641 = vst [vmem:[#allocation1 + $0x10] ss:$2 sm:$0xff] %v3510_v42  ;;  %v3455_v32 = vadd.f32 %v12798_v22, %v3454_v58 }
 0x73f   : > { %3643 = vst [vmem:[#allocation1 + $0x11] ss:$2 sm:$0xff] %v3511_v9 }
 0x744   : > { %v3663_v11 = vld.sshfl [vmem:[#allocation1] sm:$0xff pattern:$0x75316420] }
 0x745   : > { %v3457_v9 = vpop.f32.mrf.mxu2 }
 0x746   : > { %v3645_v18 = vld.sshfl [vmem:[#allocation1 + $0x10] sm:$0xff pattern:$0x75316420]  ;;  %v3458_v14 = vadd.f32 %v12798_v22, %v3457_v9  ;;  %v11893_v9 = vld [vmem:[%s15426_s2 + $0x38] sm:$0xff] }
 0x747   : > { %3660 = vst [vmem:[#allocation1 + $0x10] ss:$2 sm:$0xff] %v3514_v17  ;;  %v12779_v19 = vpack.i.bf16 %v3645_v18, %v3644_v7  ;;  %4611 = vmatpush.bf16.msrb.mxu0 %v11893_v9  ;;  %v11904_v9 = vld [vmem:[%s15426_s2 + $0x90] sm:$0xff] }
 0x748   : > { %3662 = vst [vmem:[#allocation1 + $0x11] ss:$2 sm:$0xff] %v3515_v6 }
 0x749   : > { %12780 = vrot.lane.b32.xlu2 %v12779_v19, %s12899_s23 }
 0x74f   : > { %v3664_v36 = vld.sshfl [vmem:[#allocation1 + $0x10] sm:$0xff pattern:$0x75316420] }
 0x750   : > { %v3679_v4 = vpack.c.bf16 %v3664_v36, %v3663_v11 }
 0x752   : > { %9622 = vmatmul.msk.bf16.vlgmr.msrb.gmra.mxu3 %vm1707_vm5, %v3679_v4 }
 0x785   : > { %v12776_v46 = vpop.permute.xlu1 %12775 }
 0x786   : > { %v12778_v51 = vunpack.i.h.bf16 %v12776_v46  ;;  %v12777_v3 = vunpack.i.l.bf16 %v12776_v46  ;;  %v4053_v46 = vld [vmem:[%s15425_s22 + $0x20] sm:$0xf] }
 0x788   : > { %v3668_v24 = vsel %vm1707_vm5, %v13955_v35, %v12778_v51  ;;  %v3667_v49 = vsel %vm1707_vm5, %v13953_v16, %v12777_v3 }
 0x789   : > { %v3675_v60 = vpack.c.bf16 %v3668_v24, %v3667_v49 }
 0x78b   : > { %3983 = vmatmul.bf16.vlgmr.msra.gmra.mxu1 %v3675_v60 }
 0x797   : > { %v12771_v21 = vpop.permute.xlu0 %12770 }
 0x798   : > { %v12773_v62 = vunpack.i.h.bf16 %v12771_v21  ;;  %v12772_v57 = vunpack.i.l.bf16 %v12771_v21 }
 0x79a   : > { %v3670_v38 = vsel %vm1707_vm5, %v13960_v40, %v12773_v62  ;;  %v3669_v35 = vsel %vm1707_vm5, %v13957_v27, %v12772_v57 }
 0x79b   : > { %v3676_v41 = vpack.c.bf16 %v3670_v38, %v3669_v35 }
 0x79d   : > { %3997 = vmatmul.bf16.vlgmr.msra.gmra.mxu2 %v3676_v41 }
 0x7a3   : > { %v12781_v16 = vpop.permute.xlu2 %12780 }
 0x7a4   : > { %v12783_v34 = vunpack.i.h.bf16 %v12781_v16  ;;  %v12782_v53 = vunpack.i.l.bf16 %v12781_v16 }
 0x7a6   : > { %v3674_v43 = vsel %vm1707_vm5, %v13982_v56, %v12783_v34  ;;  %v3673_v25 = vsel %vm1707_vm5, %v13971_v63, %v12782_v53  ;;  %v12799_v56 = vld [vmem:[%s12960_s19] ss:$0 sm:$0xff] }
 0x7a7   : > { %v3678_v8 = vpack.c.bf16 %v3674_v43, %v3673_v25 }
 0x7a9   : > { %v12786_v20 = vpop.permute.xlu0 %12785 }
 0x7aa   : > { %v12788_v39 = vunpack.i.h.bf16 %v12786_v20  ;;  %v12787_v7 = vunpack.i.l.bf16 %v12786_v20 }
 0x7ac   : > { %v3672_v40 = vsel %vm1707_vm5, %v13968_v1, %v12788_v39  ;;  %v3671_v27 = vsel %vm1707_vm5, %v13962_v45, %v12787_v7 }
 0x7ad   : > { %v3677_v31 = vpack.c.bf16 %v3672_v40, %v3671_v27  ;;  %4025 = vmatmul.bf16.vlgmr.msrb.gmra.mxu2 %v3678_v8 }
 0x7af   : > { %4011 = vmatmul.bf16.vlgmr.msrb.gmra.mxu1 %v3677_v31 }
 0x7d5   : > { %v4040_v23 = vpop.f32.mrf.mxu3 }
 0x7dd   : > { %v4042_v55 = vpop.f32.mrf.mxu3 }
 0x808   : > { %v3984_v30 = vpop.f32.mrf.mxu1 }
 0x809   : > { %v3985_v48 = vadd.f32 %v12799_v56, %v3984_v30 }
 0x810   : > { %v3986_v63 = vpop.f32.mrf.mxu1 }
 0x811   : > { %v3987_v1 = vadd.f32 %v12799_v56, %v3986_v63 }
 0x820   : > { %v3998_v37 = vpop.f32.mrf.mxu2 }
 0x821   : > { %v3999_v6 = vadd.f32 %v3998_v37, %v3985_v48 }
 0x828   : > { %v4000_v42 = vpop.f32.mrf.mxu2 }
 0x829   : > { %v4001_v45 = vadd.f32 %v4000_v42, %v3987_v1 }
 0x82c   : > { %v4012_v12 = vpop.f32.mrf.mxu1 }
 0x82d   : > { %v4013_v17 = vadd.f32 %v4012_v12, %v3999_v6  ;;  %v11892_v12 = vld [vmem:[%s15426_s2 + $0x30] sm:$0xff] }
 0x82e   : > { %4612 = vmatpush.bf16.msrb.mxu0 %v11892_v12  ;;  %v11919_v12 = vld [vmem:[%s15426_s2 + $0x108] sm:$0xff] }
 0x830   : > { %v4026_v5 = vpop.f32.mrf.mxu2 }
 0x831   : > { %v4027_v19 = vadd.f32 %v4026_v5, %v4013_v17 }
 0x833   : > { %v4041_v4 = vadd.f32 %v4040_v23, %v4027_v19 }
 0x834   : > { %v4014_v18 = vpop.f32.mrf.mxu1 }
 0x835   : > { %v4015_v36 = vadd.f32 %v4014_v18, %v4001_v45  ;;  %v4045_v29 = vadd.f32 %v4041_v4, %v3455_v32 }
 0x837   : > { %v4047_v0 = vmax.f32 %v4045_v29, 0.0 }
 0x838   : > { %v4028_v11 = vpop.f32.mrf.mxu2 }
 0x839   : > { %v4029_v50 = vadd.f32 %v4028_v11, %v4015_v36  ;;  %v11891_v11 = vld [vmem:[%s15426_s2 + $0x28] sm:$0xff] }
 0x83a   : > { %4613 = vmatpush.bf16.msrb.mxu0 %v11891_v11 }
 0x83b   : > { %v4043_v15 = vadd.f32 %v4042_v55, %v4029_v50 }
 0x83d   : > { %v4046_v59 = vadd.f32 %v4043_v15, %v3458_v14 }
 0x83f   : > { %v4048_v33 = vmax.f32 %v4046_v59, 0.0 }
 0x841   : > { %4084 = vmatpush.msra.mxu1 %v4048_v33 }
 0x843   : > { %4085 = vmatpush.msra.mxu1 %v4047_v0 }
 0x844   : > { %9623 = vmatmul.msk.f32.vlgmr.msra.gmra.mxu1 %vm4054_vm10, %v4049_v44 }
 0x84c   : > { %9624 = vmatmul.msk.f32.gmra.mxu1 %vm4054_vm10, %v4050_v10 }
 0x854   : > { %9625 = vmatmul.msk.f32.gmra.mxu1 %vm4054_vm10, %v4051_v26 }
 0x85c   : > { %9626 = vmatmul.msk.f32.gmra.mxu1 %vm4054_vm10, %v4052_v2 }
 0x864   : > { %9627 = vmatmul.msk.f32.gmra.mxu1 %vm4054_vm10, %v4053_v46  ;;  %v11890_v46 = vld [vmem:[%s15426_s2 + $0x20] sm:$0xff] }
 0x865   : > { %4614 = vmatpush.bf16.msrb.mxu0 %v11890_v46 }
 0x8c1   : > { %v4087_v13 = vpop.f32.mrf.mxu1 }
 0x8c2   : > { %v4107_v61 = vrot.slane %v4087_v13, 1  ;;  %v4108_v51 = vrot.slane %v4087_v13, 2  ;;  %4138 = vst [vmem:[#allocation1] ss:$9 sm:$0xff] %v4087_v13  ;;  %v4109_v3 = vrot.slane %v4087_v13, 3  ;;  %v4110_v52 = vrot.slane %v4087_v13, 4 }
 0x8c3   : > { %v4111_v49 = vrot.slane %v4087_v13, 5  ;;  %v4112_v28 = vrot.slane %v4087_v13, 6  ;;  %v4113_v60 = vrot.slane %v4087_v13, 7  ;;  %v11901_v13 = vld [vmem:[%s15426_s2 + $0x78] sm:$0xff] }
 0x8c4   : > { %4140 = vst [vmem:[#allocation1 + $0x1] ss:$9 sm:$0xff] %v4107_v61  ;;  %v11909_v61 = vld [vmem:[%s15426_s2 + $0xb8] sm:$0xff]  ;;  %4624 = vmatpush.bf16.msra.mxu2 %v11901_v13 }
 0x8c5   : > { %4142 = vst [vmem:[#allocation1 + $0x2] ss:$9 sm:$0xff] %v4108_v51  ;;  %v11889_v51 = vld [vmem:[%s15426_s2 + $0x18] sm:$0xff]  ;;  %4637 = vmatpush.bf16.msra.mxu3 %v11909_v61  ;;  %v11910_v61 = vld [vmem:[%s15426_s2 + $0xc0] sm:$0xff] }
 0x8c6   : > { %4615 = vmatpush.bf16.msrb.mxu0 %v11889_v51 }
 0x8c9   : > { %v4090_v54 = vpop.f32.mrf.mxu1 }
 0x8ca   : > { %v4114_v21 = vrot.slane %v4090_v54, 1  ;;  %v4115_v62 = vrot.slane %v4090_v54, 2  ;;  %v4116_v38 = vrot.slane %v4090_v54, 3  ;;  %v4117_v35 = vrot.slane %v4090_v54, 4 }
 0x8cb   : > { %v4118_v41 = vrot.slane %v4090_v54, 5  ;;  %v4119_v34 = vrot.slane %v4090_v54, 6  ;;  %v4120_v43 = vrot.slane %v4090_v54, 7 }
 0x8cc   : > { %v4143_v24 = vld [vmem:[#allocation1] sm:$0xff] }
 0x8cd   : > { %4144 = vst [vmem:[#allocation1] ss:$9 sm:$0xff] %v4109_v3  ;;  %v11900_v3 = vld [vmem:[%s15426_s2 + $0x70] sm:$0xff] }
 0x8ce   : > { %4145 = vst [vmem:[#allocation1 + $0x1] ss:$9 sm:$0xff] %v4110_v52  ;;  %v11908_v52 = vld [vmem:[%s15426_s2 + $0xb0] sm:$0xff]  ;;  %4625 = vmatpush.bf16.msra.mxu2 %v11900_v3 }
 0x8cf   : > { %4146 = vst [vmem:[#allocation1 + $0x2] ss:$9 sm:$0xff] %v4111_v49  ;;  %4638 = vmatpush.bf16.msra.mxu3 %v11908_v52 }
 0x8d0   : > { %4201 = vst.msk [vmem:[#allocation7] sm:$0x7] %vm4200_vm11, %v4143_v24 }
 0x8d1   : > { %v4093_v53 = vpop.f32.mrf.mxu1 }
 0x8d2   : > { %v4121_v25 = vrot.slane %v4093_v53, 1  ;;  %v4122_v39 = vrot.slane %v4093_v53, 2  ;;  %v4123_v7 = vrot.slane %v4093_v53, 3  ;;  %v4124_v40 = vrot.slane %v4093_v53, 4 }
 0x8d3   : > { %v4125_v27 = vrot.slane %v4093_v53, 5  ;;  %v4126_v31 = vrot.slane %v4093_v53, 6  ;;  %v4127_v30 = vrot.slane %v4093_v53, 7 }
 0x8d6   : > { %v4147_v47 = vld [vmem:[#allocation1] sm:$0xff] }
 0x8d7   : > { %4148 = vst [vmem:[#allocation1] ss:$9 sm:$0xff] %v4112_v28  ;;  %v4213_v4 = vld [vmem:[#allocation7] sm:$0x3] }
 0x8d8   : > { %4149 = vst [vmem:[#allocation1 + $0x1] ss:$9 sm:$0xff] %v4113_v60  ;;  %v4218_v15 = vld [vmem:[#allocation7 + $0x1] sm:$0x3]  ;;  %v11888_v60 = vld [vmem:[%s15426_s2 + $0x10] sm:$0xff] }
 0x8d9   : > { %4150 = vst [vmem:[#allocation1 + $0x2] ss:$9 sm:$0xff] %v4090_v54  ;;  %v4096_v37 = vpop.f32.mrf.mxu1  ;;  %v11907_v54 = vld [vmem:[%s15426_s2 + $0xa8] sm:$0xff]  ;;  %4616 = vmatpush.bf16.msrb.mxu0 %v11888_v60  ;;  %v11928_v60 = vld [vmem:[%s15428_s16 + $0x30] sm:$0xff] }
 0x8da   : > { %4202 = vst.msk [vmem:[#allocation7 + $0x4] sm:$0x7] %vm4200_vm11, %v4147_v47  ;;  %v4128_v63 = vrot.slane %v4096_v37, 1  ;;  %v4129_v42 = vrot.slane %v4096_v37, 2  ;;  %v4130_v48 = vrot.slane %v4096_v37, 3  ;;  %v4131_v23 = vrot.slane %v4096_v37, 4  ;;  %4639 = vmatpush.bf16.msra.mxu3 %v11907_v54 }
 0x8db   : > { %v4132_v5 = vrot.slane %v4096_v37, 5  ;;  %v4133_v6 = vrot.slane %v4096_v37, 6  ;;  %v4134_v1 = vrot.slane %v4096_v37, 7  ;;  %v11899_v47 = vld [vmem:[%s15426_s2 + $0x68] sm:$0xff] }
 0x8dc   : > { %4626 = vmatpush.bf16.msra.mxu2 %v11899_v47 }
 0x8e0   : > { %v4151_v57 = vld [vmem:[#allocation1] sm:$0xff] }
 0x8e1   : > { %4152 = vst [vmem:[#allocation1] ss:$9 sm:$0xff] %v4114_v21  ;;  %v4099_v18 = vpop.f32.mrf.mxu1  ;;  %v4214_v50 = vld [vmem:[#allocation7 + $0x4] sm:$0x3]  ;;  %v11887_v21 = vld [vmem:[%s15426_s2 + $0x8] sm:$0xff] }
 0x8e2   : > { %4153 = vst [vmem:[#allocation1 + $0x1] ss:$9 sm:$0xff] %v4115_v62  ;;  %v4135_v45 = vrot.slane %v4099_v18, 1  ;;  %v4136_v19 = vrot.slane %v4099_v18, 2  ;;  %v4137_v36 = vrot.slane %v4099_v18, 3  ;;  %v11898_v62 = vld [vmem:[%s15426_s2 + $0x60] sm:$0xff]  ;;  %4617 = vmatpush.bf16.msrb.mxu0 %v11887_v21 }
 0x8e3   : > { %4154 = vst [vmem:[#allocation1 + $0x2] ss:$9 sm:$0xff] %v4116_v38  ;;  %v4219_v29 = vld [vmem:[#allocation7 + $0x5] sm:$0x3]  ;;  %4627 = vmatpush.bf16.msra.mxu2 %v11898_v62 }
 0x8e4   : > { %4203 = vst.msk [vmem:[#allocation7 + $0x8] sm:$0x7] %vm4200_vm11, %v4151_v57  ;;  %v11906_v57 = vld [vmem:[%s15426_s2 + $0xa0] sm:$0xff]  ;;  %v4229_v38 = vld [vmem:[#allocation7 + $0x4] sm:$0x3] }
 0x8e5   : > { %4640 = vmatpush.bf16.msra.mxu3 %v11906_v57  ;;  %v11927_v57 = vld [vmem:[%s15428_s16 + $0x28] sm:$0xff] }
 0x8ea   : > { %v4155_v16 = vld [vmem:[#allocation1] sm:$0xff] }
 0x8eb   : > { %4156 = vst [vmem:[#allocation1] ss:$9 sm:$0xff] %v4117_v35 }
 0x8ec   : > { %4157 = vst [vmem:[#allocation1 + $0x1] ss:$9 sm:$0xff] %v4118_v41  ;;  %v4230_v41 = vld [vmem:[#allocation7 + $0x8] sm:$0x3] }
 0x8ed   : > { %4158 = vst [vmem:[#allocation1 + $0x2] ss:$9 sm:$0xff] %v4119_v34 }
 0x8ee   : > { %4204 = vst.msk [vmem:[#allocation7 + $0xc] sm:$0x7] %vm4200_vm11, %v4155_v16 }
 0x8f4   : > { %v4159_v20 = vld [vmem:[#allocation1] sm:$0xff] }
 0x8f5   : > { %4160 = vst [vmem:[#allocation1] ss:$9 sm:$0xff] %v4120_v43  ;;  %v4216_v55 = vld [vmem:[#allocation7 + $0xc] sm:$0x3] }
 0x8f6   : > { %4161 = vst [vmem:[#allocation1 + $0x1] ss:$9 sm:$0xff] %v4093_v53 }
 0x8f7   : > { %4162 = vst [vmem:[#allocation1 + $0x2] ss:$9 sm:$0xff] %v4121_v25 }
 0x8f8   : > { %4205 = vst.msk [vmem:[#allocation7 + $0x10] sm:$0x7] %vm4200_vm11, %v4159_v20  ;;  %v4234_v20 = vld [vmem:[#allocation7 + $0x5] sm:$0x3] }
 0x8fe   : > { %v4163_v8 = vld [vmem:[#allocation1] sm:$0xff] }
 0x8ff   : > { %4164 = vst [vmem:[#allocation1] ss:$9 sm:$0xff] %v4122_v39  ;;  %v4217_v14 = vld [vmem:[#allocation7 + $0x10] sm:$0x3]  ;;  %v4235_v39 = vld [vmem:[#allocation7 + $0x9] sm:$0x3] }
 0x900   : > { %4165 = vst [vmem:[#allocation1 + $0x1] ss:$9 sm:$0xff] %v4123_v7  ;;  %v4232_v34 = vld [vmem:[#allocation7 + $0x10] sm:$0x3] }
 0x901   : > { %4166 = vst [vmem:[#allocation1 + $0x2] ss:$9 sm:$0xff] %v4124_v40  ;;  %v11897_v40 = vld [vmem:[%s15426_s2 + $0x58] sm:$0xff] }
 0x902   : > { %4206 = vst.msk [vmem:[#allocation7 + $0x14] sm:$0x7] %vm4200_vm11, %v4163_v8  ;;  %v11886_v8 = vld [vmem:[%s15426_s2] sm:$0xff]  ;;  %4628 = vmatpush.bf16.msra.mxu2 %v11897_v40  ;;  %v11923_v40 = vld [vmem:[%s15428_s16 + $0x8] sm:$0xff] }
 0x903   : > { %4618 = vmatpush.bf16.msrb.mxu0 %v11886_v8  ;;  %v4725_v8 = vld [vmem:[#allocation8] sm:$0x3] }
 0x908   : > { %v4167_v58 = vld [vmem:[#allocation1] sm:$0xff] }
 0x909   : > { %4168 = vst [vmem:[#allocation1] ss:$9 sm:$0xff] %v4125_v27  ;;  %v4233_v43 = vld [vmem:[#allocation7 + $0x14] sm:$0x3]  ;;  %v11905_v27 = vld [vmem:[%s15426_s2 + $0x98] sm:$0xff] }
 0x90a   : > { %4169 = vst [vmem:[#allocation1 + $0x1] ss:$9 sm:$0xff] %v4126_v31  ;;  %v11896_v31 = vld [vmem:[%s15426_s2 + $0x50] sm:$0xff]  ;;  %4641 = vmatpush.bf16.msra.mxu3 %v11905_v27  ;;  %v11933_v27 = vld [vmem:[%s15428_s16 + $0x58] sm:$0xff] }
 0x90b   : > { %4170 = vst [vmem:[#allocation1 + $0x2] ss:$9 sm:$0xff] %v4127_v30  ;;  %v11920_v30 = vld [vmem:[%s15426_s2 + $0x110] sm:$0xff]  ;;  %4629 = vmatpush.bf16.msra.mxu2 %v11896_v31  ;;  %v11943_v31 = vld [vmem:[%s15428_s16 + $0xa8] sm:$0xff] }
 0x90c   : > { %4207 = vst.msk [vmem:[#allocation7 + $0x18] sm:$0x7] %vm4200_vm11, %v4167_v58  ;;  %v11921_v58 = vld [vmem:[%s15426_s2 + $0x118] sm:$0xff] }
 0x90d   : > { %4667 = vmatpush.bf16.msra.mxu0 %v11921_v58  ;;  %v11953_v58 = vld [vmem:[%s15428_s16 + $0xf8] sm:$0xff] }
 0x90e   : > { %4642 = vmatpush.bf16.msra.mxu3 %v11904_v9 }
 0x911   : > { %4668 = vmatpush.bf16.msra.mxu0 %v11920_v30  ;;  %v11922_v30 = vld [vmem:[%s15428_s16] sm:$0xff] }
 0x912   : > { %v4171_v56 = vld [vmem:[#allocation1] sm:$0xff] }
 0x913   : > { %4172 = vst [vmem:[#allocation1] ss:$9 sm:$0xff] %v4096_v37  ;;  %v4221_v0 = vld [vmem:[#allocation7 + $0x18] sm:$0x3]  ;;  %v11895_v37 = vld [vmem:[%s15426_s2 + $0x48] sm:$0xff] }
 0x914   : > { %4173 = vst [vmem:[#allocation1 + $0x1] ss:$9 sm:$0xff] %v4128_v63  ;;  %v4226_v24 = vld [vmem:[#allocation7 + $0x19] sm:$0x3]  ;;  %v11903_v63 = vld [vmem:[%s15426_s2 + $0x88] sm:$0xff]  ;;  %4630 = vmatpush.bf16.msra.mxu2 %v11895_v37 }
 0x915   : > { %4174 = vst [vmem:[#allocation1 + $0x2] ss:$9 sm:$0xff] %v4129_v42  ;;  %4643 = vmatpush.bf16.msra.mxu3 %v11903_v63  ;;  %v11894_v42 = vld [vmem:[%s15426_s2 + $0x40] sm:$0xff]  ;;  %4669 = vmatpush.bf16.msra.mxu0 %v11919_v12  ;;  %v11932_v37 = vld [vmem:[%s15428_s16 + $0x50] sm:$0xff] }
 0x916   : > { %4208 = vst.msk [vmem:[#allocation7 + $0x1c] sm:$0x7] %vm4200_vm11, %v4171_v56  ;;  %v11902_v56 = vld [vmem:[%s15426_s2 + $0x80] sm:$0xff] }
 0x917   : > { %4176 = vst [vmem:[#allocation1] ss:$9 sm:$0xff] %v4130_v48  ;;  %v11918_v48 = vld [vmem:[%s15426_s2 + $0x100] sm:$0xff] }
 0x918   : > { %4177 = vst [vmem:[#allocation1 + $0x1] ss:$9 sm:$0xff] %v4131_v23  ;;  %4631 = vmatpush.bf16.msra.mxu2 %v11894_v42  ;;  %v11942_v63 = vld [vmem:[%s15428_s16 + $0xa0] sm:$0xff]  ;;  %v11952_v42 = vld [vmem:[%s15428_s16 + $0xf0] sm:$0xff] }
 0x919   : > { %4178 = vst [vmem:[#allocation1 + $0x2] ss:$9 sm:$0xff] %v4132_v5  ;;  %4644 = vmatpush.bf16.msra.mxu3 %v11902_v56  ;;  %4670 = vmatpush.bf16.msra.mxu0 %v11918_v48  ;;  %v11931_v48 = vld [vmem:[%s15428_s16 + $0x48] sm:$0xff] }
 0x91d   : > { %v4222_v44 = vld [vmem:[#allocation7 + $0x1c] sm:$0x3] }
 0x91e   : > { %v4227_v28 = vld [vmem:[#allocation7 + $0x1d] sm:$0x3] }
 0x920   : > { %v4179_v17 = vld [vmem:[#allocation1] sm:$0xff] }
 0x921   : > { %4180 = vst [vmem:[#allocation1] ss:$9 sm:$0xff] %v4133_v6  ;;  %v11917_v6 = vld [vmem:[%s15426_s2 + $0xf8] sm:$0xff] }
 0x922   : > { %4181 = vst [vmem:[#allocation1 + $0x1] ss:$9 sm:$0xff] %v4134_v1  ;;  %4650 = vmatpush.bf16.msrb.mxu1 %v11917_v6  ;;  %v11961_v6 = vld [vmem:[%s15428_s16 + $0x138] sm:$0xff] }
 0x923   : > { %4182 = vst [vmem:[#allocation1 + $0x2] ss:$9 sm:$0xff] %v4099_v18 }
 0x924   : > { %4210 = vst.msk [vmem:[#allocation7 + $0x24] sm:$0x7] %vm4200_vm11, %v4179_v17  ;;  %v11916_v17 = vld [vmem:[%s15426_s2 + $0xf0] sm:$0xff] }
 0x926   : > { %4651 = vmatpush.bf16.msrb.mxu1 %v11916_v17  ;;  %v11940_v17 = vld [vmem:[%s15428_s16 + $0x90] sm:$0xff] }
 0x92a   : > { %v4183_v22 = vld [vmem:[#allocation1] sm:$0xff] }
 0x92b   : > { %4184 = vst [vmem:[#allocation1] ss:$9 sm:$0xff] %v4135_v45  ;;  %v4224_v10 = vld [vmem:[#allocation7 + $0x24] sm:$0x3] }
 0x92c   : > { %4185 = vst [vmem:[#allocation1 + $0x1] ss:$9 sm:$0xff] %v4136_v19  ;;  %v11915_v19 = vld [vmem:[%s15426_s2 + $0xe8] sm:$0xff] }
 0x92d   : > { %4186 = vst [vmem:[#allocation1 + $0x2] ss:$9 sm:$0xff] %v4137_v36  ;;  %4652 = vmatpush.bf16.msrb.mxu1 %v11915_v19  ;;  %v11960_v19 = vld [vmem:[%s15428_s16 + $0x130] sm:$0xff] }
 0x92e   : > { %4211 = vst.msk [vmem:[#allocation7 + $0x28] sm:$0x7] %vm4200_vm11, %v4183_v22 }
 0x92f   : > { %4238 = vst [vmem:[#allocation1] ss:$4 sm:$0xff] %v4213_v4 }
 0x930   : > { %4240 = vst [vmem:[#allocation1 + $0x1] ss:$4 sm:$0xff] %v4214_v50 }
 0x935   : > { %v4225_v2 = vld [vmem:[#allocation7 + $0x28] sm:$0x3] }
 0x937   : > { %v14046_v32 = vld.sshfl [vmem:[#allocation1] sm:$0xff pattern:$0x73625140] }
 0x938   : > { %4245 = vst [vmem:[#allocation1] ss:$4 sm:$0xff] %v4216_v55 }
 0x939   : > { %4247 = vst [vmem:[#allocation1 + $0x1] ss:$4 sm:$0xff] %v4217_v14  ;;  %v11914_v14 = vld [vmem:[%s15426_s2 + $0xe0] sm:$0xff] }
 0x93a   : > { %4653 = vmatpush.bf16.msrb.mxu1 %v11914_v14 }
 0x940   : > { %v4248_v59 = vld.sshfl [vmem:[#allocation1] sm:$0xff pattern:$0x73625140] }
 0x941   : > { %4249 = vrot.lane.b32.xlu1 %v4248_v59, %s12899_s23  ;;  %4254 = vst [vmem:[#allocation1] ss:$4 sm:$0xff] %v4218_v15  ;;  %v11913_v15 = vld [vmem:[%s15426_s2 + $0xd8] sm:$0xff]  ;;  %v11912_v59 = vld [vmem:[%s15426_s2 + $0xd0] sm:$0xff] }
 0x942   : > { %4256 = vst [vmem:[#allocation1 + $0x1] ss:$4 sm:$0xff] %v4219_v29  ;;  %4654 = vmatpush.bf16.msrb.mxu1 %v11913_v15  ;;  %v11969_v15 = vld [vmem:[%s15428_s16 + $0x178] sm:$0xff] }
 0x946   : > { %4655 = vmatpush.bf16.msrb.mxu1 %v11912_v59  ;;  %v11938_v59 = vld [vmem:[%s15428_s16 + $0x80] sm:$0xff] }
 0x949   : > { %v14049_v33 = vld.sshfl [vmem:[#allocation1] sm:$0xff pattern:$0x73625140] }
 0x94a   : > { %4261 = vst [vmem:[#allocation1] ss:$4 sm:$0xff] %v4221_v0  ;;  %v11911_v0 = vld [vmem:[%s15426_s2 + $0xc8] sm:$0xff]  ;;  %s15429_s2 = sld [smem:[#allocation21_spill]] }
 0x94b   : > { %4263 = vst [vmem:[#allocation1 + $0x1] ss:$4 sm:$0xff] %v4222_v44  ;;  %4656 = vmatpush.bf16.msrb.mxu1 %v11911_v0 }
 0x94f   : > { %4657 = vmatpush.bf16.msrb.mxu1 %v11910_v61  ;;  %v11977_v61 = vld [vmem:[%s15428_s16 + $0x1b8] sm:$0xff] }
 0x950   : > { %v12800_v9 = vld [vmem:[%s15429_s2] ss:$0 sm:$0xff]  ;;  %s15430_s2 = sld [smem:[#allocation27_spill]] }
 0x952   : > { %v4264_v26 = vld.sshfl [vmem:[#allocation1] sm:$0xff pattern:$0x73625140] }
 0x953   : > { %4270 = vst [vmem:[#allocation1] ss:$4 sm:$0xff] %v4224_v10  ;;  %5435 = vmatpush.bf16.msra.mxu1 %v11953_v58  ;;  %v11981_v58 = vld [vmem:[%s15428_s16 + $0x1d8] sm:$0xff] }
 0x954   : > { %4272 = vst [vmem:[#allocation1 + $0x1] ss:$4 sm:$0xff] %v4225_v2 }
 0x957   : > { %5436 = vmatpush.bf16.msra.mxu1 %v11952_v42  ;;  %v11980_v42 = vld [vmem:[%s15428_s16 + $0x1d0] sm:$0xff] }
 0x95b   : > { %v14057_v49 = vld.sshfl [vmem:[#allocation1] sm:$0xff pattern:$0x73625140] }
 0x95c   : > { %4277 = vst [vmem:[#allocation1] ss:$4 sm:$0xff] %v4226_v24 }
 0x95d   : > { %4279 = vst [vmem:[#allocation1 + $0x1] ss:$4 sm:$0xff] %v4227_v28 }
 0x964   : > { %v4280_v35 = vld.sshfl [vmem:[#allocation1] sm:$0xff pattern:$0x73625140] }
 0x965   : > { %v12789_v16 = vpack.i.bf16 %v4280_v35, %v4264_v26  ;;  %4286 = vst [vmem:[#allocation1] ss:$4 sm:$0xff] %v4229_v38  ;;  %v11937_v38 = vld [vmem:[%s15428_s16 + $0x78] sm:$0xff]  ;;  %v11926_v35 = vld [vmem:[%s15428_s16 + $0x20] sm:$0xff] }
 0x966   : > { %4288 = vst [vmem:[#allocation1 + $0x1] ss:$4 sm:$0xff] %v4230_v41  ;;  %v11936_v41 = vld [vmem:[%s15428_s16 + $0x70] sm:$0xff] }
 0x967   : > { %12790 = vrot.lane.b32.xlu2 %v12789_v16, %s12899_s23 }
 0x96d   : > { %v14066_v53 = vld.sshfl [vmem:[#allocation1] sm:$0xff pattern:$0x73625140] }
 0x96e   : > { %4293 = vst [vmem:[#allocation1] ss:$4 sm:$0xff] %v4232_v34 }
 0x96f   : > { %4295 = vst [vmem:[#allocation1 + $0x1] ss:$4 sm:$0xff] %v4233_v43  ;;  %v11935_v43 = vld [vmem:[%s15428_s16 + $0x68] sm:$0xff] }
 0x976   : > { %v4296_v25 = vld.sshfl [vmem:[#allocation1] sm:$0xff pattern:$0x73625140] }
 0x977   : > { %4297 = vrot.lane.b32.xlu0 %v4296_v25, %s12899_s23  ;;  %4302 = vst [vmem:[#allocation1] ss:$4 sm:$0xff] %v4234_v20  ;;  %s15427_s23 = sld [smem:[#allocation24_spill]]  ;;  %v11945_v25 = vld [vmem:[%s15428_s16 + $0xb8] sm:$0xff]  ;;  %v11924_v20 = vld [vmem:[%s15428_s16 + $0x10] sm:$0xff] }
 0x978   : > { %4304 = vst [vmem:[#allocation1 + $0x1] ss:$4 sm:$0xff] %v4235_v39  ;;  %v11934_v39 = vld [vmem:[%s15428_s16 + $0x60] sm:$0xff] }
 0x97d   : > { %v4684_v23 = vld [vmem:[%s15427_s23 + $0x38] sm:$0xff]  ;;  %v4683_v5 = vld [vmem:[%s15427_s23 + $0x30] sm:$0xff]  ;;  %v4682_v1 = vld [vmem:[%s15427_s23 + $0x28] sm:$0xff] }
 0x97e   : > { %4703 = vmatpush.msrb.mxu2 %v4684_v23  ;;  %v4681_v18 = vld [vmem:[%s15427_s23 + $0x20] sm:$0xff]  ;;  %v4680_v45 = vld [vmem:[%s15427_s23 + $0x18] sm:$0xff]  ;;  %v4679_v22 = vld [vmem:[%s15427_s23 + $0x10] sm:$0xff] }
 0x97f   : > { %v14069_v7 = vld.sshfl [vmem:[#allocation1] sm:$0xff pattern:$0x73625140]  ;;  %v4678_v36 = vld [vmem:[%s15427_s23 + $0x8] sm:$0xff]  ;;  %v11941_v23 = vld [vmem:[%s15428_s16 + $0x98] sm:$0xff] }
 0x980   : > { %4689 = vst [vmem:[#allocation1] ss:$4 sm:$0xff] %v4224_v10  ;;  %4704 = vmatpush.msrb.mxu2 %v4683_v5  ;;  %v4677_v4 = vld [vmem:[%s15427_s23] sm:$0xff]  ;;  %v4315_v13 = vpack.c.bf16 %v14069_v7, %v14069_v7  ;;  %v11944_v7 = vld [vmem:[%s15428_s16 + $0xb0] sm:$0xff]  ;;  %v11951_v5 = vld [vmem:[%s15428_s16 + $0xe8] sm:$0xff] }
 0x981   : > { %4691 = vst [vmem:[#allocation1 + $0x1] ss:$4 sm:$0xff] %v4225_v2  ;;  %5437 = vmatpush.bf16.msra.mxu1 %v11951_v5  ;;  %v11979_v5 = vld [vmem:[%s15428_s16 + $0x1c8] sm:$0xff] }
 0x982   : > { %4705 = vmatpush.msrb.mxu2 %v4682_v1  ;;  %v11930_v1 = vld [vmem:[%s15428_s16 + $0x40] sm:$0xff] }
 0x984   : > { %4706 = vmatpush.msrb.mxu2 %v4681_v18  ;;  %v11950_v18 = vld [vmem:[%s15428_s16 + $0xe0] sm:$0xff] }
 0x985   : > { %5438 = vmatpush.bf16.msra.mxu1 %v11950_v18  ;;  %v11978_v18 = vld [vmem:[%s15428_s16 + $0x1c0] sm:$0xff] }
 0x986   : > { %4707 = vmatpush.msrb.mxu2 %v4680_v45 }
 0x988   : > { %4708 = vmatpush.msrb.mxu2 %v4679_v22  ;;  %v4692_v51 = vld.sshfl [vmem:[#allocation1] sm:$0xff pattern:$0x73625140] }
 0x989   : > { %4746 = vst [vmem:[#allocation1] ss:$4 sm:$0xff] %v4725_v8  ;;  %v11982_v8 = vld [vmem:[%s15428_s16 + $0x1e0] sm:$0xff] }
 0x98a   : > { %4709 = vmatpush.msrb.mxu2 %v4678_v36 }
 0x98c   : > { %4710 = vmatpush.msrb.mxu2 %v4677_v4  ;;  %v11939_v4 = vld [vmem:[%s15428_s16 + $0x88] sm:$0xff] }
 0x9b3   : > { %v4250_v11 = vpop.permute.xlu1 %4249 }
 0x9b4   : > { %v4307_v50 = vsel %vm1707_vm5, %v14046_v32, %v4250_v11 }
 0x9b5   : > { %v4311_v55 = vpack.c.bf16 %v4307_v50, %v4307_v50  ;;  %v11949_v50 = vld [vmem:[%s15428_s16 + $0xd8] sm:$0xff] }
 0x9b6   : > { %5439 = vmatpush.bf16.msra.mxu1 %v11949_v50  ;;  %v11986_v50 = vld [vmem:[%s15428_s16 + $0x200] sm:$0xff] }
 0x9b7   : > { %4619 = vmatmul.bf16.vlgmr.msrb.gmra.mxu0 %v4311_v55  ;;  %v11959_v55 = vld [vmem:[%s15428_s16 + $0x128] sm:$0xff] }
 0x9b8   : > { %5409 = vmatpush.bf16.msrb.mxu0 %v11937_v38  ;;  %v11954_v38 = vld [vmem:[%s15428_s16 + $0x100] sm:$0xff] }
 0x9bc   : > { %5410 = vmatpush.bf16.msrb.mxu0 %v11936_v41  ;;  %v11974_v41 = vld [vmem:[%s15428_s16 + $0x1a0] sm:$0xff] }
 0x9c0   : > { %5411 = vmatpush.bf16.msrb.mxu0 %v11935_v43  ;;  %v11993_v43 = vld [vmem:[%s15428_s16 + $0x238] sm:$0xff] }
 0x9c1   : > { %v12791_v29 = vpop.permute.xlu2 %12790 }
 0x9c2   : > { %v12793_v44 = vunpack.i.h.bf16 %v12791_v29  ;;  %v12792_v10 = vunpack.i.l.bf16 %v12791_v29  ;;  %v11948_v29 = vld [vmem:[%s15428_s16 + $0xd0] sm:$0xff] }
 0x9c3   : > { %5440 = vmatpush.bf16.msra.mxu1 %v11948_v29  ;;  %v10240_v29 = vld [vmem:[%s15430_s2 + $0x160] sm:$0xf] }
 0x9c4   : > { %v4309_v26 = vsel %vm1707_vm5, %v14057_v49, %v12793_v44  ;;  %v4308_v32 = vsel %vm1707_vm5, %v14049_v33, %v12792_v10  ;;  %v11929_v49 = vld [vmem:[%s15428_s16 + $0x38] sm:$0xff]  ;;  %5412 = vmatpush.bf16.msrb.mxu0 %v11934_v39  ;;  %v11958_v44 = vld [vmem:[%s15428_s16 + $0x120] sm:$0xff]  ;;  %v11968_v10 = vld [vmem:[%s15428_s16 + $0x170] sm:$0xff] }
 0x9c5   : > { %v4313_v2 = vpack.c.bf16 %v4309_v26, %v4309_v26  ;;  %v4312_v46 = vpack.c.bf16 %v4308_v32, %v4308_v32  ;;  %5396 = vmatpush.bf16.msrb.mxu3 %v11929_v49  ;;  %v4727_v49 = vld [vmem:[#allocation8 + $0x1] sm:$0x3]  ;;  %v11973_v39 = vld [vmem:[%s15428_s16 + $0x198] sm:$0xff] }
 0x9c7   : > { %4632 = vmatmul.bf16.vlgmr.msra.gmra.mxu2 %v4312_v46  ;;  %4645 = vmatmul.bf16.vlgmr.msra.gmra.mxu3 %v4313_v2  ;;  %v11947_v2 = vld [vmem:[%s15428_s16 + $0xc8] sm:$0xff]  ;;  %v11957_v46 = vld [vmem:[%s15428_s16 + $0x118] sm:$0xff] }
 0x9c8   : > { %9772 = vmatmul.msk.bf16.vlgmr.msra.gmra.mxu0 %vm1707_vm5, %v4315_v13  ;;  %5422 = vmatpush.bf16.msra.mxu2 %v11945_v25  ;;  %v11967_v13 = vld [vmem:[%s15428_s16 + $0x168] sm:$0xff] }
 0x9c9   : > { %5397 = vmatpush.bf16.msrb.mxu3 %v11928_v60  ;;  %5413 = vmatpush.bf16.msrb.mxu0 %v11933_v27  ;;  %v11962_v27 = vld [vmem:[%s15428_s16 + $0x140] sm:$0xff] }
 0x9ca   : > { %5441 = vmatpush.bf16.msra.mxu1 %v11947_v2 }
 0x9cc   : > { %5423 = vmatpush.bf16.msra.mxu2 %v11944_v7 }
 0x9cd   : > { %5398 = vmatpush.bf16.msrb.mxu3 %v11927_v57  ;;  %5414 = vmatpush.bf16.msrb.mxu0 %v11932_v37  ;;  %v11984_v57 = vld [vmem:[%s15428_s16 + $0x1f0] sm:$0xff] }
 0x9d0   : > { %5424 = vmatpush.bf16.msra.mxu2 %v11943_v31  ;;  %v11972_v31 = vld [vmem:[%s15428_s16 + $0x190] sm:$0xff] }
 0x9d1   : > { %5399 = vmatpush.bf16.msrb.mxu3 %v11926_v35  ;;  %5415 = vmatpush.bf16.msrb.mxu0 %v11931_v48  ;;  %v11964_v35 = vld [vmem:[%s15428_s16 + $0x150] sm:$0xff]  ;;  %v11990_v48 = vld [vmem:[%s15428_s16 + $0x220] sm:$0xff] }
 0x9d4   : > { %5425 = vmatpush.bf16.msra.mxu2 %v11942_v63  ;;  %v11971_v63 = vld [vmem:[%s15428_s16 + $0x188] sm:$0xff] }
 0x9d5   : > { %5416 = vmatpush.bf16.msrb.mxu0 %v11930_v1 }
 0x9d7   : > { %9773 = vmatmul.msk.f32.vlgmr.msrb.gmra.mxu2 %vm1707_vm5, %v4692_v51  ;;  %v11946_v51 = vld [vmem:[%s15428_s16 + $0xc0] sm:$0xff] }
 0x9d8   : > { %5426 = vmatpush.bf16.msra.mxu2 %v11941_v23  ;;  %5442 = vmatpush.bf16.msra.mxu1 %v11946_v51  ;;  %v11970_v23 = vld [vmem:[%s15428_s16 + $0x180] sm:$0xff] }
 0x9d9   : > { %5461 = vmatpush.bf16.msra.mxu0 %v11969_v15  ;;  %v10248_v15 = vld [vmem:[%s15430_s2 + $0x170] sm:$0xf] }
 0x9dc   : > { %5427 = vmatpush.bf16.msra.mxu2 %v11940_v17 }
 0x9dd   : > { %5462 = vmatpush.bf16.msra.mxu0 %v11968_v10  ;;  %v12039_v10 = vld [vmem:[%s15430_s2 + $0x164] sm:$0xf0] }
 0x9e0   : > { %5428 = vmatpush.bf16.msra.mxu2 %v11939_v4 }
 0x9e1   : > { %5463 = vmatpush.bf16.msra.mxu0 %v11967_v13  ;;  %v10232_v13 = vld [vmem:[%s15430_s2 + $0x150] sm:$0xf] }
 0x9e4   : > { %5429 = vmatpush.bf16.msra.mxu2 %v11938_v59  ;;  %v12041_v59 = vld [vmem:[%s15430_s2 + $0x174] sm:$0xf0] }
 0x9e8   : > { %5474 = vmatpush.bf16.msrb.mxu2 %v11977_v61  ;;  %v12037_v61 = vld [vmem:[%s15430_s2 + $0x154] sm:$0xf0] }
 0x9e9   : > { %v4298_v33 = vpop.permute.xlu0 %4297  ;;  %v10233_v51 = vor.u32 %v12037_v61, %v10232_v13  ;;  %v12093_v13 = vld [vmem:[%s15430_s2 + $0x314] sm:$0xf0] }
 0x9ea   : > { %v4310_v3 = vsel %vm1707_vm5, %v14066_v53, %v4298_v33  ;;  %v11925_v53 = vld [vmem:[%s15428_s16 + $0x18] sm:$0xff]  ;;  %v11956_v33 = vld [vmem:[%s15428_s16 + $0x110] sm:$0xff] }
 0x9eb   : > { %v4314_v52 = vpack.c.bf16 %v4310_v3, %v4310_v3  ;;  %5400 = vmatpush.bf16.msrb.mxu3 %v11925_v53  ;;  %v11966_v3 = vld [vmem:[%s15428_s16 + $0x160] sm:$0xff]  ;;  %v4729_v53 = vld [vmem:[#allocation8 + $0x2] sm:$0x3] }
 0x9ec   : > { %5464 = vmatpush.bf16.msra.mxu0 %v11966_v3  ;;  %v12035_v3 = vld [vmem:[%s15430_s2 + $0x144] sm:$0xf0] }
 0x9ed   : > { %4658 = vmatmul.bf16.vlgmr.msrb.gmra.mxu1 %v4314_v52  ;;  %v11976_v52 = vld [vmem:[%s15428_s16 + $0x1b0] sm:$0xff] }
 0x9ee   : > { %5475 = vmatpush.bf16.msrb.mxu2 %v11976_v52  ;;  %v4741_v52 = vld [vmem:[#allocation8 + $0xd] sm:$0x3] }
 0x9ef   : > { %5401 = vmatpush.bf16.msrb.mxu3 %v11924_v20  ;;  %v11963_v20 = vld [vmem:[%s15428_s16 + $0x148] sm:$0xff] }
 0x9f3   : > { %5402 = vmatpush.bf16.msrb.mxu3 %v11923_v40  ;;  %v11992_v40 = vld [vmem:[%s15428_s16 + $0x230] sm:$0xff] }
 0x9f7   : > { %5403 = vmatpush.bf16.msrb.mxu3 %v11922_v30 }
 0x9fb   : > { %5448 = vmatpush.bf16.msra.mxu3 %v11961_v6  ;;  %v11989_v6 = vld [vmem:[%s15428_s16 + $0x218] sm:$0xff] }
 0x9ff   : > { %5449 = vmatpush.bf16.msra.mxu3 %v11960_v19 }
 0xa03   : > { %5450 = vmatpush.bf16.msra.mxu3 %v11959_v55 }
 0xa07   : > { %5451 = vmatpush.bf16.msra.mxu3 %v11958_v44  ;;  %v10249_v44 = vor.u32 %v12041_v59, %v10248_v15  ;;  %v10480_v15 = vld [vmem:[%s15430_s2 + $0x340] sm:$0xf]  ;;  %v12099_v59 = vld [vmem:[%s15430_s2 + $0x344] sm:$0xf0] }
 0xa0b   : > { %5452 = vmatpush.bf16.msra.mxu3 %v11957_v46  ;;  %v10241_v46 = vor.u32 %v12039_v10, %v10240_v29  ;;  %v10481_v29 = vor.u32 %v12099_v59, %v10480_v15  ;;  %v10154_v15 = vld [vmem:[%s15430_s2 + $0xb8] sm:$0xf0] }
 0xa0f   : > { %5453 = vmatpush.bf16.msra.mxu3 %v11956_v33  ;;  %v10224_v33 = vld [vmem:[%s15430_s2 + $0x140] sm:$0xf] }
 0xa34   : > { %v4620_v24 = vpop.f32.mrf.mxu0 }
 0xa35   : > { %v4621_v56 = vadd.f32 %v12800_v9, %v4620_v24  ;;  %v11991_v9 = vld [vmem:[%s15428_s16 + $0x228] sm:$0xff] }
 0xa3c   : > { %v4622_v28 = vpop.f32.mrf.mxu0 }
 0xa3d   : > { %v11985_v28 = vld [vmem:[%s15428_s16 + $0x1f8] sm:$0xff] }
 0xa3e   : > { %5487 = vmatpush.bf16.msrb.mxu1 %v11985_v28  ;;  %v10225_v28 = vor.u32 %v12035_v3, %v10224_v33  ;;  %v12091_v33 = vld [vmem:[%s15430_s2 + $0x304] sm:$0xf0]  ;;  %v12024_v3 = vld [vmem:[%s15430_s2 + $0xf4] sm:$0xf] }
 0xa42   : > { %5488 = vmatpush.bf16.msrb.mxu1 %v11984_v57  ;;  %v12031_v57 = vld [vmem:[%s15430_s2 + $0x124] sm:$0xf0] }
 0xa45   : > { %v14114_v47 = vpop.f32.mrf.mxu0 }
 0xa4a   : > { %v4633_v54 = vpop.f32.mrf.mxu2  ;;  %v4646_v21 = vpop.f32.mrf.mxu3 }
 0xa4b   : > { %v4634_v12 = vadd.f32 %v4633_v54, %v4621_v56  ;;  %v11965_v54 = vld [vmem:[%s15428_s16 + $0x158] sm:$0xff] }
 0xa4c   : > { %5465 = vmatpush.bf16.msra.mxu0 %v11965_v54  ;;  %v12033_v54 = vld [vmem:[%s15430_s2 + $0x134] sm:$0xf0] }
 0xa4d   : > { %v4674_v62 = vpop.f32.mrf.mxu0  ;;  %v4647_v45 = vadd.f32 %v4646_v21, %v4634_v12 }
 0xa4e   : > { %v11975_v62 = vld [vmem:[%s15428_s16 + $0x1a8] sm:$0xff] }
 0xa4f   : > { %5476 = vmatpush.bf16.msrb.mxu2 %v11975_v62  ;;  %v10208_v62 = vld [vmem:[%s15430_s2 + $0x120] sm:$0xf] }
 0xa50   : > { %5466 = vmatpush.bf16.msra.mxu0 %v11964_v35 }
 0xa52   : > { %v4635_v16 = vpop.f32.mrf.mxu2  ;;  %v4648_v34 = vpop.f32.mrf.mxu3 }
 0xa53   : > { %v11983_v16 = vld [vmem:[%s15428_s16 + $0x1e8] sm:$0xff]  ;;  %5477 = vmatpush.bf16.msrb.mxu2 %v11974_v41 }
 0xa54   : > { %5489 = vmatpush.bf16.msrb.mxu1 %v11983_v16  ;;  %5467 = vmatpush.bf16.msra.mxu0 %v11963_v20  ;;  %v10209_v16 = vor.u32 %v12031_v57, %v10208_v62  ;;  %v10168_v62 = vld [vmem:[%s15430_s2 + $0xd0] sm:$0xf] }
 0xa57   : > { %5478 = vmatpush.bf16.msrb.mxu2 %v11973_v39  ;;  %v12027_v39 = vld [vmem:[%s15430_s2 + $0x104] sm:$0xf0] }
 0xa58   : > { %5490 = vmatpush.bf16.msrb.mxu1 %v11982_v8  ;;  %5468 = vmatpush.bf16.msra.mxu0 %v11962_v27  ;;  %v12105_v8 = vld [vmem:[%s15430_s2 + $0x374] sm:$0xf0] }
 0xa59   : > { %v12009_v27 = vld [vmem:[%s15430_s2 + $0x74] sm:$0xf0] }
 0xa5b   : > { %5479 = vmatpush.bf16.msrb.mxu2 %v11972_v31  ;;  %v10184_v31 = vld [vmem:[%s15430_s2 + $0xf0] sm:$0xf] }
 0xa5c   : > { %5491 = vmatpush.bf16.msrb.mxu1 %v11981_v58 }
 0xa5f   : > { %5480 = vmatpush.bf16.msrb.mxu2 %v11971_v63 }
 0xa60   : > { %5492 = vmatpush.bf16.msrb.mxu1 %v11980_v42 }
 0xa63   : > { %5481 = vmatpush.bf16.msrb.mxu2 %v11970_v23 }
 0xa64   : > { %5493 = vmatpush.bf16.msrb.mxu1 %v11979_v5 }
 0xa68   : > { %5494 = vmatpush.bf16.msrb.mxu1 %v11978_v18  ;;  %v10176_v18 = vld [vmem:[%s15430_s2 + $0xe0] sm:$0xf] }
 0xa6a   : > { %v4659_v22 = vpop.f32.mrf.mxu1 }
 0xa6b   : > { %v4660_v36 = vadd.f32 %v4659_v22, %v4647_v45  ;;  %v11988_v45 = vld [vmem:[%s15428_s16 + $0x210] sm:$0xff] }
 0xa6d   : > { %v4673_v11 = vadd.f32 %v14114_v47, %v4660_v36  ;;  %v11955_v47 = vld [vmem:[%s15428_s16 + $0x108] sm:$0xff] }
 0xa6e   : > { %5454 = vmatpush.bf16.msra.mxu3 %v11955_v47  ;;  %v11987_v36 = vld [vmem:[%s15428_s16 + $0x208] sm:$0xff]  ;;  %v10216_v47 = vld [vmem:[%s15430_s2 + $0x130] sm:$0xf] }
 0xa6f   : > { %v4676_v14 = vmax.f32 %v4673_v11, 0.0 }
 0xa71   : > { %v4720_v0 = vrot.slane %v4676_v14, 2  ;;  %4723 = vst [vmem:[#allocation8 + $0x5] sm:$0x3] %v4676_v14 }
 0xa72   : > { %v4661_v26 = vpop.f32.mrf.mxu1  ;;  %5455 = vmatpush.bf16.msra.mxu3 %v11954_v38  ;;  %v4743_v38 = vld [vmem:[#allocation8 + $0xe] sm:$0x3] }
 0xa73   : > { %4724 = vst [vmem:[#allocation8 + $0x9] sm:$0x3] %v4720_v0  ;;  %v4739_v0 = vld [vmem:[#allocation8 + $0xc] sm:$0x3] }
 0xa78   : > { %v4726_v32 = vld [vmem:[#allocation8 + $0x4] sm:$0x3]  ;;  %v4730_v34 = vld [vmem:[#allocation8 + $0x6] sm:$0x3] }
 0xa79   : > { %4748 = vst [vmem:[#allocation1 + $0x1] ss:$4 sm:$0xff] %v4726_v32  ;;  %v4728_v24 = vld [vmem:[#allocation8 + $0x5] sm:$0x3] }
 0xa7a   : > { %v4731_v30 = vld [vmem:[#allocation8 + $0x4] sm:$0x3]  ;;  %v4732_v56 = vld [vmem:[#allocation8 + $0x8] sm:$0x3]  ;;  %v4735_v11 = vld [vmem:[#allocation8 + $0x6] sm:$0x3] }
 0xa7b   : > { %v4733_v1 = vld [vmem:[#allocation8 + $0x5] sm:$0x3]  ;;  %v4734_v19 = vld [vmem:[#allocation8 + $0x9] sm:$0x3] }
 0xa7c   : > { %v4736_v55 = vld [vmem:[#allocation8 + $0xa] sm:$0x3]  ;;  %v4738_v26 = vld [vmem:[#allocation8 + $0x8] sm:$0x3] }
 0xa7d   : > { %v4742_v35 = vld [vmem:[#allocation8 + $0xa] sm:$0x3] }
 0xa80   : > { %v4749_v60 = vld.sshfl [vmem:[#allocation1] sm:$0xff pattern:$0x73625140] }
 0xa81   : > { %v4807_v21 = vpack.c.bf16 %v4749_v60, %v4749_v60  ;;  %4755 = vst [vmem:[#allocation1 + $0x1] ss:$4 sm:$0xff] %v4728_v24  ;;  %v4740_v24 = vld [vmem:[#allocation8 + $0x9] sm:$0x3] }
 0xa82   : > { %4753 = vst [vmem:[#allocation1] ss:$4 sm:$0xff] %v4727_v49 }
 0xa83   : > { %5404 = vmatmul.bf16.vlgmr.msrb.gmra.mxu3 %v4807_v21  ;;  %v10217_v21 = vor.u32 %v12033_v54, %v10216_v47  ;;  %v10104_v54 = vld [vmem:[%s15430_s2 + $0x50] sm:$0xf] }
 0xa84   : > { %5500 = vmatpush.bf16.msrb.mxu3 %v11993_v43  ;;  %v12029_v43 = vld [vmem:[%s15430_s2 + $0x114] sm:$0xf0] }
 0xa88   : > { %5501 = vmatpush.bf16.msrb.mxu3 %v11992_v40  ;;  %v10120_v40 = vld [vmem:[%s15430_s2 + $0x70] sm:$0xf] }
 0xa89   : > { %v4756_v25 = vld.sshfl [vmem:[#allocation1] sm:$0xff pattern:$0x73625140]  ;;  %v10121_v58 = vor.u32 %v12009_v27, %v10120_v40 }
 0xa8a   : > { %v4808_v7 = vpack.c.bf16 %v4756_v25, %v4756_v25  ;;  %4762 = vst [vmem:[#allocation1 + $0x1] ss:$4 sm:$0xff] %v4730_v34  ;;  %v10192_v25 = vld [vmem:[%s15430_s2 + $0x100] sm:$0xf] }
 0xa8b   : > { %4760 = vst [vmem:[#allocation1] ss:$4 sm:$0xff] %v4729_v53  ;;  %v10200_v53 = vld [vmem:[%s15430_s2 + $0x110] sm:$0xf] }
 0xa8c   : > { %5417 = vmatmul.bf16.vlgmr.msrb.gmra.mxu0 %v4808_v7  ;;  %5502 = vmatpush.bf16.msrb.mxu3 %v11991_v9  ;;  %v10201_v20 = vor.u32 %v12029_v43, %v10200_v53  ;;  %v10504_v7 = vld [vmem:[%s15430_s2 + $0x370] sm:$0xf]  ;;  %v12025_v9 = vld [vmem:[%s15430_s2 + $0xf4] sm:$0xf0] }
 0xa8d   : > { %v10185_v63 = vor.u32 %v12025_v9, %v10184_v31  ;;  %6414 = vmatpush.bf16.msrb.mxu0 %v10121_v58  ;;  %v10505_v5 = vor.u32 %v12105_v8, %v10504_v7  ;;  %v10296_v53 = vld [vmem:[%s15430_s2 + $0x1d0] sm:$0xf]  ;;  %v12053_v43 = vld [vmem:[%s15430_s2 + $0x1d4] sm:$0xf0]  ;;  %v10160_v7 = vld [vmem:[%s15430_s2 + $0xc0] sm:$0xf] }
 0xa8e   : > { %v12019_v8 = vld [vmem:[%s15430_s2 + $0xc4] sm:$0xf0]  ;;  %v12020_v31 = vld [vmem:[%s15430_s2 + $0xd4] sm:$0xf]  ;;  %v10170_v58 = vld [vmem:[%s15430_s2 + $0xd8] sm:$0xf0] }
 0xa8f   : > { %v10161_v27 = vor.u32 %v12019_v8, %v10160_v7  ;;  %v10288_v9 = vld [vmem:[%s15430_s2 + $0x1c0] sm:$0xf]  ;;  %v10568_v7 = vld [vmem:[%s15430_s2 + $0x3f0] sm:$0xf] }
 0xa90   : > { %5503 = vmatpush.bf16.msrb.mxu3 %v11990_v48  ;;  %v12103_v48 = vld [vmem:[%s15430_s2 + $0x364] sm:$0xf0] }
 0xa92   : > { %v4763_v37 = vld.sshfl [vmem:[#allocation1] sm:$0xff pattern:$0x73625140] }
 0xa93   : > { %v4809_v12 = vpack.c.bf16 %v4763_v37, %v4763_v37  ;;  %4767 = vst [vmem:[#allocation1] ss:$4 sm:$0xff] %v4731_v30  ;;  %v10312_v30 = vld [vmem:[%s15430_s2 + $0x1f0] sm:$0xf]  ;;  %v12057_v37 = vld [vmem:[%s15430_s2 + $0x1f4] sm:$0xf0] }
 0xa94   : > { %4769 = vst [vmem:[#allocation1 + $0x1] ss:$4 sm:$0xff] %v4732_v56  ;;  %5504 = vmatpush.bf16.msrb.mxu3 %v11989_v6  ;;  %v10313_v42 = vor.u32 %v12057_v37, %v10312_v30  ;;  %v10193_v56 = vor.u32 %v12027_v39, %v10192_v25  ;;  %v10112_v6 = vld [vmem:[%s15430_s2 + $0x60] sm:$0xf]  ;;  %v12003_v39 = vld [vmem:[%s15430_s2 + $0x44] sm:$0xf0]  ;;  %v10173_v30 = vor.u32 %v12020_v31, %v10170_v58 }
 0xa95   : > { %5430 = vmatmul.bf16.vlgmr.msra.gmra.mxu2 %v4809_v12  ;;  %v10496_v12 = vld [vmem:[%s15430_s2 + $0x360] sm:$0xf]  ;;  %v12051_v37 = vld [vmem:[%s15430_s2 + $0x1c4] sm:$0xf0]  ;;  %v10130_v31 = vld [vmem:[%s15430_s2 + $0x88] sm:$0xf0] }
 0xa96   : > { %6427 = vmatpush.bf16.msra.mxu2 %v10185_v63  ;;  %v10096_v25 = vld [vmem:[%s15430_s2 + $0x40] sm:$0xf]  ;;  %v10289_v63 = vor.u32 %v12051_v37, %v10288_v9  ;;  %v12071_v37 = vld [vmem:[%s15430_s2 + $0x264] sm:$0xf0] }
 0xa97   : > { %v10097_v40 = vor.u32 %v12003_v39, %v10096_v25  ;;  %v12043_v39 = vld [vmem:[%s15430_s2 + $0x184] sm:$0xf0] }
 0xa98   : > { %5505 = vmatpush.bf16.msrb.mxu3 %v11988_v45  ;;  %v12023_v45 = vld [vmem:[%s15430_s2 + $0xe4] sm:$0xf0] }
 0xa9b   : > { %v4770_v17 = vld.sshfl [vmem:[#allocation1] sm:$0xff pattern:$0x73625140] }
 0xa9c   : > { %v4810_v22 = vpack.c.bf16 %v4770_v17, %v4770_v17  ;;  %4774 = vst [vmem:[#allocation1] ss:$4 sm:$0xff] %v4733_v1  ;;  %5506 = vmatpush.bf16.msrb.mxu3 %v11987_v36  ;;  %v12007_v17 = vld [vmem:[%s15430_s2 + $0x64] sm:$0xf0]  ;;  %v5527_v36 = vld [vmem:[#allocation9 + $0x2] sm:$0x1] }
 0xa9d   : > { %4776 = vst [vmem:[#allocation1 + $0x1] ss:$4 sm:$0xff] %v4734_v19  ;;  %v10113_v19 = vor.u32 %v12007_v17, %v10112_v6  ;;  %v10162_v6 = vld [vmem:[%s15430_s2 + $0xc8] sm:$0xf0] }
 0xa9e   : > { %5443 = vmatmul.bf16.vlgmr.msra.gmra.mxu1 %v4810_v22  ;;  %v10177_v22 = vor.u32 %v12023_v45, %v10176_v18  ;;  %v10280_v18 = vld [vmem:[%s15430_s2 + $0x1b0] sm:$0xf]  ;;  %v12049_v45 = vld [vmem:[%s15430_s2 + $0x1b4] sm:$0xf0] }
 0xa9f   : > { %6440 = vmatpush.bf16.msra.mxu1 %v10249_v44  ;;  %6415 = vmatpush.bf16.msrb.mxu0 %v10113_v19  ;;  %v12097_v44 = vld [vmem:[%s15430_s2 + $0x334] sm:$0xf0]  ;;  %v10080_v19 = vld [vmem:[%s15430_s2 + $0x20] sm:$0xf] }
 0xaa0   : > { %5507 = vmatpush.bf16.msrb.mxu3 %v11986_v50  ;;  %v12101_v50 = vld [vmem:[%s15430_s2 + $0x354] sm:$0xf0]  ;;  %6428 = vmatpush.bf16.msra.mxu2 %v10177_v22  ;;  %v10281_v22 = vor.u32 %v12049_v45, %v10280_v18  ;;  %v12119_v18 = vld [vmem:[%s15430_s2 + $0x3e4] sm:$0xf0] }
 0xaa3   : > { %6441 = vmatpush.bf16.msra.mxu1 %v10241_v46  ;;  %v10456_v46 = vld [vmem:[%s15430_s2 + $0x310] sm:$0xf] }
 0xaa4   : > { %v4777_v4 = vld.sshfl [vmem:[#allocation1] sm:$0xff pattern:$0x73625140]  ;;  %v10457_v61 = vor.u32 %v12093_v13, %v10456_v46  ;;  %v12013_v13 = vld [vmem:[%s15430_s2 + $0x94] sm:$0xf0] }
 0xaa5   : > { %v4811_v14 = vpack.c.bf16 %v4777_v4, %v4777_v4  ;;  %4781 = vst [vmem:[#allocation1] ss:$4 sm:$0xff] %v4735_v11  ;;  %v10497_v11 = vor.u32 %v12103_v48, %v10496_v12  ;;  %v10488_v4 = vld [vmem:[%s15430_s2 + $0x350] sm:$0xf] }
 0xaa6   : > { %4783 = vst [vmem:[#allocation1 + $0x1] ss:$4 sm:$0xff] %v4736_v55  ;;  %v14220_v55 = vpack.c.bf16 %v5527_v36, %v5527_v36  ;;  %v10152_v12 = vld [vmem:[%s15430_s2 + $0xb0] sm:$0xf]  ;;  %v11999_v36 = vld [vmem:[%s15430_s2 + $0x24] sm:$0xf0] }
 0xaa7   : > { %5456 = vmatmul.bf16.vlgmr.msra.gmra.mxu3 %v4811_v14  ;;  %6442 = vmatpush.bf16.msra.mxu1 %v10233_v51  ;;  %v10489_v14 = vor.u32 %v12101_v50, %v10488_v4  ;;  %v10448_v51 = vld [vmem:[%s15430_s2 + $0x300] sm:$0xf]  ;;  %v12015_v4 = vld [vmem:[%s15430_s2 + $0xa4] sm:$0xf0]  ;;  %v10081_v50 = vor.u32 %v11999_v36, %v10080_v19  ;;  %v12069_v36 = vld [vmem:[%s15430_s2 + $0x254] sm:$0xf0] }
 0xaa8   : > { %6453 = vmatpush.bf16.msra.mxu3 %v10313_v42  ;;  %v10088_v42 = vld [vmem:[%s15430_s2 + $0x30] sm:$0xf] }
 0xaab   : > { %6443 = vmatpush.bf16.msra.mxu1 %v10225_v28  ;;  %v10304_v28 = vld [vmem:[%s15430_s2 + $0x1e0] sm:$0xf] }
 0xaad   : > { %v4784_v32 = vld.sshfl [vmem:[#allocation1] sm:$0xff pattern:$0x73625140] }
 0xaae   : > { %v4812_v2 = vpack.c.bf16 %v4784_v32, %v4784_v32  ;;  %4788 = vst [vmem:[#allocation1] ss:$4 sm:$0xff] %v4738_v26  ;;  %v10464_v26 = vld [vmem:[%s15430_s2 + $0x320] sm:$0xf]  ;;  %v12095_v32 = vld [vmem:[%s15430_s2 + $0x324] sm:$0xf0] }
 0xaaf   : > { %4790 = vst [vmem:[#allocation1 + $0x1] ss:$4 sm:$0xff] %v4739_v0  ;;  %6444 = vmatpush.bf16.msra.mxu1 %v10217_v21  ;;  %v10472_v0 = vld [vmem:[%s15430_s2 + $0x330] sm:$0xf]  ;;  %v12005_v21 = vld [vmem:[%s15430_s2 + $0x54] sm:$0xf0] }
 0xab0   : > { %5469 = vmatmul.bf16.vlgmr.msra.gmra.mxu0 %v4812_v2  ;;  %v10473_v10 = vor.u32 %v12097_v44, %v10472_v0  ;;  %v10465_v2 = vor.u32 %v12095_v32, %v10464_v26  ;;  %v10105_v57 = vor.u32 %v12005_v21, %v10104_v54  ;;  %v10272_v0 = vld [vmem:[%s15430_s2 + $0x1a0] sm:$0xf]  ;;  %v12047_v44 = vld [vmem:[%s15430_s2 + $0x1a4] sm:$0xf0]  ;;  %v10072_v26 = vld [vmem:[%s15430_s2 + $0x10] sm:$0xf] }
 0xab1   : > { %v11997_v32 = vld [vmem:[%s15430_s2 + $0x14] sm:$0xf0]  ;;  %v12011_v54 = vld [vmem:[%s15430_s2 + $0x84] sm:$0xf0] }
 0xab2   : > { %6416 = vmatpush.bf16.msrb.mxu0 %v10105_v57  ;;  %v10073_v46 = vor.u32 %v11997_v32, %v10072_v26  ;;  %v12012_v57 = vld [vmem:[%s15430_s2 + $0x94] sm:$0xf] }
 0xab3   : > { %6445 = vmatpush.bf16.msra.mxu1 %v10209_v16 }
 0xab6   : > { %v4791_v49 = vld.sshfl [vmem:[#allocation1] sm:$0xff pattern:$0x73625140]  ;;  %6417 = vmatpush.bf16.msrb.mxu0 %v10097_v40  ;;  %v12121_v40 = vld [vmem:[%s15430_s2 + $0x3f4] sm:$0xf0] }
 0xab7   : > { %v4813_v60 = vpack.c.bf16 %v4791_v49, %v4791_v49  ;;  %4795 = vst [vmem:[#allocation1] ss:$4 sm:$0xff] %v4740_v24  ;;  %6446 = vmatpush.bf16.msra.mxu1 %v10201_v20  ;;  %v10449_v24 = vor.u32 %v12091_v33, %v10448_v51  ;;  %v10297_v20 = vor.u32 %v12053_v43, %v10296_v53  ;;  %v10146_v51 = vld [vmem:[%s15430_s2 + $0xa8] sm:$0xf0]  ;;  %v12089_v53 = vld [vmem:[%s15430_s2 + $0x2f4] sm:$0xf0] }
 0xab8   : > { %4797 = vst [vmem:[#allocation1 + $0x1] ss:$4 sm:$0xff] %v4741_v52  ;;  %v10186_v52 = vld [vmem:[%s15430_s2 + $0xf8] sm:$0xf0]  ;;  %v10569_v58 = vor.u32 %v12121_v40, %v10568_v7  ;;  %v12063_v7 = vld [vmem:[%s15430_s2 + $0x224] sm:$0xf0] }
 0xab9   : > { %5482 = vmatmul.bf16.vlgmr.msrb.gmra.mxu2 %v4813_v60  ;;  %v10189_v49 = vor.u32 %v12024_v3, %v10186_v52  ;;  %v12055_v60 = vld [vmem:[%s15430_s2 + $0x1e4] sm:$0xf0]  ;;  %v10264_v52 = vld [vmem:[%s15430_s2 + $0x190] sm:$0xf] }
 0xaba   : > { %v10305_v47 = vor.u32 %v12055_v60, %v10304_v28  ;;  %v11995_v60 = vld [vmem:[%s15430_s2 + $0x4] sm:$0xf0] }
 0xabb   : > { %6447 = vmatpush.bf16.msra.mxu1 %v10193_v56  ;;  %v12001_v56 = vld [vmem:[%s15430_s2 + $0x34] sm:$0xf0] }
 0xabc   : > { %6454 = vmatpush.bf16.msra.mxu3 %v10305_v47  ;;  %v10089_v48 = vor.u32 %v12001_v56, %v10088_v42  ;;  %v10128_v47 = vld [vmem:[%s15430_s2 + $0x80] sm:$0xf]  ;;  %v12087_v56 = vld [vmem:[%s15430_s2 + $0x2e4] sm:$0xf0] }
 0xabe   : > { %6418 = vmatpush.bf16.msrb.mxu0 %v10089_v48  ;;  %v12088_v48 = vld [vmem:[%s15430_s2 + $0x2f4] sm:$0xf] }
 0xabf   : > { %v4798_v41 = vld.sshfl [vmem:[#allocation1] sm:$0xff pattern:$0x73625140] }
 0xac0   : > { %v4814_v34 = vpack.c.bf16 %v4798_v41, %v4798_v41  ;;  %4802 = vst [vmem:[#allocation1] ss:$4 sm:$0xff] %v4742_v35  ;;  %v12022_v35 = vld [vmem:[%s15430_s2 + $0xe4] sm:$0xf]  ;;  %v10178_v41 = vld [vmem:[%s15430_s2 + $0xe8] sm:$0xf0]  ;;  %6455 = vmatpush.bf16.msra.mxu3 %v10297_v20 }
 0xac1   : > { %4804 = vst [vmem:[#allocation1 + $0x1] ss:$4 sm:$0xff] %v4743_v38  ;;  %v12021_v38 = vld [vmem:[%s15430_s2 + $0xd4] sm:$0xf0]  ;;  %v10256_v20 = vld [vmem:[%s15430_s2 + $0x180] sm:$0xf] }
 0xac2   : > { %5495 = vmatmul.bf16.vlgmr.msrb.gmra.mxu1 %v4814_v34  ;;  %v10169_v16 = vor.u32 %v12021_v38, %v10168_v62  ;;  %v10181_v34 = vor.u32 %v12022_v35, %v10178_v41  ;;  %6419 = vmatpush.bf16.msrb.mxu0 %v10081_v50  ;;  %v10129_v62 = vor.u32 %v12011_v54, %v10128_v47  ;;  %v10138_v38 = vld [vmem:[%s15430_s2 + $0x98] sm:$0xf0]  ;;  %v10376_v35 = vld [vmem:[%s15430_s2 + $0x270] sm:$0xf]  ;;  %v12086_v50 = vld [vmem:[%s15430_s2 + $0x2e4] sm:$0xf] }
 0xac3   : > { %6492 = vmatpush.bf16.msrb.mxu1 %v10505_v5  ;;  %v12018_v5 = vld [vmem:[%s15430_s2 + $0xc4] sm:$0xf]  ;;  %v10141_v41 = vor.u32 %v12012_v57, %v10138_v38  ;;  %v10257_v8 = vor.u32 %v12043_v39, %v10256_v20  ;;  %v10344_v47 = vld [vmem:[%s15430_s2 + $0x230] sm:$0xf]  ;;  %v12081_v38 = vld [vmem:[%s15430_s2 + $0x2b4] sm:$0xf0] }
 0xac4   : > { %6429 = vmatpush.bf16.msra.mxu2 %v10169_v16  ;;  %6456 = vmatpush.bf16.msra.mxu3 %v10289_v63  ;;  %v10165_v17 = vor.u32 %v12018_v5, %v10162_v6  ;;  %v12073_v16 = vld [vmem:[%s15430_s2 + $0x274] sm:$0xf0]  ;;  %v10432_v63 = vld [vmem:[%s15430_s2 + $0x2e0] sm:$0xf]  ;;  %v10408_v57 = vld [vmem:[%s15430_s2 + $0x2b0] sm:$0xf] }
 0xac5   : > { %v10377_v43 = vor.u32 %v12073_v16, %v10376_v35  ;;  %v10433_v5 = vor.u32 %v12087_v56, %v10432_v63  ;;  %v12082_v16 = vld [vmem:[%s15430_s2 + $0x2c4] sm:$0xf]  ;;  %v10336_v39 = vld [vmem:[%s15430_s2 + $0x220] sm:$0xf] }
 0xac6   : > { %6420 = vmatpush.bf16.msrb.mxu0 %v10073_v46  ;;  %v12067_v46 = vld [vmem:[%s15430_s2 + $0x244] sm:$0xf0]  ;;  %v10337_v40 = vor.u32 %v12063_v7, %v10336_v39  ;;  %v10528_v63 = vld [vmem:[%s15430_s2 + $0x3a0] sm:$0xf]  ;;  %v12006_v7 = vld [vmem:[%s15430_s2 + $0x64] sm:$0xf] }
 0xac7   : > { %6493 = vmatpush.bf16.msrb.mxu1 %v10497_v11  ;;  %v10144_v11 = vld [vmem:[%s15430_s2 + $0xa0] sm:$0xf]  ;;  %v12135_v39 = vld [vmem:[%s15430_s2 + $0x464] sm:$0xf0] }
 0xac8   : > { %v4805_v23 = vld.sshfl [vmem:[#allocation1] sm:$0xff pattern:$0x73625140]  ;;  %6430 = vmatpush.bf16.msra.mxu2 %v10161_v27  ;;  %v10145_v59 = vor.u32 %v12015_v4, %v10144_v11  ;;  %6457 = vmatpush.bf16.msra.mxu3 %v10281_v22  ;;  %v10360_v22 = vld [vmem:[%s15430_s2 + $0x250] sm:$0xf] }
 0xac9   : > { %v4815_v1 = vpack.c.bf16 %v4805_v23, %v4805_v23  ;;  %v12017_v23 = vld [vmem:[%s15430_s2 + $0xb4] sm:$0xf0]  ;;  %v12010_v27 = vld [vmem:[%s15430_s2 + $0x84] sm:$0xf]  ;;  %v10424_v11 = vld [vmem:[%s15430_s2 + $0x2d0] sm:$0xf] }
 0xaca   : > { %v10133_v9 = vor.u32 %v12010_v27, %v10130_v31  ;;  %v12085_v4 = vld [vmem:[%s15430_s2 + $0x2d4] sm:$0xf0]  ;;  %v12079_v27 = vld [vmem:[%s15430_s2 + $0x2a4] sm:$0xf0]  ;;  %v12080_v31 = vld [vmem:[%s15430_s2 + $0x2b4] sm:$0xf] }
 0xacb   : > { %5508 = vmatmul.bf16.vlgmr.msrb.gmra.mxu3 %v4815_v1  ;;  %6494 = vmatpush.bf16.msrb.mxu1 %v10489_v14  ;;  %v10153_v1 = vor.u32 %v12017_v23, %v10152_v12  ;;  %v12016_v14 = vld [vmem:[%s15430_s2 + $0xb4] sm:$0xf]  ;;  %v5532_v12 = vld [vmem:[#allocation9 + $0x8] sm:$0x1] }
 0xacc   : > { %v14300_v6 = vpack.c.bf16 %v5532_v12, %v5532_v12 }
 0xacd   : > { %6431 = vmatpush.bf16.msra.mxu2 %v10153_v1  ;;  %v10442_v1 = vld [vmem:[%s15430_s2 + $0x2f8] sm:$0xf0] }
 0xace   : > { %v10445_v45 = vor.u32 %v12088_v48, %v10442_v1  ;;  %v12061_v1 = vld [vmem:[%s15430_s2 + $0x214] sm:$0xf0] }
 0xacf   : > { %6495 = vmatpush.bf16.msrb.mxu1 %v10481_v29  ;;  %v10157_v29 = vor.u32 %v12016_v14, %v10154_v15  ;;  %v10434_v14 = vld [vmem:[%s15430_s2 + $0x2e8] sm:$0xf0] }
 0xad1   : > { %6432 = vmatpush.bf16.msra.mxu2 %v10145_v59  ;;  %v10361_v59 = vor.u32 %v12069_v36, %v10360_v22  ;;  %v10402_v22 = vld [vmem:[%s15430_s2 + $0x2a8] sm:$0xf0] }
 0xad2   : > { %6448 = vmatmul.bf16.vlgmr.msra.gmra.mxu1 %v14220_v55 }
 0xad3   : > { %6496 = vmatpush.bf16.msrb.mxu1 %v10473_v10  ;;  %v10273_v10 = vor.u32 %v12047_v44, %v10272_v0  ;;  %v10437_v0 = vor.u32 %v12086_v50, %v10434_v14  ;;  %v10552_v44 = vld [vmem:[%s15430_s2 + $0x3d0] sm:$0xf]  ;;  %v5525_v50 = vld [vmem:[#allocation9] sm:$0x1] }
 0xad4   : > { %v14352_v14 = vpack.c.bf16 %v5525_v50, %v5525_v50  ;;  %v12131_v50 = vld [vmem:[%s15430_s2 + $0x444] sm:$0xf0] }
 0xad5   : > { %6458 = vmatpush.bf16.msra.mxu3 %v10273_v10  ;;  %v12117_v10 = vld [vmem:[%s15430_s2 + $0x3d4] sm:$0xf0] }
 0xad6   : > { %v10553_v26 = vor.u32 %v12117_v10, %v10552_v44  ;;  %v10320_v44 = vld [vmem:[%s15430_s2 + $0x200] sm:$0xf]  ;;  %v12059_v10 = vld [vmem:[%s15430_s2 + $0x204] sm:$0xf0] }
 0xad7   : > { %6497 = vmatpush.bf16.msrb.mxu1 %v10465_v2  ;;  %v10136_v2 = vld [vmem:[%s15430_s2 + $0x90] sm:$0xf] }
 0xad8   : > { %v10137_v33 = vor.u32 %v12013_v13, %v10136_v2  ;;  %v10352_v2 = vld [vmem:[%s15430_s2 + $0x240] sm:$0xf] }
 0xad9   : > { %v10416_v13 = vld [vmem:[%s15430_s2 + $0x2c0] sm:$0xf] }
 0xada   : > { %6433 = vmatpush.bf16.msra.mxu2 %v10137_v33  ;;  %v12084_v33 = vld [vmem:[%s15430_s2 + $0x2d4] sm:$0xf] }
 0xadb   : > { %6498 = vmatpush.bf16.msrb.mxu1 %v10457_v61  ;;  %v12014_v61 = vld [vmem:[%s15430_s2 + $0xa4] sm:$0xf] }
 0xadc   : > { %v10149_v3 = vor.u32 %v12014_v61, %v10146_v51  ;;  %v10353_v61 = vor.u32 %v12067_v46, %v10352_v2  ;;  %v12083_v51 = vld [vmem:[%s15430_s2 + $0x2c4] sm:$0xf0]  ;;  %v12076_v46 = vld [vmem:[%s15430_s2 + $0x294] sm:$0xf] }
 0xadd   : > { %v12075_v2 = vld [vmem:[%s15430_s2 + $0x284] sm:$0xf0] }
 0xade   : > { %6434 = vmatpush.bf16.msra.mxu2 %v10129_v62  ;;  %v12065_v62 = vld [vmem:[%s15430_s2 + $0x234] sm:$0xf0] }
 0xadf   : > { %6499 = vmatpush.bf16.msrb.mxu1 %v10449_v24  ;;  %v12045_v24 = vld [vmem:[%s15430_s2 + $0x194] sm:$0xf0]  ;;  %v10345_v35 = vor.u32 %v12065_v62, %v10344_v47  ;;  %v10512_v47 = vld [vmem:[%s15430_s2 + $0x380] sm:$0xf] }
 0xae0   : > { %v10265_v28 = vor.u32 %v12045_v24, %v10264_v52  ;;  %v14322_v52 = vpop.f32.mrf.mxu2  ;;  %v10417_v24 = vor.u32 %v12083_v51, %v10416_v13  ;;  %v10394_v13 = vld [vmem:[%s15430_s2 + $0x298] sm:$0xf0] }
 0xae2   : > { %6459 = vmatpush.bf16.msra.mxu3 %v10265_v28  ;;  %6500 = vmatmul.bf16.vlgmr.msrb.gmra.mxu1 %v14300_v6  ;;  %v10544_v28 = vld [vmem:[%s15430_s2 + $0x3c0] sm:$0xf] }
 0xae3   : > { %6544 = vmatpush.bf16.msra.mxu1 %v10189_v49  ;;  %v10064_v49 = vld [vmem:[%s15430_s2] sm:$0xf] }
 0xae4   : > { %v10065_v21 = vor.u32 %v11995_v60, %v10064_v49  ;;  %v12115_v60 = vld [vmem:[%s15430_s2 + $0x3c4] sm:$0xf0] }
 0xae6   : > { %6421 = vmatpush.bf16.msrb.mxu0 %v10065_v21  ;;  %6460 = vmatpush.bf16.msra.mxu3 %v10257_v8  ;;  %v10545_v21 = vor.u32 %v12115_v60, %v10544_v28  ;;  %v10400_v8 = vld [vmem:[%s15430_s2 + $0x2a0] sm:$0xf]  ;;  %v10122_v60 = vld [vmem:[%s15430_s2 + $0x78] sm:$0xf0] }
 0xae7   : > { %6545 = vmatpush.bf16.msra.mxu1 %v10181_v34  ;;  %v10440_v34 = vld [vmem:[%s15430_s2 + $0x2f0] sm:$0xf] }
 0xae8   : > { %v10441_v25 = vor.u32 %v12089_v53, %v10440_v34  ;;  %v10418_v34 = vld [vmem:[%s15430_s2 + $0x2c8] sm:$0xf0]  ;;  %v10536_v53 = vld [vmem:[%s15430_s2 + $0x3b0] sm:$0xf] }
 0xae9   : > { %6422 = vmatmul.bf16.vlgmr.msrb.gmra.mxu0 %v14352_v14 }
 0xaea   : > { %6466 = vmatpush.bf16.msra.mxu0 %v10377_v43  ;;  %6479 = vmatpush.bf16.msrb.mxu2 %v10441_v25  ;;  %v10421_v43 = vor.u32 %v12082_v16, %v10418_v34  ;;  %v12113_v25 = vld [vmem:[%s15430_s2 + $0x3b4] sm:$0xf0] }
 0xaeb   : > { %6546 = vmatpush.bf16.msra.mxu1 %v10173_v30  ;;  %v10368_v30 = vld [vmem:[%s15430_s2 + $0x260] sm:$0xf]  ;;  %6505 = vmatpush.bf16.msrb.mxu3 %v10569_v58  ;;  %v10537_v20 = vor.u32 %v12113_v25, %v10536_v53  ;;  %v10410_v58 = vld [vmem:[%s15430_s2 + $0x2b8] sm:$0xf0]  ;;  %v12074_v53 = vld [vmem:[%s15430_s2 + $0x284] sm:$0xf] }
 0xaec   : > { %v10369_v42 = vor.u32 %v12071_v37, %v10368_v30  ;;  %v10413_v30 = vor.u32 %v12080_v31, %v10410_v58  ;;  %v5526_v37 = vld [vmem:[#allocation9 + $0x1] sm:$0x1]  ;;  %v10624_v25 = vld [vmem:[%s15430_s2 + $0x460] sm:$0xf]  ;;  %v6680_v31 = vld [vmem:[%s15431_s3 + $0xf0] sm:$0xff] }
 0xaed   : > { %v5536_v12 = vpack.c.bf16 %v5526_v37, %v5526_v37  ;;  %v12038_v58 = vld [vmem:[%s15430_s2 + $0x164] sm:$0xf] }
 0xaee   : > { %6467 = vmatpush.bf16.msra.mxu0 %v10369_v42  ;;  %6480 = vmatpush.bf16.msrb.mxu2 %v10433_v5  ;;  %v12111_v42 = vld [vmem:[%s15430_s2 + $0x3a4] sm:$0xf0]  ;;  %v10328_v5 = vld [vmem:[%s15430_s2 + $0x210] sm:$0xf]  ;;  %v6678_v37 = vld [vmem:[%s15431_s3 + $0xe0] sm:$0xff] }
 0xaef   : > { %6547 = vmatpush.bf16.msra.mxu1 %v10165_v17  ;;  %v10560_v17 = vld [vmem:[%s15430_s2 + $0x3e0] sm:$0xf]  ;;  %v10529_v48 = vor.u32 %v12111_v42, %v10528_v63  ;;  %6435 = vmatmul.bf16.vlgmr.msra.gmra.mxu2 %v5536_v12  ;;  %v10616_v63 = vld [vmem:[%s15430_s2 + $0x450] sm:$0xf]  ;;  %v12133_v42 = vld [vmem:[%s15430_s2 + $0x454] sm:$0xf0] }
 0xaf0   : > { %v10561_v19 = vor.u32 %v12119_v18, %v10560_v17  ;;  %v10392_v17 = vld [vmem:[%s15430_s2 + $0x290] sm:$0xf]  ;;  %v10329_v18 = vor.u32 %v12061_v1, %v10328_v5  ;;  %v10106_v5 = vld [vmem:[%s15430_s2 + $0x58] sm:$0xf0] }
 0xaf2   : > { %6506 = vmatpush.bf16.msrb.mxu3 %v10561_v19  ;;  %6468 = vmatpush.bf16.msra.mxu0 %v10361_v59  ;;  %v12078_v19 = vld [vmem:[%s15430_s2 + $0x2a4] sm:$0xf]  ;;  %v10520_v59 = vld [vmem:[%s15430_s2 + $0x390] sm:$0xf] }
 0xaf3   : > { %6548 = vmatpush.bf16.msra.mxu1 %v10157_v29  ;;  %v10425_v29 = vor.u32 %v12085_v4, %v10424_v11  ;;  %v10405_v4 = vor.u32 %v12078_v19, %v10402_v22 }
 0xaf5   : > { %6481 = vmatpush.bf16.msrb.mxu2 %v10425_v29  ;;  %v12109_v29 = vld [vmem:[%s15430_s2 + $0x394] sm:$0xf0] }
 0xaf6   : > { %6507 = vmatpush.bf16.msrb.mxu3 %v10553_v26  ;;  %6469 = vmatpush.bf16.msra.mxu0 %v10353_v61  ;;  %v10384_v26 = vld [vmem:[%s15430_s2 + $0x280] sm:$0xf] }
 0xaf7   : > { %6549 = vmatpush.bf16.msra.mxu1 %v10149_v3  ;;  %v10426_v3 = vld [vmem:[%s15430_s2 + $0x2d8] sm:$0xf0]  ;;  %v10385_v51 = vor.u32 %v12075_v2, %v10384_v26  ;;  %v6672_v26 = vld [vmem:[%s15431_s3 + $0xb0] sm:$0xff]  ;;  %v10226_v2 = vld [vmem:[%s15430_s2 + $0x148] sm:$0xf0] }
 0xaf8   : > { %v10429_v49 = vor.u32 %v12084_v33, %v10426_v3  ;;  %v10397_v33 = vor.u32 %v12076_v46, %v10394_v13  ;;  %v10632_v3 = vld [vmem:[%s15430_s2 + $0x470] sm:$0xf]  ;;  %v6670_v13 = vld [vmem:[%s15431_s3 + $0xa0] sm:$0xff] }
 0xaf9   : > { %6482 = vmatpush.bf16.msrb.mxu2 %v10417_v24  ;;  %v12137_v24 = vld [vmem:[%s15430_s2 + $0x474] sm:$0xf0] }
 0xafa   : > { %6508 = vmatpush.bf16.msrb.mxu3 %v10545_v21  ;;  %6470 = vmatpush.bf16.msra.mxu0 %v10345_v35  ;;  %v10633_v28 = vor.u32 %v12137_v24, %v10632_v3  ;;  %v10250_v35 = vld [vmem:[%s15430_s2 + $0x178] sm:$0xf0]  ;;  %v12000_v3 = vld [vmem:[%s15430_s2 + $0x34] sm:$0xf] }
 0xafb   : > { %6550 = vmatpush.bf16.msra.mxu1 %v10141_v41  ;;  %v10409_v41 = vor.u32 %v12081_v38, %v10408_v57  ;;  %v5528_v57 = vld [vmem:[#allocation9 + $0x4] sm:$0x1]  ;;  %v12040_v38 = vld [vmem:[%s15430_s2 + $0x174] sm:$0xf] }
 0xafc   : > { %v14371_v16 = vpack.c.bf16 %v5528_v57, %v5528_v57  ;;  %v10253_v34 = vor.u32 %v12040_v38, %v10250_v35  ;;  %v10090_v24 = vld [vmem:[%s15430_s2 + $0x38] sm:$0xf0]  ;;  %v6666_v57 = vld [vmem:[%s15431_s3 + $0x80] sm:$0xff]  ;;  %v12127_v35 = vld [vmem:[%s15430_s2 + $0x424] sm:$0xf0] }
 0xafd   : > { %6483 = vmatpush.bf16.msrb.mxu2 %v10409_v41  ;;  %v10592_v38 = vld [vmem:[%s15430_s2 + $0x420] sm:$0xf] }
 0xafe   : > { %6509 = vmatpush.bf16.msrb.mxu3 %v10537_v20  ;;  %6471 = vmatpush.bf16.msra.mxu0 %v10337_v40  ;;  %v10625_v40 = vor.u32 %v12135_v39, %v10624_v25  ;;  %v12030_v39 = vld [vmem:[%s15430_s2 + $0x124] sm:$0xf] }
 0xaff   : > { %6551 = vmatpush.bf16.msra.mxu1 %v10133_v9  ;;  %v10401_v9 = vor.u32 %v12079_v27, %v10400_v8  ;;  %v10114_v8 = vld [vmem:[%s15430_s2 + $0x68] sm:$0xf0]  ;;  %6461 = vmatmul.bf16.vlgmr.msra.gmra.mxu3 %v14371_v16 }
 0xb00   : > { %v10117_v27 = vor.u32 %v12006_v7, %v10114_v8  ;;  %v10210_v7 = vld [vmem:[%s15430_s2 + $0x128] sm:$0xf0] }
 0xb01   : > { %6484 = vmatpush.bf16.msrb.mxu2 %v10401_v9  ;;  %v10242_v9 = vld [vmem:[%s15430_s2 + $0x168] sm:$0xf0]  ;;  %v10213_v8 = vor.u32 %v12030_v39, %v10210_v7  ;;  %v12054_v39 = vld [vmem:[%s15430_s2 + $0x1e4] sm:$0xf] }
 0xb02   : > { %6552 = vmatmul.bf16.vlgmr.msra.gmra.mxu1 %v5536_v12  ;;  %6510 = vmatpush.bf16.msrb.mxu3 %v10529_v48  ;;  %v10617_v12 = vor.u32 %v12133_v42, %v10616_v63  ;;  %v12004_v48 = vld [vmem:[%s15430_s2 + $0x54] sm:$0xf] }
 0xb03   : > { %6596 = vmatpush.bf16.msrb.mxu1 %v10445_v45  ;;  %v12077_v45 = vld [vmem:[%s15430_s2 + $0x294] sm:$0xf0]  ;;  %6472 = vmatpush.bf16.msra.mxu0 %v10329_v18  ;;  %v10109_v1 = vor.u32 %v12004_v48, %v10106_v5  ;;  %v12036_v18 = vld [vmem:[%s15430_s2 + $0x154] sm:$0xf]  ;;  %v10202_v48 = vld [vmem:[%s15430_s2 + $0x118] sm:$0xf0] }
 0xb04   : > { %v10393_v36 = vor.u32 %v12077_v45, %v10392_v17  ;;  %v6676_v17 = vld [vmem:[%s15431_s3 + $0xd0] sm:$0xff]  ;;  %v10234_v45 = vld [vmem:[%s15430_s2 + $0x158] sm:$0xf0]  ;;  %v10576_v5 = vld [vmem:[%s15430_s2 + $0x400] sm:$0xf] }
 0xb05   : > { %v10237_v22 = vor.u32 %v12036_v18, %v10234_v45  ;;  %v6660_v42 = vld [vmem:[%s15431_s3 + $0x50] sm:$0xff]  ;;  %v6658_v45 = vld [vmem:[%s15431_s3 + $0x40] sm:$0xff] }
 0xb06   : > { %v14298_v23 = vpop.f32.mrf.mxu3  ;;  %6485 = vmatpush.bf16.msrb.mxu2 %v10393_v36  ;;  %v6674_v36 = vld [vmem:[%s15431_s3 + $0xc0] sm:$0xff] }
 0xb07   : > { %6597 = vmatpush.bf16.msrb.mxu1 %v10437_v0  ;;  %v10521_v0 = vor.u32 %v12109_v29, %v10520_v59  ;;  %v12002_v59 = vld [vmem:[%s15430_s2 + $0x44] sm:$0xf] }
 0xb09   : > { %v14311_v15 = vpop.f32.mrf.mxu0  ;;  %6511 = vmatpush.bf16.msrb.mxu3 %v10521_v0  ;;  %v10098_v0 = vld [vmem:[%s15430_s2 + $0x48] sm:$0xf0] }
 0xb0a   : > { %6486 = vmatpush.bf16.msrb.mxu2 %v10385_v51  ;;  %v12129_v51 = vld [vmem:[%s15430_s2 + $0x434] sm:$0xf0] }
 0xb0b   : > { %6598 = vmatpush.bf16.msrb.mxu1 %v10429_v49  ;;  %v12008_v49 = vld [vmem:[%s15430_s2 + $0x74] sm:$0xf] }
 0xb0c   : > { %v10125_v21 = vor.u32 %v12008_v49, %v10122_v60  ;;  %v10093_v49 = vor.u32 %v12000_v3, %v10090_v24  ;;  %v12032_v60 = vld [vmem:[%s15430_s2 + $0x134] sm:$0xf] }
 0xb0e   : > { %v5407_v32 = vpop.f32.mrf.mxu3  ;;  %6531 = vmatpush.bf16.msra.mxu2 %v10125_v21 }
 0xb0f   : > { %6599 = vmatpush.bf16.msrb.mxu1 %v10421_v43  ;;  %v10321_v32 = vor.u32 %v12059_v10, %v10320_v44  ;;  %v10386_v43 = vld [vmem:[%s15430_s2 + $0x288] sm:$0xf0]  ;;  %v10101_v10 = vor.u32 %v12002_v59, %v10098_v0 }
 0xb10   : > { %v10389_v20 = vor.u32 %v12074_v53, %v10386_v43  ;;  %v10082_v53 = vld [vmem:[%s15430_s2 + $0x28] sm:$0xf0] }
 0xb11   : > { %v5420_v54 = vpop.f32.mrf.mxu0  ;;  %6473 = vmatpush.bf16.msra.mxu0 %v10321_v32  ;;  %v12034_v32 = vld [vmem:[%s15430_s2 + $0x144] sm:$0xf] }
 0xb12   : > { %v12107_v54 = vld [vmem:[%s15430_s2 + $0x384] sm:$0xf0]  ;;  %6532 = vmatpush.bf16.msra.mxu2 %v10117_v27  ;;  %v10229_v46 = vor.u32 %v12034_v32, %v10226_v2  ;;  %v6662_v27 = vld [vmem:[%s15431_s3 + $0x60] sm:$0xff] }
 0xb13   : > { %6600 = vmatpush.bf16.msrb.mxu1 %v10413_v30  ;;  %v10513_v62 = vor.u32 %v12107_v54, %v10512_v47  ;;  %v10245_v30 = vor.u32 %v12038_v58, %v10242_v9  ;;  %v10218_v47 = vld [vmem:[%s15430_s2 + $0x138] sm:$0xf0]  ;;  %v12802_v54 = vld [vmem:[%s15432_s5] ss:$0 sm:$0xff]  ;;  %v12125_v58 = vld [vmem:[%s15430_s2 + $0x414] sm:$0xf0] }
 0xb14   : > { %s15433_s5 = sld [smem:[#allocation25_spill]]  ;;  %v6654_v2 = vld [vmem:[%s15431_s3 + $0x20] sm:$0xff] }
 0xb15   : > { %6518 = vmatpush.bf16.msrb.mxu0 %v10633_v28  ;;  %6512 = vmatpush.bf16.msrb.mxu3 %v10513_v62  ;;  %v6668_v28 = vld [vmem:[%s15431_s3 + $0x90] sm:$0xff]  ;;  %v10221_v62 = vor.u32 %v12032_v60, %v10218_v47 }
 0xb16   : > { %6533 = vmatpush.bf16.msra.mxu2 %v10109_v1  ;;  %v12123_v1 = vld [vmem:[%s15430_s2 + $0x404] sm:$0xf0] }
 0xb17   : > { %6601 = vmatpush.bf16.msrb.mxu1 %v10405_v4  ;;  %v10608_v4 = vld [vmem:[%s15430_s2 + $0x440] sm:$0xf] }
 0xb18   : > { %v14342_v56 = vpop.f32.mrf.mxu2  ;;  %v10609_v29 = vor.u32 %v12131_v50, %v10608_v4 }
 0xb19   : > { %6557 = vmatpush.bf16.msra.mxu3 %v10253_v34  ;;  %6519 = vmatpush.bf16.msrb.mxu0 %v10625_v40  ;;  %v11998_v34 = vld [vmem:[%s15430_s2 + $0x24] sm:$0xf]  ;;  %v5406_v40 = vadd.f32 %v12802_v54, %v14298_v23 }
 0xb1a   : > { %6534 = vmatpush.bf16.msra.mxu2 %v10101_v10  ;;  %v10085_v25 = vor.u32 %v11998_v34, %v10082_v53  ;;  %v10194_v10 = vld [vmem:[%s15430_s2 + $0x108] sm:$0xf0]  ;;  %v10824_v34 = vld [vmem:[%s15434_s6 + $0x170] sm:$0xf] }
 0xb1b   : > { %v14350_v11 = vpop.f32.mrf.mxu1  ;;  %6602 = vmatpush.bf16.msrb.mxu1 %v10397_v33  ;;  %v5419_v18 = vadd.f32 %v14311_v15, %v5406_v40  ;;  %v12026_v15 = vld [vmem:[%s15430_s2 + $0x104] sm:$0xf]  ;;  %v10306_v40 = vld [vmem:[%s15430_s2 + $0x1e8] sm:$0xf0] }
 0xb1d   : > { %6558 = vmatpush.bf16.msra.mxu3 %v10245_v30  ;;  %6520 = vmatpush.bf16.msrb.mxu0 %v10617_v12  ;;  %v11996_v30 = vld [vmem:[%s15430_s2 + $0x14] sm:$0xf]  ;;  %v5432_v59 = vadd.f32 %v14342_v56, %v5419_v18 }
 0xb1e   : > { %6535 = vmatpush.bf16.msra.mxu2 %v10093_v49  ;;  %v12028_v12 = vld [vmem:[%s15430_s2 + $0x114] sm:$0xf] }
 0xb1f   : > { %6603 = vmatpush.bf16.msrb.mxu1 %v10389_v20  ;;  %v6664_v20 = vld [vmem:[%s15431_s3 + $0x70] sm:$0xff]  ;;  %v10205_v23 = vor.u32 %v12028_v12, %v10202_v48  ;;  %v5445_v32 = vadd.f32 %v14350_v11, %v5432_v59  ;;  %v12801_v11 = vld [vmem:[%s15433_s5] ss:$0 sm:$0xff]  ;;  %v12183_v48 = vld [vmem:[%s15434_s6 + $0x164] sm:$0xf0]  ;;  %s15435_s5 = sld [smem:[#allocation28_spill]] }
 0xb20   : > { %v5433_v61 = vpop.f32.mrf.mxu2  ;;  %v10816_v12 = vld [vmem:[%s15434_s6 + $0x160] sm:$0xf]  ;;  %v12068_v18 = vld [vmem:[%s15430_s2 + $0x254] sm:$0xf]  ;;  %v10808_v59 = vld [vmem:[%s15434_s6 + $0x150] sm:$0xf] }
 0xb21   : > { %6559 = vmatpush.bf16.msra.mxu3 %v10237_v22  ;;  %6521 = vmatpush.bf16.msrb.mxu0 %v10609_v29  ;;  %v10600_v61 = vld [vmem:[%s15430_s2 + $0x430] sm:$0xf]  ;;  %v10577_v22 = vor.u32 %v12123_v1, %v10576_v5  ;;  %v12052_v1 = vld [vmem:[%s15430_s2 + $0x1d4] sm:$0xf] }
 0xb22   : > { %v10601_v33 = vor.u32 %v12129_v51, %v10600_v61  ;;  %6536 = vmatpush.bf16.msra.mxu2 %v10085_v25  ;;  %v6656_v29 = vld [vmem:[%s15431_s3 + $0x30] sm:$0xff]  ;;  %v6650_v61 = vld [vmem:[%s15431_s3] sm:$0xff] }
 0xb23   : > { %v5446_v41 = vpop.f32.mrf.mxu1  ;;  %6688 = vmatpush.msra.mxu1 %v6680_v31  ;;  %v10584_v31 = vld [vmem:[%s15430_s2 + $0x410] sm:$0xf] }
 0xb24   : > { %v10593_v41 = vor.u32 %v12127_v35, %v10592_v38  ;;  %v10585_v9 = vor.u32 %v12125_v58, %v10584_v31  ;;  %v10378_v38 = vld [vmem:[%s15430_s2 + $0x278] sm:$0xf0]  ;;  %v12104_v35 = vld [vmem:[%s15430_s2 + $0x374] sm:$0xf]  ;;  %v10370_v31 = vld [vmem:[%s15430_s2 + $0x268] sm:$0xf0] }
 0xb25   : > { %6689 = vmatpush.msra.mxu1 %v6678_v37  ;;  %6560 = vmatpush.bf16.msra.mxu3 %v10229_v46  ;;  %v10074_v37 = vld [vmem:[%s15430_s2 + $0x18] sm:$0xf0]  ;;  %v6652_v46 = vld [vmem:[%s15431_s3 + $0x10] sm:$0xff] }
 0xb26   : > { %6522 = vmatpush.bf16.msrb.mxu0 %v10601_v33  ;;  %v10077_v63 = vor.u32 %v11996_v30, %v10074_v37  ;;  %v12102_v30 = vld [vmem:[%s15430_s2 + $0x364] sm:$0xf] }
 0xb27   : > { %6690 = vmatpush.msra.mxu1 %v6676_v17  ;;  %v11994_v17 = vld [vmem:[%s15430_s2 + $0x4] sm:$0xf] }
 0xb28   : > { %6537 = vmatpush.bf16.msra.mxu2 %v10077_v63 }
 0xb29   : > { %6691 = vmatpush.msra.mxu1 %v6674_v36  ;;  %6561 = vmatpush.bf16.msra.mxu3 %v10221_v62  ;;  %v10066_v36 = vld [vmem:[%s15430_s2 + $0x8] sm:$0xf0]  ;;  %v10314_v62 = vld [vmem:[%s15430_s2 + $0x1f8] sm:$0xf0] }
 0xb2a   : > { %v14391_v19 = vpop.f32.mrf.mxu3  ;;  %6523 = vmatpush.bf16.msrb.mxu0 %v10593_v41  ;;  %v10069_v50 = vor.u32 %v11994_v17, %v10066_v36  ;;  %v10506_v41 = vld [vmem:[%s15430_s2 + $0x378] sm:$0xf0]  ;;  %v12100_v36 = vld [vmem:[%s15430_s2 + $0x354] sm:$0xf] }
 0xb2b   : > { %6692 = vmatpush.msra.mxu1 %v6672_v26  ;;  %v10197_v26 = vor.u32 %v12026_v15, %v10194_v10  ;;  %v5458_v56 = vadd.f32 %v14391_v19, %v5445_v32  ;;  %v4713_v19 = vadd.f32 %v12801_v11, %v14322_v52  ;;  %v12185_v52 = vld [vmem:[%s15434_s6 + $0x174] sm:$0xf0]  ;;  %v10298_v17 = vld [vmem:[%s15430_s2 + $0x1d8] sm:$0xf0]  ;;  %v12050_v10 = vld [vmem:[%s15430_s2 + $0x1c4] sm:$0xf] }
 0xb2c   : > { %6538 = vmatpush.bf16.msra.mxu2 %v10069_v50  ;;  %v10825_v37 = vor.u32 %v12185_v52, %v10824_v34  ;;  %v10490_v50 = vld [vmem:[%s15430_s2 + $0x358] sm:$0xf0]  ;;  %v12066_v32 = vld [vmem:[%s15430_s2 + $0x244] sm:$0xf]  ;;  %v10274_v52 = vld [vmem:[%s15430_s2 + $0x1a8] sm:$0xf0] }
 0xb2d   : > { %v14398_v44 = vpop.f32.mrf.mxu0  ;;  %6693 = vmatpush.msra.mxu1 %v6670_v13  ;;  %6562 = vmatpush.bf16.msra.mxu3 %v10213_v8 }
 0xb2e   : > { %6524 = vmatpush.bf16.msrb.mxu0 %v10585_v9  ;;  %v5471_v51 = vadd.f32 %v14398_v44, %v5458_v56  ;;  %v10509_v9 = vor.u32 %v12104_v35, %v10506_v41  ;;  %v12098_v56 = vld [vmem:[%s15430_s2 + $0x344] sm:$0xf] }
 0xb2f   : > { %6694 = vmatpush.msra.mxu1 %v6668_v28  ;;  %v12046_v41 = vld [vmem:[%s15430_s2 + $0x1a4] sm:$0xf] }
 0xb31   : > { %6695 = vmatpush.msra.mxu1 %v6666_v57  ;;  %6563 = vmatpush.bf16.msra.mxu3 %v10205_v23  ;;  %v12072_v57 = vld [vmem:[%s15430_s2 + $0x274] sm:$0xf]  ;;  %v10309_v23 = vor.u32 %v12054_v39, %v10306_v40  ;;  %v12094_v39 = vld [vmem:[%s15430_s2 + $0x324] sm:$0xf]  ;;  %v10466_v40 = vld [vmem:[%s15430_s2 + $0x328] sm:$0xf0] }
 0xb32   : > { %v5459_v21 = vpop.f32.mrf.mxu3  ;;  %6525 = vmatpush.bf16.msrb.mxu0 %v10577_v22 }
 0xb33   : > { %6696 = vmatpush.msra.mxu1 %v6664_v20  ;;  %v12056_v21 = vld [vmem:[%s15430_s2 + $0x1f4] sm:$0xf]  ;;  %v10381_v20 = vor.u32 %v12072_v57, %v10378_v38  ;;  %v12177_v57 = vld [vmem:[%s15434_s6 + $0x134] sm:$0xf0] }
 0xb34   : > { %v10317_v25 = vor.u32 %v12056_v21, %v10314_v62  ;;  %v10474_v21 = vld [vmem:[%s15430_s2 + $0x338] sm:$0xf0]  ;;  %v10792_v62 = vld [vmem:[%s15434_s6 + $0x130] sm:$0xf] }
 0xb35   : > { %v5472_v43 = vpop.f32.mrf.mxu0  ;;  %6697 = vmatpush.msra.mxu1 %v6662_v27  ;;  %6564 = vmatpush.bf16.msra.mxu3 %v10197_v26  ;;  %v12070_v27 = vld [vmem:[%s15430_s2 + $0x264] sm:$0xf]  ;;  %v10290_v26 = vld [vmem:[%s15430_s2 + $0x1c8] sm:$0xf0] }
 0xb36   : > { %v10373_v5 = vor.u32 %v12070_v27, %v10370_v31  ;;  %v10784_v27 = vld [vmem:[%s15434_s6 + $0x120] sm:$0xf]  ;;  %v12175_v31 = vld [vmem:[%s15434_s6 + $0x124] sm:$0xf0] }
 0xb37   : > { %6698 = vmatpush.msra.mxu1 %v6660_v42  ;;  %v10498_v42 = vld [vmem:[%s15430_s2 + $0x368] sm:$0xf0] }
 0xb38   : > { %v10501_v22 = vor.u32 %v12102_v30, %v10498_v42  ;;  %v12044_v30 = vld [vmem:[%s15430_s2 + $0x194] sm:$0xf]  ;;  %v10330_v42 = vld [vmem:[%s15430_s2 + $0x218] sm:$0xf0] }
 0xb39   : > { %6699 = vmatpush.msra.mxu1 %v6658_v45  ;;  %v10362_v45 = vld [vmem:[%s15430_s2 + $0x258] sm:$0xf0] }
 0xb3a   : > { %v10365_v15 = vor.u32 %v12068_v18, %v10362_v45  ;;  %v12042_v45 = vld [vmem:[%s15430_s2 + $0x184] sm:$0xf] }
 0xb3b   : > { %6700 = vmatpush.msra.mxu1 %v6656_v29  ;;  %v12181_v29 = vld [vmem:[%s15434_s6 + $0x154] sm:$0xf0] }
 0xb3c   : > { %v5483_v4 = vpop.f32.mrf.mxu2 }
 0xb3d   : > { %6701 = vmatpush.msra.mxu1 %v6654_v2  ;;  %v5484_v3 = vadd.f32 %v5483_v4, %v5471_v51  ;;  %v10817_v4 = vor.u32 %v12183_v48, %v10816_v12  ;;  %v10354_v2 = vld [vmem:[%s15430_s2 + $0x248] sm:$0xf0]  ;;  %v10800_v51 = vld [vmem:[%s15434_s6 + $0x140] sm:$0xf]  ;;  %v10469_v12 = vor.u32 %v12094_v39, %v10466_v40  ;;  %v12092_v48 = vld [vmem:[%s15430_s2 + $0x314] sm:$0xf] }
 0xb3e   : > { %v10357_v11 = vor.u32 %v12066_v32, %v10354_v2  ;;  %v10450_v32 = vld [vmem:[%s15430_s2 + $0x308] sm:$0xf0]  ;;  %v10768_v2 = vld [vmem:[%s15434_s6 + $0x100] sm:$0xf]  ;;  %v6677_v39 = vld [vmem:[%s15431_s3 + $0xd8] sm:$0xff] }
 0xb3f   : > { %v5496_v0 = vpop.f32.mrf.mxu1  ;;  %6702 = vmatpush.msra.mxu1 %v6652_v46  ;;  %v10493_v46 = vor.u32 %v12100_v36, %v10490_v50  ;;  %v12058_v36 = vld [vmem:[%s15430_s2 + $0x204] sm:$0xf]  ;;  %v12120_v50 = vld [vmem:[%s15430_s2 + $0x3f4] sm:$0xf] }
 0xb40   : > { %v5497_v24 = vadd.f32 %v5496_v0, %v5484_v3  ;;  %v10301_v0 = vor.u32 %v12052_v1, %v10298_v17  ;;  %v10293_v3 = vor.u32 %v12050_v10, %v10290_v26  ;;  %v10776_v1 = vld [vmem:[%s15434_s6 + $0x110] sm:$0xf]  ;;  %v12173_v17 = vld [vmem:[%s15434_s6 + $0x114] sm:$0xf0]  ;;  %v12090_v10 = vld [vmem:[%s15430_s2 + $0x304] sm:$0xf] }
 0xb41   : > { %6703 = vmatpush.msra.mxu1 %v6650_v61  ;;  %v10482_v61 = vld [vmem:[%s15430_s2 + $0x348] sm:$0xf0]  ;;  %v10777_v26 = vor.u32 %v12173_v17, %v10776_v1  ;;  %v11056_v1 = vld [vmem:[%s15434_s6 + $0x340] sm:$0xf]  ;;  %v12243_v17 = vld [vmem:[%s15434_s6 + $0x344] sm:$0xf0] }
 0xb44   : > { %v5485_v13 = vpop.f32.mrf.mxu2 }
 0xb45   : > { %v10809_v13 = vor.u32 %v12181_v29, %v10808_v59  ;;  %v10570_v59 = vld [vmem:[%s15430_s2 + $0x3f8] sm:$0xf0] }
 0xb47   : > { %v5498_v33 = vpop.f32.mrf.mxu1 }
 0xb48   : > { %v12179_v33 = vld [vmem:[%s15434_s6 + $0x144] sm:$0xf0] }
 0xb4e   : > { %v5509_v49 = vpop.f32.mrf.mxu3 }
 0xb4f   : > { %v5510_v28 = vadd.f32 %v5509_v49, %v5497_v24  ;;  %v12048_v24 = vld [vmem:[%s15430_s2 + $0x1b4] sm:$0xf]  ;;  %v10282_v49 = vld [vmem:[%s15430_s2 + $0x1b8] sm:$0xf0] }
 0xb50   : > { %v10285_v38 = vor.u32 %v12048_v24, %v10282_v49  ;;  %v10453_v24 = vor.u32 %v12090_v10, %v10450_v32  ;;  %v10562_v49 = vld [vmem:[%s15430_s2 + $0x3e8] sm:$0xf0]  ;;  %v12126_v10 = vld [vmem:[%s15430_s2 + $0x424] sm:$0xf] }
 0xb51   : > { %v5513_v60 = vadd.f32 %v5510_v28, %v4713_v19  ;;  %v12064_v19 = vld [vmem:[%s15430_s2 + $0x234] sm:$0xf]  ;;  %v10346_v28 = vld [vmem:[%s15430_s2 + $0x238] sm:$0xf0]  ;;  %v6667_v32 = vld [vmem:[%s15431_s3 + $0x88] sm:$0xff] }
 0xb52   : > { %v10349_v35 = vor.u32 %v12064_v19, %v10346_v28  ;;  %v12134_v19 = vld [vmem:[%s15430_s2 + $0x464] sm:$0xf]  ;;  %v10626_v28 = vld [vmem:[%s15430_s2 + $0x468] sm:$0xf0] }
 0xb53   : > { %v5514_v47 = vmax.f32 %v5513_v60, 0.0  ;;  %v10485_v60 = vor.u32 %v12098_v56, %v10482_v61  ;;  %v10573_v61 = vor.u32 %v12120_v50, %v10570_v59  ;;  %v12110_v59 = vld [vmem:[%s15430_s2 + $0x3a4] sm:$0xf] }
 0xb55   : > { %v5520_v54 = vrot.slane %v5514_v47, 2  ;;  %5523 = vst [vmem:[#allocation9 + $0x5] sm:$0x3] %v5514_v47 }
 0xb56   : > { %v5511_v44 = vpop.f32.mrf.mxu3 }
 0xb57   : > { %5524 = vst [vmem:[#allocation9 + $0x9] sm:$0x3] %v5520_v54  ;;  %v12096_v54 = vld [vmem:[%s15430_s2 + $0x334] sm:$0xf]  ;;  %v10801_v44 = vor.u32 %v12179_v33, %v10800_v51  ;;  %v12118_v33 = vld [vmem:[%s15430_s2 + $0x3e4] sm:$0xf] }
 0xb5c   : > { %v14455_v53 = vld [vmem:[#allocation9 + $0x5] sm:$0x1]  ;;  %v5530_v43 = vld [vmem:[#allocation9 + $0x6] sm:$0x1] }
 0xb5d   : > { %v14460_v7 = vpack.c.bf16 %v14455_v53, %v14455_v53  ;;  %v5540_v8 = vpack.c.bf16 %v5530_v43, %v5530_v43  ;;  %v12062_v43 = vld [vmem:[%s15430_s2 + $0x224] sm:$0xf] }
 0xb5e   : > { %v5533_v58 = vld [vmem:[#allocation9 + $0x9] sm:$0x1]  ;;  %v5534_v47 = vld [vmem:[#allocation9 + $0xa] sm:$0x1] }
 0xb5f   : > { %6474 = vmatmul.bf16.vlgmr.msra.gmra.mxu0 %v14460_v7  ;;  %6487 = vmatmul.bf16.vlgmr.msrb.gmra.mxu2 %v5540_v8  ;;  %v14467_v63 = vpack.c.bf16 %v5533_v58, %v5533_v58  ;;  %v14498_v34 = vpack.c.bf16 %v5534_v47, %v5534_v47  ;;  %v10277_v58 = vor.u32 %v12046_v41, %v10274_v52  ;;  %v6681_v47 = vld [vmem:[%s15431_s3 + $0xf8] sm:$0xff]  ;;  %v14542_v41 = vld [vmem:[#allocation10 + $0x1] ss:$4 sm:$0x3]  ;;  %v12132_v52 = vld [vmem:[%s15430_s2 + $0x454] sm:$0xf] }
 0xb60   : > { %6570 = vmatpush.bf16.msra.mxu0 %v10317_v25  ;;  %6583 = vmatpush.bf16.msrb.mxu2 %v10381_v20  ;;  %v10338_v25 = vld [vmem:[%s15430_s2 + $0x228] sm:$0xf0]  ;;  %v10477_v20 = vor.u32 %v12096_v54, %v10474_v21  ;;  %v10554_v21 = vld [vmem:[%s15430_s2 + $0x3d8] sm:$0xf0] }
 0xb61   : > { %6604 = vmatmul.bf16.vlgmr.msrb.gmra.mxu1 %v5540_v8  ;;  %6513 = vmatmul.bf16.vlgmr.msrb.gmra.mxu3 %v14467_v63  ;;  %v10793_v8 = vor.u32 %v12177_v57, %v10792_v62  ;;  %v11072_v62 = vld [vmem:[%s15434_s6 + $0x360] sm:$0xf]  ;;  %v10565_v57 = vor.u32 %v12118_v33, %v10562_v49  ;;  %v10586_v49 = vld [vmem:[%s15430_s2 + $0x418] sm:$0xf0] }
 0xb62   : > { %6609 = vmatpush.bf16.msrb.mxu3 %v10509_v9  ;;  %8581 = vmatpush.bf16.msrb.mxu1 %v10825_v37  ;;  %v10341_v9 = vor.u32 %v12062_v43, %v10338_v25  ;;  %v10266_v37 = vld [vmem:[%s15430_s2 + $0x198] sm:$0xf0]  ;;  %v6764_v25 = vperm.slane %v14542_v41, 0  ;;  %v11040_v33 = vld [vmem:[%s15434_s6 + $0x320] sm:$0xf] }
 0xb63   : > { %v10618_v43 = vld [vmem:[%s15430_s2 + $0x458] sm:$0xf0] }
 0xb64   : > { %6571 = vmatpush.bf16.msra.mxu0 %v10309_v23  ;;  %6584 = vmatpush.bf16.msrb.mxu2 %v10373_v5  ;;  %v10785_v23 = vor.u32 %v12175_v31, %v10784_v27  ;;  %v10458_v5 = vld [vmem:[%s15430_s2 + $0x318] sm:$0xf0]  ;;  %v14551_v40 = vpack.c.bf16 %v6764_v25, %v6764_v25  ;;  %v10621_v31 = vor.u32 %v12132_v52, %v10618_v43  ;;  %v6659_v52 = vld [vmem:[%s15431_s3 + $0x48] sm:$0xff] }
 0xb65   : > { %v10461_v29 = vor.u32 %v12092_v48, %v10458_v5  ;;  %v12112_v5 = vld [vmem:[%s15430_s2 + $0x3b4] sm:$0xf] }
 0xb66   : > { %6610 = vmatpush.bf16.msrb.mxu3 %v10501_v22  ;;  %8582 = vmatpush.bf16.msrb.mxu1 %v10817_v4  ;;  %v10258_v22 = vld [vmem:[%s15430_s2 + $0x188] sm:$0xf0] }
 0xb67   : > { %v10322_v4 = vld [vmem:[%s15430_s2 + $0x208] sm:$0xf0]  ;;  %v10261_v56 = vor.u32 %v12042_v45, %v10258_v22  ;;  %v6669_v22 = vld [vmem:[%s15431_s3 + $0x98] sm:$0xff] }
 0xb68   : > { %6572 = vmatpush.bf16.msra.mxu0 %v10301_v0  ;;  %6585 = vmatpush.bf16.msrb.mxu2 %v10365_v15  ;;  %v12136_v0 = vld [vmem:[%s15430_s2 + $0x474] sm:$0xf]  ;;  %v10634_v15 = vld [vmem:[%s15430_s2 + $0x478] sm:$0xf0]  ;;  %v6671_v45 = vld [vmem:[%s15431_s3 + $0xa8] sm:$0xff] }
 0xb69   : > { %v10637_v51 = vor.u32 %v12136_v0, %v10634_v15  ;;  %v12241_v0 = vld [vmem:[%s15434_s6 + $0x334] sm:$0xf0]  ;;  %v10530_v15 = vld [vmem:[%s15430_s2 + $0x3a8] sm:$0xf0] }
 0xb6a   : > { %6611 = vmatpush.bf16.msrb.mxu3 %v10493_v46  ;;  %8583 = vmatpush.bf16.msrb.mxu1 %v10809_v13  ;;  %v12171_v46 = vld [vmem:[%s15434_s6 + $0x104] sm:$0xf0]  ;;  %v10325_v13 = vor.u32 %v12058_v36, %v10322_v4  ;;  %v11057_v36 = vor.u32 %v12243_v17, %v11056_v1 }
 0xb6b   : > { %v12199_v17 = vld [vmem:[%s15434_s6 + $0x1e4] sm:$0xf0] }
 0xb6c   : > { %6573 = vmatpush.bf16.msra.mxu0 %v10293_v3  ;;  %6586 = vmatpush.bf16.msrb.mxu2 %v10357_v11  ;;  %v11080_v3 = vld [vmem:[%s15434_s6 + $0x370] sm:$0xf]  ;;  %v12249_v11 = vld [vmem:[%s15434_s6 + $0x374] sm:$0xf0] }
 0xb6d   : > { %v11081_v54 = vor.u32 %v12249_v11, %v11080_v3  ;;  %v12239_v3 = vld [vmem:[%s15434_s6 + $0x324] sm:$0xf0]  ;;  %v10522_v11 = vld [vmem:[%s15430_s2 + $0x398] sm:$0xf0] }
 0xb6e   : > { %6612 = vmatpush.bf16.msrb.mxu3 %v10485_v60  ;;  %8584 = vmatpush.bf16.msrb.mxu1 %v10801_v44  ;;  %v10769_v60 = vor.u32 %v12171_v46, %v10768_v2  ;;  %v12116_v44 = vld [vmem:[%s15430_s2 + $0x3d4] sm:$0xf]  ;;  %v6665_v2 = vld [vmem:[%s15431_s3 + $0x78] sm:$0xff] }
 0xb6f   : > { %6526 = vmatmul.bf16.vlgmr.msrb.gmra.mxu0 %v14498_v34  ;;  %6539 = vmatmul.bf16.vlgmr.msra.gmra.mxu2 %v14352_v14  ;;  %v12060_v14 = vld [vmem:[%s15430_s2 + $0x214] sm:$0xf]  ;;  %v10557_v27 = vor.u32 %v12116_v44, %v10554_v21  ;;  %v12106_v44 = vld [vmem:[%s15430_s2 + $0x384] sm:$0xf]  ;;  %v11032_v21 = vld [vmem:[%s15434_s6 + $0x310] sm:$0xf] }
 0xb70   : > { %6574 = vmatpush.bf16.msra.mxu0 %v10285_v38  ;;  %6587 = vmatpush.bf16.msrb.mxu2 %v10349_v35  ;;  %v10333_v18 = vor.u32 %v12060_v14, %v10330_v42  ;;  %v10629_v38 = vor.u32 %v12134_v19, %v10626_v28  ;;  %v12247_v35 = vld [vmem:[%s15434_s6 + $0x364] sm:$0xf0]  ;;  %v10610_v14 = vld [vmem:[%s15430_s2 + $0x448] sm:$0xf0]  ;;  %v6673_v42 = vld [vmem:[%s15431_s3 + $0xb8] sm:$0xff] }
 0xb71   : > { %6704 = vmatmul.f32.vlgmr.msra.gmra.mxu1 %v14455_v53  ;;  %6565 = vmatmul.bf16.vlgmr.msra.gmra.mxu3 %v14220_v55  ;;  %v10269_v55 = vor.u32 %v12044_v30, %v10266_v37  ;;  %v12245_v30 = vld [vmem:[%s15434_s6 + $0x354] sm:$0xf0]  ;;  %v12130_v37 = vld [vmem:[%s15430_s2 + $0x444] sm:$0xf]  ;;  %v6663_v19 = vld [vmem:[%s15431_s3 + $0x68] sm:$0xff] }
 0xb72   : > { %6613 = vmatpush.bf16.msrb.mxu3 %v10477_v20  ;;  %8585 = vmatpush.bf16.msrb.mxu1 %v10793_v8  ;;  %v6679_v20 = vld [vmem:[%s15431_s3 + $0xe8] sm:$0xff]  ;;  %v11073_v8 = vor.u32 %v12247_v35, %v11072_v62  ;;  %v6661_v28 = vld [vmem:[%s15431_s3 + $0x58] sm:$0xff] }
 0xb73   : > { %v12237_v62 = vld [vmem:[%s15434_s6 + $0x314] sm:$0xf0]  ;;  %v10578_v35 = vld [vmem:[%s15430_s2 + $0x408] sm:$0xf0] }
 0xb74   : > { %6575 = vmatpush.bf16.msra.mxu0 %v10277_v58  ;;  %6588 = vmatpush.bf16.msrb.mxu2 %v10341_v9  ;;  %v12114_v58 = vld [vmem:[%s15430_s2 + $0x3c4] sm:$0xf]  ;;  %v11064_v9 = vld [vmem:[%s15434_s6 + $0x350] sm:$0xf]  ;;  %v11033_v43 = vor.u32 %v12237_v62, %v11032_v21 }
 0xb76   : > { %6614 = vmatpush.bf16.msrb.mxu3 %v10469_v12  ;;  %8586 = vmatpush.bf16.msrb.mxu1 %v10785_v23  ;;  %v11065_v12 = vor.u32 %v12245_v30, %v11064_v9  ;;  %v10613_v23 = vor.u32 %v12130_v37, %v10610_v14  ;;  %v11336_v9 = vld [vmem:[%s15434_s6 + $0x570] sm:$0xf]  ;;  %v12313_v30 = vld [vmem:[%s15434_s6 + $0x574] sm:$0xf0] }
 0xb77   : > { %v10888_v37 = vld [vmem:[%s15434_s6 + $0x1f0] sm:$0xf]  ;;  %v12201_v14 = vld [vmem:[%s15434_s6 + $0x1f4] sm:$0xf0] }
 0xb78   : > { %6576 = vmatpush.bf16.msra.mxu0 %v10269_v55  ;;  %6589 = vmatpush.bf16.msrb.mxu2 %v10333_v18  ;;  %v12128_v55 = vld [vmem:[%s15430_s2 + $0x434] sm:$0xf]  ;;  %v10602_v18 = vld [vmem:[%s15430_s2 + $0x438] sm:$0xf0]  ;;  %v10889_v1 = vor.u32 %v12201_v14, %v10888_v37  ;;  %v12147_v37 = vld [vmem:[%s15434_s6 + $0x44] sm:$0xf0] }
 0xb79   : > { %v10605_v50 = vor.u32 %v12128_v55, %v10602_v18  ;;  %v11320_v55 = vld [vmem:[%s15434_s6 + $0x550] sm:$0xf]  ;;  %v14616_v18 = vld [vmem:[%s15435_s5] sm:$0x3]  ;;  %s15436_s5 = sld [smem:[#allocation30_spill]] }
 0xb7a   : > { %6615 = vmatpush.bf16.msrb.mxu3 %v10461_v29  ;;  %8587 = vmatpush.bf16.msrb.mxu1 %v10777_v26  ;;  %v11048_v29 = vld [vmem:[%s15434_s6 + $0x330] sm:$0xf]  ;;  %v10594_v26 = vld [vmem:[%s15430_s2 + $0x428] sm:$0xf0]  ;;  %v10736_v14 = vld [vmem:[%s15434_s6 + $0xc0] sm:$0xf] }
 0xb7b   : > { %v11049_v46 = vor.u32 %v12241_v0, %v11048_v29  ;;  %v12309_v29 = vld [vmem:[%s15434_s6 + $0x554] sm:$0xf0] }
 0xb7c   : > { %6577 = vmatpush.bf16.msra.mxu0 %v10261_v56  ;;  %6590 = vmatpush.bf16.msrb.mxu2 %v10325_v13  ;;  %v14579_v56 = vpop.f32.mrf.mxu1  ;;  %v10533_v13 = vor.u32 %v12110_v59, %v10530_v15  ;;  %v12153_v59 = vld [vmem:[%s15434_s6 + $0x74] sm:$0xf0] }
 0xb7e   : > { %6616 = vmatpush.bf16.msrb.mxu3 %v10453_v24  ;;  %8588 = vmatpush.bf16.msrb.mxu1 %v10769_v60  ;;  %v12124_v24 = vld [vmem:[%s15430_s2 + $0x414] sm:$0xf]  ;;  %v11041_v60 = vor.u32 %v12239_v3, %v11040_v33  ;;  %v10752_v33 = vld [vmem:[%s15434_s6 + $0xe0] sm:$0xf]  ;;  %v11321_v3 = vor.u32 %v12309_v29, %v11320_v55  ;;  %v12191_v55 = vld [vmem:[%s15434_s6 + $0x1a4] sm:$0xf0] }
 0xb7f   : > { %6591 = vmatmul.bf16.vlgmr.msrb.gmra.mxu2 %v14460_v7  ;;  %6578 = vmatmul.bf16.vlgmr.msra.gmra.mxu0 %v14371_v16  ;;  %v10546_v7 = vld [vmem:[%s15430_s2 + $0x3c8] sm:$0xf0]  ;;  %v11288_v29 = vld [vmem:[%s15434_s6 + $0x510] sm:$0xf] }
 0xb80   : > { %6622 = vmatpush.bf16.msrb.mxu0 %v10573_v61  ;;  %6635 = vmatpush.bf16.msra.mxu2 %v10637_v51  ;;  %v6675_v16 = vld [vmem:[%s15431_s3 + $0xc8] sm:$0xff]  ;;  %v10549_v48 = vor.u32 %v12114_v58, %v10546_v7  ;;  %v10597_v61 = vor.u32 %v12126_v10, %v10594_v26  ;;  %v12108_v51 = vld [vmem:[%s15430_s2 + $0x394] sm:$0xf]  ;;  %v6653_v7 = vld [vmem:[%s15431_s3 + $0x18] sm:$0xff] }
 0xb81   : > { %8589 = vmatmul.bf16.vlgmr.msrb.gmra.mxu1 %v14551_v40  ;;  %6617 = vmatmul.bf16.vlgmr.msrb.gmra.mxu3 %v14300_v6  ;;  %v10538_v6 = vld [vmem:[%s15430_s2 + $0x3b8] sm:$0xf0]  ;;  %v6655_v58 = vld [vmem:[%s15431_s3 + $0x28] sm:$0xff]  ;;  %v10760_v10 = vld [vmem:[%s15434_s6 + $0xf0] sm:$0xf] }
 0xb82   : > { %6708 = vmatpush.msra.mxu3 %v6681_v47  ;;  %8633 = vmatpush.bf16.msra.mxu1 %v11081_v54  ;;  %v10541_v4 = vor.u32 %v12112_v5, %v10538_v6  ;;  %v10525_v47 = vor.u32 %v12108_v51, %v10522_v11  ;;  %v10589_v54 = vor.u32 %v12124_v24, %v10586_v49  ;;  %v12311_v5 = vld [vmem:[%s15434_s6 + $0x564] sm:$0xf0]  ;;  %v14611_v6 = vld [vmem:[#allocation10 + $0x8] ss:$4 sm:$0x3] }
 0xb83   : > { %v12169_v26 = vld [vmem:[%s15434_s6 + $0xf4] sm:$0xf0]  ;;  %v12151_v51 = vld [vmem:[%s15434_s6 + $0x64] sm:$0xf0] }
 0xb84   : > { %6623 = vmatpush.bf16.msrb.mxu0 %v10565_v57  ;;  %6636 = vmatpush.bf16.msra.mxu2 %v10629_v38  ;;  %v10514_v57 = vld [vmem:[%s15430_s2 + $0x388] sm:$0xf0]  ;;  %v12122_v38 = vld [vmem:[%s15430_s2 + $0x404] sm:$0xf]  ;;  %v6451_v25 = vpop.f32.mrf.mxu1  ;;  %v12167_v49 = vld [vmem:[%s15434_s6 + $0xe4] sm:$0xf0]  ;;  %s9112_s2 = scalar_lea.hbm %s13055_s4, %s13078_s0 }
 0xb85   : > { %6709 = vmatpush.msra.mxu3 %v6679_v20  ;;  %v6657_v20 = vld [vmem:[%s15431_s3 + $0x38] sm:$0xff]  ;;  %s9116_s8 = sshll.u32 %s9112_s2, 4  ;;  %s12824_s0 = scalar_lea.hbm %s13055_s4, 2  ;;  %s9117_s8 = int_to_ptr.hbm [resolvable:$true] %s9116_s8 }
 0xb86   : > { %8634 = vmatpush.bf16.msra.mxu1 %v11073_v8  ;;  %v10581_v8 = vor.u32 %v12122_v38, %v10578_v35  ;;  %v12149_v38 = vld [vmem:[%s15434_s6 + $0x54] sm:$0xf0]  ;;  %v10744_v35 = vld [vmem:[%s15434_s6 + $0xd0] sm:$0xf] }
 0xb87   : > { %6710 = vmatpush.msra.mxu3 %v6677_v39  ;;  %v10517_v39 = vor.u32 %v12106_v44, %v10514_v57  ;;  %v12195_v44 = vld [vmem:[%s15434_s6 + $0x1c4] sm:$0xf0]  ;;  %v10680_v57 = vld [vmem:[%s15434_s6 + $0x50] sm:$0xf] }
 0xb88   : > { %6624 = vmatpush.bf16.msrb.mxu0 %v10557_v27  ;;  %6637 = vmatpush.bf16.msra.mxu2 %v10621_v31  ;;  %v11024_v27 = vld [vmem:[%s15434_s6 + $0x300] sm:$0xf]  ;;  %v12235_v31 = vld [vmem:[%s15434_s6 + $0x304] sm:$0xf0]  ;;  %v10681_v25 = vor.u32 %v12149_v38, %v10680_v57  ;;  %v12141_v57 = vld [vmem:[%s15434_s6 + $0x14] sm:$0xf0] }
 0xb89   : > { %6711 = vmatpush.msra.mxu3 %v6675_v16  ;;  %v11025_v16 = vor.u32 %v12235_v31, %v11024_v27  ;;  %v10712_v38 = vld [vmem:[%s15434_s6 + $0x90] sm:$0xf] }
 0xb8a   : > { %8635 = vmatpush.bf16.msra.mxu1 %v11065_v12  ;;  %v11337_v12 = vor.u32 %v12313_v30, %v11336_v9  ;;  %v12193_v9 = vld [vmem:[%s15434_s6 + $0x1b4] sm:$0xf0]  ;;  %v14651_v30 = vpop.f32.mrf.mxu3 }
 0xb8b   : > { %6712 = vmatpush.msra.mxu3 %v6673_v42  ;;  %v6651_v42 = vld [vmem:[%s15431_s3 + $0x8] sm:$0xff] }
 0xb8c   : > { %6625 = vmatpush.bf16.msrb.mxu0 %v10549_v48  ;;  %6638 = vmatpush.bf16.msra.mxu2 %v10613_v23  ;;  %v10880_v48 = vld [vmem:[%s15434_s6 + $0x1e0] sm:$0xf] }
 0xb8d   : > { %6713 = vmatpush.msra.mxu3 %v6671_v45  ;;  %v11328_v23 = vld [vmem:[%s15434_s6 + $0x560] sm:$0xf]  ;;  %v6423_v45 = vpop.f32.mrf.mxu0 }
 0xb8e   : > { %8636 = vmatpush.bf16.msra.mxu1 %v11057_v36  ;;  %v11329_v36 = vor.u32 %v12311_v5, %v11328_v23  ;;  %v12303_v23 = vld [vmem:[%s15434_s6 + $0x524] sm:$0xf0] }
 0xb8f   : > { %6714 = vmatpush.msra.mxu3 %v6669_v22  ;;  %v14618_v22 = vpop.f32.mrf.mxu1 }
 0xb90   : > { %6626 = vmatpush.bf16.msrb.mxu0 %v10541_v4  ;;  %6639 = vmatpush.bf16.msra.mxu2 %v10605_v50  ;;  %v6410_v4 = vperm.slane %v14616_v18, 0  ;;  %v6436_v50 = vpop.f32.mrf.mxu2 }
 0xb91   : > { %6715 = vmatpush.msra.mxu3 %v6667_v32  ;;  %v10881_v32 = vor.u32 %v12199_v17, %v10880_v48  ;;  %v11296_v48 = vld [vmem:[%s15434_s6 + $0x520] sm:$0xf] }
 0xb92   : > { %8637 = vmatpush.bf16.msra.mxu1 %v11049_v46  ;;  %v12197_v46 = vld [vmem:[%s15434_s6 + $0x1d4] sm:$0xf0]  ;;  %v10848_v17 = vld [vmem:[%s15434_s6 + $0x1a0] sm:$0xf] }
 0xb93   : > { %6716 = vmatpush.msra.mxu3 %v6665_v2  ;;  %v10872_v2 = vld [vmem:[%s15434_s6 + $0x1d0] sm:$0xf] }
 0xb94   : > { %6627 = vmatpush.bf16.msrb.mxu0 %v10533_v13  ;;  %6640 = vmatpush.bf16.msra.mxu2 %v10597_v61  ;;  %v6424_v13 = vadd.f32 %v6423_v45, %v6410_v4  ;;  %v10761_v61 = vor.u32 %v12169_v26, %v10760_v10  ;;  %v10728_v4 = vld [vmem:[%s15434_s6 + $0xb0] sm:$0xf]  ;;  %v10849_v26 = vor.u32 %v12191_v55, %v10848_v17  ;;  %v10704_v17 = vld [vmem:[%s15434_s6 + $0x80] sm:$0xf]  ;;  %v12155_v55 = vld [vmem:[%s15434_s6 + $0x84] sm:$0xf0] }
 0xb95   : > { %6717 = vmatpush.msra.mxu3 %v6663_v19  ;;  %v11312_v19 = vld [vmem:[%s15434_s6 + $0x540] sm:$0xf]  ;;  %v6425_v21 = vpop.f32.mrf.mxu0 }
 0xb96   : > { %8638 = vmatpush.bf16.msra.mxu1 %v11041_v60  ;;  %v14636_v11 = vadd.f32 %v6436_v50, %v6424_v13  ;;  %v10753_v60 = vor.u32 %v12167_v49, %v10752_v33  ;;  %v11297_v50 = vor.u32 %v12303_v23, %v11296_v48  ;;  %v12143_v13 = vld [vmem:[%s15434_s6 + $0x24] sm:$0xf0]  ;;  %v11280_v49 = vld [vmem:[%s15434_s6 + $0x500] sm:$0xf] }
 0xb97   : > { %6718 = vmatpush.msra.mxu3 %v6661_v28  ;;  %v12307_v28 = vld [vmem:[%s15434_s6 + $0x544] sm:$0xf0]  ;;  %v6503_v62 = vpop.f32.mrf.mxu1  ;;  %v10640_v48 = vld [vmem:[%s15434_s6] sm:$0xf] }
 0xb98   : > { %6628 = vmatpush.bf16.msrb.mxu0 %v10525_v47  ;;  %6641 = vmatpush.bf16.msra.mxu2 %v10589_v54  ;;  %v10873_v47 = vor.u32 %v12197_v46, %v10872_v2  ;;  %v10864_v54 = vld [vmem:[%s15434_s6 + $0x1c0] sm:$0xf]  ;;  %v12189_v2 = vld [vmem:[%s15434_s6 + $0x194] sm:$0xf0]  ;;  %v10648_v62 = vld [vmem:[%s15434_s6 + $0x10] sm:$0xf] }
 0xb99   : > { %6719 = vmatpush.msra.mxu3 %v6659_v52  ;;  %v11313_v52 = vor.u32 %v12307_v28, %v11312_v19  ;;  %v10865_v31 = vor.u32 %v12195_v44, %v10864_v54  ;;  %v10656_v46 = vld [vmem:[%s15434_s6 + $0x20] sm:$0xf]  ;;  %v12299_v19 = vld [vmem:[%s15434_s6 + $0x504] sm:$0xf0]  ;;  %v11592_v54 = vld [vmem:[%s15434_s6 + $0x770] sm:$0xf] }
 0xb9a   : > { %8639 = vmatpush.bf16.msra.mxu1 %v11033_v43  ;;  %v6438_v43 = vpop.f32.mrf.mxu2  ;;  %v10657_v33 = vor.u32 %v12143_v13, %v10656_v46  ;;  %v12377_v44 = vld [vmem:[%s15434_s6 + $0x774] sm:$0xf0]  ;;  %v10944_v46 = vld [vmem:[%s15434_s6 + $0x260] sm:$0xf] }
 0xb9b   : > { %6720 = vmatpush.msra.mxu3 %v6657_v20  ;;  %v12165_v20 = vld [vmem:[%s15434_s6 + $0xd4] sm:$0xf0]  ;;  %v11281_v43 = vor.u32 %v12299_v19, %v11280_v49 }
 0xb9c   : > { %6629 = vmatpush.bf16.msrb.mxu0 %v10517_v39  ;;  %6642 = vmatpush.bf16.msra.mxu2 %v10581_v8  ;;  %v11304_v39 = vld [vmem:[%s15434_s6 + $0x530] sm:$0xf]  ;;  %v12305_v8 = vld [vmem:[%s15434_s6 + $0x534] sm:$0xf0]  ;;  %v10745_v27 = vor.u32 %v12165_v20, %v10744_v35 }
 0xb9d   : > { %6721 = vmatpush.msra.mxu3 %v6655_v58  ;;  %v10856_v58 = vld [vmem:[%s15434_s6 + $0x1b0] sm:$0xf]  ;;  %v12157_v20 = vld [vmem:[%s15434_s6 + $0x94] sm:$0xf0] }
 0xb9e   : > { %8640 = vmatpush.bf16.msra.mxu1 %v11025_v16  ;;  %v11305_v16 = vor.u32 %v12305_v8, %v11304_v39  ;;  %v11144_v35 = vld [vmem:[%s15434_s6 + $0x3f0] sm:$0xf]  ;;  %v11593_v39 = vor.u32 %v12377_v44, %v11592_v54  ;;  %v10713_v8 = vor.u32 %v12157_v20, %v10712_v38  ;;  %v12213_v44 = vld [vmem:[%s15434_s6 + $0x254] sm:$0xf0] }
 0xb9f   : > { %6722 = vmatpush.msra.mxu3 %v6653_v7  ;;  %6630 = vmatmul.bf16.vlgmr.msrb.gmra.mxu0 %v14467_v63  ;;  %v6774_v63 = vperm.slane %v14611_v6, 0  ;;  %v10672_v7 = vld [vmem:[%s15434_s6 + $0x40] sm:$0xf]  ;;  %v14661_v45 = vpop.f32.mrf.mxu1  ;;  %v10936_v54 = vld [vmem:[%s15434_s6 + $0x250] sm:$0xf] }
 0xba0   : > { %6643 = vmatmul.bf16.vlgmr.msra.gmra.mxu2 %v14498_v34  ;;  %v10696_v34 = vld [vmem:[%s15434_s6 + $0x70] sm:$0xf]  ;;  %v10937_v38 = vor.u32 %v12213_v44, %v10936_v54  ;;  %v12257_v20 = vld [vmem:[%s15434_s6 + $0x3b4] sm:$0xf0] }
 0xba1   : > { %6723 = vmatpush.msra.mxu3 %v6651_v42  ;;  %v14626_v0 = vpack.c.bf16 %v6774_v63, %v6774_v63  ;;  %v10697_v15 = vor.u32 %v12153_v59, %v10696_v34  ;;  %8568 = vmatpush.bf16.msrb.mxu2 %v10761_v61  ;;  %v10673_v42 = vor.u32 %v12147_v37, %v10672_v7  ;;  %v10664_v63 = vld [vmem:[%s15434_s6 + $0x30] sm:$0xf]  ;;  %v12161_v59 = vld [vmem:[%s15434_s6 + $0xb4] sm:$0xf0]  ;;  %v10720_v61 = vld [vmem:[%s15434_s6 + $0xa0] sm:$0xf] }
 0xba2   : > { %8685 = vmatpush.bf16.msrb.mxu1 %v11337_v12  ;;  %6724 = vmatmul.f32.vlgmr.msra.gmra.mxu3 %v14455_v53  ;;  %v10688_v53 = vld [vmem:[%s15434_s6 + $0x60] sm:$0xf]  ;;  %v12163_v12 = vld [vmem:[%s15434_s6 + $0xc4] sm:$0xf0]  ;;  %v10729_v10 = vor.u32 %v12161_v59, %v10728_v4  ;;  %v10705_v4 = vor.u32 %v12155_v55, %v10704_v17  ;;  %v11016_v59 = vld [vmem:[%s15434_s6 + $0x2f0] sm:$0xf] }
 0xba3   : > { %8594 = vmatpush.bf16.msrb.mxu3 %v10889_v1  ;;  %8641 = vmatmul.bf16.vlgmr.msra.gmra.mxu1 %v14626_v0  ;;  %v10689_v24 = vor.u32 %v12151_v51, %v10688_v53  ;;  %v10737_v5 = vor.u32 %v12163_v12, %v10736_v14  ;;  %v10857_v1 = vor.u32 %v12193_v9, %v10856_v58  ;;  %v6464_v53 = vpop.f32.mrf.mxu3  ;;  %v11136_v58 = vld [vmem:[%s15434_s6 + $0x3e0] sm:$0xf]  ;;  %v12375_v7 = vld [vmem:[%s15434_s6 + $0x764] sm:$0xf0]  ;;  %v12373_v12 = vld [vmem:[%s15434_s6 + $0x754] sm:$0xf0] }
 0xba4   : > { %8555 = vmatpush.bf16.msra.mxu0 %v10697_v15  ;;  %v12301_v15 = vld [vmem:[%s15434_s6 + $0x514] sm:$0xf0]  ;;  %v11584_v9 = vld [vmem:[%s15434_s6 + $0x760] sm:$0xf]  ;;  %v12263_v14 = vld [vmem:[%s15434_s6 + $0x3e4] sm:$0xf0] }
 0xba5   : > { %8569 = vmatpush.bf16.msrb.mxu2 %v10753_v60  ;;  %v11289_v51 = vor.u32 %v12301_v15, %v11288_v29  ;;  %v11585_v23 = vor.u32 %v12375_v7, %v11584_v9  ;;  %v11137_v29 = vor.u32 %v12263_v14, %v11136_v58  ;;  %v11008_v53 = vld [vmem:[%s15434_s6 + $0x2e0] sm:$0xf]  ;;  %v12367_v9 = vld [vmem:[%s15434_s6 + $0x724] sm:$0xf0]  ;;  %v12225_v55 = vld [vmem:[%s15434_s6 + $0x2b4] sm:$0xf0] }
 0xba6   : > { %8686 = vmatpush.bf16.msrb.mxu1 %v11329_v36  ;;  %v12145_v36 = vld [vmem:[%s15434_s6 + $0x34] sm:$0xf0]  ;;  %v11552_v58 = vld [vmem:[%s15434_s6 + $0x720] sm:$0xf] }
 0xba7   : > { %8595 = vmatpush.bf16.msrb.mxu3 %v10881_v32  ;;  %v10665_v34 = vor.u32 %v12145_v36, %v10664_v63  ;;  %v10840_v32 = vld [vmem:[%s15434_s6 + $0x190] sm:$0xf]  ;;  %v6555_v21 = vpop.f32.mrf.mxu1  ;;  %v11553_v17 = vor.u32 %v12367_v9, %v11552_v58  ;;  %v12329_v54 = vld [vmem:[%s15434_s6 + $0x5f4] sm:$0xf0]  ;;  %v11392_v9 = vld [vmem:[%s15434_s6 + $0x5e0] sm:$0xf] }
 0xba8   : > { %8556 = vmatpush.bf16.msra.mxu0 %v10689_v24  ;;  %v10832_v24 = vld [vmem:[%s15434_s6 + $0x180] sm:$0xf]  ;;  %v10841_v60 = vor.u32 %v12189_v2, %v10840_v32  ;;  %v12261_v32 = vld [vmem:[%s15434_s6 + $0x3d4] sm:$0xf0]  ;;  %v11000_v21 = vld [vmem:[%s15434_s6 + $0x2d0] sm:$0xf] }
 0xba9   : > { %8570 = vmatpush.bf16.msrb.mxu2 %v10745_v27  ;;  %v6765_v27 = vperm.slane %v14542_v41, 1 }
 0xbaa   : > { %8687 = vmatpush.bf16.msrb.mxu1 %v11321_v3  ;;  %v12159_v3 = vld [vmem:[%s15434_s6 + $0xa4] sm:$0xf0] }
 0xbab   : > { %8596 = vmatpush.bf16.msrb.mxu3 %v10873_v47  ;;  %v10721_v28 = vor.u32 %v12159_v3, %v10720_v61  ;;  %v12187_v47 = vld [vmem:[%s15434_s6 + $0x184] sm:$0xf0] }
 0xbac   : > { %8557 = vmatpush.bf16.msra.mxu0 %v10681_v25  ;;  %v10649_v25 = vor.u32 %v12141_v57, %v10648_v62  ;;  %v12215_v61 = vld [vmem:[%s15434_s6 + $0x264] sm:$0xf0]  ;;  %v11560_v62 = vld [vmem:[%s15434_s6 + $0x730] sm:$0xf]  ;;  %v12369_v57 = vld [vmem:[%s15434_s6 + $0x734] sm:$0xf0] }
 0xbad   : > { %8571 = vmatpush.bf16.msrb.mxu2 %v10737_v5  ;;  %v14698_v5 = vpack.c.bf16 %v6765_v27, %v6765_v27  ;;  %v12371_v3 = vld [vmem:[%s15434_s6 + $0x744] sm:$0xf0] }
 0xbae   : > { %8688 = vmatpush.bf16.msrb.mxu1 %v11313_v52  ;;  %v12265_v52 = vld [vmem:[%s15434_s6 + $0x3f4] sm:$0xf0]  ;;  %v12211_v27 = vld [vmem:[%s15434_s6 + $0x244] sm:$0xf0] }
 0xbaf   : > { %8597 = vmatpush.bf16.msrb.mxu3 %v10865_v31  ;;  %v10833_v31 = vor.u32 %v12187_v47, %v10832_v24  ;;  %v11145_v37 = vor.u32 %v12265_v52, %v11144_v35  ;;  %v10945_v24 = vor.u32 %v12215_v61, %v10944_v46  ;;  %v12229_v35 = vld [vmem:[%s15434_s6 + $0x2d4] sm:$0xf0]  ;;  %v10976_v46 = vld [vmem:[%s15434_s6 + $0x2a0] sm:$0xf] }
 0xbb0   : > { %8558 = vmatpush.bf16.msra.mxu0 %v10673_v42  ;;  %v11576_v42 = vld [vmem:[%s15434_s6 + $0x750] sm:$0xf]  ;;  %v11536_v61 = vld [vmem:[%s15434_s6 + $0x700] sm:$0xf] }
 0xbb1   : > { %8572 = vmatpush.bf16.msrb.mxu2 %v10729_v10  ;;  %v12233_v10 = vld [vmem:[%s15434_s6 + $0x2f4] sm:$0xf0]  ;;  %v11577_v13 = vor.u32 %v12373_v12, %v11576_v42  ;;  %v11104_v42 = vld [vmem:[%s15434_s6 + $0x3a0] sm:$0xf]  ;;  %v12255_v12 = vld [vmem:[%s15434_s6 + $0x3a4] sm:$0xf0] }
 0xbb2   : > { %8689 = vmatpush.bf16.msrb.mxu1 %v11305_v16  ;;  %v14692_v16 = vld [vmem:[#allocation10 + $0xa] ss:$4 sm:$0x3]  ;;  %v11017_v2 = vor.u32 %v12233_v10, %v11016_v59  ;;  %v6743_v10 = vld [vmem:[#allocation10] ss:$4 sm:$0x3] }
 0xbb3   : > { %8598 = vmatpush.bf16.msrb.mxu3 %v10857_v1  ;;  %v6784_v41 = vperm.slane %v14692_v16, 0  ;;  %v12139_v1 = vld [vmem:[%s15434_s6 + $0x4] sm:$0xf0]  ;;  %v11096_v59 = vld [vmem:[%s15434_s6 + $0x390] sm:$0xf] }
 0xbb4   : > { %8559 = vmatpush.bf16.msra.mxu0 %v10665_v34  ;;  %v10641_v36 = vor.u32 %v12139_v1, %v10640_v48  ;;  %v12217_v34 = vld [vmem:[%s15434_s6 + $0x274] sm:$0xf0]  ;;  %v10920_v48 = vld [vmem:[%s15434_s6 + $0x230] sm:$0xf] }
 0xbb5   : > { %8573 = vmatpush.bf16.msrb.mxu2 %v10721_v28  ;;  %v14703_v63 = vpack.c.bf16 %v6784_v41, %v6784_v41  ;;  %v11120_v28 = vld [vmem:[%s15434_s6 + $0x3c0] sm:$0xf]  ;;  %v10984_v1 = vld [vmem:[%s15434_s6 + $0x2b0] sm:$0xf] }
 0xbb6   : > { %8690 = vmatpush.bf16.msrb.mxu1 %v11297_v50  ;;  %v10952_v50 = vld [vmem:[%s15434_s6 + $0x270] sm:$0xf] }
 0xbb7   : > { %8599 = vmatpush.bf16.msrb.mxu3 %v10849_v26  ;;  %v10953_v15 = vor.u32 %v12217_v34, %v10952_v50  ;;  %v11128_v26 = vld [vmem:[%s15434_s6 + $0x3d0] sm:$0xf]  ;;  %v11105_v34 = vor.u32 %v12255_v12, %v11104_v42  ;;  %v14773_v12 = vld [vmem:[#allocation10 + $0x11] ss:$4 sm:$0x3] }
 0xbb8   : > { %8560 = vmatpush.bf16.msra.mxu0 %v10657_v33  ;;  %v11568_v33 = vld [vmem:[%s15434_s6 + $0x740] sm:$0xf]  ;;  %v11129_v49 = vor.u32 %v12261_v32, %v11128_v26 }
 0xbb9   : > { %8574 = vmatpush.bf16.msrb.mxu2 %v10713_v8  ;;  %v11569_v47 = vor.u32 %v12371_v3, %v11568_v33  ;;  %v10928_v8 = vld [vmem:[%s15434_s6 + $0x240] sm:$0xf]  ;;  %v12223_v33 = vld [vmem:[%s15434_s6 + $0x2a4] sm:$0xf0] }
 0xbba   : > { %8691 = vmatpush.bf16.msrb.mxu1 %v11289_v51  ;;  %v12231_v51 = vld [vmem:[%s15434_s6 + $0x2e4] sm:$0xf0]  ;;  %v10929_v7 = vor.u32 %v12211_v27, %v10928_v8  ;;  %v10912_v32 = vld [vmem:[%s15434_s6 + $0x220] sm:$0xf]  ;;  %v6759_v27 = vperm.slane %v6743_v10, 0 }
 0xbbb   : > { %8600 = vmatpush.bf16.msrb.mxu3 %v10841_v60  ;;  %v11009_v19 = vor.u32 %v12231_v51, %v11008_v53  ;;  %v12259_v60 = vld [vmem:[%s15434_s6 + $0x3c4] sm:$0xf0] }
 0xbbc   : > { %8561 = vmatpush.bf16.msra.mxu0 %v10649_v25  ;;  %v11121_v52 = vor.u32 %v12259_v60, %v11120_v28  ;;  %v11112_v25 = vld [vmem:[%s15434_s6 + $0x3b0] sm:$0xf]  ;;  %v12363_v53 = vld [vmem:[%s15434_s6 + $0x704] sm:$0xf0]  ;;  %v6760_v28 = vperm.slane %v6743_v10, 1  ;;  %v14771_v42 = vpack.c.bf16 %v6759_v27, %v6759_v27 }
 0xbbd   : > { %8575 = vmatpush.bf16.msrb.mxu2 %v10705_v4  ;;  %v11113_v14 = vor.u32 %v12257_v20, %v11112_v25  ;;  %v12365_v4 = vld [vmem:[%s15434_s6 + $0x714] sm:$0xf0]  ;;  %v12251_v60 = vld [vmem:[%s15434_s6 + $0x384] sm:$0xf0]  ;;  %v11537_v44 = vor.u32 %v12363_v53, %v11536_v61  ;;  %v12150_v20 = vld [vmem:[%s15434_s6 + $0x64] sm:$0xf] }
 0xbbe   : > { %8692 = vmatpush.bf16.msrb.mxu1 %v11281_v43  ;;  %v11001_v43 = vor.u32 %v12229_v35, %v11000_v21  ;;  %v14757_v21 = vpack.c.bf16 %v6760_v28, %v6760_v28  ;;  %v12297_v10 = vld [vmem:[%s15434_s6 + $0x4f4] sm:$0xf0]  ;;  %v12146_v53 = vld [vmem:[%s15434_s6 + $0x44] sm:$0xf] }
 0xbbf   : > { %8601 = vmatpush.bf16.msrb.mxu3 %v10833_v31  ;;  %v10992_v31 = vld [vmem:[%s15434_s6 + $0x2c0] sm:$0xf] }
 0xbc0   : > { %8562 = vmatpush.bf16.msra.mxu0 %v10641_v36  ;;  %v11544_v36 = vld [vmem:[%s15434_s6 + $0x710] sm:$0xf]  ;;  %8576 = vmatmul.bf16.vlgmr.msrb.gmra.mxu2 %v14757_v21 }
 0xbc1   : > { %8693 = vmatmul.bf16.vlgmr.msrb.gmra.mxu1 %v14703_v63  ;;  %8620 = vmatpush.bf16.msra.mxu2 %v11017_v2  ;;  %v11545_v26 = vor.u32 %v12365_v4, %v11544_v36  ;;  %v12207_v2 = vld [vmem:[%s15434_s6 + $0x224] sm:$0xf0]  ;;  %v11208_v4 = vld [vmem:[%s15434_s6 + $0x470] sm:$0xf] }
 0xbc2   : > { %8737 = vmatpush.bf16.msra.mxu1 %v11593_v39  ;;  %8602 = vmatmul.bf16.vlgmr.msrb.gmra.mxu3 %v14698_v5  ;;  %v11561_v39 = vor.u32 %v12369_v57, %v11560_v62  ;;  %v10913_v51 = vor.u32 %v12207_v2, %v10912_v32  ;;  %v10904_v62 = vld [vmem:[%s15434_s6 + $0x210] sm:$0xf]  ;;  %v12205_v57 = vld [vmem:[%s15434_s6 + $0x214] sm:$0xf0]  ;;  %v12219_v36 = vld [vmem:[%s15434_s6 + $0x284] sm:$0xf0] }
 0xbc3   : > { %8646 = vmatpush.bf16.msra.mxu3 %v11145_v37  ;;  %v12227_v37 = vld [vmem:[%s15434_s6 + $0x2c4] sm:$0xf0]  ;;  %8563 = vmatmul.bf16.vlgmr.msra.gmra.mxu0 %v14771_v42  ;;  %v12325_v32 = vld [vmem:[%s15434_s6 + $0x5d4] sm:$0xf0] }
 0xbc4   : > { %8607 = vmatpush.bf16.msrb.mxu0 %v10953_v15  ;;  %v10993_v41 = vor.u32 %v12227_v37, %v10992_v31  ;;  %v12253_v15 = vld [vmem:[%s15434_s6 + $0x394] sm:$0xf0]  ;;  %v6775_v31 = vperm.slane %v14611_v6, 1  ;;  %v12148_v37 = vld [vmem:[%s15434_s6 + $0x54] sm:$0xf] }
 0xbc5   : > { %8621 = vmatpush.bf16.msra.mxu2 %v11009_v19  ;;  %v11097_v3 = vor.u32 %v12253_v15, %v11096_v59  ;;  %v10977_v19 = vor.u32 %v12223_v33, %v10976_v46  ;;  %v11272_v15 = vld [vmem:[%s15434_s6 + $0x4f0] sm:$0xf]  ;;  %v12279_v33 = vld [vmem:[%s15434_s6 + $0x464] sm:$0xf0] }
 0xbc6   : > { %8738 = vmatpush.bf16.msra.mxu1 %v11585_v23  ;;  %v12209_v23 = vld [vmem:[%s15434_s6 + $0x234] sm:$0xf0]  ;;  %v14775_v6 = vpack.c.bf16 %v6775_v31, %v6775_v31  ;;  %v11273_v46 = vor.u32 %v12297_v10, %v11272_v15  ;;  %v11368_v31 = vld [vmem:[%s15434_s6 + $0x5b0] sm:$0xf]  ;;  %v11360_v10 = vld [vmem:[%s15434_s6 + $0x5a0] sm:$0xf] }
 0xbc7   : > { %8647 = vmatpush.bf16.msra.mxu3 %v11137_v29  ;;  %v10921_v50 = vor.u32 %v12209_v23, %v10920_v48  ;;  %v10985_v29 = vor.u32 %v12225_v55, %v10984_v1  ;;  %v6794_v48 = vperm.slane %v14773_v12, 0  ;;  %v10896_v23 = vld [vmem:[%s15434_s6 + $0x200] sm:$0xf]  ;;  %v12203_v1 = vld [vmem:[%s15434_s6 + $0x204] sm:$0xf0] }
 0xbc8   : > { %8608 = vmatpush.bf16.msrb.mxu0 %v10945_v24  ;;  %v12152_v24 = vld [vmem:[%s15434_s6 + $0x74] sm:$0xf]  ;;  %v10960_v55 = vld [vmem:[%s15434_s6 + $0x280] sm:$0xf] }
 0xbc9   : > { %8622 = vmatpush.bf16.msra.mxu2 %v11001_v43  ;;  %v12221_v43 = vld [vmem:[%s15434_s6 + $0x294] sm:$0xf0]  ;;  %v10961_v59 = vor.u32 %v12219_v36, %v10960_v55  ;;  %v11248_v55 = vld [vmem:[%s15434_s6 + $0x4c0] sm:$0xf]  ;;  %v12291_v36 = vld [vmem:[%s15434_s6 + $0x4c4] sm:$0xf0] }
 0xbca   : > { %8739 = vmatpush.bf16.msra.mxu1 %v11577_v13  ;;  %v11088_v13 = vld [vmem:[%s15434_s6 + $0x380] sm:$0xf] }
 0xbcb   : > { %8648 = vmatpush.bf16.msra.mxu3 %v11129_v49  ;;  %v10698_v49 = vld [vmem:[%s15434_s6 + $0x78] sm:$0xf0]  ;;  %v11089_v25 = vor.u32 %v12251_v60, %v11088_v13  ;;  %v11376_v60 = vld [vmem:[%s15434_s6 + $0x5c0] sm:$0xf] }
 0xbcc   : > { %8609 = vmatpush.bf16.msrb.mxu0 %v10937_v38  ;;  %v10968_v38 = vld [vmem:[%s15434_s6 + $0x290] sm:$0xf]  ;;  %v10701_v35 = vor.u32 %v12152_v24, %v10698_v49  ;;  %v11264_v24 = vld [vmem:[%s15434_s6 + $0x4e0] sm:$0xf]  ;;  %v12295_v49 = vld [vmem:[%s15434_s6 + $0x4e4] sm:$0xf0] }
 0xbcd   : > { %8623 = vmatpush.bf16.msra.mxu2 %v10993_v41  ;;  %v10969_v8 = vor.u32 %v12221_v43, %v10968_v38  ;;  %v11256_v43 = vld [vmem:[%s15434_s6 + $0x4d0] sm:$0xf] }
 0xbce   : > { %8740 = vmatpush.bf16.msra.mxu1 %v11569_v47  ;;  %v11400_v47 = vld [vmem:[%s15434_s6 + $0x5f0] sm:$0xf] }
 0xbcf   : > { %8649 = vmatpush.bf16.msra.mxu3 %v11121_v52  ;;  %v10905_v52 = vor.u32 %v12205_v57, %v10904_v62  ;;  %v11401_v58 = vor.u32 %v12329_v54, %v11400_v47  ;;  %v12323_v47 = vld [vmem:[%s15434_s6 + $0x5c4] sm:$0xf0]  ;;  %v11192_v57 = vld [vmem:[%s15434_s6 + $0x450] sm:$0xf] }
 0xbd0   : > { %8610 = vmatpush.bf16.msrb.mxu0 %v10929_v7  ;;  %v12327_v7 = vld [vmem:[%s15434_s6 + $0x5e4] sm:$0xf0]  ;;  %v11377_v27 = vor.u32 %v12323_v47, %v11376_v60  ;;  %v11352_v60 = vld [vmem:[%s15434_s6 + $0x590] sm:$0xf]  ;;  %v12317_v47 = vld [vmem:[%s15434_s6 + $0x594] sm:$0xf0] }
 0xbd1   : > { %8624 = vmatpush.bf16.msra.mxu2 %v10985_v29  ;;  %v12281_v29 = vld [vmem:[%s15434_s6 + $0x474] sm:$0xf0]  ;;  %v6747_v62 = vld [vmem:[#allocation10 + $0x2] ss:$4 sm:$0x3] }
 0xbd2   : > { %8741 = vmatpush.bf16.msra.mxu1 %v11561_v39  ;;  %v10690_v39 = vld [vmem:[%s15434_s6 + $0x68] sm:$0xf0]  ;;  %v11209_v2 = vor.u32 %v12281_v29, %v11208_v4  ;;  %v12142_v4 = vld [vmem:[%s15434_s6 + $0x24] sm:$0xf] }
 0xbd3   : > { %8650 = vmatpush.bf16.msra.mxu3 %v11113_v14  ;;  %v10682_v14 = vld [vmem:[%s15434_s6 + $0x58] sm:$0xf0]  ;;  %v10693_v41 = vor.u32 %v12150_v20, %v10690_v39  ;;  %v12293_v39 = vld [vmem:[%s15434_s6 + $0x4d4] sm:$0xf0] }
 0xbd4   : > { %8611 = vmatpush.bf16.msrb.mxu0 %v10921_v50  ;;  %v11393_v50 = vor.u32 %v12327_v7, %v11392_v9  ;;  %v10685_v61 = vor.u32 %v12148_v37, %v10682_v14  ;;  %v10666_v20 = vld [vmem:[%s15434_s6 + $0x38] sm:$0xf0]  ;;  %v12321_v9 = vld [vmem:[%s15434_s6 + $0x5b4] sm:$0xf0]  ;;  %v11257_v37 = vor.u32 %v12293_v39, %v11256_v43  ;;  %v6769_v14 = vperm.slane %v6747_v62, 0 }
 0xbd5   : > { %8625 = vmatpush.bf16.msra.mxu2 %v10977_v19  ;;  %v11369_v29 = vor.u32 %v12321_v9, %v11368_v31  ;;  %v11232_v43 = vld [vmem:[%s15434_s6 + $0x4a0] sm:$0xf]  ;;  %v10642_v39 = vld [vmem:[%s15434_s6 + $0x8] sm:$0xf0]  ;;  %v12216_v31 = vld [vmem:[%s15434_s6 + $0x274] sm:$0xf] }
 0xbd6   : > { %8742 = vmatpush.bf16.msra.mxu1 %v11553_v17  ;;  %v10897_v17 = vor.u32 %v12203_v1, %v10896_v23  ;;  %v14826_v15 = vpack.c.bf16 %v6769_v14, %v6769_v14  ;;  %v10954_v9 = vld [vmem:[%s15434_s6 + $0x278] sm:$0xf0]  ;;  %v11656_v14 = vld [vmem:[%s15434_s6 + $0x7f0] sm:$0xf] }
 0xbd7   : > { %8651 = vmatpush.bf16.msra.mxu3 %v11105_v34  ;;  %v14784_v34 = vpack.c.bf16 %v6794_v48, %v6794_v48 }
 0xbd8   : > { %8612 = vmatpush.bf16.msrb.mxu0 %v10913_v51  ;;  %v11200_v51 = vld [vmem:[%s15434_s6 + $0x460] sm:$0xf] }
 0xbd9   : > { %8626 = vmatpush.bf16.msra.mxu2 %v10969_v8  ;;  %v11201_v54 = vor.u32 %v12279_v33, %v11200_v51  ;;  %v11240_v51 = vld [vmem:[%s15434_s6 + $0x4b0] sm:$0xf]  ;;  %v12289_v33 = vld [vmem:[%s15434_s6 + $0x4b4] sm:$0xf0] }
 0xbda   : > { %8743 = vmatpush.bf16.msra.mxu1 %v11545_v26  ;;  %v11384_v26 = vld [vmem:[%s15434_s6 + $0x5d0] sm:$0xf] }
 0xbdb   : > { %8652 = vmatpush.bf16.msra.mxu3 %v11097_v3  ;;  %v10674_v3 = vld [vmem:[%s15434_s6 + $0x48] sm:$0xf0]  ;;  %v11385_v28 = vor.u32 %v12325_v32, %v11384_v26  ;;  %v12319_v26 = vld [vmem:[%s15434_s6 + $0x5a4] sm:$0xf0] }
 0xbdc   : > { %8613 = vmatpush.bf16.msrb.mxu0 %v10905_v52  ;;  %v14791_v13 = vpop.f32.mrf.mxu0  ;;  %v10677_v38 = vor.u32 %v12146_v53, %v10674_v3  ;;  %v12277_v52 = vld [vmem:[%s15434_s6 + $0x454] sm:$0xf0]  ;;  %v12140_v3 = vld [vmem:[%s15434_s6 + $0x14] sm:$0xf] }
 0xbdd   : > { %8627 = vmatpush.bf16.msra.mxu2 %v10961_v59  ;;  %v11193_v7 = vor.u32 %v12277_v52, %v11192_v57  ;;  %v12273_v53 = vld [vmem:[%s15434_s6 + $0x434] sm:$0xf0]  ;;  %v12271_v52 = vld [vmem:[%s15434_s6 + $0x424] sm:$0xf0] }
 0xbde   : > { %8744 = vmatpush.bf16.msra.mxu1 %v11537_v44  ;;  %v14801_v19 = vpop.f32.mrf.mxu1  ;;  %v11265_v44 = vor.u32 %v12295_v49, %v11264_v24  ;;  %v10650_v24 = vld [vmem:[%s15434_s6 + $0x18] sm:$0xf0] }
 0xbdf   : > { %8653 = vmatpush.bf16.msra.mxu3 %v11089_v25  ;;  %v12144_v25 = vld [vmem:[%s15434_s6 + $0x34] sm:$0xf] }
 0xbe0   : > { %8614 = vmatpush.bf16.msrb.mxu0 %v10897_v17  ;;  %v10669_v1 = vor.u32 %v12144_v25, %v10666_v20  ;;  %v12275_v17 = vld [vmem:[%s15434_s6 + $0x444] sm:$0xf0]  ;;  %v12138_v20 = vld [vmem:[%s15434_s6 + $0x4] sm:$0xf] }
 0xbe1   : > { %8745 = vmatmul.bf16.vlgmr.msra.gmra.mxu1 %v14784_v34  ;;  %8672 = vmatpush.bf16.msrb.mxu2 %v11273_v46  ;;  %v11176_v46 = vld [vmem:[%s15434_s6 + $0x430] sm:$0xf]  ;;  %v12287_v25 = vld [vmem:[%s15434_s6 + $0x4a4] sm:$0xf0] }
 0xbe2   : > { %8789 = vmatpush.bf16.msrb.mxu1 %v10701_v35  ;;  %8654 = vmatmul.bf16.vlgmr.msra.gmra.mxu3 %v14775_v6  ;;  %v6770_v35 = vperm.slane %v6747_v62, 1  ;;  %v14811_v8 = vpop.f32.mrf.mxu2  ;;  %v11168_v62 = vld [vmem:[%s15434_s6 + $0x420] sm:$0xf] }
 0xbe3   : > { %8698 = vmatpush.bf16.msrb.mxu3 %v11401_v58  ;;  %8615 = vmatmul.bf16.vlgmr.msrb.gmra.mxu0 %v14826_v15 }
 0xbe4   : > { %8659 = vmatpush.bf16.msra.mxu0 %v11209_v2  ;;  %v14814_v58 = vpack.c.bf16 %v6770_v35, %v6770_v35  ;;  %v6477_v48 = vpop.f32.mrf.mxu0  ;;  %v14818_v23 = vpop.f32.mrf.mxu3  ;;  %v11249_v2 = vor.u32 %v12291_v36, %v11248_v55  ;;  %v10653_v35 = vor.u32 %v12140_v3, %v10650_v24  ;;  %v11160_v55 = vld [vmem:[%s15434_s6 + $0x410] sm:$0xf]  ;;  %v12269_v36 = vld [vmem:[%s15434_s6 + $0x414] sm:$0xf0]  ;;  %v12212_v3 = vld [vmem:[%s15434_s6 + $0x254] sm:$0xf] }
 0xbe5   : > { %8673 = vmatpush.bf16.msrb.mxu2 %v11265_v44  ;;  %v11241_v44 = vor.u32 %v12289_v33, %v11240_v51  ;;  %v11233_v48 = vor.u32 %v12287_v25, %v11232_v43  ;;  %v11161_v51 = vor.u32 %v12269_v36, %v11160_v55  ;;  %v12361_v43 = vld [vmem:[%s15434_s6 + $0x6f4] sm:$0xf0]  ;;  %v11520_v55 = vld [vmem:[%s15434_s6 + $0x6e0] sm:$0xf]  ;;  %v12359_v36 = vld [vmem:[%s15434_s6 + $0x6e4] sm:$0xf0] }
 0xbe6   : > { %8790 = vmatpush.bf16.msrb.mxu1 %v10693_v41  ;;  %v11184_v41 = vld [vmem:[%s15434_s6 + $0x440] sm:$0xf]  ;;  %v6607_v59 = vpop.f32.mrf.mxu1  ;;  %8628 = vmatmul.bf16.vlgmr.msra.gmra.mxu2 %v14814_v58 }
 0xbe7   : > { %8699 = vmatpush.bf16.msrb.mxu3 %v11393_v50  ;;  %v10658_v50 = vld [vmem:[%s15434_s6 + $0x28] sm:$0xf0]  ;;  %v11185_v32 = vor.u32 %v12275_v17, %v11184_v41  ;;  %v11169_v41 = vor.u32 %v12271_v52, %v11168_v62  ;;  %v10645_v17 = vor.u32 %v12138_v20, %v10642_v39  ;;  %v12285_v59 = vld [vmem:[%s15434_s6 + $0x494] sm:$0xf0]  ;;  %v11464_v62 = vld [vmem:[%s15434_s6 + $0x670] sm:$0xf] }
 0xbe8   : > { %8660 = vmatpush.bf16.msra.mxu0 %v11201_v54  ;;  %v11177_v54 = vor.u32 %v12273_v53, %v11176_v46  ;;  %v12391_v53 = vld [vmem:[%s15434_s6 + $0x7e4] sm:$0xf0]  ;;  %v11528_v52 = vld [vmem:[%s15434_s6 + $0x6f0] sm:$0xf] }
 0xbe9   : > { %8674 = vmatpush.bf16.msrb.mxu2 %v11257_v37  ;;  %v12315_v37 = vld [vmem:[%s15434_s6 + $0x584] sm:$0xf0]  ;;  %v11640_v39 = vld [vmem:[%s15434_s6 + $0x7d0] sm:$0xf] }
 0xbea   : > { %8791 = vmatpush.bf16.msrb.mxu1 %v10685_v61  ;;  %v10661_v61 = vor.u32 %v12142_v4, %v10658_v50  ;;  %v6490_v49 = vpop.f32.mrf.mxu2  ;;  %v10957_v4 = vor.u32 %v12216_v31, %v10954_v9  ;;  %v11224_v50 = vld [vmem:[%s15434_s6 + $0x490] sm:$0xf] }
 0xbeb   : > { %8700 = vmatpush.bf16.msrb.mxu3 %v11385_v28  ;;  %v11361_v28 = vor.u32 %v12319_v26, %v11360_v10  ;;  %v11225_v24 = vor.u32 %v12285_v59, %v11224_v50  ;;  %v11152_v49 = vld [vmem:[%s15434_s6 + $0x400] sm:$0xf]  ;;  %v12387_v59 = vld [vmem:[%s15434_s6 + $0x7c4] sm:$0xf0] }
 0xbec   : > { %8661 = vmatpush.bf16.msra.mxu0 %v11193_v7  ;;  %v6516_v57 = vpop.f32.mrf.mxu3  ;;  %v11344_v7 = vld [vmem:[%s15434_s6 + $0x580] sm:$0xf] }
 0xbed   : > { %8675 = vmatpush.bf16.msrb.mxu2 %v11249_v2  ;;  %v11345_v26 = vor.u32 %v12315_v37, %v11344_v7  ;;  %v10946_v2 = vld [vmem:[%s15434_s6 + $0x268] sm:$0xf0]  ;;  %v12345_v57 = vld [vmem:[%s15434_s6 + $0x674] sm:$0xf0]  ;;  %v12210_v37 = vld [vmem:[%s15434_s6 + $0x244] sm:$0xf] }
 0xbee   : > { %8792 = vmatpush.bf16.msrb.mxu1 %v10677_v38  ;;  %v14840_v38 = vpop.f32.mrf.mxu0  ;;  %v11465_v9 = vor.u32 %v12345_v57, %v11464_v62  ;;  %v11632_v50 = vld [vmem:[%s15434_s6 + $0x7c0] sm:$0xf]  ;;  %v12206_v62 = vld [vmem:[%s15434_s6 + $0x224] sm:$0xf] }
 0xbef   : > { %8701 = vmatpush.bf16.msrb.mxu3 %v11377_v27  ;;  %v11353_v27 = vor.u32 %v12317_v47, %v11352_v60  ;;  %v11216_v60 = vld [vmem:[%s15434_s6 + $0x480] sm:$0xf] }
 0xbf0   : > { %8662 = vmatpush.bf16.msra.mxu0 %v11185_v32  ;;  %v12214_v32 = vld [vmem:[%s15434_s6 + $0x264] sm:$0xf] }
 0xbf1   : > { %8676 = vmatpush.bf16.msrb.mxu2 %v11241_v44  ;;  %v10949_v47 = vor.u32 %v12214_v32, %v10946_v2  ;;  %v12283_v44 = vld [vmem:[%s15434_s6 + $0x484] sm:$0xf0]  ;;  %v12208_v2 = vld [vmem:[%s15434_s6 + $0x234] sm:$0xf] }
 0xbf2   : > { %8793 = vmatpush.bf16.msrb.mxu1 %v10669_v1  ;;  %v12393_v1 = vld [vmem:[%s15434_s6 + $0x7f4] sm:$0xf0]  ;;  %v14858_v10 = vpop.f32.mrf.mxu2  ;;  %v11217_v31 = vor.u32 %v12283_v44, %v11216_v60 }
 0xbf3   : > { %8702 = vmatpush.bf16.msrb.mxu3 %v11369_v29  ;;  %v6785_v29 = vperm.slane %v14692_v16, 1  ;;  %v11657_v46 = vor.u32 %v12393_v1, %v11656_v14  ;;  %v11529_v14 = vor.u32 %v12361_v43, %v11528_v52  ;;  %v12385_v60 = vld [vmem:[%s15434_s6 + $0x7b4] sm:$0xf0]  ;;  %v12339_v52 = vld [vmem:[%s15434_s6 + $0x644] sm:$0xf0] }
 0xbf4   : > { %8663 = vmatpush.bf16.msra.mxu0 %v11177_v54  ;;  %v14864_v33 = vpop.f32.mrf.mxu3 }
 0xbf5   : > { %8677 = vmatpush.bf16.msrb.mxu2 %v11233_v48  ;;  %v14870_v54 = vpack.c.bf16 %v6785_v29, %v6785_v29  ;;  %v12343_v48 = vld [vmem:[%s15434_s6 + $0x664] sm:$0xf0] }
 0xbf6   : > { %8794 = vmatpush.bf16.msrb.mxu1 %v10661_v61  ;;  %v11648_v61 = vld [vmem:[%s15434_s6 + $0x7e0] sm:$0xf]  ;;  %v6529_v16 = vpop.f32.mrf.mxu0 }
 0xbf7   : > { %8703 = vmatpush.bf16.msrb.mxu3 %v11361_v28  ;;  %v12267_v28 = vld [vmem:[%s15434_s6 + $0x404] sm:$0xf0]  ;;  %v11649_v25 = vor.u32 %v12391_v53, %v11648_v61  ;;  %v11448_v61 = vld [vmem:[%s15434_s6 + $0x650] sm:$0xf]  ;;  %v12341_v53 = vld [vmem:[%s15434_s6 + $0x654] sm:$0xf0] }
 0xbf8   : > { %8664 = vmatpush.bf16.msra.mxu0 %v11169_v41  ;;  %v11153_v20 = vor.u32 %v12267_v28, %v11152_v49  ;;  %v11456_v41 = vld [vmem:[%s15434_s6 + $0x660] sm:$0xf]  ;;  %v11512_v16 = vld [vmem:[%s15434_s6 + $0x6d0] sm:$0xf]  ;;  %v6411_v49 = vperm.slane %v14616_v18, 1 }
 0xbf9   : > { %8678 = vmatpush.bf16.msrb.mxu2 %v11225_v24  ;;  %v11457_v29 = vor.u32 %v12343_v48, %v11456_v41  ;;  %v11633_v24 = vor.u32 %v12387_v59, %v11632_v50  ;;  %v11624_v28 = vld [vmem:[%s15434_s6 + $0x7b0] sm:$0xf]  ;;  %v12355_v18 = vld [vmem:[%s15434_s6 + $0x6c4] sm:$0xf0]  ;;  %v12204_v41 = vld [vmem:[%s15434_s6 + $0x214] sm:$0xf] }
 0xbfa   : > { %8795 = vmatpush.bf16.msrb.mxu1 %v10653_v35  ;;  %v10938_v35 = vld [vmem:[%s15434_s6 + $0x258] sm:$0xf0]  ;;  %v6542_v1 = vpop.f32.mrf.mxu2  ;;  %v11608_v50 = vld [vmem:[%s15434_s6 + $0x790] sm:$0xf]  ;;  %v12381_v59 = vld [vmem:[%s15434_s6 + $0x794] sm:$0xf0] }
 0xbfb   : > { %8704 = vmatpush.bf16.msrb.mxu3 %v11353_v27  ;;  %v12389_v27 = vld [vmem:[%s15434_s6 + $0x7d4] sm:$0xf0]  ;;  %v10941_v7 = vor.u32 %v12212_v3, %v10938_v35  ;;  %v11440_v35 = vld [vmem:[%s15434_s6 + $0x640] sm:$0xf]  ;;  %v11432_v1 = vld [vmem:[%s15434_s6 + $0x630] sm:$0xf] }
 0xbfc   : > { %8665 = vmatpush.bf16.msra.mxu0 %v11161_v51  ;;  %v10922_v51 = vld [vmem:[%s15434_s6 + $0x238] sm:$0xf0]  ;;  %v12357_v3 = vld [vmem:[%s15434_s6 + $0x6d4] sm:$0xf0] }
 0xbfd   : > { %8679 = vmatpush.bf16.msrb.mxu2 %v11217_v31  ;;  %v10925_v44 = vor.u32 %v12208_v2, %v10922_v51  ;;  %v11513_v57 = vor.u32 %v12357_v3, %v11512_v16  ;;  %v12383_v31 = vld [vmem:[%s15434_s6 + $0x7a4] sm:$0xf0]  ;;  %v10898_v3 = vld [vmem:[%s15434_s6 + $0x208] sm:$0xf0] }
 0xbfe   : > { %8796 = vmatpush.bf16.msrb.mxu1 %v10645_v17  ;;  %v10930_v17 = vld [vmem:[%s15434_s6 + $0x248] sm:$0xf0]  ;;  %v12335_v51 = vld [vmem:[%s15434_s6 + $0x624] sm:$0xf0] }
 0xbff   : > { %8705 = vmatpush.bf16.msrb.mxu3 %v11345_v26  ;;  %v14890_v26 = vpop.f32.mrf.mxu0  ;;  %v10933_v32 = vor.u32 %v12210_v37, %v10930_v17  ;;  %v12337_v17 = vld [vmem:[%s15434_s6 + $0x634] sm:$0xf0] }
 0xc00   : > { %8666 = vmatpush.bf16.msra.mxu0 %v11153_v20  ;;  %v11504_v20 = vld [vmem:[%s15434_s6 + $0x6c0] sm:$0xf] }
 0xc01   : > { %8797 = vmatmul.bf16.vlgmr.msrb.gmra.mxu1 %v14771_v42  ;;  %v11641_v42 = vor.u32 %v12389_v27, %v11640_v39  ;;  %8724 = vmatpush.bf16.msra.mxu2 %v11529_v14  ;;  %v11625_v39 = vor.u32 %v12385_v60, %v11624_v28  ;;  %v11616_v27 = vld [vmem:[%s15434_s6 + $0x7a0] sm:$0xf]  ;;  %v11505_v48 = vor.u32 %v12355_v18, %v11504_v20  ;;  %v11210_v60 = vld [vmem:[%s15434_s6 + $0x478] sm:$0xf0]  ;;  %v11416_v18 = vld [vmem:[%s15434_s6 + $0x610] sm:$0xf] }
 0xc02   : > { %8841 = vmatpush.bf16.msra.mxu1 %v10957_v4  ;;  %8706 = vmatmul.bf16.vlgmr.msrb.gmra.mxu3 %v14870_v54  ;;  %v6568_v4 = vpop.f32.mrf.mxu3  ;;  %v14904_v43 = vpop.f32.mrf.mxu2  ;;  %v11609_v28 = vor.u32 %v12381_v59, %v11608_v50  ;;  %v12331_v59 = vld [vmem:[%s15434_s6 + $0x604] sm:$0xf0] }
 0xc03   : > { %8750 = vmatpush.bf16.msra.mxu3 %v11657_v46  ;;  %v11521_v46 = vor.u32 %v12359_v36, %v11520_v55  ;;  %v10906_v36 = vld [vmem:[%s15434_s6 + $0x218] sm:$0xf0]  ;;  %v12353_v4 = vld [vmem:[%s15434_s6 + $0x6b4] sm:$0xf0] }
 0xc04   : > { %8711 = vmatpush.bf16.msrb.mxu0 %v11465_v9  ;;  %v11441_v9 = vor.u32 %v12339_v52, %v11440_v35  ;;  %v10909_v2 = vor.u32 %v12204_v41, %v10906_v36  ;;  %v10762_v52 = vld [vmem:[%s15434_s6 + $0xf8] sm:$0xf0]  ;;  %v12278_v41 = vld [vmem:[%s15434_s6 + $0x464] sm:$0xf] }
 0xc05   : > { %8725 = vmatpush.bf16.msra.mxu2 %v11521_v46  ;;  %v12202_v46 = vld [vmem:[%s15434_s6 + $0x204] sm:$0xf] }
 0xc06   : > { %8842 = vmatpush.bf16.msra.mxu1 %v10949_v47  ;;  %v11449_v47 = vor.u32 %v12341_v53, %v11448_v61  ;;  %v11424_v53 = vld [vmem:[%s15434_s6 + $0x620] sm:$0xf] }
 0xc07   : > { %8751 = vmatpush.bf16.msra.mxu3 %v11649_v25  ;;  %v10914_v25 = vld [vmem:[%s15434_s6 + $0x228] sm:$0xf0]  ;;  %v6581_v14 = vpop.f32.mrf.mxu0 }
 0xc08   : > { %8712 = vmatpush.bf16.msrb.mxu0 %v11457_v29  ;;  %v10917_v37 = vor.u32 %v12206_v62, %v10914_v25  ;;  %v11433_v29 = vor.u32 %v12337_v17, %v11432_v1  ;;  %v12168_v62 = vld [vmem:[%s15434_s6 + $0xf4] sm:$0xf]  ;;  %v10901_v25 = vor.u32 %v12202_v46, %v10898_v3 }
 0xc09   : > { %8726 = vmatpush.bf16.msra.mxu2 %v11513_v57  ;;  %v11425_v57 = vor.u32 %v12335_v51, %v11424_v53  ;;  %v10765_v1 = vor.u32 %v12168_v62, %v10762_v52  ;;  %v12164_v53 = vld [vmem:[%s15434_s6 + $0xd4] sm:$0xf]  ;;  %v10746_v51 = vld [vmem:[%s15434_s6 + $0xd8] sm:$0xf0] }
 0xc0a   : > { %8843 = vmatpush.bf16.msra.mxu1 %v10941_v7  ;;  %v6541_v7 = vadd.f32 %v14858_v10, %v6411_v49  ;;  %v14915_v55 = vpop.f32.mrf.mxu3  ;;  %v11617_v10 = vor.u32 %v12383_v31, %v11616_v27  ;;  %v6594_v16 = vpop.f32.mrf.mxu2  ;;  %v12351_v49 = vld [vmem:[%s15434_s6 + $0x6a4] sm:$0xf0]  ;;  %v6450_v27 = vadd.f32 %v14579_v56, %v14636_v11  ;;  %v12166_v56 = vld [vmem:[%s15434_s6 + $0xe4] sm:$0xf]  ;;  %v10754_v11 = vld [vmem:[%s15434_s6 + $0xe8] sm:$0xf0] }
 0xc0b   : > { %8752 = vmatpush.bf16.msra.mxu3 %v11641_v42  ;;  %v11496_v42 = vld [vmem:[%s15434_s6 + $0x6b0] sm:$0xf]  ;;  %v12272_v62 = vld [vmem:[%s15434_s6 + $0x434] sm:$0xf] }
 0xc0c   : > { %8713 = vmatpush.bf16.msrb.mxu0 %v11449_v47  ;;  %v11497_v61 = vor.u32 %v12353_v4, %v11496_v42  ;;  %v11600_v47 = vld [vmem:[%s15434_s6 + $0x780] sm:$0xf]  ;;  %v6463_v4 = vadd.f32 %v14651_v30, %v6450_v27 }
 0xc0d   : > { %8727 = vmatpush.bf16.msra.mxu2 %v11505_v48  ;;  %v11202_v48 = vld [vmem:[%s15434_s6 + $0x468] sm:$0xf0] }
 0xc0e   : > { %8844 = vmatpush.bf16.msra.mxu1 %v10933_v32  ;;  %v6554_v32 = vadd.f32 %v14661_v45, %v6541_v7  ;;  %v12280_v45 = vld [vmem:[%s15434_s6 + $0x474] sm:$0xf]  ;;  %v11480_v7 = vld [vmem:[%s15434_s6 + $0x690] sm:$0xf]  ;;  %v6476_v46 = vadd.f32 %v14791_v13, %v6463_v4 }
 0xc0f   : > { %8753 = vmatpush.bf16.msra.mxu3 %v11633_v24  ;;  %v11488_v24 = vld [vmem:[%s15434_s6 + $0x6a0] sm:$0xf]  ;;  %v11213_v31 = vor.u32 %v12280_v45, %v11210_v60  ;;  %v12162_v60 = vld [vmem:[%s15434_s6 + $0xc4] sm:$0xf] }
 0xc10   : > { %8714 = vmatpush.bf16.msrb.mxu0 %v11441_v9  ;;  %v6567_v35 = vadd.f32 %v14864_v33, %v6554_v32  ;;  %v11489_v20 = vor.u32 %v12351_v49, %v11488_v24  ;;  %v6795_v33 = vperm.slane %v14773_v12, 1  ;;  %v11408_v12 = vld [vmem:[%s15434_s6 + $0x600] sm:$0xf]  ;;  %v12276_v32 = vld [vmem:[%s15434_s6 + $0x454] sm:$0xf]  ;;  %v6489_v24 = vadd.f32 %v14811_v8, %v6476_v46 }
 0xc11   : > { %8728 = vmatpush.bf16.msra.mxu2 %v11497_v61  ;;  %v10757_v61 = vor.u32 %v12166_v56, %v10754_v11  ;;  %v11409_v16 = vor.u32 %v12331_v59, %v11408_v12  ;;  %v12274_v49 = vld [vmem:[%s15434_s6 + $0x444] sm:$0xf]  ;;  %v10714_v59 = vld [vmem:[%s15434_s6 + $0x98] sm:$0xf0] }
 0xc12   : > { %8845 = vmatpush.bf16.msra.mxu1 %v10925_v44  ;;  %v12379_v44 = vld [vmem:[%s15434_s6 + $0x784] sm:$0xf0]  ;;  %v6620_v9 = vpop.f32.mrf.mxu3  ;;  %v6580_v17 = vadd.f32 %v14890_v26, %v6567_v35  ;;  %v14950_v50 = vpack.c.bf16 %v6795_v33, %v6795_v33  ;;  %v6502_v8 = vadd.f32 %v14618_v22, %v6489_v24 }
 0xc13   : > { %8754 = vmatpush.bf16.msra.mxu3 %v11625_v39  ;;  %v12333_v39 = vld [vmem:[%s15434_s6 + $0x614] sm:$0xf0]  ;;  %v11601_v14 = vor.u32 %v12379_v44, %v11600_v47  ;;  %v12347_v26 = vld [vmem:[%s15434_s6 + $0x684] sm:$0xf0]  ;;  %v10738_v47 = vld [vmem:[%s15434_s6 + $0xc8] sm:$0xf0] }
 0xc14   : > { %8715 = vmatpush.bf16.msrb.mxu0 %v11433_v29  ;;  %v11417_v36 = vor.u32 %v12333_v39, %v11416_v18  ;;  %v11472_v29 = vld [vmem:[%s15434_s6 + $0x680] sm:$0xf]  ;;  %v6593_v30 = vadd.f32 %v14904_v43, %v6580_v17  ;;  %v10749_v43 = vor.u32 %v12164_v53, %v10746_v51  ;;  %v10741_v35 = vor.u32 %v12162_v60, %v10738_v47  ;;  %v11170_v9 = vld [vmem:[%s15434_s6 + $0x428] sm:$0xf0]  ;;  %v12154_v53 = vld [vmem:[%s15434_s6 + $0x84] sm:$0xf] }
 0xc15   : > { %8729 = vmatpush.bf16.msra.mxu2 %v11489_v20  ;;  %v11473_v3 = vor.u32 %v12347_v26, %v11472_v29  ;;  %v6515_v20 = vadd.f32 %v14818_v23, %v6502_v8  ;;  %v6682_v18 = vld [vmem:[%s15416_s12] sm:$0x3]  ;;  %v12158_v23 = vld [vmem:[%s15434_s6 + $0xa4] sm:$0xf]  ;;  %v10706_v51 = vld [vmem:[%s15434_s6 + $0x88] sm:$0xf0] }
 0xc16   : > { %8846 = vmatpush.bf16.msra.mxu1 %v10917_v37  ;;  %v12349_v37 = vld [vmem:[%s15434_s6 + $0x694] sm:$0xf0]  ;;  %v6685_v27 = vperm.slane %v6682_v18, 1  ;;  %v12230_v60 = vld [vmem:[%s15434_s6 + $0x2e4] sm:$0xf] }
 0xc17   : > { %8755 = vmatpush.bf16.msra.mxu3 %v11617_v10  ;;  %v11481_v42 = vor.u32 %v12349_v37, %v11480_v7  ;;  %v11205_v10 = vor.u32 %v12278_v41, %v11202_v48  ;;  %v6528_v7 = vadd.f32 %v14840_v38, %v6515_v20  ;;  %v10722_v48 = vld [vmem:[%s15434_s6 + $0xa8] sm:$0xf0]  ;;  %v11162_v38 = vld [vmem:[%s15434_s6 + $0x418] sm:$0xf0] }
 0xc18   : > { %8716 = vmatpush.bf16.msrb.mxu0 %v11425_v57  ;;  %v11178_v57 = vld [vmem:[%s15434_s6 + $0x438] sm:$0xf0]  ;;  %v10725_v12 = vor.u32 %v12158_v23, %v10722_v48  ;;  %v11010_v8 = vld [vmem:[%s15434_s6 + $0x2e8] sm:$0xf0]  ;;  %v12421_v23 = vld [vmem:[%s15434_s6 + $0x8d4] sm:$0xf0] }
 0xc19   : > { %8730 = vmatpush.bf16.msra.mxu2 %v11481_v42  ;;  %v11181_v39 = vor.u32 %v12272_v62, %v11178_v57  ;;  %v6648_v42 = vmax.f32 %v6528_v7, 0.0  ;;  %v11013_v18 = vor.u32 %v12230_v60, %v11010_v8  ;;  %v10994_v48 = vld [vmem:[%s15434_s6 + $0x2c8] sm:$0xf0]  ;;  %v12399_v8 = vld [vmem:[%s15434_s6 + $0x824] sm:$0xf0] }
 0xc1a   : > { %8847 = vmatpush.bf16.msra.mxu1 %v10909_v2  ;;  %v11194_v2 = vld [vmem:[%s15434_s6 + $0x458] sm:$0xf0] }
 0xc1b   : > { %8756 = vmatpush.bf16.msra.mxu3 %v11609_v28  ;;  %v11197_v13 = vor.u32 %v12276_v32, %v11194_v2  ;;  %v6606_v28 = vadd.f32 %v14801_v19, %v6593_v30  ;;  %v10730_v19 = vld [vmem:[%s15434_s6 + $0xb8] sm:$0xf0]  ;;  %v12266_v32 = vld [vmem:[%s15434_s6 + $0x404] sm:$0xf]  ;;  %v11154_v2 = vld [vmem:[%s15434_s6 + $0x408] sm:$0xf0]  ;;  %v14991_v30 = vpop.f32.mrf.mxu1 }
 0xc1c   : > { %8717 = vmatpush.bf16.msrb.mxu0 %v11417_v36  ;;  %v6631_v45 = vpop.f32.mrf.mxu0  ;;  %v12268_v36 = vld [vmem:[%s15434_s6 + $0x414] sm:$0xf]  ;;  %v11157_v24 = vor.u32 %v12266_v32, %v11154_v2 }
 0xc1d   : > { %8731 = vmatpush.bf16.msra.mxu2 %v11473_v3  ;;  %v6619_v52 = vadd.f32 %v14915_v55, %v6606_v28  ;;  %v11165_v29 = vor.u32 %v12268_v36, %v11162_v38  ;;  %v11018_v3 = vld [vmem:[%s15434_s6 + $0x2f8] sm:$0xf0]  ;;  %v11784_v28 = vld [vmem:[%s15434_s6 + $0x8f0] sm:$0xf] }
 0xc1e   : > { %8848 = vmatpush.bf16.msra.mxu1 %v10901_v25  ;;  %v12160_v25 = vld [vmem:[%s15434_s6 + $0xb4] sm:$0xf]  ;;  %v6753_v36 = vld [vmem:[#allocation10 + $0x10] ss:$4 sm:$0x3] }
 0xc1f   : > { %8757 = vmatpush.bf16.msra.mxu3 %v11601_v14  ;;  %v6632_v22 = vadd.f32 %v6631_v45, %v6619_v52  ;;  %v10733_v55 = vor.u32 %v12160_v25, %v10730_v19  ;;  %v6737_v14 = vlaneseq  ;;  %v12425_v45 = vld [vmem:[%s15434_s6 + $0x8f4] sm:$0xf0]  ;;  %v11712_v52 = vld [vmem:[%s15434_s6 + $0x860] sm:$0xf]  ;;  %v6790_v32 = vperm.slane %v6753_v36, 1 }
 0xc20   : > { %8718 = vmatpush.bf16.msrb.mxu0 %v11409_v16  ;;  %v12232_v16 = vld [vmem:[%s15434_s6 + $0x2f4] sm:$0xf] }
 0xc21   : > { %8849 = vmatmul.bf16.vlgmr.msra.gmra.mxu1 %v14826_v15  ;;  %v11186_v15 = vld [vmem:[%s15434_s6 + $0x448] sm:$0xf0]  ;;  %vm6739_vm12 = vcmp.lt.s32.totalorder %v6737_v14, 256  ;;  %v12405_v14 = vld [vmem:[%s15434_s6 + $0x854] sm:$0xf0] }
 0xc22   : > { %8893 = vmatpush.bf16.msrb.mxu1 %v11213_v31  ;;  %8758 = vmatmul.bf16.vlgmr.msra.gmra.mxu3 %v14950_v50  ;;  %v11189_v44 = vor.u32 %v12274_v49, %v11186_v15  ;;  %v12270_v31 = vld [vmem:[%s15434_s6 + $0x424] sm:$0xf]  ;;  %v11021_v49 = vor.u32 %v12232_v16, %v11018_v3  ;;  %v11720_v15 = vld [vmem:[%s15434_s6 + $0x870] sm:$0xf]  ;;  %v12417_v3 = vld [vmem:[%s15434_s6 + $0x8b4] sm:$0xf0] }
 0xc23   : > { %8802 = vmatpush.bf16.msrb.mxu3 %v10765_v1  ;;  %v6644_v37 = vpop.f32.mrf.mxu2  ;;  %v11173_v17 = vor.u32 %v12270_v31, %v11170_v9  ;;  %v15004_v25 = vpop.f32.mrf.mxu1  ;;  %v12228_v31 = vld [vmem:[%s15434_s6 + $0x2d4] sm:$0xf]  ;;  %v11002_v9 = vld [vmem:[%s15434_s6 + $0x2d8] sm:$0xf0]  ;;  %v11752_v16 = vld [vmem:[%s15434_s6 + $0x8b0] sm:$0xf] }
 0xc24   : > { %v6645_v33 = vadd.f32 %v6644_v37, %v6632_v22  ;;  %v6633_v41 = vpop.f32.mrf.mxu0  ;;  %v11776_v22 = vld [vmem:[%s15434_s6 + $0x8e0] sm:$0xf] }
 0xc25   : > { %v6725_v1 = vpop.f32.mrf.mxu3  ;;  %v11768_v41 = vld [vmem:[%s15434_s6 + $0x8d0] sm:$0xf] }
 0xc26   : > { %8894 = vmatpush.bf16.msrb.mxu1 %v11205_v10  ;;  %v6649_v56 = vmax.f32 %v6645_v33, 0.0  ;;  %v14982_v11 = vadd.f32 %v6725_v1, %v6685_v27  ;;  %v12156_v10 = vld [vmem:[%s15434_s6 + $0x94] sm:$0xf]  ;;  %v12423_v27 = vld [vmem:[%s15434_s6 + $0x8e4] sm:$0xf0]  ;;  %v11005_v33 = vor.u32 %v12228_v31, %v11002_v9 }
 0xc27   : > { %8803 = vmatpush.bf16.msrb.mxu3 %v10757_v61  ;;  %v10717_v61 = vor.u32 %v12156_v10, %v10714_v59  ;;  %v11777_v37 = vor.u32 %v12423_v27, %v11776_v22  ;;  %v12419_v10 = vld [vmem:[%s15434_s6 + $0x8c4] sm:$0xf0]  ;;  %v12224_v59 = vld [vmem:[%s15434_s6 + $0x2b4] sm:$0xf]  ;;  %v12397_v22 = vld [vmem:[%s15434_s6 + $0x814] sm:$0xf0] }
 0xc28   : > { %v6733_v4 = vrot.slane %v6649_v56, 7  ;;  %v11696_v56 = vld [vmem:[%s15434_s6 + $0x840] sm:$0xf]  ;;  %v11736_v27 = vld [vmem:[%s15434_s6 + $0x890] sm:$0xf] }
 0xc29   : > { %v12413_v31 = vld [vmem:[%s15434_s6 + $0x894] sm:$0xf0]  ;;  %v12218_v9 = vld [vmem:[%s15434_s6 + $0x284] sm:$0xf] }
 0xc2a   : > { %8895 = vmatpush.bf16.msrb.mxu1 %v11197_v13  ;;  %v6734_v26 = vsel %vm1030_vm0, %v6648_v42, %v6733_v4  ;;  %v10709_v13 = vor.u32 %v12154_v53, %v10706_v51  ;;  %v11760_v4 = vld [vmem:[%s15434_s6 + $0x8c0] sm:$0xf]  ;;  %v12401_v51 = vld [vmem:[%s15434_s6 + $0x834] sm:$0xf0] }
 0xc2b   : > { %8804 = vmatpush.bf16.msrb.mxu3 %v10749_v43  ;;  %6742 = vst.msk [vmem:[#allocation10 + $0x9] ss:$4 sm:$0x3] %vm6739_vm12, %v6734_v26  ;;  %v6646_v46 = vpop.f32.mrf.mxu2  ;;  %v12409_v43 = vld [vmem:[%s15434_s6 + $0x874] sm:$0xf0]  ;;  %v8592_v38 = vpop.f32.mrf.mxu1  ;;  %v6789_v26 = vperm.slane %v6753_v36, 0 }
 0xc2c   : > { %v11721_v57 = vor.u32 %v12409_v43, %v11720_v15  ;;  %v11761_v46 = vor.u32 %v12419_v10, %v11760_v4  ;;  %v15035_v15 = vpack.c.bf16 %v6790_v32, %v6790_v32  ;;  %v12184_v36 = vld [vmem:[%s15434_s6 + $0x174] sm:$0xf]  ;;  %v10890_v4 = vld [vmem:[%s15434_s6 + $0x1f8] sm:$0xf0]  ;;  %v12294_v10 = vld [vmem:[%s15434_s6 + $0x4e4] sm:$0xf] }
 0xc2e   : > { %8896 = vmatpush.bf16.msrb.mxu1 %v11189_v44 }
 0xc2f   : > { %8805 = vmatpush.bf16.msrb.mxu3 %v10741_v35  ;;  %v11785_v35 = vor.u32 %v12425_v45, %v11784_v28  ;;  %v11753_v28 = vor.u32 %v12417_v3, %v11752_v16  ;;  %v11680_v45 = vld [vmem:[%s15434_s6 + $0x820] sm:$0xf]  ;;  %v10818_v16 = vld [vmem:[%s15434_s6 + $0x168] sm:$0xf0]  ;;  %v12198_v3 = vld [vmem:[%s15434_s6 + $0x1e4] sm:$0xf] }
 0xc32   : > { %8897 = vmatpush.bf16.msrb.mxu1 %v11181_v39  ;;  %v6749_v47 = vld [vmem:[#allocation10 + $0x9] ss:$4 sm:$0x3]  ;;  %v12407_v39 = vld [vmem:[%s15434_s6 + $0x864] sm:$0xf0] }
 0xc33   : > { %8806 = vmatpush.bf16.msrb.mxu3 %v10733_v55  ;;  %v6779_v44 = vperm.slane %v6749_v47, 0  ;;  %v6780_v62 = vperm.slane %v6749_v47, 1  ;;  %v11713_v7 = vor.u32 %v12407_v39, %v11712_v52  ;;  %v11704_v55 = vld [vmem:[%s15434_s6 + $0x850] sm:$0xf]  ;;  %v15038_v60 = vpop.f32.mrf.mxu1  ;;  %v11681_v52 = vor.u32 %v12399_v8, %v11680_v45  ;;  %v11258_v45 = vld [vmem:[%s15434_s6 + $0x4d8] sm:$0xf0] }
 0xc34   : > { %v11705_v1 = vor.u32 %v12405_v14, %v11704_v55  ;;  %v11274_v55 = vld [vmem:[%s15434_s6 + $0x4f8] sm:$0xf0] }
 0xc35   : > { %v6811_v19 = vpack.c.bf16 %v6779_v44, %v6779_v44  ;;  %v15006_v20 = vpack.c.bf16 %v6780_v62, %v6780_v62  ;;  %v11744_v44 = vld [vmem:[%s15434_s6 + $0x8a0] sm:$0xf]  ;;  %v12415_v62 = vld [vmem:[%s15434_s6 + $0x8a4] sm:$0xf0] }
 0xc36   : > { %8898 = vmatpush.bf16.msrb.mxu1 %v11173_v17  ;;  %v11769_v17 = vor.u32 %v12421_v23, %v11768_v41  ;;  %v11737_v41 = vor.u32 %v12413_v31, %v11736_v27  ;;  %v12395_v23 = vld [vmem:[%s15434_s6 + $0x804] sm:$0xf0] }
 0xc37   : > { %8807 = vmatpush.bf16.msrb.mxu3 %v10725_v12  ;;  %8667 = vmatmul.bf16.vlgmr.msra.gmra.mxu0 %v6811_v19  ;;  %v12403_v12 = vld [vmem:[%s15434_s6 + $0x844] sm:$0xf0] }
 0xc38   : > { %8680 = vmatmul.bf16.vlgmr.msrb.gmra.mxu2 %v15006_v20  ;;  %8763 = vmatpush.bf16.msra.mxu0 %v11721_v57  ;;  %v11697_v2 = vor.u32 %v12403_v12, %v11696_v56  ;;  %v12220_v57 = vld [vmem:[%s15434_s6 + $0x294] sm:$0xf]  ;;  %v12411_v56 = vld [vmem:[%s15434_s6 + $0x884] sm:$0xf0] }
 0xc39   : > { %8776 = vmatpush.bf16.msrb.mxu2 %v11785_v35  ;;  %v10970_v35 = vld [vmem:[%s15434_s6 + $0x298] sm:$0xf0]  ;;  %v12200_v12 = vld [vmem:[%s15434_s6 + $0x1f4] sm:$0xf] }
 0xc3a   : > { %8899 = vmatpush.bf16.msrb.mxu1 %v11165_v29  ;;  %v10986_v29 = vld [vmem:[%s15434_s6 + $0x2b8] sm:$0xf0]  ;;  %v10973_v39 = vor.u32 %v12220_v57, %v10970_v35 }
 0xc3b   : > { %8808 = vmatpush.bf16.msrb.mxu3 %v10717_v61  ;;  %v11688_v61 = vld [vmem:[%s15434_s6 + $0x830] sm:$0xf]  ;;  %v10989_v53 = vor.u32 %v12224_v59, %v10986_v29  ;;  %v11266_v59 = vld [vmem:[%s15434_s6 + $0x4e8] sm:$0xf0]  ;;  %v10810_v35 = vld [vmem:[%s15434_s6 + $0x158] sm:$0xf0] }
 0xc3c   : > { %8764 = vmatpush.bf16.msra.mxu0 %v11713_v7  ;;  %v11689_v43 = vor.u32 %v12401_v51, %v11688_v61  ;;  %v10962_v7 = vld [vmem:[%s15434_s6 + $0x288] sm:$0xf0]  ;;  %v10893_v61 = vor.u32 %v12200_v12, %v10890_v4  ;;  %v11269_v51 = vor.u32 %v12294_v10, %v11266_v59  ;;  %v10794_v4 = vld [vmem:[%s15434_s6 + $0x138] sm:$0xf0]  ;;  %v12192_v10 = vld [vmem:[%s15434_s6 + $0x1b4] sm:$0xf] }
 0xc3d   : > { %8777 = vmatpush.bf16.msrb.mxu2 %v11777_v37  ;;  %v12296_v37 = vld [vmem:[%s15434_s6 + $0x4f4] sm:$0xf]  ;;  %v10858_v59 = vld [vmem:[%s15434_s6 + $0x1b8] sm:$0xf0] }
 0xc3e   : > { %8900 = vmatpush.bf16.msrb.mxu1 %v11157_v24  ;;  %v12222_v24 = vld [vmem:[%s15434_s6 + $0x2a4] sm:$0xf]  ;;  %v11277_v38 = vor.u32 %v12296_v37, %v11274_v55  ;;  %v10802_v55 = vld [vmem:[%s15434_s6 + $0x148] sm:$0xf0] }
 0xc3f   : > { %8809 = vmatpush.bf16.msrb.mxu3 %v10709_v13  ;;  %v10978_v13 = vld [vmem:[%s15434_s6 + $0x2a8] sm:$0xf0] }
 0xc40   : > { %8765 = vmatpush.bf16.msra.mxu0 %v11705_v1  ;;  %v10981_v47 = vor.u32 %v12222_v24, %v10978_v13  ;;  %v10965_v1 = vor.u32 %v12218_v9, %v10962_v7  ;;  %v10882_v24 = vld [vmem:[%s15434_s6 + $0x1e8] sm:$0xf0]  ;;  %v12178_v7 = vld [vmem:[%s15434_s6 + $0x144] sm:$0xf] }
 0xc41   : > { %8901 = vmatmul.bf16.vlgmr.msrb.gmra.mxu1 %v6811_v19  ;;  %8778 = vmatpush.bf16.msrb.mxu2 %v11769_v17  ;;  %v11745_v19 = vor.u32 %v12415_v62, %v11744_v44  ;;  %v11728_v17 = vld [vmem:[%s15434_s6 + $0x880] sm:$0xf]  ;;  %v10885_v44 = vor.u32 %v12198_v3, %v10882_v24  ;;  %v12180_v62 = vld [vmem:[%s15434_s6 + $0x154] sm:$0xf]  ;;  %v12190_v3 = vld [vmem:[%s15434_s6 + $0x1a4] sm:$0xf] }
 0xc42   : > { %8810 = vmatmul.bf16.vlgmr.msrb.gmra.mxu3 %v14757_v21  ;;  %v12226_v21 = vld [vmem:[%s15434_s6 + $0x2c4] sm:$0xf]  ;;  %v10813_v31 = vor.u32 %v12180_v62, %v10810_v35  ;;  %v10850_v24 = vld [vmem:[%s15434_s6 + $0x1a8] sm:$0xf0] }
 0xc43   : > { %8854 = vmatpush.bf16.msra.mxu3 %v11021_v49  ;;  %v10997_v42 = vor.u32 %v12226_v21, %v10994_v48  ;;  %v15033_v49 = vpack.c.bf16 %v6789_v26, %v6789_v26  ;;  %v6757_v21 = vld [vmem:[#allocation10 + $0x12] ss:$4 sm:$0x3]  ;;  %v8644_v48 = vpop.f32.mrf.mxu1  ;;  %v10853_v35 = vor.u32 %v12190_v3, %v10850_v24  ;;  %v12358_v24 = vld [vmem:[%s15434_s6 + $0x6e4] sm:$0xf] }
 0xc44   : > { %8766 = vmatpush.bf16.msra.mxu0 %v11697_v2  ;;  %v6799_v29 = vperm.slane %v6757_v21, 0  ;;  %v6800_v26 = vperm.slane %v6757_v21, 1  ;;  %v11729_v2 = vor.u32 %v12411_v56, %v11728_v17  ;;  %v11242_v21 = vld [vmem:[%s15434_s6 + $0x4b8] sm:$0xf0]  ;;  %v10805_v56 = vor.u32 %v12178_v7, %v10802_v55  ;;  %v12360_v55 = vld [vmem:[%s15434_s6 + $0x6f4] sm:$0xf] }
 0xc45   : > { %8779 = vmatpush.bf16.msrb.mxu2 %v11761_v46  ;;  %v8603_v48 = vpop.f32.mrf.mxu3 }
 0xc46   : > { %v15069_v13 = vpack.c.bf16 %v6799_v29, %v6799_v29  ;;  %v12286_v29 = vld [vmem:[%s15434_s6 + $0x4a4] sm:$0xf] }
 0xc47   : > { %8855 = vmatpush.bf16.msra.mxu3 %v11013_v18  ;;  %8719 = vmatmul.bf16.vlgmr.msrb.gmra.mxu0 %v15033_v49  ;;  %v11672_v18 = vld [vmem:[%s15434_s6 + $0x810] sm:$0xf] }
 0xc48   : > { %8732 = vmatmul.bf16.vlgmr.msra.gmra.mxu2 %v15035_v15  ;;  %8767 = vmatpush.bf16.msra.mxu0 %v11689_v43  ;;  %v11673_v14 = vor.u32 %v12397_v22, %v11672_v18  ;;  %v15071_v43 = vpack.c.bf16 %v6800_v26, %v6800_v26  ;;  %v12290_v18 = vld [vmem:[%s15434_s6 + $0x4c4] sm:$0xf]  ;;  %v15086_v22 = vld [vmem:[%s15436_s5] sm:$0x3]  ;;  %v11234_v26 = vld [vmem:[%s15434_s6 + $0x4a8] sm:$0xf0] }
 0xc49   : > { %8780 = vmatpush.bf16.msrb.mxu2 %v11753_v28  ;;  %v12292_v28 = vld [vmem:[%s15434_s6 + $0x4d4] sm:$0xf]  ;;  %v8551_v27 = vperm.slane %v15086_v22, 0  ;;  %s893_s5 = sand.u32 1, %s12858_s10  }
 0xc4a   : > { %v11261_v57 = vor.u32 %v12292_v28, %v11258_v45  ;;  %v12284_v45 = vld [vmem:[%s15434_s6 + $0x494] sm:$0xf]  ;;  %s894_s3 = scalar_lea.vmem [#allocation11], %s893_s5  ;;  %s9104_s9 = scalar_lea.sflag [#allocation12], %s893_s5 }
 0xc4b   : > { %8856 = vmatpush.bf16.msra.mxu3 %v11005_v33  ;;  %v11664_v33 = vld [vmem:[%s15434_s6 + $0x800] sm:$0xf] }
 0xc4c   : > { %8768 = vmatpush.bf16.msra.mxu0 %v11681_v52  ;;  %v11665_v32 = vor.u32 %v12395_v23, %v11664_v33  ;;  %v12196_v52 = vld [vmem:[%s15434_s6 + $0x1d4] sm:$0xf]  ;;  %v12194_v33 = vld [vmem:[%s15434_s6 + $0x1c4] sm:$0xf] }
 0xc4d   : > { %8781 = vmatpush.bf16.msrb.mxu2 %v11745_v19  ;;  %v10874_v19 = vld [vmem:[%s15434_s6 + $0x1d8] sm:$0xf0]  ;;  %v12288_v23 = vld [vmem:[%s15434_s6 + $0x4b4] sm:$0xf] }
 0xc4e   : > { %v10877_v9 = vor.u32 %v12196_v52, %v10874_v19  ;;  %v11245_v12 = vor.u32 %v12288_v23, %v11242_v21  ;;  %v12172_v52 = vld [vmem:[%s15434_s6 + $0x114] sm:$0xf]  ;;  %v10770_v23 = vld [vmem:[%s15434_s6 + $0x108] sm:$0xf0]  ;;  %v12186_v21 = vld [vmem:[%s15434_s6 + $0x184] sm:$0xf] }
 0xc4f   : > { %8857 = vmatpush.bf16.msra.mxu3 %v10997_v42  ;;  %v10826_v42 = vld [vmem:[%s15434_s6 + $0x178] sm:$0xf0] }
 0xc50   : > { %8769 = vmatpush.bf16.msra.mxu0 %v11673_v14  ;;  %v10829_v46 = vor.u32 %v12184_v36, %v10826_v42  ;;  %v10866_v14 = vld [vmem:[%s15434_s6 + $0x1c8] sm:$0xf0] }
 0xc51   : > { %8782 = vmatpush.bf16.msrb.mxu2 %v11737_v41  ;;  %v8564_v41 = vpop.f32.mrf.mxu0  ;;  %v10869_v36 = vor.u32 %v12194_v33, %v10866_v14  ;;  %v11530_v33 = vld [vmem:[%s15434_s6 + $0x6f8] sm:$0xf0] }
 0xc53   : > { %8858 = vmatpush.bf16.msra.mxu3 %v10989_v53  ;;  %v12182_v53 = vld [vmem:[%s15434_s6 + $0x164] sm:$0xf] }
 0xc54   : > { %8770 = vmatpush.bf16.msra.mxu0 %v11665_v32  ;;  %v10821_v8 = vor.u32 %v12182_v53, %v10818_v16  ;;  %v10786_v16 = vld [vmem:[%s15434_s6 + $0x128] sm:$0xf0] }
 0xc55   : > { %8783 = vmatpush.bf16.msrb.mxu2 %v11729_v2 }
 0xc57   : > { %8859 = vmatpush.bf16.msra.mxu3 %v10981_v47  ;;  %v15075_v47 = vpop.f32.mrf.mxu1  ;;  %8771 = vmatmul.bf16.vlgmr.msra.gmra.mxu0 %v15069_v13 }
 0xc58   : > { %8815 = vmatpush.bf16.msrb.mxu0 %v10829_v46  ;;  %8784 = vmatmul.bf16.vlgmr.msrb.gmra.mxu2 %v15071_v43  ;;  %v10861_v46 = vor.u32 %v12192_v10, %v10858_v59 }
 0xc59   : > { %8828 = vmatpush.bf16.msra.mxu2 %v10893_v61  ;;  %v12174_v61 = vld [vmem:[%s15434_s6 + $0x124] sm:$0xf]  ;;  %v8566_v28 = vpop.f32.mrf.mxu0 }
 0xc5a   : > { %v11522_v28 = vld [vmem:[%s15434_s6 + $0x6e8] sm:$0xf0] }
 0xc5b   : > { %8860 = vmatpush.bf16.msra.mxu3 %v10973_v39  ;;  %v11250_v39 = vld [vmem:[%s15434_s6 + $0x4c8] sm:$0xf0] }
 0xc5c   : > { %8816 = vmatpush.bf16.msrb.mxu0 %v10821_v8  ;;  %v11253_v37 = vor.u32 %v12290_v18, %v11250_v39  ;;  %v8605_v8 = vpop.f32.mrf.mxu3  ;;  %v10778_v18 = vld [vmem:[%s15434_s6 + $0x118] sm:$0xf0]  ;;  %v12188_v39 = vld [vmem:[%s15434_s6 + $0x194] sm:$0xf] }
 0xc5d   : > { %8829 = vmatpush.bf16.msra.mxu2 %v10885_v44  ;;  %v10781_v7 = vor.u32 %v12172_v52, %v10778_v18  ;;  %v11525_v8 = vor.u32 %v12358_v24, %v11522_v28  ;;  %v11458_v52 = vld [vmem:[%s15434_s6 + $0x668] sm:$0xf0]  ;;  %v11434_v24 = vld [vmem:[%s15434_s6 + $0x638] sm:$0xf0]  ;;  %v12350_v28 = vld [vmem:[%s15434_s6 + $0x6a4] sm:$0xf] }
 0xc5f   : > { %8861 = vmatpush.bf16.msra.mxu3 %v10965_v1  ;;  %v8577_v1 = vpop.f32.mrf.mxu2  ;;  %v8696_v17 = vpop.f32.mrf.mxu1 }
 0xc60   : > { %8817 = vmatpush.bf16.msrb.mxu0 %v10813_v31  ;;  %v12282_v31 = vld [vmem:[%s15434_s6 + $0x484] sm:$0xf]  ;;  %v11082_v17 = vld [vmem:[%s15434_s6 + $0x378] sm:$0xf0] }
 0xc61   : > { %8830 = vmatpush.bf16.msra.mxu2 %v10877_v9  ;;  %v11218_v9 = vld [vmem:[%s15434_s6 + $0x488] sm:$0xf0] }
 0xc62   : > { %8862 = vmatmul.bf16.vlgmr.msra.gmra.mxu3 %v14814_v58  ;;  %v8565_v58 = vadd.f32 %v8564_v41, %v8551_v27  ;;  %v10842_v27 = vld [vmem:[%s15434_s6 + $0x198] sm:$0xf0]  ;;  %v11221_v14 = vor.u32 %v12282_v31, %v11218_v9  ;;  %v12170_v41 = vld [vmem:[%s15434_s6 + $0x104] sm:$0xf] }
 0xc63   : > { %8906 = vmatpush.bf16.msrb.mxu3 %v11277_v38  ;;  %v12176_v38 = vld [vmem:[%s15434_s6 + $0x134] sm:$0xf]  ;;  %v10773_v59 = vor.u32 %v12170_v41, %v10770_v23  ;;  %v11514_v31 = vld [vmem:[%s15434_s6 + $0x6d8] sm:$0xf0] }
 0xc64   : > { %v8578_v42 = vadd.f32 %v8577_v1, %v8565_v58  ;;  %8818 = vmatpush.bf16.msrb.mxu0 %v10805_v56  ;;  %v10797_v2 = vor.u32 %v12176_v38, %v10794_v4  ;;  %v8616_v58 = vpop.f32.mrf.mxu0  ;;  %v12248_v1 = vld [vmem:[%s15434_s6 + $0x374] sm:$0xf] }
 0xc65   : > { %8831 = vmatpush.bf16.msra.mxu2 %v10869_v36  ;;  %v11533_v36 = vor.u32 %v12360_v55, %v11530_v33  ;;  %v8655_v38 = vpop.f32.mrf.mxu3  ;;  %v12340_v41 = vld [vmem:[%s15434_s6 + $0x654] sm:$0xf] }
 0xc66   : > { %v8591_v32 = vadd.f32 %v15004_v25, %v8578_v42  ;;  %v11226_v25 = vld [vmem:[%s15434_s6 + $0x498] sm:$0xf0]  ;;  %v12264_v42 = vld [vmem:[%s15434_s6 + $0x3f4] sm:$0xf] }
 0xc67   : > { %8907 = vmatpush.bf16.msrb.mxu3 %v11269_v51  ;;  %v11237_v51 = vor.u32 %v12286_v29, %v11234_v26  ;;  %v8579_v44 = vpop.f32.mrf.mxu2  ;;  %v15109_v62 = vpop.f32.mrf.mxu1  ;;  %v11229_v19 = vor.u32 %v12284_v45, %v11226_v25  ;;  %v12262_v45 = vld [vmem:[%s15434_s6 + $0x3e4] sm:$0xf]  ;;  %v11138_v25 = vld [vmem:[%s15434_s6 + $0x3e8] sm:$0xf0] }
 0xc68   : > { %v8604_v53 = vadd.f32 %v8603_v48, %v8591_v32  ;;  %8819 = vmatpush.bf16.msrb.mxu0 %v10797_v2  ;;  %v10834_v48 = vld [vmem:[%s15434_s6 + $0x188] sm:$0xf0]  ;;  %v11085_v32 = vor.u32 %v12248_v1, %v11082_v17  ;;  %v12246_v2 = vld [vmem:[%s15434_s6 + $0x364] sm:$0xf]  ;;  %v11141_v18 = vor.u32 %v12262_v45, %v11138_v25 }
 0xc69   : > { %8832 = vmatpush.bf16.msra.mxu2 %v10861_v46  ;;  %v10837_v26 = vor.u32 %v12186_v21, %v10834_v48  ;;  %v12344_v46 = vld [vmem:[%s15434_s6 + $0x674] sm:$0xf]  ;;  %v11450_v21 = vld [vmem:[%s15434_s6 + $0x658] sm:$0xf0]  ;;  %v11506_v48 = vld [vmem:[%s15434_s6 + $0x6c8] sm:$0xf0] }
 0xc6a   : > { %v8617_v56 = vadd.f32 %v8616_v58, %v8604_v53  ;;  %v12354_v58 = vld [vmem:[%s15434_s6 + $0x6c4] sm:$0xf]  ;;  %v11058_v17 = vld [vmem:[%s15434_s6 + $0x348] sm:$0xf0] }
 0xc6b   : > { %8908 = vmatpush.bf16.msrb.mxu3 %v11261_v57  ;;  %v10789_v57 = vor.u32 %v12174_v61, %v10786_v16  ;;  %v11466_v61 = vld [vmem:[%s15434_s6 + $0x678] sm:$0xf0]  ;;  %v12242_v1 = vld [vmem:[%s15434_s6 + $0x344] sm:$0xf]  ;;  %v11490_v45 = vld [vmem:[%s15434_s6 + $0x6a8] sm:$0xf0] }
 0xc6c   : > { %v11469_v3 = vor.u32 %v12344_v46, %v11466_v61  ;;  %v12256_v61 = vld [vmem:[%s15434_s6 + $0x3b4] sm:$0xf] }
 0xc6d   : > { %8820 = vmatpush.bf16.msrb.mxu0 %v10789_v57  ;;  %8833 = vmatpush.bf16.msra.mxu2 %v10853_v35  ;;  %v12342_v35 = vld [vmem:[%s15434_s6 + $0x664] sm:$0xf]  ;;  %v8657_v9 = vpop.f32.mrf.mxu3 }
 0xc6e   : > { %8945 = vmatpush.bf16.msra.mxu1 %v11469_v3  ;;  %v11482_v9 = vld [vmem:[%s15434_s6 + $0x698] sm:$0xf0] }
 0xc6f   : > { %8909 = vmatpush.bf16.msrb.mxu3 %v11253_v37  ;;  %v10845_v37 = vor.u32 %v12188_v39, %v10842_v27  ;;  %v8629_v4 = vpop.f32.mrf.mxu2  ;;  %v8748_v10 = vpop.f32.mrf.mxu1  ;;  %v11066_v39 = vld [vmem:[%s15434_s6 + $0x358] sm:$0xf0]  ;;  %v12356_v27 = vld [vmem:[%s15434_s6 + $0x6d4] sm:$0xf] }
 0xc70   : > { %v8630_v29 = vadd.f32 %v8629_v4, %v8617_v56  ;;  %v11517_v55 = vor.u32 %v12356_v27, %v11514_v31  ;;  %v11453_v56 = vor.u32 %v12340_v41, %v11450_v21  ;;  %v11061_v4 = vor.u32 %v12242_v1, %v11058_v17  ;;  %v11442_v10 = vld [vmem:[%s15434_s6 + $0x648] sm:$0xf0]  ;;  %v12348_v31 = vld [vmem:[%s15434_s6 + $0x694] sm:$0xf]  ;;  %v11098_v41 = vld [vmem:[%s15434_s6 + $0x398] sm:$0xf0] }
 0xc71   : > { %8821 = vmatpush.bf16.msrb.mxu0 %v10781_v7  ;;  %8834 = vmatpush.bf16.msra.mxu2 %v10845_v37  ;;  %v12260_v7 = vld [vmem:[%s15434_s6 + $0x3d4] sm:$0xf]  ;;  %v11130_v37 = vld [vmem:[%s15434_s6 + $0x3d8] sm:$0xf0]  ;;  %v11426_v27 = vld [vmem:[%s15434_s6 + $0x628] sm:$0xf0] }
 0xc72   : > { %v8643_v16 = vadd.f32 %v15038_v60, %v8630_v29  ;;  %v12244_v60 = vld [vmem:[%s15434_s6 + $0x354] sm:$0xf]  ;;  %v11498_v29 = vld [vmem:[%s15434_s6 + $0x6b8] sm:$0xf0]  ;;  %v12234_v21 = vld [vmem:[%s15434_s6 + $0x304] sm:$0xf] }
 0xc73   : > { %8910 = vmatpush.bf16.msrb.mxu3 %v11245_v12  ;;  %v11146_v12 = vld [vmem:[%s15434_s6 + $0x3f8] sm:$0xf0]  ;;  %v11069_v23 = vor.u32 %v12244_v60, %v11066_v39  ;;  %v12334_v39 = vld [vmem:[%s15434_s6 + $0x624] sm:$0xf] }
 0xc74   : > { %v11149_v53 = vor.u32 %v12264_v42, %v11146_v12  ;;  %v15137_v44 = vadd.f32 %v8655_v38, %v8643_v16  ;;  %v11509_v38 = vor.u32 %v12354_v58, %v11506_v48  ;;  %v12338_v12 = vld [vmem:[%s15434_s6 + $0x644] sm:$0xf]  ;;  %v12336_v16 = vld [vmem:[%s15434_s6 + $0x634] sm:$0xf]  ;;  %v11026_v58 = vld [vmem:[%s15434_s6 + $0x308] sm:$0xf0] }
 0xc75   : > { %8822 = vmatpush.bf16.msrb.mxu0 %v10773_v59  ;;  %8835 = vmatpush.bf16.msra.mxu2 %v10837_v26  ;;  %v12352_v59 = vld [vmem:[%s15434_s6 + $0x6b4] sm:$0xf]  ;;  %v11445_v46 = vor.u32 %v12338_v12, %v11442_v10  ;;  %v11437_v60 = vor.u32 %v12336_v16, %v11434_v24  ;;  %v11418_v1 = vld [vmem:[%s15434_s6 + $0x618] sm:$0xf0]  ;;  %v12346_v17 = vld [vmem:[%s15434_s6 + $0x684] sm:$0xf] }
 0xc76   : > { %v12332_v48 = vld [vmem:[%s15434_s6 + $0x614] sm:$0xf]  ;;  %v11786_v12 = vld [vmem:[%s15434_s6 + $0x8f8] sm:$0xf0]  ;;  %v11330_v24 = vld [vmem:[%s15434_s6 + $0x568] sm:$0xf0] }
 0xc77   : > { %8911 = vmatpush.bf16.msrb.mxu3 %v11237_v51  ;;  %v11074_v51 = vld [vmem:[%s15434_s6 + $0x368] sm:$0xf0]  ;;  %v8631_v33 = vpop.f32.mrf.mxu2  ;;  %v12312_v10 = vld [vmem:[%s15434_s6 + $0x574] sm:$0xf] }
 0xc78   : > { %v11077_v57 = vor.u32 %v12246_v2, %v11074_v51  ;;  %8823 = vmatmul.bf16.vlgmr.msrb.gmra.mxu0 %v14551_v40  ;;  %8836 = vmatmul.bf16.vlgmr.msra.gmra.mxu2 %v14698_v5  ;;  %v11133_v40 = vor.u32 %v12260_v7, %v11130_v37  ;;  %v12258_v5 = vld [vmem:[%s15434_s6 + $0x3c4] sm:$0xf]  ;;  %v11050_v2 = vld [vmem:[%s15434_s6 + $0x338] sm:$0xf0]  ;;  %v11501_v51 = vor.u32 %v12352_v59, %v11498_v29  ;;  %v12236_v37 = vld [vmem:[%s15434_s6 + $0x314] sm:$0xf] }
 0xc79   : > { %8867 = vmatpush.bf16.msra.mxu0 %v11085_v32  ;;  %8880 = vmatpush.bf16.msrb.mxu2 %v11149_v53  ;;  %v12240_v32 = vld [vmem:[%s15434_s6 + $0x334] sm:$0xf]  ;;  %v11114_v53 = vld [vmem:[%s15434_s6 + $0x3b8] sm:$0xf0]  ;;  %v11429_v33 = vor.u32 %v12334_v39, %v11426_v27  ;;  %v12406_v27 = vld [vmem:[%s15434_s6 + $0x864] sm:$0xf] }
 0xc7a   : > { %v11053_v3 = vor.u32 %v12240_v32, %v11050_v2  ;;  %v11117_v25 = vor.u32 %v12256_v61, %v11114_v53  ;;  %v11338_v59 = vld [vmem:[%s15434_s6 + $0x578] sm:$0xf0]  ;;  %v11029_v61 = vor.u32 %v12234_v21, %v11026_v58  ;;  %v11410_v53 = vld [vmem:[%s15434_s6 + $0x608] sm:$0xf0]  ;;  %v12404_v58 = vld [vmem:[%s15434_s6 + $0x854] sm:$0xf] }
 0xc7b   : > { %8912 = vmatpush.bf16.msrb.mxu3 %v11229_v19  ;;  %v8618_v19 = vpop.f32.mrf.mxu0  ;;  %v11402_v32 = vld [vmem:[%s15434_s6 + $0x5f8] sm:$0xf0]  ;;  %v11341_v16 = vor.u32 %v12312_v10, %v11338_v59  ;;  %v12402_v10 = vld [vmem:[%s15434_s6 + $0x844] sm:$0xf]  ;;  %v11698_v59 = vld [vmem:[%s15434_s6 + $0x848] sm:$0xf0] }
 0xc7d   : > { %8868 = vmatpush.bf16.msra.mxu0 %v11077_v57  ;;  %8881 = vmatpush.bf16.msrb.mxu2 %v11141_v18  ;;  %v11042_v57 = vld [vmem:[%s15434_s6 + $0x328] sm:$0xf0]  ;;  %v11493_v18 = vor.u32 %v12350_v28, %v11490_v45  ;;  %v12408_v28 = vld [vmem:[%s15434_s6 + $0x874] sm:$0xf] }
 0xc7f   : > { %8913 = vmatpush.bf16.msrb.mxu3 %v11221_v14  ;;  %v8552_v14 = vperm.slane %v15086_v22, 1  ;;  %v11122_v22 = vld [vmem:[%s15434_s6 + $0x3c8] sm:$0xf0] }
 0xc80   : > { %v11125_v26 = vor.u32 %v12258_v5, %v11122_v22  ;;  %v12250_v22 = vld [vmem:[%s15434_s6 + $0x384] sm:$0xf] }
 0xc81   : > { %8869 = vmatpush.bf16.msra.mxu0 %v11069_v23  ;;  %8882 = vmatpush.bf16.msrb.mxu2 %v11133_v40  ;;  %v11485_v23 = vor.u32 %v12348_v31, %v11482_v9  ;;  %v11714_v31 = vld [vmem:[%s15434_s6 + $0x868] sm:$0xf0] }
 0xc82   : > { %8914 = vmatmul.bf16.vlgmr.msrb.gmra.mxu3 %v15006_v20  ;;  %v11461_v20 = vor.u32 %v12342_v35, %v11458_v52  ;;  %v12254_v35 = vld [vmem:[%s15434_s6 + $0x3a4] sm:$0xf]  ;;  %v11106_v52 = vld [vmem:[%s15434_s6 + $0x3a8] sm:$0xf0] }
 0xc83   : > { %8958 = vmatpush.bf16.msra.mxu3 %v11533_v36  ;;  %v8798_v36 = vpop.f32.mrf.mxu1  ;;  %v11109_v7 = vor.u32 %v12254_v35, %v11106_v52  ;;  %v12326_v35 = vld [vmem:[%s15434_s6 + $0x5e4] sm:$0xf]  ;;  %v11394_v52 = vld [vmem:[%s15434_s6 + $0x5e8] sm:$0xf0] }
 0xc84   : > { %8946 = vmatpush.bf16.msra.mxu1 %v11461_v20  ;;  %v15158_v42 = vadd.f32 %v8798_v36, %v8552_v14  ;;  %v12252_v14 = vld [vmem:[%s15434_s6 + $0x394] sm:$0xf]  ;;  %v11421_v36 = vor.u32 %v12332_v48, %v11418_v1  ;;  %v11397_v9 = vor.u32 %v12326_v35, %v11394_v52  ;;  %v11762_v1 = vld [vmem:[%s15434_s6 + $0x8c8] sm:$0xf0]  ;;  %v12318_v35 = vld [vmem:[%s15434_s6 + $0x5a4] sm:$0xf] }
 0xc85   : > { %8870 = vmatpush.bf16.msra.mxu0 %v11061_v4  ;;  %8883 = vmatpush.bf16.msrb.mxu2 %v11125_v26  ;;  %v11101_v5 = vor.u32 %v12252_v14, %v11098_v41  ;;  %v11090_v4 = vld [vmem:[%s15434_s6 + $0x388] sm:$0xf0]  ;;  %v12328_v26 = vld [vmem:[%s15434_s6 + $0x5f4] sm:$0xf]  ;;  %v11386_v14 = vld [vmem:[%s15434_s6 + $0x5d8] sm:$0xf0]  ;;  %v11717_v41 = vor.u32 %v12406_v27, %v11714_v31 }
 0xc86   : > { %v11405_v45 = vor.u32 %v12328_v26, %v11402_v32  ;;  %v12416_v26 = vld [vmem:[%s15434_s6 + $0x8b4] sm:$0xf]  ;;  %v11754_v32 = vld [vmem:[%s15434_s6 + $0x8b8] sm:$0xf0]  ;;  %v11362_v52 = vld [vmem:[%s15434_s6 + $0x5a8] sm:$0xf0] }
 0xc87   : > { %8959 = vmatpush.bf16.msra.mxu3 %v11525_v8  ;;  %v12238_v8 = vld [vmem:[%s15434_s6 + $0x324] sm:$0xf]  ;;  %v11682_v31 = vld [vmem:[%s15434_s6 + $0x828] sm:$0xf0] }
 0xc88   : > { %8947 = vmatpush.bf16.msra.mxu1 %v11453_v56  ;;  %v11045_v20 = vor.u32 %v12238_v8, %v11042_v57  ;;  %v11474_v56 = vld [vmem:[%s15434_s6 + $0x688] sm:$0xf0]  ;;  %v11722_v8 = vld [vmem:[%s15434_s6 + $0x878] sm:$0xf0]  ;;  %v12422_v57 = vld [vmem:[%s15434_s6 + $0x8e4] sm:$0xf] }
 0xc89   : > { %8871 = vmatpush.bf16.msra.mxu0 %v11053_v3  ;;  %8884 = vmatpush.bf16.msrb.mxu2 %v11117_v25  ;;  %v11477_v29 = vor.u32 %v12346_v17, %v11474_v56  ;;  %v12310_v3 = vld [vmem:[%s15434_s6 + $0x564] sm:$0xf] }
 0xc8a   : > { %v11333_v39 = vor.u32 %v12310_v3, %v11330_v24  ;;  %v12306_v56 = vld [vmem:[%s15434_s6 + $0x544] sm:$0xf]  ;;  %v12400_v24 = vld [vmem:[%s15434_s6 + $0x834] sm:$0xf] }
 0xc8b   : > { %8960 = vmatpush.bf16.msra.mxu3 %v11517_v55  ;;  %v8800_v19 = vpop.f32.mrf.mxu1  ;;  %v11034_v55 = vld [vmem:[%s15434_s6 + $0x318] sm:$0xf0]  ;;  %v12302_v3 = vld [vmem:[%s15434_s6 + $0x524] sm:$0xf] }
 0xc8c   : > { %8948 = vmatpush.bf16.msra.mxu1 %v11445_v46  ;;  %v11037_v40 = vor.u32 %v12236_v37, %v11034_v55  ;;  %v12330_v46 = vld [vmem:[%s15434_s6 + $0x604] sm:$0xf]  ;;  %v11725_v19 = vor.u32 %v12408_v28, %v11722_v8  ;;  %v12420_v37 = vld [vmem:[%s15434_s6 + $0x8d4] sm:$0xf]  ;;  %v11770_v55 = vld [vmem:[%s15434_s6 + $0x8d8] sm:$0xf0] }
 0xc8d   : > { %8872 = vmatpush.bf16.msra.mxu0 %v11045_v20  ;;  %8885 = vmatpush.bf16.msrb.mxu2 %v11109_v7  ;;  %v11413_v25 = vor.u32 %v12330_v46, %v11410_v53  ;;  %v12308_v20 = vld [vmem:[%s15434_s6 + $0x554] sm:$0xf]  ;;  %v11322_v7 = vld [vmem:[%s15434_s6 + $0x558] sm:$0xf0]  ;;  %v11773_v21 = vor.u32 %v12420_v37, %v11770_v55  ;;  %v12398_v27 = vld [vmem:[%s15434_s6 + $0x824] sm:$0xf] }
 0xc8e   : > { %v11325_v48 = vor.u32 %v12308_v20, %v11322_v7  ;;  %v11370_v46 = vld [vmem:[%s15434_s6 + $0x5b8] sm:$0xf0]  ;;  %v12300_v20 = vld [vmem:[%s15434_s6 + $0x514] sm:$0xf] }
 0xc8f   : > { %8961 = vmatpush.bf16.msra.mxu3 %v11509_v38  ;;  %v12424_v38 = vld [vmem:[%s15434_s6 + $0x8f4] sm:$0xf]  ;;  %v11690_v28 = vld [vmem:[%s15434_s6 + $0x838] sm:$0xf0] }
 0xc90   : > { %8949 = vmatpush.bf16.msra.mxu1 %v11437_v60  ;;  %v11789_v2 = vor.u32 %v12424_v38, %v11786_v12  ;;  %v11778_v60 = vld [vmem:[%s15434_s6 + $0x8e8] sm:$0xf0]  ;;  %v11290_v7 = vld [vmem:[%s15434_s6 + $0x518] sm:$0xf0]  ;;  %v12412_v37 = vld [vmem:[%s15434_s6 + $0x894] sm:$0xf] }
 0xc91   : > { %8873 = vmatpush.bf16.msra.mxu0 %v11037_v40  ;;  %8886 = vmatpush.bf16.msrb.mxu2 %v11101_v5  ;;  %v12418_v40 = vld [vmem:[%s15434_s6 + $0x8c4] sm:$0xf]  ;;  %v11314_v5 = vld [vmem:[%s15434_s6 + $0x548] sm:$0xf0]  ;;  %v11738_v55 = vld [vmem:[%s15434_s6 + $0x898] sm:$0xf0] }
 0xc92   : > { %v11765_v38 = vor.u32 %v12418_v40, %v11762_v1  ;;  %v11317_v12 = vor.u32 %v12306_v56, %v11314_v5  ;;  %v11282_v40 = vld [vmem:[%s15434_s6 + $0x508] sm:$0xf0]  ;;  %v12396_v1 = vld [vmem:[%s15434_s6 + $0x814] sm:$0xf]  ;;  %v12314_v5 = vld [vmem:[%s15434_s6 + $0x584] sm:$0xf] }
 0xc93   : > { %8962 = vmatpush.bf16.msra.mxu3 %v11501_v51  ;;  %v11093_v51 = vor.u32 %v12250_v22, %v11090_v4  ;;  %v12322_v22 = vld [vmem:[%s15434_s6 + $0x5c4] sm:$0xf]  ;;  %v12304_v4 = vld [vmem:[%s15434_s6 + $0x534] sm:$0xf] }
 0xc94   : > { %8950 = vmatpush.bf16.msra.mxu1 %v11429_v33  ;;  %v12324_v33 = vld [vmem:[%s15434_s6 + $0x5d4] sm:$0xf] }
 0xc95   : > { %8874 = vmatpush.bf16.msra.mxu0 %v11029_v61  ;;  %8887 = vmatpush.bf16.msrb.mxu2 %v11093_v51  ;;  %v11389_v17 = vor.u32 %v12324_v33, %v11386_v14  ;;  %v11701_v61 = vor.u32 %v12402_v10, %v11698_v59  ;;  %v11757_v51 = vor.u32 %v12416_v26, %v11754_v32  ;;  %v12316_v33 = vld [vmem:[%s15434_s6 + $0x594] sm:$0xf]  ;;  %v11354_v14 = vld [vmem:[%s15434_s6 + $0x598] sm:$0xf0]  ;;  %v12394_v26 = vld [vmem:[%s15434_s6 + $0x804] sm:$0xf] }
 0xc96   : > { %v11357_v56 = vor.u32 %v12316_v33, %v11354_v14  ;;  %v12392_v10 = vld [vmem:[%s15434_s6 + $0x7f4] sm:$0xf]  ;;  %v11658_v59 = vld [vmem:[%s15434_s6 + $0x7f8] sm:$0xf0]  ;;  %v11666_v32 = vld [vmem:[%s15434_s6 + $0x808] sm:$0xf0] }
 0xc97   : > { %8963 = vmatpush.bf16.msra.mxu3 %v11493_v18  ;;  %v11781_v18 = vor.u32 %v12422_v57, %v11778_v60  ;;  %v12414_v57 = vld [vmem:[%s15434_s6 + $0x8a4] sm:$0xf]  ;;  %v11746_v60 = vld [vmem:[%s15434_s6 + $0x8a8] sm:$0xf0] }
 0xc98   : > { %8951 = vmatpush.bf16.msra.mxu1 %v11421_v36  ;;  %8875 = vmatmul.bf16.vlgmr.msra.gmra.mxu0 %v14626_v0  ;;  %v11706_v0 = vld [vmem:[%s15434_s6 + $0x858] sm:$0xf0] }
 0xc99   : > { %8919 = vmatpush.bf16.msrb.mxu0 %v11341_v16  ;;  %8932 = vmatpush.bf16.msra.mxu2 %v11405_v45  ;;  %v11709_v36 = vor.u32 %v12404_v58, %v11706_v0  ;;  %v11741_v58 = vor.u32 %v12412_v37, %v11738_v55  ;;  %v11293_v0 = vor.u32 %v12300_v20, %v11290_v7  ;;  %v11634_v20 = vld [vmem:[%s15434_s6 + $0x7c8] sm:$0xf0]  ;;  %v12384_v37 = vld [vmem:[%s15434_s6 + $0x7b4] sm:$0xf]  ;;  %v11626_v55 = vld [vmem:[%s15434_s6 + $0x7b8] sm:$0xf0] }
 0xc9a   : > { %8888 = vmatmul.bf16.vlgmr.msrb.gmra.mxu2 %v14775_v6  ;;  %v11629_v14 = vor.u32 %v12384_v37, %v11626_v55  ;;  %v9033_v55 = vld [vmem:[%s13045_s20 + $0x20] sm:$0xff] }
 0xc9b   : > { %8964 = vmatpush.bf16.msra.mxu3 %v11485_v23  ;;  %v15217_v23 = vpop.f32.mrf.mxu3 }
 0xc9c   : > { %8952 = vmatpush.bf16.msra.mxu1 %v11413_v25  ;;  %v11298_v25 = vld [vmem:[%s15434_s6 + $0x528] sm:$0xf0] }
 0xc9d   : > { %8920 = vmatpush.bf16.msrb.mxu0 %v11333_v39  ;;  %8933 = vmatpush.bf16.msra.mxu2 %v11397_v9  ;;  %v11301_v39 = vor.u32 %v12302_v3, %v11298_v25  ;;  %v11365_v9 = vor.u32 %v12318_v35, %v11362_v52  ;;  %v11650_v3 = vld [vmem:[%s15434_s6 + $0x7e8] sm:$0xf0]  ;;  %v11642_v35 = vld [vmem:[%s15434_s6 + $0x7d8] sm:$0xf0] }
 0xc9e   : > { %v15227_v6 = vpop.f32.mrf.mxu1 }
 0xc9f   : > { %8965 = vmatpush.bf16.msra.mxu3 %v11477_v29  ;;  %8953 = vmatmul.bf16.vlgmr.msra.gmra.mxu1 %v15033_v49  ;;  %v11306_v49 = vld [vmem:[%s15434_s6 + $0x538] sm:$0xf0] }
 0xca0   : > { %8997 = vmatpush.bf16.msrb.mxu1 %v11725_v19  ;;  %v11309_v16 = vor.u32 %v12304_v4, %v11306_v49  ;;  %v11693_v19 = vor.u32 %v12400_v24, %v11690_v28  ;;  %v11669_v24 = vor.u32 %v12394_v26, %v11666_v32  ;;  %v11538_v26 = vld [vmem:[%s15434_s6 + $0x708] sm:$0xf0] }
 0xca1   : > { %8921 = vmatpush.bf16.msrb.mxu0 %v11325_v48  ;;  %8934 = vmatpush.bf16.msra.mxu2 %v11389_v17  ;;  %v11674_v17 = vld [vmem:[%s15434_s6 + $0x818] sm:$0xf0] }
 0xca2   : > { %8966 = vmatmul.bf16.vlgmr.msra.gmra.mxu3 %v15035_v15  ;;  %v11378_v15 = vld [vmem:[%s15434_s6 + $0x5c8] sm:$0xf0]  ;;  %v11677_v4 = vor.u32 %v12396_v1, %v11674_v17 }
 0xca3   : > { %9010 = vmatpush.bf16.msrb.mxu3 %v11789_v2  ;;  %v11381_v29 = vor.u32 %v12322_v22, %v11378_v15  ;;  %v12320_v2 = vld [vmem:[%s15434_s6 + $0x5b4] sm:$0xf]  ;;  %v8709_v53 = vpop.f32.mrf.mxu3  ;;  %v12410_v22 = vld [vmem:[%s15434_s6 + $0x884] sm:$0xf]  ;;  %v11730_v15 = vld [vmem:[%s15434_s6 + $0x888] sm:$0xf0] }
 0xca4   : > { %8998 = vmatpush.bf16.msrb.mxu1 %v11717_v41  ;;  %v11373_v45 = vor.u32 %v12320_v2, %v11370_v46  ;;  %v11685_v41 = vor.u32 %v12398_v27, %v11682_v31  ;;  %v12374_v53 = vld [vmem:[%s15434_s6 + $0x764] sm:$0xf]  ;;  %v12368_v31 = vld [vmem:[%s15434_s6 + $0x734] sm:$0xf]  ;;  %v11618_v1 = vld [vmem:[%s15434_s6 + $0x7a8] sm:$0xf0] }
 0xca5   : > { %8922 = vmatpush.bf16.msrb.mxu0 %v11317_v12  ;;  %8935 = vmatpush.bf16.msra.mxu2 %v11381_v29  ;;  %v11594_v12 = vld [vmem:[%s15434_s6 + $0x778] sm:$0xf0]  ;;  %v11733_v29 = vor.u32 %v12410_v22, %v11730_v15 }
 0xca6   : > { %v8852_v8 = vpop.f32.mrf.mxu1 }
 0xca7   : > { %9011 = vmatpush.bf16.msrb.mxu3 %v11781_v18  ;;  %v11749_v18 = vor.u32 %v12414_v57, %v11746_v60  ;;  %v12372_v8 = vld [vmem:[%s15434_s6 + $0x754] sm:$0xf]  ;;  %v11578_v57 = vld [vmem:[%s15434_s6 + $0x758] sm:$0xf0] }
 0xca8   : > { %8999 = vmatpush.bf16.msrb.mxu1 %v11709_v36  ;;  %v11346_v36 = vld [vmem:[%s15434_s6 + $0x588] sm:$0xf0]  ;;  %v12388_v60 = vld [vmem:[%s15434_s6 + $0x7d4] sm:$0xf]  ;;  %v11581_v52 = vor.u32 %v12372_v8, %v11578_v57 }
 0xca9   : > { %8923 = vmatpush.bf16.msrb.mxu0 %v11309_v16  ;;  %8936 = vmatpush.bf16.msra.mxu2 %v11373_v45  ;;  %v11349_v2 = vor.u32 %v12314_v5, %v11346_v36  ;;  %v12390_v16 = vld [vmem:[%s15434_s6 + $0x7e4] sm:$0xf]  ;;  %v12364_v36 = vld [vmem:[%s15434_s6 + $0x714] sm:$0xf] }
 0xcaa   : > { %v11653_v25 = vor.u32 %v12390_v16, %v11650_v3  ;;  %v9043_v16 = vld [vmem:[%s13045_s20 + $0x70] sm:$0xff] }
 0xcab   : > { %9012 = vmatpush.bf16.msrb.mxu3 %v11773_v21  ;;  %v12298_v21 = vld [vmem:[%s15434_s6 + $0x504] sm:$0xf]  ;;  %v15257_v48 = vpop.f32.mrf.mxu3  ;;  %v9039_v57 = vld [vmem:[%s13045_s20 + $0x50] sm:$0xff] }
 0xcac   : > { %9000 = vmatpush.bf16.msrb.mxu1 %v11701_v61  ;;  %v11285_v49 = vor.u32 %v12298_v21, %v11282_v40  ;;  %v11661_v61 = vor.u32 %v12392_v10, %v11658_v59  ;;  %v11554_v21 = vld [vmem:[%s15434_s6 + $0x728] sm:$0xf0]  ;;  %v12382_v40 = vld [vmem:[%s15434_s6 + $0x7a4] sm:$0xf]  ;;  %v11610_v10 = vld [vmem:[%s15434_s6 + $0x798] sm:$0xf0] }
 0xcad   : > { %8924 = vmatpush.bf16.msrb.mxu0 %v11301_v39  ;;  %8937 = vmatpush.bf16.msra.mxu2 %v11365_v9  ;;  %v11570_v39 = vld [vmem:[%s15434_s6 + $0x748] sm:$0xf0]  ;;  %v11562_v9 = vld [vmem:[%s15434_s6 + $0x738] sm:$0xf0]  ;;  %v11621_v15 = vor.u32 %v12382_v40, %v11618_v1 }
 0xcae   : > { %v11565_v33 = vor.u32 %v12368_v31, %v11562_v9  ;;  %v12803_v31 = vld [vmem:[%s15416_s12] sm:$0x3]  ;;  %s12818_s12 = sshra.s32 %s9117_s8, 4  ;;  %s12819_s12 = int_to_ptr.hbm [resolvable:$true] %s12818_s12 }
 0xcaf   : > { %9013 = vmatpush.bf16.msrb.mxu3 %v11765_v38  ;;  %v12376_v38 = vld [vmem:[%s15434_s6 + $0x774] sm:$0xf]  ;;  %v6684_v9 = vperm.slane %v12803_v31, 0  ;;  %s12820_s13 = scalar_lea.hbm %s12819_s12, 1  ;;  %p12825_p0 = scmp.lt.s32.totalorder %s12819_s12, %s13055_s4 }
 0xcb0   : > { %9001 = vmatpush.bf16.msrb.mxu1 %v11693_v19  ;;  %v11597_v46 = vor.u32 %v12376_v38, %v11594_v12  ;;  %v11645_v19 = vor.u32 %v12388_v60, %v11642_v35  ;;  %v11546_v38 = vld [vmem:[%s15434_s6 + $0x718] sm:$0xf0]  ;;  %p12821_p11 = scmp.ne.s32.totalorder %s12819_s12, %s12820_s13  ;;  %p12826_p1 = scmp.lt.s32.totalorder %s12824_s0, %s12820_s13 }
 0xcb1   : > { %8925 = vmatpush.bf16.msrb.mxu0 %v11293_v0  ;;  %8938 = vmatpush.bf16.msra.mxu2 %v11357_v56  ;;  %v11549_v59 = vor.u32 %v12364_v36, %v11546_v38 }
 0xcb2   : > { %p12822_p12 = pnand %p12821_p11, %p13095_p5  ;;  %p12827_p2 = por %p12826_p1, %p12825_p0 }
 0xcb3   : > { %9014 = vmatpush.bf16.msrb.mxu3 %v11757_v51  ;;  %v11586_v51 = vld [vmem:[%s15434_s6 + $0x768] sm:$0xf0]  ;;  %v8761_v28 = vpop.f32.mrf.mxu3 }
 0xcb4   : > { %9002 = vmatpush.bf16.msrb.mxu1 %v11685_v41  ;;  %v11589_v45 = vor.u32 %v12374_v53, %v11586_v51  ;;  %v12366_v41 = vld [vmem:[%s15434_s6 + $0x724] sm:$0xf]  ;;  %v9044_v51 = vld [vmem:[%s13045_s20 + $0x78] sm:$0xff]  ;;  %p12823_p13 = pneg %p12822_p12 }
 0xcb5   : > { %8926 = vmatpush.bf16.msrb.mxu0 %v11285_v49  ;;  %8939 = vmatpush.bf16.msra.mxu2 %v11349_v2  ;;  %v12362_v49 = vld [vmem:[%s15434_s6 + $0x704] sm:$0xf] }
 0xcb6   : > { %v12378_v2 = vld [vmem:[%s15434_s6 + $0x784] sm:$0xf]  ;;  %v11541_v53 = vor.u32 %v12362_v49, %v11538_v26  ;;  %v9060_v26 = vld [vmem:[%s13045_s20 + $0xf8] sm:$0xff]  ;;  %p12828_p3 = pnand %p12827_p2, %p12823_p13 }
 0xcb7   : > { %9015 = vmatpush.bf16.msrb.mxu3 %v11749_v18  ;;  %v12370_v18 = vld [vmem:[%s15434_s6 + $0x744] sm:$0xf] }
 0xcb8   : > { %9003 = vmatpush.bf16.msrb.mxu1 %v11677_v4  ;;  %8927 = vmatmul.bf16.vlgmr.msrb.gmra.mxu0 %v14703_v63  ;;  %v8668_v63 = vpop.f32.mrf.mxu0  ;;  %v11573_v27 = vor.u32 %v12370_v18, %v11570_v39  ;;  %v12380_v4 = vld [vmem:[%s15434_s6 + $0x794] sm:$0xf]  ;;  %v9036_v18 = vld [vmem:[%s13045_s20 + $0x38] sm:$0xff] }
 0xcb9   : > { %8971 = vmatpush.bf16.msra.mxu0 %v11597_v46  ;;  %8984 = vmatpush.bf16.msrb.mxu2 %v11661_v61  ;;  %v11602_v46 = vld [vmem:[%s15434_s6 + $0x788] sm:$0xf0]  ;;  %v9035_v39 = vld [vmem:[%s13045_s20 + $0x30] sm:$0xff] }
 0xcba   : > { %8940 = vmatmul.bf16.vlgmr.msra.gmra.mxu2 %v14870_v54 }
 0xcbb   : > { %9016 = vmatpush.bf16.msrb.mxu3 %v11741_v58  ;;  %v8681_v0 = vpop.f32.mrf.mxu2 }
 0xcbc   : > { %9004 = vmatpush.bf16.msrb.mxu1 %v11669_v24  ;;  %v9042_v24 = vld [vmem:[%s13045_s20 + $0x68] sm:$0xff] }
 0xcbd   : > { %8972 = vmatpush.bf16.msra.mxu0 %v11589_v45  ;;  %8985 = vmatpush.bf16.msrb.mxu2 %v11653_v25  ;;  %v9041_v45 = vld [vmem:[%s13045_s20 + $0x60] sm:$0xff]  ;;  %v9040_v25 = vld [vmem:[%s13045_s20 + $0x58] sm:$0xff] }
 0xcbe   : > { %v15290_v7 = vpop.f32.mrf.mxu1 }
 0xcbf   : > { %9017 = vmatpush.bf16.msrb.mxu3 %v11733_v29  ;;  %9005 = vmatmul.bf16.vlgmr.msrb.gmra.mxu1 %v15069_v13  ;;  %v8669_v13 = vadd.f32 %v8668_v63, %v15137_v44  ;;  %v11557_v44 = vor.u32 %v12366_v41, %v11554_v21  ;;  %v11613_v29 = vor.u32 %v12380_v4, %v11610_v10  ;;  %v9034_v63 = vld [vmem:[%s13045_s20 + $0x28] sm:$0xff] }
 0xcc0   : > { %v8670_v5 = vpop.f32.mrf.mxu0  ;;  %v9030_v21 = vld [vmem:[%s13045_s20 + $0x8] sm:$0xff] }
 0xcc1   : > { %8973 = vmatpush.bf16.msra.mxu0 %v11581_v52  ;;  %8986 = vmatpush.bf16.msrb.mxu2 %v11645_v19  ;;  %v8682_v56 = vadd.f32 %v8681_v0, %v8669_v13  ;;  %v9038_v52 = vld [vmem:[%s13045_s20 + $0x48] sm:$0xff]  ;;  %v9037_v19 = vld [vmem:[%s13045_s20 + $0x40] sm:$0xff]  ;;  %v6706_v13 = vadd.f32 %v14991_v30, %v6684_v9 }
 0xcc2   : > { %9018 = vmatmul.bf16.vlgmr.msrb.gmra.mxu3 %v15071_v43  ;;  %v12386_v43 = vld [vmem:[%s15434_s6 + $0x7c4] sm:$0xf]  ;;  %s9114_s6 = sshll.u32 %s894_s3, 4  ;;  %s9115_s6 = int_to_ptr.vmem [resolvable:$true] %s9114_s6 }
 0xcc3   : > { %v11637_v54 = vor.u32 %v12386_v43, %v11634_v20  ;;  %v8695_v22 = vadd.f32 %v15075_v47, %v8682_v56  ;;  %v8683_v32 = vpop.f32.mrf.mxu2  ;;  %v9029_v0 = vld [vmem:[%s13045_s20] sm:$0xff] }
 0xcc5   : > { %8974 = vmatpush.bf16.msra.mxu0 %v11573_v27  ;;  %8987 = vmatpush.bf16.msrb.mxu2 %v11637_v54  ;;  %v8811_v58 = vpop.f32.mrf.mxu3 }
 0xcc6   : > { %v15300_v17 = vadd.f32 %v8811_v58, %v15158_v42  ;;  %v8904_v12 = vpop.f32.mrf.mxu1  ;;  %v8708_v42 = vadd.f32 %v15217_v23, %v8695_v22  ;;  %v11605_v23 = vor.u32 %v12378_v2, %v11602_v46  ;;  %v9058_v2 = vld [vmem:[%s13045_s20 + $0xe8] sm:$0xff] }
 0xcc8   : > { %v8720_v61 = vpop.f32.mrf.mxu0 }
 0xcc9   : > { %8975 = vmatpush.bf16.msra.mxu0 %v11565_v33  ;;  %8988 = vmatpush.bf16.msrb.mxu2 %v11629_v14  ;;  %v8721_v8 = vadd.f32 %v8720_v61, %v8708_v42  ;;  %v9032_v33 = vld [vmem:[%s13045_s20 + $0x18] sm:$0xff]  ;;  %v9031_v14 = vld [vmem:[%s13045_s20 + $0x10] sm:$0xff]  ;;  %v9057_v61 = vld [vmem:[%s13045_s20 + $0xe0] sm:$0xff] }
 0xccb   : > { %v8733_v3 = vpop.f32.mrf.mxu2 }
 0xccc   : > { %v8734_v35 = vadd.f32 %v8733_v3, %v8721_v8  ;;  %v9054_v3 = vld [vmem:[%s13045_s20 + $0xc8] sm:$0xff] }
 0xccd   : > { %8976 = vmatpush.bf16.msra.mxu0 %v11557_v44  ;;  %8989 = vmatpush.bf16.msrb.mxu2 %v11621_v15  ;;  %v8813_v47 = vpop.f32.mrf.mxu3  ;;  %v9050_v8 = vld [vmem:[%s13045_s20 + $0xa8] sm:$0xff] }
 0xcce   : > { %v9059_v47 = vld [vmem:[%s13045_s20 + $0xf0] sm:$0xff] }
 0xcd0   : > { %v8722_v28 = vpop.f32.mrf.mxu0 }
 0xcd1   : > { %8977 = vmatpush.bf16.msra.mxu0 %v11549_v59  ;;  %8990 = vmatpush.bf16.msrb.mxu2 %v11613_v29  ;;  %v9051_v28 = vld [vmem:[%s13045_s20 + $0xb0] sm:$0xff] }
 0xcd3   : > { %v8735_v60 = vpop.f32.mrf.mxu2 }
 0xcd4   : > { %v9049_v60 = vld [vmem:[%s13045_s20 + $0xa0] sm:$0xff] }
 0xcd5   : > { %8978 = vmatpush.bf16.msra.mxu0 %v11541_v53  ;;  %8991 = vmatpush.bf16.msrb.mxu2 %v11605_v23  ;;  %v9056_v23 = vld [vmem:[%s13045_s20 + $0xd8] sm:$0xff] }
 0xcd8   : > { %8979 = vmatmul.bf16.vlgmr.msra.gmra.mxu0 %v14784_v34  ;;  %8992 = vmatmul.bf16.vlgmr.msrb.gmra.mxu2 %v14950_v50  ;;  %v8772_v34 = vpop.f32.mrf.mxu0  ;;  %v8747_v50 = vadd.f32 %v15109_v62, %v8734_v35 }
 0xcd9   : > { %9062 = vmatpush.msrb.mxu0 %v9044_v51  ;;  %9082 = vmatpush.msra.mxu2 %v9060_v26 }
 0xcda   : > { %v8760_v20 = vadd.f32 %v15257_v48, %v8747_v50 }
 0xcdb   : > { %9063 = vmatpush.msrb.mxu0 %v9043_v16  ;;  %v8785_v43 = vpop.f32.mrf.mxu2  ;;  %9083 = vmatpush.msra.mxu2 %v9059_v47  ;;  %v9055_v16 = vld [vmem:[%s13045_s20 + $0xd0] sm:$0xff] }
 0xcdc   : > { %v8773_v37 = vadd.f32 %v8772_v34, %v8760_v20 }
 0xcdd   : > { %9064 = vmatpush.msrb.mxu0 %v9042_v24  ;;  %9084 = vmatpush.msra.mxu2 %v9058_v2  ;;  %v9052_v24 = vld [vmem:[%s13045_s20 + $0xb8] sm:$0xff] }
 0xcde   : > { %v8786_v62 = vadd.f32 %v8785_v43, %v8773_v37  ;;  %v9045_v43 = vld [vmem:[%s13045_s20 + $0x80] sm:$0xff] }
 0xcdf   : > { %9065 = vmatpush.msrb.mxu0 %v9041_v45  ;;  %9085 = vmatpush.msra.mxu2 %v9057_v61 }
 0xce0   : > { %v8774_v54 = vpop.f32.mrf.mxu0  ;;  %v9023_v48 = vadd.f32 %v8786_v62, %v6706_v13 }
 0xce1   : > { %9066 = vmatpush.msrb.mxu0 %v9040_v25  ;;  %9086 = vmatpush.msra.mxu2 %v9056_v23 }
 0xce2   : > { %v9025_v40 = vmax.f32 %v9023_v48, 0.0 }
 0xce3   : > { %9067 = vmatpush.msrb.mxu0 %v9039_v57  ;;  %v8787_v41 = vpop.f32.mrf.mxu2  ;;  %9087 = vmatpush.msra.mxu2 %v9055_v16 }
 0xce5   : > { %9068 = vmatpush.msrb.mxu0 %v9038_v52  ;;  %v8863_v27 = vpop.f32.mrf.mxu3  ;;  %9088 = vmatpush.msra.mxu2 %v9054_v3  ;;  %v9048_v52 = vld [vmem:[%s13045_s20 + $0x98] sm:$0xff] }
 0xce7   : > { %9069 = vmatpush.msrb.mxu0 %v9037_v19  ;;  %v9047_v19 = vld [vmem:[%s13045_s20 + $0x90] sm:$0xff] }
 0xce9   : > { %9070 = vmatpush.msrb.mxu0 %v9036_v18  ;;  %v9046_v18 = vld [vmem:[%s13045_s20 + $0x88] sm:$0xff] }
 0xceb   : > { %9071 = vmatpush.msrb.mxu0 %v9035_v39 }
 0xced   : > { %9072 = vmatpush.msrb.mxu0 %v9034_v63  ;;  %v8865_v58 = vpop.f32.mrf.mxu3 }
 0xcee   : > { %v9061_v58 = vld [vmem:[%s13050_s27] sm:$0x1] }
 0xcef   : > { %9073 = vmatpush.msrb.mxu0 %v9033_v55 }
 0xcf1   : > { %9074 = vmatpush.msrb.mxu0 %v9032_v33 }
 0xcf3   : > { %9075 = vmatpush.msrb.mxu0 %v9031_v14 }
 0xcf5   : > { %9076 = vmatpush.msrb.mxu0 %v9030_v21  ;;  %v8824_v1 = vpop.f32.mrf.mxu0 }
 0xcf6   : > { %v8825_v56 = vadd.f32 %v8824_v1, %v15300_v17 }
 0xcf7   : > { %9077 = vmatpush.msrb.mxu0 %v9029_v0 }
 0xcf8   : > { %9078 = vmatmul.f32.vlgmr.msrb.gmra.mxu0 %v9025_v40 }
 0xcfb   : > { %v8837_v44 = vpop.f32.mrf.mxu2 }
 0xcfc   : > { %v8838_v30 = vadd.f32 %v8837_v44, %v8825_v56 }
 0xcfd   : > { %v8826_v22 = vpop.f32.mrf.mxu0 }
 0xcfe   : > { %v8851_v15 = vadd.f32 %v15227_v6, %v8838_v30 }
 0xd00   : > { %v8864_v38 = vadd.f32 %v8863_v27, %v8851_v15 }
 0xd03   : > { %v8839_v12 = vpop.f32.mrf.mxu2 }
 0xd05   : > { %v8915_v5 = vpop.f32.mrf.mxu3 }
 0xd0d   : > { %v8917_v36 = vpop.f32.mrf.mxu3 }
 0xd15   : > { %v8876_v4 = vpop.f32.mrf.mxu0 }
 0xd16   : > { %v8877_v42 = vadd.f32 %v8876_v4, %v8864_v38 }
 0xd1c   : > { %v8954_v10 = vpop.f32.mrf.mxu1 }
 0xd1d   : > { %v8889_v59 = vpop.f32.mrf.mxu2  ;;  %v8878_v17 = vpop.f32.mrf.mxu0 }
 0xd1e   : > { %v8890_v29 = vadd.f32 %v8889_v59, %v8877_v42 }
 0xd20   : > { %v8903_v32 = vadd.f32 %v15290_v7, %v8890_v29  ;;  %v9053_v7 = vld [vmem:[%s13045_s20 + $0xc0] sm:$0xff] }
 0xd21   : > { %9089 = vmatpush.msra.mxu2 %v9053_v7 }
 0xd22   : > { %v8916_v6 = vadd.f32 %v8915_v5, %v8903_v32 }
 0xd23   : > { %9090 = vmatpush.msra.mxu2 %v9052_v24 }
 0xd24   : > { %v8956_v46 = vpop.f32.mrf.mxu1 }
 0xd25   : > { %v8967_v49 = vpop.f32.mrf.mxu3  ;;  %v8891_v53 = vpop.f32.mrf.mxu2  ;;  %9091 = vmatpush.msra.mxu2 %v9051_v28 }
 0xd27   : > { %9092 = vmatpush.msra.mxu2 %v9050_v8 }
 0xd29   : > { %9093 = vmatpush.msra.mxu2 %v9049_v60 }
 0xd2b   : > { %9094 = vmatpush.msra.mxu2 %v9048_v52 }
 0xd2d   : > { %v8969_v51 = vpop.f32.mrf.mxu3  ;;  %9095 = vmatpush.msra.mxu2 %v9047_v19 }
 0xd2f   : > { %9096 = vmatpush.msra.mxu2 %v9046_v18 }
 0xd31   : > { %9097 = vmatpush.msra.mxu2 %v9045_v43 }
 0xd35   : > { %v8928_v45 = vpop.f32.mrf.mxu0 }
 0xd36   : > { %v8929_v63 = vadd.f32 %v8928_v45, %v8916_v6 }
 0xd3c   : > { %v9006_v25 = vpop.f32.mrf.mxu1 }
 0xd3d   : > { %v8941_v35 = vpop.f32.mrf.mxu2  ;;  %v8930_v34 = vpop.f32.mrf.mxu0 }
 0xd3e   : > { %v8942_v27 = vadd.f32 %v8941_v35, %v8929_v63 }
 0xd40   : > { %v8955_v54 = vadd.f32 %v8954_v10, %v8942_v27 }
 0xd42   : > { %v8968_v9 = vadd.f32 %v8967_v49, %v8955_v54 }
 0xd44   : > { %v9008_v50 = vpop.f32.mrf.mxu1 }
 0xd45   : > { %v9019_v57 = vpop.f32.mrf.mxu3  ;;  %v8943_v20 = vpop.f32.mrf.mxu2 }
 0xd4d   : > { %v9021_v39 = vpop.f32.mrf.mxu3 }
 0xd55   : > { %v8980_v31 = vpop.f32.mrf.mxu0 }
 0xd56   : > { %v8981_v37 = vadd.f32 %v8980_v31, %v8968_v9 }
 0xd5b   : > { %v8993_v55 = vpop.f32.mrf.mxu2 }
 0xd5c   : > { %v8994_v62 = vadd.f32 %v8993_v55, %v8981_v37 }
 0xd5d   : > { %v8982_v33 = vpop.f32.mrf.mxu0 }
 0xd5e   : > { %v9007_v13 = vadd.f32 %v9006_v25, %v8994_v62 }
 0xd60   : > { %v9020_v14 = vadd.f32 %v9019_v57, %v9007_v13 }
 0xd62   : > { %v9024_v41 = vadd.f32 %v9020_v14, %v14982_v11 }
 0xd63   : > { %v8995_v48 = vpop.f32.mrf.mxu2 }
 0xd64   : > { %v9026_v21 = vmax.f32 %v9024_v41, 0.0 }
 0xd66   : > { %9098 = vmatmul.f32.vlgmr.msra.gmra.mxu2 %v9026_v21 }
 0xd75   : > { %v9079_v0 = vpop.f32.mrf.mxu0 }
 0xd76   : > { %v9080_v40 = vadd.f32 %v9079_v0, %v9061_v58 }
 0xde9   : > { %v9099_v1 = vpop.f32.mrf.mxu2 }
 0xdea   : > { %v9100_v56 = vadd.f32 %v9099_v1, %v9080_v40 }
 0xdec   : > { %9102 = vst [vmem:[%s894_s3] sm:$0x1] %v9100_v56 }
 0xded   : > { %12831 = shalt.err (!%p12828_p3)
}
 0xdee   : > { %12426 = dma.vmem_to_hbm [thread:$0]  (%p13095_p5), %s9115_s6, 16, %s9117_s8, %s9104_s9  }
 0xdef PF: > { %p12432_p4 = scmp.ge.s32.totalorder %s12866_s15, 2  ;;  %s9128_s3 = sand.u32 1, %s12854_s7  }
 0xdf0   : > { %s9129_s2 = scalar_lea.sflag [#allocation12], %s9128_s3 }
 0xdf1   : > { %p12429_p7 = pnand %p12432_p4, %p13099_p6 }
 0xdf3   : > { %p12430_p8 = pneg %p12429_p7 }
 0xdf5   : > { %12849 = dma.done.wait (%p12430_p8), %s9129_s2, 16  }
 0xdf6   : > { %12851 = vsyncadd (%p12430_p8), %s9129_s2, 4294967280  ;;  %p69_p9 = scmp.ge.s32.totalorder %s13082_s18, 4   ;;  %s15437_s7 = smov %s12858_s10 }
 0xdf7   : > { %s15438_s10 = smov %s12862_s11  ;;  %s15439_s11 = smov %s13093_s26 }
 0xdf8   : > { %s15440_s15 = smov %s13082_s18  ;;  %71 = sbr.rel (!%p69_p9) target bundleno = 60 (0x3c), region = 315 }
 0xdfd   :  { %9134 = vsyncpa [#allocation12], 1 }
 0xdfe   :  { %9136 = vsyncpa [#allocation12 + $0x1], 1 }

</bundles_post_ra>
